<compile_context>
chip_gen: v7x
topology: tpu7x:2x2x1
jax: 0.10.0
libtpu: 0.0.40
codegen_flags: <defaults>
</compile_context>

<pallas_src>
import jax
import jax.numpy as jnp
from jax import lax
from jax.experimental import pallas as pl
from jax.experimental.pallas import tpu as pltpu

LANE = 128             # TPU lane width; channel dims of params/scratch pad to this
_W_DATA = 8            # sublane-aligned column offset where the real image sits
_W_HALO = _W_DATA - 1  # left 1-px halo column
_W_PAD = 16            # extra columns allocated in the halo scratch


def _round_up(x, m):
    return ((x + m - 1) // m) * m


# ----------------------------------------------------------------------------
# Fused SparseBasicBlock kernel factory (one grid step == one sample)
# ----------------------------------------------------------------------------
def _make_block_kernel(*, H, W, Cin, planes, Cp, Cq, stride, eps, has_sc, mm_dtype):
    K = 3
    Ho = (H + 2 - K) // stride + 1
    Wo = (W + 2 - K) // stride + 1
    inv_cnt = 1.0 / float(Ho * Wo * planes)   # GroupNorm divides by the REAL count

    def zero_halo(ref, Hi, Wi, C):
        # Zero only the halo the 3x3 taps actually read (rows 0 / Hi+1, cols
        # _W_HALO and _W_DATA+Wi).  Perimeter cost, done every grid step so it is
        # correct even when the parallel batch axis is split across TensorCores.
        wal = ref.shape[1]
        zrow = jnp.zeros((1, wal, C), jnp.float32)
        ref[0:1, :, :] = zrow
        ref[Hi + 1:Hi + 2, :, :] = zrow
        zcol = jnp.zeros((Hi, 1, C), jnp.float32)
        ref[1:Hi + 1, _W_HALO:_W_HALO + 1, :] = zcol
        ref[1:Hi + 1, _W_DATA + Wi:_W_DATA + Wi + 1, :] = zcol

    def conv3x3(src_ref, w_ref, cin_pad, s):
        # 3x3 conv as 3 accumulated MXU matmuls (K = 3*cin_pad each); no 9x-wide
        # im2col buffer.  kw shifts via pltpu.roll (XLU) on an aligned slab.
        acc = None
        for kh in range(K):
            if s == 1:
                slab = src_ref[kh:kh + Ho, :, :]          # aligned full-width load
                wal = slab.shape[1]
                taps = []
                for kw in range(K):
                    sh = 1 - kw                           # want cols [_W_HALO+kw, ...)
                    rolled = pltpu.roll(slab, sh % wal, 1) if sh != 0 else slab
                    taps.append(rolled[:, _W_DATA:_W_DATA + Wo, :])
            else:
                # Downsampling conv (rare): direct strided ref reads.
                taps = [src_ref[pl.ds(kh, Ho, s), pl.ds(_W_HALO + kw, Wo, s), :]
                        for kw in range(K)]
            patch = jnp.concatenate(taps, axis=-1)        # (Ho, Wo, 3*cin_pad)
            patch = patch.reshape(Ho * Wo, K * cin_pad).astype(mm_dtype)
            w_kh = w_ref[kh * K * cin_pad:(kh + 1) * K * cin_pad, :]
            part = jnp.dot(patch, w_kh, preferred_element_type=jnp.float32)
            acc = part if acc is None else acc + part
        return acc                                        # (Ho*Wo, Cq) float32

    def groupnorm1(y, gamma, beta):
        # Both moments from the single resident value y; padded channels of y are
        # exactly 0 and gamma/beta are 0 there, so stats (divided by the real count)
        # and padded outputs are unchanged.
        # TODO(synk): switch to two-pass variance if activations get large in magnitude.
        s1 = jnp.sum(y, axis=0, keepdims=True)            # (1, Cq)
        s2 = jnp.sum(y * y, axis=0, keepdims=True)        # (1, Cq)
        mean = jnp.sum(s1) * inv_cnt
        var = jnp.maximum(jnp.sum(s2) * inv_cnt - mean * mean, 0.0)
        return (y - mean) * (lax.rsqrt(var + eps) * gamma) + beta

    def kernel(*refs):
        if has_sc:
            x_ref, w1_ref, w2_ref, wsc_ref, gn_ref, o_ref, xq1, xq2 = refs
        else:
            x_ref, w1_ref, w2_ref, gn_ref, o_ref, xq1, xq2 = refs
            wsc_ref = None

        gn = gn_ref[...]                                  # (8, Cq): all gammas/betas

        # stage the (real-Cin) input into the zero-halo scratch
        zero_halo(xq1, H, W, Cp)
        xq1[1:H + 1, _W_DATA:_W_DATA + W, :Cin] = x_ref[0].astype(jnp.float32)
        if Cp > Cin:   # padded channels must be exactly 0 (read by conv / shortcut)
            xq1[1:H + 1, _W_DATA:_W_DATA + W, Cin:] = jnp.zeros(
                (H, W, Cp - Cin), jnp.float32)

        # conv1 -> GN1 -> ReLU (all resident in VMEM)
        y1 = conv3x3(xq1, w1_ref, Cp, stride)
        h = jnp.maximum(groupnorm1(y1, gn[0:1, :], gn[1:2, :]), 0.0)

        # conv2 (stride 1) -> GN2
        zero_halo(xq2, Ho, Wo, Cq)
        xq2[1:Ho + 1, _W_DATA:_W_DATA + Wo, :] = h.reshape(Ho, Wo, Cq)
        y2 = conv3x3(xq2, w2_ref, Cq, 1)
        z = groupnorm1(y2, gn[2:3, :], gn[3:4, :])

        # shortcut: option 'B' (1x1 sparse conv + GN) or identity
        if stride > 1:
            x_int = xq1[pl.ds(1, Ho, stride), pl.ds(_W_DATA, Wo, stride), :]
        else:
            x_int = xq1[1:H + 1, _W_DATA:_W_DATA + W, :]
        x_int = x_int.reshape(Ho * Wo, Cp)
        if has_sc:
            sc = jnp.dot(x_int.astype(mm_dtype), wsc_ref[...],
                         preferred_element_type=jnp.float32)
            sc = groupnorm1(sc, gn[4:5, :], gn[5:6, :])
        else:
            sc = x_int                                    # identity: Cp == Cq

        out = jnp.maximum(z + sc, 0.0)
        o_ref[...] = out.reshape(1, Ho, Wo, Cq).astype(o_ref.dtype)  # lane-dense store

    return kernel, Ho, Wo


# ----------------------------------------------------------------------------
# Parameter preparation (plain JAX, runs once per call on tiny tensors)
# ----------------------------------------------------------------------------
def _prep_conv_weight(w_oihw, cin_pad, cout_pad, dtype):
    """OIHW -> zero-padded HWIO -> (Kh*Kw*cin_pad, cout_pad), cast once host-side."""
    cout, cin, kh, kw = w_oihw.shape
    w = jnp.transpose(w_oihw.astype(jnp.float32), (2, 3, 1, 0))
    w = jnp.pad(w, ((0, 0), (0, 0), (0, cin_pad - cin), (0, cout_pad - cout)))
    return w.reshape(kh * kw * cin_pad, cout_pad).astype(dtype)


def _pack_gn_params(params, cq, has_sc):
    """All gamma/beta vectors in one (8, Cq) array -> one tiny DMA per grid step.
    Rows: g1, b1, g2, b2, gsc, bsc, 0, 0; padded channels stay exactly zero."""
    rows = [params["g1"], params["b1"], params["g2"], params["b2"]]
    if has_sc:
        rows += [params["gsc"], params["bsc"]]
    gn = jnp.zeros((8, cq), jnp.float32)
    for i, r in enumerate(rows):
        gn = gn.at[i, :r.shape[0]].set(r.astype(jnp.float32))
    return gn


# ----------------------------------------------------------------------------
# Forward wrappers
# ----------------------------------------------------------------------------
def sparse_basic_block_apply(x_nhwc, params, *, stride, eps=1e-5,
                             mxu_dtype=jnp.bfloat16):
    """Fused SparseBasicBlock on NHWC input with its REAL channel count.  Returns
    NHWC output with channels zero-padded to a lane multiple (Cq) so blocks can be
    chained without per-block slice/transpose HBM round trips."""
    N, H, W, Cin = x_nhwc.shape
    planes = params["g1"].shape[0]
    Cp = _round_up(Cin, LANE)
    Cq = _round_up(planes, LANE)
    has_sc = params.get("wsc_oihw", None) is not None
    if not has_sc:
        assert stride == 1 and Cin == planes, "identity shortcut needs matching shapes"

    kernel, Ho, Wo = _make_block_kernel(
        H=H, W=W, Cin=Cin, planes=planes, Cp=Cp, Cq=Cq, stride=stride, eps=eps,
        has_sc=has_sc, mm_dtype=mxu_dtype)

    w1 = _prep_conv_weight(params["w1_oihw"], Cp, Cq, mxu_dtype)     # (9*Cp, Cq)
    w2 = _prep_conv_weight(params["w2_oihw"], Cq, Cq, mxu_dtype)     # (9*Cq, Cq)
    gn = _pack_gn_params(params, Cq, has_sc)                         # (8, Cq)

    ins = [x_nhwc, w1, w2]
    in_specs = [
        pl.BlockSpec((1, H, W, Cin), lambda n: (n, 0, 0, 0)),
        pl.BlockSpec(w1.shape, lambda n: (0, 0)),
        pl.BlockSpec(w2.shape, lambda n: (0, 0)),
    ]
    if has_sc:
        wsc = _prep_conv_weight(params["wsc_oihw"], Cp, Cq, mxu_dtype)  # (Cp, Cq)
        ins.append(wsc)
        in_specs.append(pl.BlockSpec(wsc.shape, lambda n: (0, 0)))
    ins.append(gn)
    in_specs.append(pl.BlockSpec((8, Cq), lambda n: (0, 0)))

    wbytes = jnp.dtype(mxu_dtype).itemsize
    flops = 2 * N * Ho * Wo * (9 * Cp * Cq + 9 * Cq * Cq + (Cp * Cq if has_sc else 0))
    bytes_accessed = ((x_nhwc.size + N * Ho * Wo * Cq + gn.size) * 4
                      + (w1.size + w2.size + (wsc.size if has_sc else 0)) * wbytes)
    cost = pl.CostEstimate(flops=int(flops),
                           transcendentals=int(N * (3 if has_sc else 2)),
                           bytes_accessed=int(bytes_accessed))

    return pl.pallas_call(
        kernel,
        out_shape=jax.ShapeDtypeStruct((N, Ho, Wo, Cq), x_nhwc.dtype),
        grid=(N,),
        in_specs=in_specs,
        out_specs=pl.BlockSpec((1, Ho, Wo, Cq), lambda n: (n, 0, 0, 0)),
        scratch_shapes=[
            pltpu.VMEM((H + 2, W + _W_PAD, Cp), jnp.float32),    # conv1 input + halo
            pltpu.VMEM((Ho + 2, Wo + _W_PAD, Cq), jnp.float32),  # conv2 input + halo
        ],
        compiler_params=pltpu.CompilerParams(
            dimension_semantics=("parallel",),
            vmem_limit_bytes=48 * 1024 * 1024,
        ),
        cost_estimate=cost,
    )(*ins)


def sparse_basic_block_forward(x_nchw, params, *, stride, eps=1e-5,
                               mxu_dtype=jnp.bfloat16):
    """NCHW -> NCHW wrapper matching the PyTorch module interface."""
    planes = params["g1"].shape[0]
    x_nhwc = jnp.transpose(x_nchw, (0, 2, 3, 1))
    out = sparse_basic_block_apply(x_nhwc, params, stride=stride, eps=eps,
                                   mxu_dtype=mxu_dtype)
    return jnp.transpose(out[..., :planes], (0, 3, 1, 2))


# ----------------------------------------------------------------------------
# Parameter construction (deterministic, mirrors SparseConv2d semantics)
# ----------------------------------------------------------------------------
def make_random_subsets_mask(key, out_ch, in_ch, k, num_fixed):
    """'random_subsets': zero `num_fixed` random weight positions per out channel."""
    flat = in_ch * k * k
    num_fixed = min(num_fixed, flat)
    mask = jnp.ones((out_ch, flat), jnp.float32)
    for o in range(out_ch):
        perm = jax.random.permutation(jax.random.fold_in(key, o), flat)[:num_fixed]
        mask = mask.at[o, perm].set(0.0)
    return mask.reshape(out_ch, in_ch, k, k)


def make_sparse_conv_weight(key, in_ch, out_ch, k, num_fixed):
    """Kaiming-uniform-style init, then apply the sparsity mask (mask_constant=0)."""
    kw_, km = jax.random.split(key)
    fan_in = in_ch * k * k
    bound = 1.0 / jnp.sqrt(jnp.float32(fan_in))
    w = jax.random.uniform(kw_, (out_ch, in_ch, k, k), jnp.float32, -bound, bound)
    return w * make_random_subsets_mask(km, out_ch, in_ch, k, num_fixed)


def init_sparse_basic_block(key, in_planes, planes, stride, num_fixed=6):
    keys = jax.random.split(key, 8)
    p = {}
    p["w1_oihw"] = make_sparse_conv_weight(keys[0], in_planes, planes, 3, num_fixed)
    p["w2_oihw"] = make_sparse_conv_weight(keys[1], planes, planes, 3, num_fixed)
    p["g1"] = 1.0 + 0.1 * jax.random.normal(keys[2], (planes,), jnp.float32)
    p["b1"] = 0.1 * jax.random.normal(keys[3], (planes,), jnp.float32)
    p["g2"] = 1.0 + 0.1 * jax.random.normal(keys[4], (planes,), jnp.float32)
    p["b2"] = 0.1 * jax.random.normal(keys[5], (planes,), jnp.float32)
    if stride != 1 or in_planes != planes:   # option 'B' downsample shortcut
        p["wsc_oihw"] = make_sparse_conv_weight(
            keys[6], in_planes, planes, 1, min(num_fixed, in_planes))
        p["gsc"] = 1.0 + 0.1 * jax.random.normal(keys[7], (planes,), jnp.float32)
        p["bsc"] = 0.1 * jax.random.normal(
            jax.random.fold_in(keys[7], 1), (planes,), jnp.float32)
    else:
        p["wsc_oihw"] = None
    return p


# ----------------------------------------------------------------------------
# Pure-JAX reference (NCHW, mirrors the PyTorch forward) for sanity checks
# ----------------------------------------------------------------------------
def _ref_conv(x_nchw, w_oihw, stride, pad):
    return lax.conv_general_dilated(
        x_nchw, w_oihw, (stride, stride), [(pad, pad), (pad, pad)],
        dimension_numbers=("NCHW", "OIHW", "NCHW"))


def _ref_gn1(x_nchw, g, b, eps=1e-5):
    mean = jnp.mean(x_nchw, axis=(1, 2, 3), keepdims=True)
    var = jnp.mean((x_nchw - mean) ** 2, axis=(1, 2, 3), keepdims=True)
    y = (x_nchw - mean) / jnp.sqrt(var + eps)
    return y * g.reshape(1, -1, 1, 1) + b.reshape(1, -1, 1, 1)


def ref_forward(x_nchw, p, stride):
    out = jax.nn.relu(_ref_gn1(_ref_conv(x_nchw, p["w1_oihw"], stride, 1),
                               p["g1"], p["b1"]))
    out = _ref_gn1(_ref_conv(out, p["w2_oihw"], 1, 1), p["g2"], p["b2"])
    if p.get("wsc_oihw", None) is not None:
        sc = _ref_gn1(_ref_conv(x_nchw, p["wsc_oihw"], stride, 0), p["gsc"], p["bsc"])
    else:
        sc = x_nchw
    return jax.nn.relu(out + sc)


# ----------------------------------------------------------------------------
if __name__ == "__main__":
    key = jax.random.PRNGKey(0)
    kx, kp1, kp2, kp3 = jax.random.split(key, 4)

    # Config 1: option-'B' shortcut (1x1 sparse conv + GN), stride 1, 4 -> 8 channels.
    N, Cin, planes, H, W = 2, 4, 8, 16, 16
    x1 = jax.random.normal(kx, (N, Cin, H, W), jnp.float32)          # NCHW
    p1 = init_sparse_basic_block(kp1, Cin, planes, stride=1, num_fixed=6)
    ref1 = jax.block_until_ready(ref_forward(x1, p1, 1))

    out1 = jax.block_until_ready(
        sparse_basic_block_forward(x1, p1, stride=1, mxu_dtype=jnp.float32))
    assert out1.shape == (N, planes, H, W), out1.shape
    err1 = float(jnp.max(jnp.abs(out1 - ref1)))
    assert err1 < 1e-3, f"cfg1 f32 err={err1}"

    out1b = jax.block_until_ready(
        sparse_basic_block_forward(x1, p1, stride=1))                # bf16 MXU default
    err1b = float(jnp.max(jnp.abs(out1b - ref1)))
    assert err1b < 1e-1, f"cfg1 bf16 err={err1b}"                    # looser tol for bf16

    # Config 2: identity shortcut (in_planes == planes, stride == 1).
    x2 = jax.random.normal(jax.random.fold_in(kx, 1), (N, planes, H, W), jnp.float32)
    p2 = init_sparse_basic_block(kp2, planes, planes, stride=1, num_fixed=6)
    out2 = jax.block_until_ready(
        sparse_basic_block_forward(x2, p2, stride=1, mxu_dtype=jnp.float32))
    ref2 = ref_forward(x2, p2, 1)
    assert out2.shape == (N, planes, H, W), out2.shape
    err2 = float(jnp.max(jnp.abs(out2 - ref2)))
    assert err2 < 1e-3, f"cfg2 err={err2}"

    # Config 3: downsampling block (stride 2, 8 -> 16 channels, option-'B' shortcut).
    Cin3, planes3, stride3 = 8, 16, 2
    x3 = jax.random.normal(jax.random.fold_in(kx, 2), (N, Cin3, H, W), jnp.float32)
    p3 = init_sparse_basic_block(kp3, Cin3, planes3, stride=stride3, num_fixed=6)
    out3 = jax.block_until_ready(
        sparse_basic_block_forward(x3, p3, stride=stride3, mxu_dtype=jnp.float32))
    ref3 = ref_forward(x3, p3, stride3)
    assert out3.shape == (N, planes3, H // 2, W // 2), out3.shape
    err3 = float(jnp.max(jnp.abs(out3 - ref3)))
    assert err3 < 1e-3, f"cfg3 err={err3}"

    print("KERNEL_OK")
</pallas_src>

<mosaic_0001>
module attributes {stable_mosaic.version = 11 : i64} {
  func.func @kernel(%arg0: i32, %arg1: memref<1x16x16x4xf32, #tpu.memory_space<vmem>>, %arg2: memref<1152x128xf32, #tpu.memory_space<vmem>>, %arg3: memref<1152x128xf32, #tpu.memory_space<vmem>>, %arg4: memref<128x128xf32, #tpu.memory_space<vmem>>, %arg5: memref<8x128xf32, #tpu.memory_space<vmem>>, %arg6: memref<1x16x16x128xf32, #tpu.memory_space<vmem>>, %arg7: memref<18x32x128xf32, #tpu.memory_space<vmem>>, %arg8: memref<18x32x128xf32, #tpu.memory_space<vmem>>) attributes {dimension_semantics = [#tpu.dimension_semantics<parallel>], iteration_bounds = array<i64: 2>, scalar_prefetch = 0 : i64, scratch_operands = 2 : i64, tpu.core_type = #tpu.core_type<tc>, window_params = [{transform_indices = @transform_0, window_bounds = array<i64: 1, 16, 16, 4>}, {pipeline_mode = #tpu.pipeline_mode<synchronous>, transform_indices = @transform_1, window_bounds = array<i64: 1152, 128>}, {pipeline_mode = #tpu.pipeline_mode<synchronous>, transform_indices = @transform_2, window_bounds = array<i64: 1152, 128>}, {pipeline_mode = #tpu.pipeline_mode<synchronous>, transform_indices = @transform_3, window_bounds = array<i64: 128, 128>}, {pipeline_mode = #tpu.pipeline_mode<synchronous>, transform_indices = @transform_4, window_bounds = array<i64: 8, 128>}, {transform_indices = @transform_5, window_bounds = array<i64: 1, 16, 16, 128>}]} {
    %c0 = arith.constant 0 : index
    %c0_0 = arith.constant 0 : index
    %0 = vector.load %arg5[%c0, %c0_0] : memref<8x128xf32, #tpu.memory_space<vmem>>, vector<8x128xf32>
    %cst = arith.constant 0.000000e+00 : f32
    %1 = vector.broadcast %cst : f32 to vector<1x32x128xf32>
    %c0_1 = arith.constant 0 : index
    %c0_2 = arith.constant 0 : index
    %c0_3 = arith.constant 0 : index
    %2 = vector.load %arg7[%c0_1, %c0_2, %c0_3] : memref<18x32x128xf32, #tpu.memory_space<vmem>>, vector<1x32x128xf32>
    tpu.vector_store %arg7[%c0_1, %c0_2, %c0_3], %1 {strides = array<i32>} : memref<18x32x128xf32, #tpu.memory_space<vmem>>, vector<1x32x128xf32>,
    %c17 = arith.constant 17 : index
    %c0_4 = arith.constant 0 : index
    %c0_5 = arith.constant 0 : index
    %3 = vector.load %arg7[%c17, %c0_4, %c0_5] : memref<18x32x128xf32, #tpu.memory_space<vmem>>, vector<1x32x128xf32>
    tpu.vector_store %arg7[%c17, %c0_4, %c0_5], %1 {strides = array<i32>} : memref<18x32x128xf32, #tpu.memory_space<vmem>>, vector<1x32x128xf32>,
    %cst_6 = arith.constant 0.000000e+00 : f32
    %4 = vector.broadcast %cst_6 : f32 to vector<16x1x128xf32>
    %c1 = arith.constant 1 : index
    %c7 = arith.constant 7 : index
    %c0_7 = arith.constant 0 : index
    %5 = vector.load %arg7[%c1, %c7, %c0_7] : memref<18x32x128xf32, #tpu.memory_space<vmem>>, vector<16x1x128xf32>
    tpu.vector_store %arg7[%c1, %c7, %c0_7], %4 {strides = array<i32>} : memref<18x32x128xf32, #tpu.memory_space<vmem>>, vector<16x1x128xf32>,
    %c1_8 = arith.constant 1 : index
    %c24 = arith.constant 24 : index
    %c0_9 = arith.constant 0 : index
    %6 = vector.load %arg7[%c1_8, %c24, %c0_9] : memref<18x32x128xf32, #tpu.memory_space<vmem>>, vector<16x1x128xf32>
    tpu.vector_store %arg7[%c1_8, %c24, %c0_9], %4 {strides = array<i32>} : memref<18x32x128xf32, #tpu.memory_space<vmem>>, vector<16x1x128xf32>,
    %c0_10 = arith.constant 0 : index
    %c0_11 = arith.constant 0 : index
    %c0_12 = arith.constant 0 : index
    %c0_13 = arith.constant 0 : index
    %7 = vector.load %arg1[%c0_10, %c0_11, %c0_12, %c0_13] : memref<1x16x16x4xf32, #tpu.memory_space<vmem>>, vector<1x16x16x4xf32>
    %8 = vector.shape_cast %7 : vector<1x16x16x4xf32> to vector<16x16x4xf32>
    %c1_14 = arith.constant 1 : index
    %c8 = arith.constant 8 : index
    %c0_15 = arith.constant 0 : index
    %9 = vector.load %arg7[%c1_14, %c8, %c0_15] : memref<18x32x128xf32, #tpu.memory_space<vmem>>, vector<16x16x4xf32>
    tpu.vector_store %arg7[%c1_14, %c8, %c0_15], %8 {strides = array<i32>} : memref<18x32x128xf32, #tpu.memory_space<vmem>>, vector<16x16x4xf32>,
    %cst_16 = arith.constant 0.000000e+00 : f32
    %10 = vector.broadcast %cst_16 : f32 to vector<16x16x124xf32>
    %c1_17 = arith.constant 1 : index
    %c8_18 = arith.constant 8 : index
    %c4 = arith.constant 4 : index
    %11 = vector.load %arg7[%c1_17, %c8_18, %c4] : memref<18x32x128xf32, #tpu.memory_space<vmem>>, vector<16x16x124xf32>
    tpu.vector_store %arg7[%c1_17, %c8_18, %c4], %10 {strides = array<i32>} : memref<18x32x128xf32, #tpu.memory_space<vmem>>, vector<16x16x124xf32>,
    %c0_19 = arith.constant 0 : index
    %c0_20 = arith.constant 0 : index
    %c0_21 = arith.constant 0 : index
    %12 = vector.load %arg7[%c0_19, %c0_20, %c0_21] : memref<18x32x128xf32, #tpu.memory_space<vmem>>, vector<16x32x128xf32>
    %c1_i32 = arith.constant 1 : i32
    %13 = tpu.dynamic_rotate %12 by %c1_i32 dim 1 : vector<16x32x128xf32>, i32 -> vector<16x32x128xf32>
    %14 = vector.extract_strided_slice %13 {offsets = [0, 8, 0], sizes = [16, 16, 128], strides = [1, 1, 1]} : vector<16x32x128xf32> to vector<16x16x128xf32>
    %15 = vector.extract_strided_slice %12 {offsets = [0, 8, 0], sizes = [16, 16, 128], strides = [1, 1, 1]} : vector<16x32x128xf32> to vector<16x16x128xf32>
    %c31_i32 = arith.constant 31 : i32
    %16 = tpu.dynamic_rotate %12 by %c31_i32 dim 1 : vector<16x32x128xf32>, i32 -> vector<16x32x128xf32>
    %17 = vector.extract_strided_slice %16 {offsets = [0, 8, 0], sizes = [16, 16, 128], strides = [1, 1, 1]} : vector<16x32x128xf32> to vector<16x16x128xf32>
    %18 = tpu.concatenate %14, %15, %17 in 2 : vector<16x16x128xf32>, vector<16x16x128xf32>, vector<16x16x128xf32> -> vector<16x16x384xf32>
    %19 = vector.shape_cast %18 : vector<16x16x384xf32> to vector<256x384xf32>
    %c0_22 = arith.constant 0 : index
    %c0_23 = arith.constant 0 : index
    %20 = vector.load %arg2[%c0_22, %c0_23] : memref<1152x128xf32, #tpu.memory_space<vmem>>, vector<384x128xf32>
    %cst_24 = arith.constant dense<0.000000e+00> : vector<256x128xf32>
    %21 = tpu.matmul %19, %20, %cst_24 {dimension_numbers = #tpu.dot_dimension_numbers<[1], [0], [0], [1], [0, 0, 1, 1], [], []>} : vector<256x384xf32>, vector<384x128xf32>, vector<256x128xf32> -> vector<256x128xf32>
    %c1_25 = arith.constant 1 : index
    %c0_26 = arith.constant 0 : index
    %c0_27 = arith.constant 0 : index
    %22 = vector.load %arg7[%c1_25, %c0_26, %c0_27] : memref<18x32x128xf32, #tpu.memory_space<vmem>>, vector<16x32x128xf32>
    %c1_i32_28 = arith.constant 1 : i32
    %23 = tpu.dynamic_rotate %22 by %c1_i32_28 dim 1 : vector<16x32x128xf32>, i32 -> vector<16x32x128xf32>
    %24 = vector.extract_strided_slice %23 {offsets = [0, 8, 0], sizes = [16, 16, 128], strides = [1, 1, 1]} : vector<16x32x128xf32> to vector<16x16x128xf32>
    %25 = vector.extract_strided_slice %22 {offsets = [0, 8, 0], sizes = [16, 16, 128], strides = [1, 1, 1]} : vector<16x32x128xf32> to vector<16x16x128xf32>
    %c31_i32_29 = arith.constant 31 : i32
    %26 = tpu.dynamic_rotate %22 by %c31_i32_29 dim 1 : vector<16x32x128xf32>, i32 -> vector<16x32x128xf32>
    %27 = vector.extract_strided_slice %26 {offsets = [0, 8, 0], sizes = [16, 16, 128], strides = [1, 1, 1]} : vector<16x32x128xf32> to vector<16x16x128xf32>
    %28 = tpu.concatenate %24, %25, %27 in 2 : vector<16x16x128xf32>, vector<16x16x128xf32>, vector<16x16x128xf32> -> vector<16x16x384xf32>
    %29 = vector.shape_cast %28 : vector<16x16x384xf32> to vector<256x384xf32>
    %c384 = arith.constant 384 : index
    %c0_30 = arith.constant 0 : index
    %30 = vector.load %arg2[%c384, %c0_30] : memref<1152x128xf32, #tpu.memory_space<vmem>>, vector<384x128xf32>
    %cst_31 = arith.constant dense<0.000000e+00> : vector<256x128xf32>
    %31 = tpu.matmul %29, %30, %cst_31 {dimension_numbers = #tpu.dot_dimension_numbers<[1], [0], [0], [1], [0, 0, 1, 1], [], []>} : vector<256x384xf32>, vector<384x128xf32>, vector<256x128xf32> -> vector<256x128xf32>
    %32 = arith.addf %21, %31 : vector<256x128xf32>
    %c2 = arith.constant 2 : index
    %c0_32 = arith.constant 0 : index
    %c0_33 = arith.constant 0 : index
    %33 = vector.load %arg7[%c2, %c0_32, %c0_33] : memref<18x32x128xf32, #tpu.memory_space<vmem>>, vector<16x32x128xf32>
    %c1_i32_34 = arith.constant 1 : i32
    %34 = tpu.dynamic_rotate %33 by %c1_i32_34 dim 1 : vector<16x32x128xf32>, i32 -> vector<16x32x128xf32>
    %35 = vector.extract_strided_slice %34 {offsets = [0, 8, 0], sizes = [16, 16, 128], strides = [1, 1, 1]} : vector<16x32x128xf32> to vector<16x16x128xf32>
    %36 = vector.extract_strided_slice %33 {offsets = [0, 8, 0], sizes = [16, 16, 128], strides = [1, 1, 1]} : vector<16x32x128xf32> to vector<16x16x128xf32>
    %c31_i32_35 = arith.constant 31 : i32
    %37 = tpu.dynamic_rotate %33 by %c31_i32_35 dim 1 : vector<16x32x128xf32>, i32 -> vector<16x32x128xf32>
    %38 = vector.extract_strided_slice %37 {offsets = [0, 8, 0], sizes = [16, 16, 128], strides = [1, 1, 1]} : vector<16x32x128xf32> to vector<16x16x128xf32>
    %39 = tpu.concatenate %35, %36, %38 in 2 : vector<16x16x128xf32>, vector<16x16x128xf32>, vector<16x16x128xf32> -> vector<16x16x384xf32>
    %40 = vector.shape_cast %39 : vector<16x16x384xf32> to vector<256x384xf32>
    %c768 = arith.constant 768 : index
    %c0_36 = arith.constant 0 : index
    %41 = vector.load %arg2[%c768, %c0_36] : memref<1152x128xf32, #tpu.memory_space<vmem>>, vector<384x128xf32>
    %cst_37 = arith.constant dense<0.000000e+00> : vector<256x128xf32>
    %42 = tpu.matmul %40, %41, %cst_37 {dimension_numbers = #tpu.dot_dimension_numbers<[1], [0], [0], [1], [0, 0, 1, 1], [], []>} : vector<256x384xf32>, vector<384x128xf32>, vector<256x128xf32> -> vector<256x128xf32>
    %43 = arith.addf %32, %42 : vector<256x128xf32>
    %44 = vector.extract_strided_slice %0 {offsets = [0, 0], sizes = [1, 128], strides = [1, 1]} : vector<8x128xf32> to vector<1x128xf32>
    %45 = vector.extract_strided_slice %0 {offsets = [1, 0], sizes = [1, 128], strides = [1, 1]} : vector<8x128xf32> to vector<1x128xf32>
    %cst_38 = arith.constant dense<0.000000e+00> : vector<128xf32>
    %46 = vector.multi_reduction <add>, %43, %cst_38 [0] : vector<256x128xf32> to vector<128xf32>
    %47 = vector.shape_cast %46 : vector<128xf32> to vector<1x128xf32>
    %48 = arith.mulf %43, %43 : vector<256x128xf32>
    %cst_39 = arith.constant dense<0.000000e+00> : vector<128xf32>
    %49 = vector.multi_reduction <add>, %48, %cst_39 [0] : vector<256x128xf32> to vector<128xf32>
    %50 = vector.shape_cast %49 : vector<128xf32> to vector<1x128xf32>
    %51 = vector.shape_cast %47 : vector<1x128xf32> to vector<1x1x128xf32>
    %cst_40 = arith.constant dense<0.000000e+00> : vector<1xf32>
    %52 = vector.multi_reduction <add>, %51, %cst_40 [1, 2] : vector<1x1x128xf32> to vector<1xf32>
    %53 = vector.shape_cast %52 : vector<1xf32> to vector<1x1x1xf32>
    %54 = vector.extract %53[0, 0, 0] : f32 from vector<1x1x1xf32>
    %cst_41 = arith.constant 4.8828125E-4 : f32
    %55 = arith.mulf %54, %cst_41 : f32
    %56 = vector.shape_cast %50 : vector<1x128xf32> to vector<1x1x128xf32>
    %cst_42 = arith.constant dense<0.000000e+00> : vector<1xf32>
    %57 = vector.multi_reduction <add>, %56, %cst_42 [1, 2] : vector<1x1x128xf32> to vector<1xf32>
    %58 = vector.shape_cast %57 : vector<1xf32> to vector<1x1x1xf32>
    %59 = vector.extract %58[0, 0, 0] : f32 from vector<1x1x1xf32>
    %cst_43 = arith.constant 4.8828125E-4 : f32
    %60 = arith.mulf %59, %cst_43 : f32
    %61 = arith.mulf %55, %55 : f32
    %62 = arith.subf %60, %61 : f32
    %cst_44 = arith.constant 0.000000e+00 : f32
    %63 = arith.maximumf %62, %cst_44 : f32
    %64 = vector.broadcast %55 : f32 to vector<256x128xf32>
    %65 = arith.subf %43, %64 : vector<256x128xf32>
    %cst_45 = arith.constant 9.99999974E-6 : f32
    %66 = arith.addf %63, %cst_45 : f32
    %67 = math.rsqrt %66 : f32
    %68 = vector.broadcast %67 : f32 to vector<1x128xf32>
    %69 = arith.mulf %68, %44 : vector<1x128xf32>
    %70 = vector.broadcast %69 : vector<1x128xf32> to vector<256x128xf32>
    %71 = arith.mulf %65, %70 : vector<256x128xf32>
    %72 = vector.broadcast %45 : vector<1x128xf32> to vector<256x128xf32>
    %73 = arith.addf %71, %72 : vector<256x128xf32>
    %cst_46 = arith.constant 0.000000e+00 : f32
    %74 = vector.broadcast %cst_46 : f32 to vector<256x128xf32>
    %75 = arith.maximumf %73, %74 : vector<256x128xf32>
    %cst_47 = arith.constant 0.000000e+00 : f32
    %76 = vector.broadcast %cst_47 : f32 to vector<1x32x128xf32>
    %c0_48 = arith.constant 0 : index
    %c0_49 = arith.constant 0 : index
    %c0_50 = arith.constant 0 : index
    %77 = vector.load %arg8[%c0_48, %c0_49, %c0_50] : memref<18x32x128xf32, #tpu.memory_space<vmem>>, vector<1x32x128xf32>
    tpu.vector_store %arg8[%c0_48, %c0_49, %c0_50], %76 {strides = array<i32>} : memref<18x32x128xf32, #tpu.memory_space<vmem>>, vector<1x32x128xf32>,
    %c17_51 = arith.constant 17 : index
    %c0_52 = arith.constant 0 : index
    %c0_53 = arith.constant 0 : index
    %78 = vector.load %arg8[%c17_51, %c0_52, %c0_53] : memref<18x32x128xf32, #tpu.memory_space<vmem>>, vector<1x32x128xf32>
    tpu.vector_store %arg8[%c17_51, %c0_52, %c0_53], %76 {strides = array<i32>} : memref<18x32x128xf32, #tpu.memory_space<vmem>>, vector<1x32x128xf32>,
    %cst_54 = arith.constant 0.000000e+00 : f32
    %79 = vector.broadcast %cst_54 : f32 to vector<16x1x128xf32>
    %c1_55 = arith.constant 1 : index
    %c7_56 = arith.constant 7 : index
    %c0_57 = arith.constant 0 : index
    %80 = vector.load %arg8[%c1_55, %c7_56, %c0_57] : memref<18x32x128xf32, #tpu.memory_space<vmem>>, vector<16x1x128xf32>
    tpu.vector_store %arg8[%c1_55, %c7_56, %c0_57], %79 {strides = array<i32>} : memref<18x32x128xf32, #tpu.memory_space<vmem>>, vector<16x1x128xf32>,
    %c1_58 = arith.constant 1 : index
    %c24_59 = arith.constant 24 : index
    %c0_60 = arith.constant 0 : index
    %81 = vector.load %arg8[%c1_58, %c24_59, %c0_60] : memref<18x32x128xf32, #tpu.memory_space<vmem>>, vector<16x1x128xf32>
    tpu.vector_store %arg8[%c1_58, %c24_59, %c0_60], %79 {strides = array<i32>} : memref<18x32x128xf32, #tpu.memory_space<vmem>>, vector<16x1x128xf32>,
    %82 = vector.shape_cast %75 : vector<256x128xf32> to vector<16x16x128xf32>
    %c1_61 = arith.constant 1 : index
    %c8_62 = arith.constant 8 : index
    %c0_63 = arith.constant 0 : index
    %83 = vector.load %arg8[%c1_61, %c8_62, %c0_63] : memref<18x32x128xf32, #tpu.memory_space<vmem>>, vector<16x16x128xf32>
    tpu.vector_store %arg8[%c1_61, %c8_62, %c0_63], %82 {strides = array<i32>} : memref<18x32x128xf32, #tpu.memory_space<vmem>>, vector<16x16x128xf32>,
    %c0_64 = arith.constant 0 : index
    %c0_65 = arith.constant 0 : index
    %c0_66 = arith.constant 0 : index
    %84 = vector.load %arg8[%c0_64, %c0_65, %c0_66] : memref<18x32x128xf32, #tpu.memory_space<vmem>>, vector<16x32x128xf32>
    %c1_i32_67 = arith.constant 1 : i32
    %85 = tpu.dynamic_rotate %84 by %c1_i32_67 dim 1 : vector<16x32x128xf32>, i32 -> vector<16x32x128xf32>
    %86 = vector.extract_strided_slice %85 {offsets = [0, 8, 0], sizes = [16, 16, 128], strides = [1, 1, 1]} : vector<16x32x128xf32> to vector<16x16x128xf32>
    %87 = vector.extract_strided_slice %84 {offsets = [0, 8, 0], sizes = [16, 16, 128], strides = [1, 1, 1]} : vector<16x32x128xf32> to vector<16x16x128xf32>
    %c31_i32_68 = arith.constant 31 : i32
    %88 = tpu.dynamic_rotate %84 by %c31_i32_68 dim 1 : vector<16x32x128xf32>, i32 -> vector<16x32x128xf32>
    %89 = vector.extract_strided_slice %88 {offsets = [0, 8, 0], sizes = [16, 16, 128], strides = [1, 1, 1]} : vector<16x32x128xf32> to vector<16x16x128xf32>
    %90 = tpu.concatenate %86, %87, %89 in 2 : vector<16x16x128xf32>, vector<16x16x128xf32>, vector<16x16x128xf32> -> vector<16x16x384xf32>
    %91 = vector.shape_cast %90 : vector<16x16x384xf32> to vector<256x384xf32>
    %c0_69 = arith.constant 0 : index
    %c0_70 = arith.constant 0 : index
    %92 = vector.load %arg3[%c0_69, %c0_70] : memref<1152x128xf32, #tpu.memory_space<vmem>>, vector<384x128xf32>
    %cst_71 = arith.constant dense<0.000000e+00> : vector<256x128xf32>
    %93 = tpu.matmul %91, %92, %cst_71 {dimension_numbers = #tpu.dot_dimension_numbers<[1], [0], [0], [1], [0, 0, 1, 1], [], []>} : vector<256x384xf32>, vector<384x128xf32>, vector<256x128xf32> -> vector<256x128xf32>
    %c1_72 = arith.constant 1 : index
    %c0_73 = arith.constant 0 : index
    %c0_74 = arith.constant 0 : index
    %94 = vector.load %arg8[%c1_72, %c0_73, %c0_74] : memref<18x32x128xf32, #tpu.memory_space<vmem>>, vector<16x32x128xf32>
    %c1_i32_75 = arith.constant 1 : i32
    %95 = tpu.dynamic_rotate %94 by %c1_i32_75 dim 1 : vector<16x32x128xf32>, i32 -> vector<16x32x128xf32>
    %96 = vector.extract_strided_slice %95 {offsets = [0, 8, 0], sizes = [16, 16, 128], strides = [1, 1, 1]} : vector<16x32x128xf32> to vector<16x16x128xf32>
    %97 = vector.extract_strided_slice %94 {offsets = [0, 8, 0], sizes = [16, 16, 128], strides = [1, 1, 1]} : vector<16x32x128xf32> to vector<16x16x128xf32>
    %c31_i32_76 = arith.constant 31 : i32
    %98 = tpu.dynamic_rotate %94 by %c31_i32_76 dim 1 : vector<16x32x128xf32>, i32 -> vector<16x32x128xf32>
    %99 = vector.extract_strided_slice %98 {offsets = [0, 8, 0], sizes = [16, 16, 128], strides = [1, 1, 1]} : vector<16x32x128xf32> to vector<16x16x128xf32>
    %100 = tpu.concatenate %96, %97, %99 in 2 : vector<16x16x128xf32>, vector<16x16x128xf32>, vector<16x16x128xf32> -> vector<16x16x384xf32>
    %101 = vector.shape_cast %100 : vector<16x16x384xf32> to vector<256x384xf32>
    %c384_77 = arith.constant 384 : index
    %c0_78 = arith.constant 0 : index
    %102 = vector.load %arg3[%c384_77, %c0_78] : memref<1152x128xf32, #tpu.memory_space<vmem>>, vector<384x128xf32>
    %cst_79 = arith.constant dense<0.000000e+00> : vector<256x128xf32>
    %103 = tpu.matmul %101, %102, %cst_79 {dimension_numbers = #tpu.dot_dimension_numbers<[1], [0], [0], [1], [0, 0, 1, 1], [], []>} : vector<256x384xf32>, vector<384x128xf32>, vector<256x128xf32> -> vector<256x128xf32>
    %104 = arith.addf %93, %103 : vector<256x128xf32>
    %c2_80 = arith.constant 2 : index
    %c0_81 = arith.constant 0 : index
    %c0_82 = arith.constant 0 : index
    %105 = vector.load %arg8[%c2_80, %c0_81, %c0_82] : memref<18x32x128xf32, #tpu.memory_space<vmem>>, vector<16x32x128xf32>
    %c1_i32_83 = arith.constant 1 : i32
    %106 = tpu.dynamic_rotate %105 by %c1_i32_83 dim 1 : vector<16x32x128xf32>, i32 -> vector<16x32x128xf32>
    %107 = vector.extract_strided_slice %106 {offsets = [0, 8, 0], sizes = [16, 16, 128], strides = [1, 1, 1]} : vector<16x32x128xf32> to vector<16x16x128xf32>
    %108 = vector.extract_strided_slice %105 {offsets = [0, 8, 0], sizes = [16, 16, 128], strides = [1, 1, 1]} : vector<16x32x128xf32> to vector<16x16x128xf32>
    %c31_i32_84 = arith.constant 31 : i32
    %109 = tpu.dynamic_rotate %105 by %c31_i32_84 dim 1 : vector<16x32x128xf32>, i32 -> vector<16x32x128xf32>
    %110 = vector.extract_strided_slice %109 {offsets = [0, 8, 0], sizes = [16, 16, 128], strides = [1, 1, 1]} : vector<16x32x128xf32> to vector<16x16x128xf32>
    %111 = tpu.concatenate %107, %108, %110 in 2 : vector<16x16x128xf32>, vector<16x16x128xf32>, vector<16x16x128xf32> -> vector<16x16x384xf32>
    %112 = vector.shape_cast %111 : vector<16x16x384xf32> to vector<256x384xf32>
    %c768_85 = arith.constant 768 : index
    %c0_86 = arith.constant 0 : index
    %113 = vector.load %arg3[%c768_85, %c0_86] : memref<1152x128xf32, #tpu.memory_space<vmem>>, vector<384x128xf32>
    %cst_87 = arith.constant dense<0.000000e+00> : vector<256x128xf32>
    %114 = tpu.matmul %112, %113, %cst_87 {dimension_numbers = #tpu.dot_dimension_numbers<[1], [0], [0], [1], [0, 0, 1, 1], [], []>} : vector<256x384xf32>, vector<384x128xf32>, vector<256x128xf32> -> vector<256x128xf32>
    %115 = arith.addf %104, %114 : vector<256x128xf32>
    %116 = vector.extract_strided_slice %0 {offsets = [2, 0], sizes = [1, 128], strides = [1, 1]} : vector<8x128xf32> to vector<1x128xf32>
    %117 = vector.extract_strided_slice %0 {offsets = [3, 0], sizes = [1, 128], strides = [1, 1]} : vector<8x128xf32> to vector<1x128xf32>
    %cst_88 = arith.constant dense<0.000000e+00> : vector<128xf32>
    %118 = vector.multi_reduction <add>, %115, %cst_88 [0] : vector<256x128xf32> to vector<128xf32>
    %119 = vector.shape_cast %118 : vector<128xf32> to vector<1x128xf32>
    %120 = arith.mulf %115, %115 : vector<256x128xf32>
    %cst_89 = arith.constant dense<0.000000e+00> : vector<128xf32>
    %121 = vector.multi_reduction <add>, %120, %cst_89 [0] : vector<256x128xf32> to vector<128xf32>
    %122 = vector.shape_cast %121 : vector<128xf32> to vector<1x128xf32>
    %123 = vector.shape_cast %119 : vector<1x128xf32> to vector<1x1x128xf32>
    %cst_90 = arith.constant dense<0.000000e+00> : vector<1xf32>
    %124 = vector.multi_reduction <add>, %123, %cst_90 [1, 2] : vector<1x1x128xf32> to vector<1xf32>
    %125 = vector.shape_cast %124 : vector<1xf32> to vector<1x1x1xf32>
    %126 = vector.extract %125[0, 0, 0] : f32 from vector<1x1x1xf32>
    %cst_91 = arith.constant 4.8828125E-4 : f32
    %127 = arith.mulf %126, %cst_91 : f32
    %128 = vector.shape_cast %122 : vector<1x128xf32> to vector<1x1x128xf32>
    %cst_92 = arith.constant dense<0.000000e+00> : vector<1xf32>
    %129 = vector.multi_reduction <add>, %128, %cst_92 [1, 2] : vector<1x1x128xf32> to vector<1xf32>
    %130 = vector.shape_cast %129 : vector<1xf32> to vector<1x1x1xf32>
    %131 = vector.extract %130[0, 0, 0] : f32 from vector<1x1x1xf32>
    %cst_93 = arith.constant 4.8828125E-4 : f32
    %132 = arith.mulf %131, %cst_93 : f32
    %133 = arith.mulf %127, %127 : f32
    %134 = arith.subf %132, %133 : f32
    %cst_94 = arith.constant 0.000000e+00 : f32
    %135 = arith.maximumf %134, %cst_94 : f32
    %136 = vector.broadcast %127 : f32 to vector<256x128xf32>
    %137 = arith.subf %115, %136 : vector<256x128xf32>
    %cst_95 = arith.constant 9.99999974E-6 : f32
    %138 = arith.addf %135, %cst_95 : f32
    %139 = math.rsqrt %138 : f32
    %140 = vector.broadcast %139 : f32 to vector<1x128xf32>
    %141 = arith.mulf %140, %116 : vector<1x128xf32>
    %142 = vector.broadcast %141 : vector<1x128xf32> to vector<256x128xf32>
    %143 = arith.mulf %137, %142 : vector<256x128xf32>
    %144 = vector.broadcast %117 : vector<1x128xf32> to vector<256x128xf32>
    %145 = arith.addf %143, %144 : vector<256x128xf32>
    %c1_96 = arith.constant 1 : index
    %c8_97 = arith.constant 8 : index
    %c0_98 = arith.constant 0 : index
    %146 = vector.load %arg7[%c1_96, %c8_97, %c0_98] : memref<18x32x128xf32, #tpu.memory_space<vmem>>, vector<16x16x128xf32>
    %147 = vector.shape_cast %146 : vector<16x16x128xf32> to vector<256x128xf32>
    %c0_99 = arith.constant 0 : index
    %c0_100 = arith.constant 0 : index
    %148 = vector.load %arg4[%c0_99, %c0_100] : memref<128x128xf32, #tpu.memory_space<vmem>>, vector<128x128xf32>
    %cst_101 = arith.constant dense<0.000000e+00> : vector<256x128xf32>
    %149 = tpu.matmul %147, %148, %cst_101 {dimension_numbers = #tpu.dot_dimension_numbers<[1], [0], [0], [1], [0, 0, 1, 1], [], []>} : vector<256x128xf32>, vector<128x128xf32>, vector<256x128xf32> -> vector<256x128xf32>
    %150 = vector.extract_strided_slice %0 {offsets = [4, 0], sizes = [1, 128], strides = [1, 1]} : vector<8x128xf32> to vector<1x128xf32>
    %151 = vector.extract_strided_slice %0 {offsets = [5, 0], sizes = [1, 128], strides = [1, 1]} : vector<8x128xf32> to vector<1x128xf32>
    %cst_102 = arith.constant dense<0.000000e+00> : vector<128xf32>
    %152 = vector.multi_reduction <add>, %149, %cst_102 [0] : vector<256x128xf32> to vector<128xf32>
    %153 = vector.shape_cast %152 : vector<128xf32> to vector<1x128xf32>
    %154 = arith.mulf %149, %149 : vector<256x128xf32>
    %cst_103 = arith.constant dense<0.000000e+00> : vector<128xf32>
    %155 = vector.multi_reduction <add>, %154, %cst_103 [0] : vector<256x128xf32> to vector<128xf32>
    %156 = vector.shape_cast %155 : vector<128xf32> to vector<1x128xf32>
    %157 = vector.shape_cast %153 : vector<1x128xf32> to vector<1x1x128xf32>
    %cst_104 = arith.constant dense<0.000000e+00> : vector<1xf32>
    %158 = vector.multi_reduction <add>, %157, %cst_104 [1, 2] : vector<1x1x128xf32> to vector<1xf32>
    %159 = vector.shape_cast %158 : vector<1xf32> to vector<1x1x1xf32>
    %160 = vector.extract %159[0, 0, 0] : f32 from vector<1x1x1xf32>
    %cst_105 = arith.constant 4.8828125E-4 : f32
    %161 = arith.mulf %160, %cst_105 : f32
    %162 = vector.shape_cast %156 : vector<1x128xf32> to vector<1x1x128xf32>
    %cst_106 = arith.constant dense<0.000000e+00> : vector<1xf32>
    %163 = vector.multi_reduction <add>, %162, %cst_106 [1, 2] : vector<1x1x128xf32> to vector<1xf32>
    %164 = vector.shape_cast %163 : vector<1xf32> to vector<1x1x1xf32>
    %165 = vector.extract %164[0, 0, 0] : f32 from vector<1x1x1xf32>
    %cst_107 = arith.constant 4.8828125E-4 : f32
    %166 = arith.mulf %165, %cst_107 : f32
    %167 = arith.mulf %161, %161 : f32
    %168 = arith.subf %166, %167 : f32
    %cst_108 = arith.constant 0.000000e+00 : f32
    %169 = arith.maximumf %168, %cst_108 : f32
    %170 = vector.broadcast %161 : f32 to vector<256x128xf32>
    %171 = arith.subf %149, %170 : vector<256x128xf32>
    %cst_109 = arith.constant 9.99999974E-6 : f32
    %172 = arith.addf %169, %cst_109 : f32
    %173 = math.rsqrt %172 : f32
    %174 = vector.broadcast %173 : f32 to vector<1x128xf32>
    %175 = arith.mulf %174, %150 : vector<1x128xf32>
    %176 = vector.broadcast %175 : vector<1x128xf32> to vector<256x128xf32>
    %177 = arith.mulf %171, %176 : vector<256x128xf32>
    %178 = vector.broadcast %151 : vector<1x128xf32> to vector<256x128xf32>
    %179 = arith.addf %177, %178 : vector<256x128xf32>
    %180 = arith.addf %145, %179 : vector<256x128xf32>
    %cst_110 = arith.constant 0.000000e+00 : f32
    %181 = vector.broadcast %cst_110 : f32 to vector<256x128xf32>
    %182 = arith.maximumf %180, %181 : vector<256x128xf32>
    %183 = vector.shape_cast %182 : vector<256x128xf32> to vector<1x16x16x128xf32>
    %c0_111 = arith.constant 0 : index
    %c0_112 = arith.constant 0 : index
    %c0_113 = arith.constant 0 : index
    %c0_114 = arith.constant 0 : index
    %184 = vector.load %arg6[%c0_111, %c0_112, %c0_113, %c0_114] : memref<1x16x16x128xf32, #tpu.memory_space<vmem>>, vector<1x16x16x128xf32>
    tpu.vector_store %arg6[%c0_111, %c0_112, %c0_113, %c0_114], %183 {strides = array<i32>} : memref<1x16x16x128xf32, #tpu.memory_space<vmem>>, vector<1x16x16x128xf32>,
    return
  }
  func.func @transform_0(%arg0: i32) -> (i32, i32, i32, i32) {
    %c0_i32 = arith.constant 0 : i32
    %c0_i32_0 = arith.constant 0 : i32
    %c0_i32_1 = arith.constant 0 : i32
    %c0_i32_2 = arith.constant 0 : i32
    return %arg0, %c0_i32, %c0_i32_0, %c0_i32_1 : i32, i32, i32, i32
  }
  func.func @transform_1(%arg0: i32) -> (i32, i32) {
    %c0_i32 = arith.constant 0 : i32
    %c0_i32_0 = arith.constant 0 : i32
    %c0_i32_1 = arith.constant 0 : i32
    return %c0_i32, %c0_i32_0 : i32, i32
  }
  func.func @transform_2(%arg0: i32) -> (i32, i32) {
    %c0_i32 = arith.constant 0 : i32
    %c0_i32_0 = arith.constant 0 : i32
    %c0_i32_1 = arith.constant 0 : i32
    return %c0_i32, %c0_i32_0 : i32, i32
  }
  func.func @transform_3(%arg0: i32) -> (i32, i32) {
    %c0_i32 = arith.constant 0 : i32
    %c0_i32_0 = arith.constant 0 : i32
    %c0_i32_1 = arith.constant 0 : i32
    return %c0_i32, %c0_i32_0 : i32, i32
  }
  func.func @transform_4(%arg0: i32) -> (i32, i32) {
    %c0_i32 = arith.constant 0 : i32
    %c0_i32_0 = arith.constant 0 : i32
    %c0_i32_1 = arith.constant 0 : i32
    return %c0_i32, %c0_i32_0 : i32, i32
  }
  func.func @transform_5(%arg0: i32) -> (i32, i32, i32, i32) {
    %c0_i32 = arith.constant 0 : i32
    %c0_i32_0 = arith.constant 0 : i32
    %c0_i32_1 = arith.constant 0 : i32
    %c0_i32_2 = arith.constant 0 : i32
    return %arg0, %c0_i32, %c0_i32_0, %c0_i32_1 : i32, i32, i32, i32
  }
}

</mosaic_0001>

<bundles_post_ra>
// kernel: tpu_custom_call.1
= control target key start
LH: loop header
LB: loop body
LE: loop exit
PB: predicated region body
PF: predicated region fallthrough
CT: control target
= control target key end

     0   :  { %10 = vsyncpa [#allocation5], 0  ;;  %s12232_s0 = inlined_call_operand.vmem [shape: f32[2,16,16,4], index: 0, kind: input, shape index: {}]   ;;  %s12233_s1 = inlined_call_operand.hbm [shape: f32[1152,128], index: 1, kind: input, shape index: {}]   ;;  %s12234_s2 = inlined_call_operand.hbm [shape: f32[1152,128], index: 2, kind: input, shape index: {}]   ;;  %s12235_s3 = inlined_call_operand.vmem [shape: f32[128,128], index: 3, kind: input, shape index: {}]   ;;  %s12236_s4 = inlined_call_operand.vmem [shape: f32[8,128], index: 4, kind: input, shape index: {}]   ;;  %s12237_s5 = inlined_call_operand.hbm [shape: f32[2,16,16,128], index: 5, kind: output, shape index: {}]  }
   0x1   :  { %11 = vsyncpa [#allocation8], 0 }
   0x2   :  { %12 = vsyncpa [#allocation6], 0 }
   0x3   :  { %14 = vsyncpa [#allocation6 + $0x1], 0  ;;  %s7802_s18 = smov 0   ;;  %s7804_s19 = smov 0  }
   0x4   :  { %s7806_s20 = smov 0   ;;  %s7808_s21 = smov 0  }
   0x5 LB: > { %s7823_s22 = sadd.s32 4294967295, %s7760_s21   ;;  %s6096_s23 = sadd.s32 4294967294, %s7760_s21   ;;  %s7760_s21 = sphi %s7808_s21, %s12649_s21   ;;  %s7756_s20 = sphi %s7806_s20, %s12648_s20   ;;  %s7752_s19 = sphi %s7804_s19, %s12647_s19   ;;  %s7748_s18 = sphi %s7802_s18, %s12646_s18  }
   0x6   : > { %s7827_s24 = sadd.s32 1, %s7760_s21   ;;  %s137_s25 = sadd.s32 1, %s7756_s20 }
   0x7   : > { %s134_s26 = ssub.s32 %s7760_s21, %s7827_s24  ;;  %p147_p0 = scmp.ne.s32.totalorder %s7756_s20, %s7752_s19 }
   0x8   : > { %p135_p1 = scmp.eq.s32.totalorder %s134_s26, 0  ;;  %p148_p2 = scmp.eq.s32.totalorder %s7823_s22, 1 }
   0x9   : > { %p153_p3 = scmp.ne.s32.totalorder %s7752_s19, %s7748_s18  ;;  %p154_p4 = scmp.eq.s32.totalorder %s6096_s23, 1 }
   0xa   : > { %s7838_s27 = scalar_select %p135_p1, %s7756_s20, %s137_s25  }
   0xb   : > { %p7840_p5 = por %p148_p2, %p147_p0  ;;  %p7844_p6 = por %p154_p4, %p153_p3 }
   0xc   : > { %p6097_p7 = scmp.ge.s32.totalorder %s7760_s21, 1  ;;  %p161_p8 = scmp.lt.s32.totalorder %s7760_s21, 3 }
   0xd   : > { %s12364_s28 = scalar_select %p7840_p5, 1, 0 }
   0xe   : > { %s12365_s29 = scalar_select %p7844_p6, 1, 0 }
   0xf   : > { %p12238_p9 = scmp.eq.s32.totalorder %s7823_s22, 0  ;;  %p7851_p10 = pnand %p6097_p7, %p161_p8 }
  0x10   : > { %s7762_s6 = smov [#allocation4]   ;;  %s7763_s9 = smov [#allocation7]  }
  0x11   : > { %s12366_s30 = scalar_select %p7851_p10, 1, 0 }
  0x12   : > { %s173_s7 = sshll.u32 %s7762_s6, 4  ;;  %p7566_p11 = pneg %p7851_p10  ;;  %s174_s7 = int_to_ptr.vmem [resolvable:$true] %s173_s7 }
  0x13   : > { %s186_s10 = sshll.u32 %s7763_s9, 4  ;;  %s7634_s13 = scalar_lea.hbm %s12233_s1, 18432  ;;  %s7863_s10 = int_to_ptr.vmem [resolvable:$true] %s186_s10 }
  0x14   : > { %p7859_p12 = pnand %p12238_p9, %p7566_p11  ;;  %p7635_p13 = scmp.ne.s32.totalorder %s12233_s1, %s7634_s13 }
  0x15   : > { %p7641_p3 = scmp.lt.u32.totalorder %s7634_s13, %s12233_s1 }
  0x16   : > { %p7636_p0 = pneg %p7859_p12 }
  0x18   : > { %p7637_p1 = pnand %p7636_p0, %p7635_p13 }
  0x1a   : > { %p7638_p2 = pneg %p7637_p1 }
  0x1c   : > { %p7643_p4 = pnand %p7641_p3, %p7638_p2 }
  0x1e   : > { %7646 = shalt.err (!%p7643_p4)
}
  0x1f   : > { %s7647_s23 = scalar_lea.vmem %s174_s7, 18432  ;;  %p7655_p9 = scmp.lt.s32.totalorder %s174_s7, %s174_s7 }
  0x20   : > { %p7648_p7 = scmp.ne.s32.totalorder %s174_s7, %s7647_s23  ;;  %p7656_p6 = scmp.lt.s32.totalorder %s7647_s23, %s7647_s23 }
  0x22   : > { %p7650_p8 = pnand %p7648_p7, %p7636_p0  ;;  %p7657_p5 = por %p7656_p6, %p7655_p9 }
  0x24   : > { %p7651_p11 = pneg %p7650_p8 }
  0x26   : > { %p7658_p10 = pnand %p7657_p5, %p7651_p11 }
  0x28   : > { %7661 = shalt.err (!%p7658_p10)
}
  0x29   : > { %s7764_s25 = smov 128   ;;  %s7765_s26 = smov 8  }
  0x2a   : > { %7569 = dma.hbm_to_vmem [thread:$0]  (!%p7859_p12), %s12233_s1, 18432, %s174_s7, [#allocation5], %s7764_s25, %s7764_s25, %s7765_s26  }
  0x2b   : > { %s7662_s13 = scalar_lea.hbm %s12234_s2, 18432 }
  0x2c   : > { %p7663_p13 = scmp.ne.s32.totalorder %s12234_s2, %s7662_s13  ;;  %p7669_p9 = scmp.lt.u32.totalorder %s7662_s13, %s12234_s2 }
  0x2e   : > { %p7665_p5 = pnand %p7663_p13, %p7636_p0 }
  0x30   : > { %p7666_p6 = pneg %p7665_p5 }
  0x32   : > { %p7671_p10 = pnand %p7669_p9, %p7666_p6 }
  0x34   : > { %7674 = shalt.err (!%p7671_p10)
}
  0x35   : > { %s7675_s7 = scalar_lea.vmem %s7863_s10, 18432  ;;  %p7683_p4 = scmp.lt.s32.totalorder %s7863_s10, %s7863_s10 }
  0x36   : > { %p7676_p1 = scmp.ne.s32.totalorder %s7863_s10, %s7675_s7  ;;  %p7684_p7 = scmp.lt.s32.totalorder %s7675_s7, %s7675_s7 }
  0x38   : > { %p7678_p2 = pnand %p7676_p1, %p7636_p0  ;;  %p7685_p8 = por %p7684_p7, %p7683_p4 }
  0x3a   : > { %p7679_p3 = pneg %p7678_p2 }
  0x3c   : > { %p7686_p11 = pnand %p7685_p8, %p7679_p3 }
  0x3e   : > { %7689 = shalt.err (!%p7686_p11)
}
  0x3f   : > { %7572 = dma.hbm_to_vmem [thread:$0]  (!%p7859_p12), %s12234_s2, 18432, %s7863_s10, [#allocation8], %s7764_s25, %s7764_s25, %s7765_s26  }
  0x40   : > { %p12368_p13 = scmp.ne.s32.totalorder %s12366_s30, 0 }
  0x42   : > { %216 = sbr.rel (%p12368_p13) target bundleno = 2013 (0x7dd), region = 40 }
  0x49   : > { %p12369_p5 = scmp.eq.s32.totalorder %s7823_s22, 0 }
  0x4b   : > { %7735 = dma.done.wait (%p12369_p5), [#allocation5], 18432   ;;  %p12370_p0 = pmov %p12369_p5 }
  0x4d   : > { %7737 = vsyncadd (%p12370_p0), [#allocation5], 4294948864  ;;  %p12371_p6 = pmov %p12370_p0 }
  0x4e   : > { %p12372_p9 = pmov %p12370_p0 }
  0x4f   : > { %7739 = dma.done.wait (%p12371_p6), [#allocation8], 18432  }
  0x50   : > { %7741 = vsyncadd (%p12372_p9), [#allocation8], 4294948864  ;;  %v12243_v0 = vmov 0.0|0.0   ;;  %v7767_v1 = vmov 0.0   ;;  %p248_p12 = scmp.lt.s32.totalorder %s7823_s22, 1  ;;  %v894_v2 = vld [vmem:[#allocation4 + $0x180] sm:$0xff]  ;;  %v506_v32 = vlaneseq }
  0x51   : > { %7010 = vmatprep.subr.bf16.mxu0 %v12243_v0  ;;  %254 = vst [vmem:[#allocation2] sm:$0xff] %v7767_v1  ;;  %264 = vst [vmem:[#allocation2 + $0x27] sm:$0x1] %v7767_v1  ;;  %v895_v3 = vld [vmem:[#allocation4 + $0x188] sm:$0xff]  ;;  %v926_v4 = vld [vmem:[#allocation4 + $0x280] sm:$0xff]  ;;  %vm328_vm0 = vcmask 31744  }
  0x52   : > { %265 = vst [vmem:[#allocation2 + $0x47] sm:$0x1] %v7767_v1  ;;  %266 = vst [vmem:[#allocation2 + $0x67] sm:$0x1] %v7767_v1  ;;  %s249_s30 = scalar_select %p248_p12, %s7823_s22, 1  ;;  %v7011_v5 = vpack.c.bf16 %v895_v3, %v894_v2  ;;  %v927_v6 = vld [vmem:[#allocation4 + $0x288] sm:$0xff] }
  0x53   : > { %267 = vst [vmem:[#allocation2 + $0x87] sm:$0x1] %v7767_v1  ;;  %268 = vst [vmem:[#allocation2 + $0xa7] sm:$0x1] %v7767_v1  ;;  %v896_v7 = vld [vmem:[#allocation4 + $0x190] sm:$0xff]  ;;  %v897_v8 = vld [vmem:[#allocation4 + $0x198] sm:$0xff]  ;;  %v7058_v9 = vpack.c.bf16 %v927_v6, %v926_v4 }
  0x54   : > { %269 = vst [vmem:[#allocation2 + $0xc7] sm:$0x1] %v7767_v1  ;;  %270 = vst [vmem:[#allocation2 + $0xe7] sm:$0x1] %v7767_v1  ;;  %v928_v10 = vld [vmem:[#allocation4 + $0x290] sm:$0xff]  ;;  %v929_v11 = vld [vmem:[#allocation4 + $0x298] sm:$0xff]  ;;  %7012 = vmatpush1.bf16.msra.mxu0 %v7011_v5  ;;  %v7014_v12 = vpack.c.bf16 %v897_v8, %v896_v7 }
  0x55   : > { %271 = vst [vmem:[#allocation2 + $0x107] sm:$0x1] %v7767_v1  ;;  %272 = vst [vmem:[#allocation2 + $0x127] sm:$0x1] %v7767_v1  ;;  %v7062_v13 = vpack.c.bf16 %v929_v11, %v928_v10  ;;  %v930_v14 = vld [vmem:[#allocation4 + $0x2a0] sm:$0xff]  ;;  %v931_v15 = vld [vmem:[#allocation4 + $0x2a8] sm:$0xff]  ;;  %7059 = vmatprep.subr.bf16.mxu1 %v7058_v9  ;;  %7013 = vmatprep.subr.bf16.mxu0 %v12243_v0 }
  0x56   : > { %273 = vst [vmem:[#allocation2 + $0x147] sm:$0x1] %v7767_v1  ;;  %274 = vst [vmem:[#allocation2 + $0x167] sm:$0x1] %v7767_v1  ;;  %v898_v16 = vld [vmem:[#allocation4 + $0x1a0] sm:$0xff]  ;;  %v899_v17 = vld [vmem:[#allocation4 + $0x1a8] sm:$0xff]  ;;  %7061 = vmatpush3.bf16.msra.mxu1 %v7058_v9  ;;  %v7066_v18 = vpack.c.bf16 %v931_v15, %v930_v14 }
  0x57   : > { %275 = vst [vmem:[#allocation2 + $0x187] sm:$0x1] %v7767_v1  ;;  %276 = vst [vmem:[#allocation2 + $0x1a7] sm:$0x1] %v7767_v1  ;;  %s6112_s8 = sshll.u32 %s249_s30, 8  ;;  %7063 = vmatprep.subr.bf16.mxu1 %v7062_v13  ;;  %v7017_v19 = vpack.c.bf16 %v899_v17, %v898_v16  ;;  %v932_v20 = vld [vmem:[#allocation4 + $0x2b0] sm:$0xff] }
  0x58   : > { %277 = vst [vmem:[#allocation2 + $0x1c7] sm:$0x1] %v7767_v1  ;;  %278 = vst [vmem:[#allocation2 + $0x1e7] sm:$0x1] %v7767_v1  ;;  %7015 = vmatpush1.bf16.msra.mxu0 %v7014_v12  ;;  %v933_v21 = vld [vmem:[#allocation4 + $0x2b8] sm:$0xff]  ;;  %s7994_s26 = scalar_lea.vmem %s12232_s0, %s6112_s8  ;;  %v900_v22 = vld [vmem:[#allocation4 + $0x1b0] sm:$0xff] }
  0x59   : > { %279 = vst [vmem:[#allocation2 + $0x207] sm:$0x1] %v7767_v1  ;;  %280 = vst [vmem:[#allocation2 + $0x38] sm:$0x1] %v7767_v1  ;;  %7016 = vmatprep.subr.bf16.mxu0 %v12243_v0  ;;  %v901_v23 = vld [vmem:[#allocation4 + $0x1b8] sm:$0xff]  ;;  %vm361_vm1 = vcmask 1047584   ;;  %v7070_v24 = vpack.c.bf16 %v933_v21, %v932_v20 }
  0x5a   : > { %281 = vst [vmem:[#allocation2 + $0x58] sm:$0x1] %v7767_v1  ;;  %282 = vst [vmem:[#allocation2 + $0x78] sm:$0x1] %v7767_v1  ;;  %7065 = vmatpush3.bf16.msra.mxu1 %v7062_v13  ;;  %v296_v25 = vld [vmem:[%s7994_s26] sm:$0xff]  ;;  %v7020_v26 = vpack.c.bf16 %v901_v23, %v900_v22  ;;  %v935_v28 = vld [vmem:[#allocation4 + $0x2c8] sm:$0xff] }
  0x5b   : > { %283 = vst [vmem:[#allocation2 + $0x98] sm:$0x1] %v7767_v1  ;;  %284 = vst [vmem:[#allocation2 + $0xb8] sm:$0x1] %v7767_v1  ;;  %7067 = vmatprep.subr.bf16.mxu1 %v7066_v18  ;;  %v934_v27 = vld [vmem:[#allocation4 + $0x2c0] sm:$0xff]  ;;  %v297_v29 = vld [vmem:[%s7994_s26 + $0x8] sm:$0xff] }
  0x5c   : > { %285 = vst [vmem:[#allocation2 + $0xd8] sm:$0x1] %v7767_v1  ;;  %286 = vst [vmem:[#allocation2 + $0xf8] sm:$0x1] %v7767_v1  ;;  %7018 = vmatpush1.bf16.msra.mxu0 %v7017_v19  ;;  %v902_v30 = vld [vmem:[#allocation4 + $0x1c0] sm:$0xff]  ;;  %v903_v31 = vld [vmem:[#allocation4 + $0x1c8] sm:$0xff]  ;;  %v7074_v35 = vpack.c.bf16 %v935_v28, %v934_v27 }
  0x5d   : > { %287 = vst [vmem:[#allocation2 + $0x118] sm:$0x1] %v7767_v1  ;;  %288 = vst [vmem:[#allocation2 + $0x138] sm:$0x1] %v7767_v1  ;;  %7019 = vmatprep.subr.bf16.mxu0 %v12243_v0  ;;  %v298_v33 = vld [vmem:[%s7994_s26 + $0x10] sm:$0xff]  ;;  %v299_v34 = vld [vmem:[%s7994_s26 + $0x18] sm:$0xff]  ;;  %v7023_v37 = vpack.c.bf16 %v903_v31, %v902_v30 }
  0x5e   : > { %289 = vst [vmem:[#allocation2 + $0x158] sm:$0x1] %v7767_v1  ;;  %290 = vst [vmem:[#allocation2 + $0x178] sm:$0x1] %v7767_v1  ;;  %7069 = vmatpush3.bf16.msra.mxu1 %v7066_v18  ;;  %v936_v36 = vld [vmem:[#allocation4 + $0x2d0] sm:$0xff]  ;;  %v937_v38 = vld [vmem:[#allocation4 + $0x2d8] sm:$0xff] }
  0x5f   : > { %291 = vst [vmem:[#allocation2 + $0x198] sm:$0x1] %v7767_v1  ;;  %292 = vst [vmem:[#allocation2 + $0x1b8] sm:$0x1] %v7767_v1  ;;  %7071 = vmatprep.subr.bf16.mxu1 %v7070_v24  ;;  %v300_v39 = vld [vmem:[%s7994_s26 + $0x20] sm:$0xff]  ;;  %v301_v40 = vld [vmem:[%s7994_s26 + $0x28] sm:$0xff]  ;;  %v7078_v45 = vpack.c.bf16 %v937_v38, %v936_v36 }
  0x60   : > { %293 = vst [vmem:[#allocation2 + $0x1d8] sm:$0x1] %v7767_v1  ;;  %294 = vst [vmem:[#allocation2 + $0x1f8] sm:$0x1] %v7767_v1  ;;  %7021 = vmatpush1.bf16.msra.mxu0 %v7020_v26  ;;  %v904_v41 = vld [vmem:[#allocation4 + $0x1d0] sm:$0xff]  ;;  %v905_v42 = vld [vmem:[#allocation4 + $0x1d8] sm:$0xff] }
  0x61   : > { %295 = vst [vmem:[#allocation2 + $0x218] sm:$0x1] %v7767_v1  ;;  %2882 = vst [vmem:[#allocation3 + $0x27] sm:$0x1] %v7767_v1  ;;  %7022 = vmatprep.subr.bf16.mxu0 %v12243_v0  ;;  %v8017_v43 = vshrl.u32 %v506_v32, 7  ;;  %v302_v44 = vld [vmem:[%s7994_s26 + $0x30] sm:$0xff]  ;;  %v7026_v48 = vpack.c.bf16 %v905_v42, %v904_v41 }
  0x62   : > { %2883 = vst [vmem:[#allocation3 + $0x47] sm:$0x1] %v7767_v1  ;;  %2884 = vst [vmem:[#allocation3 + $0x67] sm:$0x1] %v7767_v1  ;;  %7073 = vmatpush3.bf16.msra.mxu1 %v7070_v24  ;;  %v906_v46 = vld [vmem:[#allocation4 + $0x1e0] sm:$0xff]  ;;  %v303_v47 = vld [vmem:[%s7994_s26 + $0x38] sm:$0xff] }
  0x63   : > { %2885 = vst [vmem:[#allocation3 + $0x87] sm:$0x1] %v7767_v1  ;;  %2886 = vst [vmem:[#allocation3 + $0xa7] sm:$0x1] %v7767_v1  ;;  %7075 = vmatprep.subr.bf16.mxu1 %v7074_v35  ;;  %v938_v49 = vld [vmem:[#allocation4 + $0x2e0] sm:$0xff]  ;;  %v939_v50 = vld [vmem:[#allocation4 + $0x2e8] sm:$0xff] }
  0x64   : > { %2887 = vst [vmem:[#allocation3 + $0xc7] sm:$0x1] %v7767_v1  ;;  %2888 = vst [vmem:[#allocation3 + $0xe7] sm:$0x1] %v7767_v1  ;;  %7024 = vmatpush1.bf16.msra.mxu0 %v7023_v37  ;;  %v907_v52 = vld [vmem:[#allocation4 + $0x1e8] sm:$0xff]  ;;  %vm589_vm2 = vcmp.lt.s32.totalorder %v8017_v43, 7  ;;  %v7082_v58 = vpack.c.bf16 %v939_v50, %v938_v49 }
  0x65   : > { %2889 = vst [vmem:[#allocation3 + $0x107] sm:$0x1] %v7767_v1  ;;  %2890 = vst [vmem:[#allocation3 + $0x127] sm:$0x1] %v7767_v1  ;;  %7025 = vmatprep.subr.bf16.mxu0 %v12243_v0  ;;  %v304_v55 = vld [vmem:[%s7994_s26 + $0x40] sm:$0xff]  ;;  %v305_v57 = vld [vmem:[%s7994_s26 + $0x48] sm:$0xff]  ;;  %v7029_v59 = vpack.c.bf16 %v907_v52, %v906_v46 }
  0x66   : > { %2891 = vst [vmem:[#allocation3 + $0x147] sm:$0x1] %v7767_v1  ;;  %2892 = vst [vmem:[#allocation3 + $0x167] sm:$0x1] %v7767_v1  ;;  %7077 = vmatpush3.bf16.msra.mxu1 %v7074_v35  ;;  %v940_v60 = vld [vmem:[#allocation4 + $0x2f0] sm:$0xff]  ;;  %v941_v61 = vld [vmem:[#allocation4 + $0x2f8] sm:$0xff] }
  0x67   : > { %2893 = vst [vmem:[#allocation3 + $0x187] sm:$0x1] %v7767_v1  ;;  %2894 = vst [vmem:[#allocation3 + $0x1a7] sm:$0x1] %v7767_v1  ;;  %7079 = vmatprep.subr.bf16.mxu1 %v7078_v45  ;;  %v306_v63 = vld [vmem:[%s7994_s26 + $0x50] sm:$0xff]  ;;  %v909_v3 = vld [vmem:[#allocation4 + $0x1f8] sm:$0xff]  ;;  %v7086_v5 = vpack.c.bf16 %v941_v61, %v940_v60 }
  0x68   : > { %2895 = vst [vmem:[#allocation3 + $0x1c7] sm:$0x1] %v7767_v1  ;;  %2896 = vst [vmem:[#allocation3 + $0x1e7] sm:$0x1] %v7767_v1  ;;  %7027 = vmatpush1.bf16.msra.mxu0 %v7026_v48  ;;  %v908_v2 = vld [vmem:[#allocation4 + $0x1f0] sm:$0xff]  ;;  %v307_v4 = vld [vmem:[%s7994_s26 + $0x58] sm:$0xff] }
  0x69   : > { %2897 = vst [vmem:[#allocation3 + $0x207] sm:$0x1] %v7767_v1  ;;  %2898 = vst [vmem:[#allocation3 + $0x38] sm:$0x1] %v7767_v1  ;;  %7028 = vmatprep.subr.bf16.mxu0 %v12243_v0  ;;  %v673_v6 = vld [vmem:[#allocation2 + $0x38] sm:$0xff]  ;;  %v7032_v8 = vpack.c.bf16 %v909_v3, %v908_v2  ;;  %v308_v10 = vld [vmem:[%s7994_s26 + $0x60] sm:$0xff] }
  0x6a   : > { %2899 = vst [vmem:[#allocation3 + $0x58] sm:$0x1] %v7767_v1  ;;  %2900 = vst [vmem:[#allocation3 + $0x78] sm:$0x1] %v7767_v1  ;;  %7081 = vmatpush3.bf16.msra.mxu1 %v7078_v45  ;;  %v309_v11 = vld [vmem:[%s7994_s26 + $0x68] sm:$0xff]  ;;  %v910_v12 = vld [vmem:[#allocation4 + $0x200] sm:$0xff] }
  0x6b   : > { %2901 = vst [vmem:[#allocation3 + $0x98] sm:$0x1] %v7767_v1  ;;  %2902 = vst [vmem:[#allocation3 + $0xb8] sm:$0x1] %v7767_v1  ;;  %7083 = vmatprep.subr.bf16.mxu1 %v7082_v58  ;;  %v911_v13 = vld [vmem:[#allocation4 + $0x208] sm:$0xff]  ;;  %v846_v14 = vrot.slane %v673_v6, 1 }
  0x6c   : > { %2903 = vst [vmem:[#allocation3 + $0xd8] sm:$0x1] %v7767_v1  ;;  %2904 = vst [vmem:[#allocation3 + $0xf8] sm:$0x1] %v7767_v1  ;;  %7030 = vmatpush1.bf16.msra.mxu0 %v7029_v59  ;;  %v622_v15 = vld [vmem:[#allocation4] sm:$0xff]  ;;  %v623_v16 = vld [vmem:[#allocation4 + $0x8] sm:$0xff]  ;;  %v7035_v22 = vpack.c.bf16 %v911_v13, %v910_v12 }
  0x6d   : > { %2905 = vst [vmem:[#allocation3 + $0x118] sm:$0x1] %v7767_v1  ;;  %2906 = vst [vmem:[#allocation3 + $0x138] sm:$0x1] %v7767_v1  ;;  %7031 = vmatprep.subr.bf16.mxu0 %v12243_v0  ;;  %v677_v19 = vld [vmem:[#allocation2 + $0x58] sm:$0xff]  ;;  %v310_v20 = vld [vmem:[%s7994_s26 + $0x70] sm:$0xff]  ;;  %v7091_v28 = vpack.c.bf16 %v623_v16, %v622_v15 }
  0x6e   : > { %2907 = vst [vmem:[#allocation3 + $0x158] sm:$0x1] %v7767_v1  ;;  %2908 = vst [vmem:[#allocation3 + $0x178] sm:$0x1] %v7767_v1  ;;  %7085 = vmatpush3.bf16.msra.mxu1 %v7082_v58  ;;  %v311_v21 = vld [vmem:[%s7994_s26 + $0x78] sm:$0xff]  ;;  %v624_v30 = vld [vmem:[#allocation4 + $0x10] sm:$0xff] }
  0x6f   : > { %2909 = vst [vmem:[#allocation3 + $0x198] sm:$0x1] %v7767_v1  ;;  %2910 = vst [vmem:[#allocation3 + $0x1b8] sm:$0x1] %v7767_v1  ;;  %7087 = vmatprep.subr.bf16.mxu1 %v7086_v5  ;;  %v913_v26 = vld [vmem:[#allocation4 + $0x218] sm:$0xff]  ;;  %v312_v32 = vld [vmem:[%s7994_s26 + $0x80] sm:$0xff] }
  0x70   : > { %2911 = vst [vmem:[#allocation3 + $0x1d8] sm:$0x1] %v7767_v1  ;;  %2912 = vst [vmem:[#allocation3 + $0x1f8] sm:$0x1] %v7767_v1  ;;  %7033 = vmatpush1.bf16.msra.mxu0 %v7032_v8  ;;  %v625_v31 = vld [vmem:[#allocation4 + $0x18] sm:$0xff]  ;;  %v313_v38 = vld [vmem:[%s7994_s26 + $0x88] sm:$0xff] }
  0x71   : > { %2913 = vst [vmem:[#allocation3 + $0x218] sm:$0x1] %v7767_v1  ;;  %329 = vst.msk [vmem:[#allocation2 + $0x28] sm:$0xff] %vm328_vm0, %v296_v25  ;;  %7034 = vmatprep.subr.bf16.mxu0 %v12243_v0  ;;  %v912_v25 = vld [vmem:[#allocation4 + $0x210] sm:$0xff]  ;;  %v681_v36 = vld [vmem:[#allocation2 + $0x78] sm:$0xff]  ;;  %vm508_vm3 = vcmp.lt.s32.totalorder %v8017_v43, 1 }
  0x72   : > { %330 = vst.msk [vmem:[#allocation2 + $0x30] sm:$0xff] %vm328_vm0, %v297_v29  ;;  %331 = vst.msk [vmem:[#allocation2 + $0x48] sm:$0xff] %vm328_vm0, %v298_v33  ;;  %7089 = vmatpush3.bf16.msra.mxu1 %v7086_v5  ;;  %v847_v29 = vrot.slane %v677_v19, 1  ;;  %v314_v41 = vld [vmem:[%s7994_s26 + $0x90] sm:$0xff]  ;;  %v315_v42 = vld [vmem:[%s7994_s26 + $0x98] sm:$0xff]  ;;  %v848_v48 = vrot.slane %v681_v36, 1 }
  0x73   : > { %362 = vst.msk [vmem:[#allocation2 + $0x28] sm:$0xff] %vm361_vm1, %v7767_v1  ;;  %363 = vst.msk [vmem:[#allocation2 + $0x30] sm:$0xff] %vm361_vm1, %v7767_v1  ;;  %7090 = vmatprep.subr.bf16.mxu1 %v12243_v0  ;;  %v915_v45 = vld [vmem:[#allocation4 + $0x228] sm:$0xff]  ;;  %v626_v49 = vld [vmem:[#allocation4 + $0x20] sm:$0xff]  ;;  %vm2703_vm4 = vcmask 1040384   ;;  %s7768_s16 = smov 0.0  }
  0x74   : > { %332 = vst.msk [vmem:[#allocation2 + $0x50] sm:$0xff] %vm328_vm0, %v299_v34  ;;  %12373 = vst [vmem:[#allocation13_spill] sm:$0xff] %v8017_v43  ;;  %7036 = vmatpush1.bf16.msra.mxu0 %v7035_v22  ;;  %v627_v50 = vld [vmem:[#allocation4 + $0x28] sm:$0xff]  ;;  %v916_v60 = vld [vmem:[#allocation4 + $0x230] sm:$0xff]  ;;  %p12644_p1 = scmp.ne.s32.totalorder %s12364_s28, 0 }
  0x75   : > { %364 = vst.msk [vmem:[#allocation2 + $0x48] sm:$0xff] %vm361_vm1, %v7767_v1  ;;  %365 = vst.msk [vmem:[#allocation2 + $0x50] sm:$0xff] %vm361_vm1, %v7767_v1  ;;  %7037 = vmatprep.subr.bf16.mxu0 %v12243_v0  ;;  %v317_v58 = vld [vmem:[%s7994_s26 + $0xa8] sm:$0xff]  ;;  %v318_v2 = vld [vmem:[%s7994_s26 + $0xb0] sm:$0xff]  ;;  %v7097_v5 = vpack.c.bf16 %v627_v50, %v626_v49 }
  0x76   : > { %333 = vst.msk [vmem:[#allocation2 + $0x68] sm:$0xff] %vm328_vm0, %v300_v39  ;;  %334 = vst.msk [vmem:[#allocation2 + $0x70] sm:$0xff] %vm328_vm0, %v301_v40  ;;  %v7038_v39 = vpack.c.bf16 %v913_v26, %v912_v25  ;;  %v319_v3 = vld [vmem:[%s7994_s26 + $0xb8] sm:$0xff]  ;;  %v628_v8 = vld [vmem:[#allocation4 + $0x30] sm:$0xff] }
  0x77   : > { %366 = vst.msk [vmem:[#allocation2 + $0x68] sm:$0xff] %vm361_vm1, %v7767_v1  ;;  %367 = vst.msk [vmem:[#allocation2 + $0x70] sm:$0xff] %vm361_vm1, %v7767_v1  ;;  %v320_v15 = vld [vmem:[%s7994_s26 + $0xc0] sm:$0xff]  ;;  %v919_v22 = vld [vmem:[#allocation4 + $0x248] sm:$0xff] }
  0x78   : > { %335 = vst.msk [vmem:[#allocation2 + $0x88] sm:$0xff] %vm328_vm0, %v302_v44  ;;  %336 = vst.msk [vmem:[#allocation2 + $0x90] sm:$0xff] %vm328_vm0, %v303_v47  ;;  %v914_v44 = vld [vmem:[#allocation4 + $0x220] sm:$0xff]  ;;  %v7094_v47 = vpack.c.bf16 %v625_v31, %v624_v30  ;;  %7039 = vmatpush1.bf16.msra.mxu0 %v7038_v39 }
  0x79   : > { %368 = vst.msk [vmem:[#allocation2 + $0x88] sm:$0xff] %vm361_vm1, %v7767_v1  ;;  %369 = vst.msk [vmem:[#allocation2 + $0x90] sm:$0xff] %vm361_vm1, %v7767_v1  ;;  %v7041_v59 = vpack.c.bf16 %v915_v45, %v914_v44  ;;  %7040 = vmatprep.subr.bf16.mxu0 %v12243_v0  ;;  %v630_v31 = vld [vmem:[#allocation4 + $0x40] sm:$0xff]  ;;  %v921_v45 = vld [vmem:[#allocation4 + $0x258] sm:$0xff] }
  0x7a   : > { %v8028_v51 = vld [vmem:[#allocation2 + $0x28] sm:$0xff]  ;;  %v8035_v53 = vld [vmem:[#allocation2 + $0x30] sm:$0xff]  ;;  %337 = vst.msk [vmem:[#allocation2 + $0xa8] sm:$0xff] %vm328_vm0, %v304_v55  ;;  %338 = vst.msk [vmem:[#allocation2 + $0xb0] sm:$0xff] %vm328_vm0, %v305_v57 }
  0x7b   : > { %v814_v54 = vrot.slane %v8028_v51, 1  ;;  %1006 = vmatprep.mubr.f32.mxu0 %v8028_v51  ;;  %v830_v56 = vrot.slane %v8035_v53, 1  ;;  %370 = vst.msk [vmem:[#allocation2 + $0xa8] sm:$0xff] %vm361_vm1, %v7767_v1  ;;  %371 = vst.msk [vmem:[#allocation2 + $0xb0] sm:$0xff] %vm361_vm1, %v7767_v1  ;;  %v316_v57 = vld [vmem:[%s7994_s26 + $0xa0] sm:$0xff] }
  0x7c   : > { %339 = vst.msk [vmem:[#allocation2 + $0xc8] sm:$0xff] %vm328_vm0, %v306_v63  ;;  %340 = vst.msk [vmem:[#allocation2 + $0xd0] sm:$0xff] %vm328_vm0, %v307_v4  ;;  %v8061_v7 = vld [vmem:[#allocation2 + $0x48] sm:$0xff]  ;;  %v8065_v9 = vld [vmem:[#allocation2 + $0x50] sm:$0xff]  ;;  %7042 = vmatpush1.bf16.msra.mxu0 %v7041_v59 }
  0x7d   : > { %v878_v62 = vsel %vm589_vm2, %v814_v54, %v830_v56  ;;  %372 = vst.msk [vmem:[#allocation2 + $0xc8] sm:$0xff] %vm361_vm1, %v7767_v1  ;;  %373 = vst.msk [vmem:[#allocation2 + $0xd0] sm:$0xff] %vm361_vm1, %v7767_v1  ;;  %v815_v17 = vrot.slane %v8061_v7, 1  ;;  %v8078_v18 = vrot.slane %v8065_v9, 1  ;;  %v862_v27 = vsel %vm589_vm2, %v830_v56, %v846_v14  ;;  %v685_v56 = vld [vmem:[#allocation2 + $0x98] sm:$0xff]  ;;  %7043 = vmatprep.subr.bf16.mxu0 %v12243_v0 }
  0x7e   : > { %6482 = vmatprep.mubr.f32.mxu1 %v878_v62  ;;  %341 = vst.msk [vmem:[#allocation2 + $0xe8] sm:$0xff] %vm328_vm0, %v308_v10  ;;  %342 = vst.msk [vmem:[#allocation2 + $0xf0] sm:$0xff] %vm328_vm0, %v309_v11  ;;  %v8082_v23 = vld [vmem:[#allocation2 + $0x68] sm:$0xff]  ;;  %v8084_v24 = vld [vmem:[#allocation2 + $0x70] sm:$0xff]  ;;  %v849_v6 = vrot.slane %v685_v56, 1 }
  0x7f   : > { %374 = vst.msk [vmem:[#allocation2 + $0xe8] sm:$0xff] %vm361_vm1, %v7767_v1  ;;  %375 = vst.msk [vmem:[#allocation2 + $0xf0] sm:$0xff] %vm361_vm1, %v7767_v1  ;;  %v8102_v33 = vsel %vm589_vm2, %v815_v17, %v8078_v18  ;;  %v816_v34 = vrot.slane %v8082_v23, 1  ;;  %v8106_v35 = vrot.slane %v8084_v24, 1  ;;  %6483 = vmatmul.mubr.f32.vlgmr.msra.gmra.mrb[0].mxu1 %v862_v27  ;;  %v863_v46 = vsel %vm589_vm2, %v8078_v18, %v847_v29  ;;  %v917_v63 = vld [vmem:[#allocation4 + $0x238] sm:$0xff] }
  0x80   : > { %12374 = vst [vmem:[#allocation14_spill] sm:$0xff] %v8078_v18  ;;  %343 = vst.msk [vmem:[#allocation2 + $0x108] sm:$0xff] %vm328_vm0, %v310_v20  ;;  %v8108_v37 = vld [vmem:[#allocation2 + $0x88] sm:$0xff]  ;;  %v8112_v40 = vld [vmem:[#allocation2 + $0x90] sm:$0xff]  ;;  %7092 = vmatpush1.bf16.msra.mxu1 %v7091_v28  ;;  %6485 = vmatprep.mubr.f32.mxu1 %v8102_v33  ;;  %v7044_v16 = vpack.c.bf16 %v917_v63, %v916_v60 }
  0x81   : > { %344 = vst.msk [vmem:[#allocation2 + $0x110] sm:$0xff] %vm328_vm0, %v311_v21  ;;  %12375 = vst [vmem:[#allocation15_spill] sm:$0xff] %v8102_v33  ;;  %7093 = vmatprep.subr.bf16.mxu1 %v12243_v0  ;;  %v8136_v52 = vsel %vm589_vm2, %v816_v34, %v8106_v35  ;;  %v817_v54 = vrot.slane %v8108_v37, 1  ;;  %v8140_v55 = vrot.slane %v8112_v40, 1  ;;  %v864_v4 = vsel %vm589_vm2, %v8106_v35, %v848_v48  ;;  %v629_v11 = vld [vmem:[#allocation4 + $0x38] sm:$0xff]  ;;  %v321_v20 = vld [vmem:[%s7994_s26 + $0xc8] sm:$0xff] }
  0x82   : > { %376 = vst.msk [vmem:[#allocation2 + $0x108] sm:$0xff] %vm361_vm1, %v7767_v1  ;;  %377 = vst.msk [vmem:[#allocation2 + $0x110] sm:$0xff] %vm361_vm1, %v7767_v1  ;;  %v8144_v61 = vld [vmem:[#allocation2 + $0xa8] sm:$0xff]  ;;  %v8146_v62 = vld [vmem:[#allocation2 + $0xb0] sm:$0xff]  ;;  %v7100_v26 = vpack.c.bf16 %v629_v11, %v628_v8  ;;  %7045 = vmatpush1.bf16.msra.mxu0 %v7044_v16 }
  0x83   : > { %12376 = vst [vmem:[#allocation16_spill] sm:$0xff] %v8106_v35  ;;  %345 = vst.msk [vmem:[#allocation2 + $0x128] sm:$0xff] %vm328_vm0, %v312_v32  ;;  %6486 = vmatmul.mubr.f32.gmra.mrb[2].mxu1 %v863_v46  ;;  %v8167_v10 = vsel %vm589_vm2, %v817_v54, %v8140_v55  ;;  %v818_v12 = vrot.slane %v8144_v61, 1  ;;  %v8171_v13 = vrot.slane %v8146_v62, 1  ;;  %v689_v14 = vld [vmem:[#allocation2 + $0xb8] sm:$0xff]  ;;  %v918_v21 = vld [vmem:[#allocation4 + $0x240] sm:$0xff]  ;;  %v865_v25 = vsel %vm589_vm2, %v8140_v55, %v849_v6 }
  0x84   : > { %346 = vst.msk [vmem:[#allocation2 + $0x130] sm:$0xff] %vm328_vm0, %v313_v38  ;;  %347 = vst.msk [vmem:[#allocation2 + $0x148] sm:$0xff] %vm328_vm0, %v314_v41  ;;  %7095 = vmatpush1.bf16.msra.mxu1 %v7094_v47  ;;  %6488 = vmatprep.mubr.f32.mxu1 %v8136_v52  ;;  %v8178_v17 = vld [vmem:[#allocation2 + $0xc8] sm:$0xff]  ;;  %v8180_v19 = vld [vmem:[#allocation2 + $0xd0] sm:$0xff]  ;;  %v850_v27 = vrot.slane %v689_v14, 1  ;;  %v7047_v39 = vpack.c.bf16 %v919_v22, %v918_v21 }
  0x85   : > { %378 = vst.msk [vmem:[#allocation2 + $0x128] sm:$0xff] %vm361_vm1, %v7767_v1  ;;  %379 = vst.msk [vmem:[#allocation2 + $0x130] sm:$0xff] %vm361_vm1, %v7767_v1  ;;  %7096 = vmatprep.subr.bf16.mxu1 %v12243_v0  ;;  %v322_v28 = vld [vmem:[%s7994_s26 + $0xd0] sm:$0xff]  ;;  %v323_v29 = vld [vmem:[%s7994_s26 + $0xd8] sm:$0xff]  ;;  %v8200_v30 = vsel %vm589_vm2, %v818_v12, %v8171_v13  ;;  %v819_v34 = vrot.slane %v8178_v17, 1  ;;  %v8204_v36 = vrot.slane %v8180_v19, 1  ;;  %7046 = vmatprep.subr.bf16.mxu0 %v12243_v0 }
  0x86   : > { %348 = vst.msk [vmem:[#allocation2 + $0x150] sm:$0xff] %vm328_vm0, %v315_v42  ;;  %12377 = vst [vmem:[#allocation17_spill] sm:$0xff] %v8136_v52  ;;  %v631_v32 = vld [vmem:[#allocation4 + $0x48] sm:$0xff]  ;;  %v693_v38 = vld [vmem:[#allocation2 + $0xd8] sm:$0xff]  ;;  %v866_v48 = vsel %vm589_vm2, %v8171_v13, %v850_v27  ;;  %7048 = vmatpush1.bf16.msra.mxu0 %v7047_v39 }
  0x87   : > { %380 = vst.msk [vmem:[#allocation2 + $0x148] sm:$0xff] %vm361_vm1, %v7767_v1  ;;  %381 = vst.msk [vmem:[#allocation2 + $0x150] sm:$0xff] %vm361_vm1, %v7767_v1  ;;  %6489 = vmatmul.mubr.f32.gmra.mrb[4].mxu1 %v864_v4  ;;  %v920_v41 = vld [vmem:[#allocation4 + $0x250] sm:$0xff]  ;;  %v8208_v42 = vld [vmem:[#allocation2 + $0xe8] sm:$0xff]  ;;  %v7103_v49 = vpack.c.bf16 %v631_v32, %v630_v31  ;;  %v851_v50 = vrot.slane %v693_v38, 1  ;;  %7049 = vmatprep.subr.bf16.mxu0 %v12243_v0 }
  0x88   : > { %12378 = vst [vmem:[#allocation18_spill] sm:$0xff] %v8140_v55  ;;  %349 = vst.msk [vmem:[#allocation2 + $0x168] sm:$0xff] %vm328_vm0, %v316_v57  ;;  %7098 = vmatpush1.bf16.msra.mxu1 %v7097_v5  ;;  %6491 = vmatprep.mubr.f32.mxu1 %v8167_v10  ;;  %v8210_v44 = vld [vmem:[#allocation2 + $0xf0] sm:$0xff]  ;;  %v324_v46 = vld [vmem:[%s7994_s26 + $0xe0] sm:$0xff]  ;;  %v8229_v57 = vsel %vm589_vm2, %v819_v34, %v8204_v36 }
  0x89   : > { %350 = vst.msk [vmem:[#allocation2 + $0x170] sm:$0xff] %vm328_vm0, %v317_v58  ;;  %351 = vst.msk [vmem:[#allocation2 + $0x188] sm:$0xff] %vm328_vm0, %v318_v2  ;;  %7099 = vmatprep.subr.bf16.mxu1 %v12243_v0  ;;  %v325_v47 = vld [vmem:[%s7994_s26 + $0xe8] sm:$0xff]  ;;  %v632_v54 = vld [vmem:[#allocation4 + $0x50] sm:$0xff]  ;;  %v820_v58 = vrot.slane %v8208_v42, 1  ;;  %v8233_v59 = vrot.slane %v8210_v44, 1  ;;  %v867_v11 = vsel %vm589_vm2, %v8204_v36, %v851_v50 }
  0x8a   : > { %382 = vst.msk [vmem:[#allocation2 + $0x168] sm:$0xff] %vm361_vm1, %v7767_v1  ;;  %383 = vst.msk [vmem:[#allocation2 + $0x170] sm:$0xff] %vm361_vm1, %v7767_v1  ;;  %v633_v56 = vld [vmem:[#allocation4 + $0x58] sm:$0xff]  ;;  %v326_v63 = vld [vmem:[%s7994_s26 + $0xf0] sm:$0xff] }
  0x8b   : > { %352 = vst.msk [vmem:[#allocation2 + $0x190] sm:$0xff] %vm328_vm0, %v319_v3  ;;  %12379 = vst [vmem:[#allocation19_spill] sm:$0xff] %v8167_v10  ;;  %6492 = vmatmul.mubr.f32.gmra.mrb[6].mxu1 %v865_v25  ;;  %v697_v60 = vld [vmem:[#allocation2 + $0xf8] sm:$0xff]  ;;  %v7050_v3 = vpack.c.bf16 %v921_v45, %v920_v41  ;;  %v8241_v4 = vld [vmem:[#allocation2 + $0x108] sm:$0xff]  ;;  %v7106_v12 = vpack.c.bf16 %v633_v56, %v632_v54 }
  0x8c   : > { %12380 = vst [vmem:[#allocation20_spill] sm:$0xff] %v8171_v13  ;;  %384 = vst.msk [vmem:[#allocation2 + $0x188] sm:$0xff] %vm361_vm1, %v7767_v1  ;;  %7101 = vmatpush1.bf16.msra.mxu1 %v7100_v26  ;;  %6494 = vmatprep.mubr.f32.mxu1 %v8200_v30  ;;  %v327_v2 = vld [vmem:[%s7994_s26 + $0xf8] sm:$0xff]  ;;  %v8243_v5 = vld [vmem:[#allocation2 + $0x110] sm:$0xff]  ;;  %v852_v14 = vrot.slane %v697_v60, 1 }
  0x8d   : > { %385 = vst.msk [vmem:[#allocation2 + $0x190] sm:$0xff] %vm361_vm1, %v7767_v1  ;;  %12381 = vst [vmem:[#allocation21_spill] sm:$0xff] %v8200_v30  ;;  %7102 = vmatprep.subr.bf16.mxu1 %v12243_v0  ;;  %v922_v6 = vld [vmem:[#allocation4 + $0x260] sm:$0xff]  ;;  %v923_v8 = vld [vmem:[#allocation4 + $0x268] sm:$0xff]  ;;  %v8264_v21 = vrot.slane %v8243_v5, 1  ;;  %7051 = vmatpush1.bf16.msra.mxu0 %v7050_v3 }
  0x8e   : > { %353 = vst.msk [vmem:[#allocation2 + $0x1a8] sm:$0xff] %vm328_vm0, %v320_v15  ;;  %354 = vst.msk [vmem:[#allocation2 + $0x1b0] sm:$0xff] %vm328_vm0, %v321_v20  ;;  %v8260_v15 = vsel %vm589_vm2, %v820_v58, %v8233_v59  ;;  %v634_v16 = vld [vmem:[#allocation4 + $0x60] sm:$0xff]  ;;  %v635_v20 = vld [vmem:[#allocation4 + $0x68] sm:$0xff]  ;;  %v7053_v25 = vpack.c.bf16 %v923_v8, %v922_v6  ;;  %7052 = vmatprep.subr.bf16.mxu0 %v12243_v0  ;;  %v868_v32 = vsel %vm589_vm2, %v8233_v59, %v852_v14 }
  0x8f   : > { %386 = vst.msk [vmem:[#allocation2 + $0x1a8] sm:$0xff] %vm361_vm1, %v7767_v1  ;;  %387 = vst.msk [vmem:[#allocation2 + $0x1b0] sm:$0xff] %vm361_vm1, %v7767_v1  ;;  %6495 = vmatmul.mubr.f32.gmra.mrb[8].mxu1 %v866_v48  ;;  %v701_v22 = vld [vmem:[#allocation2 + $0x118] sm:$0xff]  ;;  %v8266_v26 = vld [vmem:[#allocation2 + $0x128] sm:$0xff]  ;;  %v7109_v34 = vpack.c.bf16 %v635_v20, %v634_v16  ;;  %v750_v58 = vrot.slane %v8028_v51, 7 }
  0x90   : > { %12382 = vst [vmem:[#allocation22_spill] sm:$0xff] %v8204_v36  ;;  %355 = vst.msk [vmem:[#allocation2 + $0x1c8] sm:$0xff] %vm328_vm0, %v322_v28  ;;  %7104 = vmatpush1.bf16.msra.mxu1 %v7103_v49  ;;  %6497 = vmatprep.mubr.f32.mxu1 %v8229_v57  ;;  %v8268_v27 = vld [vmem:[#allocation2 + $0x130] sm:$0xff]  ;;  %v8271_v31 = vld [vmem:[#allocation2 + $0x20] sm:$0xff]  ;;  %v853_v38 = vrot.slane %v701_v22, 1  ;;  %v822_v48 = vrot.slane %v8266_v26, 1 }
  0x91   : > { %356 = vst.msk [vmem:[#allocation2 + $0x1d0] sm:$0xff] %vm328_vm0, %v323_v29  ;;  %357 = vst.msk [vmem:[#allocation2 + $0x1e8] sm:$0xff] %vm328_vm0, %v324_v46  ;;  %7105 = vmatprep.subr.bf16.mxu1 %v12243_v0  ;;  %v924_v28 = vld [vmem:[#allocation4 + $0x270] sm:$0xff]  ;;  %v925_v29 = vld [vmem:[#allocation4 + $0x278] sm:$0xff]  ;;  %v8285_v49 = vrot.slane %v8268_v27, 1  ;;  %7054 = vmatpush1.bf16.msra.mxu0 %v7053_v25  ;;  %v12242_v56 = vrot.slane %v8271_v31, 7 }
  0x92   : > { %388 = vst.msk [vmem:[#allocation2 + $0x1c8] sm:$0xff] %vm361_vm1, %v7767_v1  ;;  %389 = vst.msk [vmem:[#allocation2 + $0x1d0] sm:$0xff] %vm361_vm1, %v7767_v1  ;;  %v654_v39 = vld [vmem:[#allocation4 + $0x100] sm:$0xff]  ;;  %v655_v41 = vld [vmem:[#allocation4 + $0x108] sm:$0xff]  ;;  %v7056_v54 = vpack.c.bf16 %v925_v29, %v924_v28  ;;  %7055 = vmatprep.subr.bf16.mxu0 %v12243_v0  ;;  %v869_v3 = vsel %vm589_vm2, %v8264_v21, %v853_v38  ;;  %v766_v28 = vrot.slane %v8035_v53, 7 }
  0x93   : > { %358 = vst.msk [vmem:[#allocation2 + $0x1f0] sm:$0xff] %vm328_vm0, %v325_v47  ;;  %12383 = vst [vmem:[#allocation23_spill] sm:$0xff] %v8229_v57  ;;  %6498 = vmatmul.mubr.f32.gmra.mrb[10].mxu1 %v867_v11  ;;  %v636_v46 = vld [vmem:[#allocation4 + $0x70] sm:$0xff]  ;;  %v637_v47 = vld [vmem:[#allocation4 + $0x78] sm:$0xff]  ;;  %v798_v25 = vsel %vm508_vm3, %v12242_v56, %v750_v58 }
  0x94   : > { %12384 = vst [vmem:[#allocation24_spill] sm:$0xff] %v8233_v59  ;;  %390 = vst.msk [vmem:[#allocation2 + $0x1e8] sm:$0xff] %vm361_vm1, %v7767_v1  ;;  %7107 = vmatpush1.bf16.msra.mxu1 %v7106_v12  ;;  %6500 = vmatprep.mubr.f32.mxu1 %v8260_v15  ;;  %v705_v50 = vld [vmem:[#allocation2 + $0x138] sm:$0xff]  ;;  %v8289_v60 = vld [vmem:[#allocation2 + $0x148] sm:$0xff]  ;;  %v7112_v6 = vpack.c.bf16 %v637_v47, %v636_v46  ;;  %v8303_v12 = vsel %vm589_vm2, %v822_v48, %v8285_v49 }
  0x95   : > { %391 = vst.msk [vmem:[#allocation2 + $0x1f0] sm:$0xff] %vm361_vm1, %v7767_v1  ;;  %12385 = vst [vmem:[#allocation25_spill] sm:$0xff] %v8260_v15  ;;  %7108 = vmatprep.subr.bf16.mxu1 %v12243_v0  ;;  %v854_v8 = vrot.slane %v705_v50, 1  ;;  %v656_v51 = vld [vmem:[#allocation4 + $0x110] sm:$0xff]  ;;  %v657_v11 = vld [vmem:[#allocation4 + $0x118] sm:$0xff]  ;;  %v12241_v20 = vrot.slane %v8289_v60, 1  ;;  %7057 = vmatpush1.bf16.msra.mxu0 %v7056_v54 }
  0x96   : > { %359 = vst.msk [vmem:[#allocation2 + $0x208] sm:$0xff] %vm328_vm0, %v326_v63  ;;  %360 = vst.msk [vmem:[#allocation2 + $0x210] sm:$0xff] %vm328_vm0, %v327_v2  ;;  %v8291_v63 = vld [vmem:[#allocation2 + $0x150] sm:$0xff]  ;;  %v7138_v2 = vpack.c.bf16 %v655_v41, %v654_v39  ;;  %v638_v14 = vld [vmem:[#allocation4 + $0x80] sm:$0xff]  ;;  %v7142_v38 = vpack.c.bf16 %v657_v11, %v656_v51 }
  0x97   : > { %392 = vst.msk [vmem:[#allocation2 + $0x208] sm:$0xff] %vm361_vm1, %v7767_v1  ;;  %393 = vst.msk [vmem:[#allocation2 + $0x210] sm:$0xff] %vm361_vm1, %v7767_v1  ;;  %v821_v1 = vrot.slane %v8241_v4, 1  ;;  %6501 = vmatmul.mubr.f32.gmra.mrb[12].mxu1 %v868_v32  ;;  %v639_v16 = vld [vmem:[#allocation4 + $0x88] sm:$0xff]  ;;  %v709_v22 = vld [vmem:[#allocation2 + $0x158] sm:$0xff]  ;;  %v870_v39 = vsel %vm589_vm2, %v8285_v49, %v854_v8  ;;  %v782_v8 = vsel %vm508_vm3, %v750_v58, %v766_v28 }
  0x98   : > { %12386 = vst [vmem:[#allocation26_spill] sm:$0xff] %v8264_v21  ;;  %12388 = vst [vmem:[#allocation28_spill] sm:$0xff] %v8285_v49  ;;  %7110 = vmatpush1.bf16.msra.mxu1 %v7109_v34  ;;  %v8312_v29 = vld [vmem:[#allocation2 + $0x168] sm:$0xff]  ;;  %v8314_v32 = vld [vmem:[#allocation2 + $0x170] sm:$0xff]  ;;  %7139 = vmatprep.subr.bf16.mxu0 %v7138_v2  ;;  %v7115_v41 = vpack.c.bf16 %v639_v16, %v638_v14  ;;  %v855_v46 = vrot.slane %v709_v22, 1  ;;  %v751_v16 = vrot.slane %v8061_v7, 7 }
  0x99   : > { %v8281_v45 = vsel %vm589_vm2, %v821_v1, %v8264_v21  ;;  %7111 = vmatprep.subr.bf16.mxu1 %v12243_v0  ;;  %12389 = vst [vmem:[#allocation29_spill] sm:$0xff] %v8303_v12  ;;  %v839_v1 = vrot.slane %v8291_v63, 1  ;;  %v674_v34 = vld [vmem:[#allocation2 + $0x40] sm:$0xff]  ;;  %v659_v48 = vld [vmem:[#allocation4 + $0x128] sm:$0xff]  ;;  %1007 = vmatmul.mubr.f32.vlgmr.msra.gmra.mrb[0].mxu0 %v798_v25  ;;  %v640_v54 = vld [vmem:[#allocation4 + $0x90] sm:$0xff]  ;;  %v840_v51 = vrot.slane %v8314_v32, 1 }
  0x9a   : > { %12387 = vst [vmem:[#allocation27_spill] sm:$0xff] %v8281_v45  ;;  %6503 = vmatprep.mubr.f32.mxu1 %v8281_v45  ;;  %v658_v47 = vld [vmem:[#allocation4 + $0x120] sm:$0xff]  ;;  %v713_v11 = vld [vmem:[#allocation2 + $0x178] sm:$0xff]  ;;  %1011 = vmatprep.mubr.f32.mxu0 %v8035_v53  ;;  %v735_v14 = vrot.slane %v674_v34, 7  ;;  %v8331_v22 = vld [vmem:[#allocation2 + $0x188] sm:$0xff]  ;;  %v12390_v34 = vmov 0.0|0.0  }
  0x9b   : > { %6504 = vmatmul.mubr.f32.gmra.mrb[14].mxu1 %v869_v3  ;;  %v887_v50 = vsel %vm589_vm2, %v12241_v20, %v839_v1  ;;  %v641_v3 = vld [vmem:[#allocation4 + $0x98] sm:$0xff]  ;;  %v8333_v25 = vld [vmem:[#allocation2 + $0x190] sm:$0xff]  ;;  %7141 = vmatpush3.bf16.msra.mxu0 %v7138_v2  ;;  %v7146_v20 = vpack.c.bf16 %v659_v48, %v658_v47  ;;  %v871_v56 = vsel %vm589_vm2, %v839_v1, %v855_v46  ;;  %v12391_v49 = vrot.slane %v8312_v29, 1  ;;  %v8344_v1 = vld [vmem:[#allocation2 + $0x1a8] sm:$0xff] }
  0x9c   : > { %7113 = vmatpush1.bf16.msra.mxu1 %v7112_v6  ;;  %6506 = vmatprep.mubr.f32.mxu1 %v8303_v12  ;;  %v7118_v53 = vpack.c.bf16 %v641_v3, %v640_v54  ;;  %v856_v6 = vrot.slane %v713_v11, 1  ;;  %v660_v58 = vld [vmem:[#allocation4 + $0x130] sm:$0xff]  ;;  %v661_v28 = vld [vmem:[#allocation4 + $0x138] sm:$0xff]  ;;  %v841_v47 = vrot.slane %v8333_v25, 1  ;;  %v8349_v46 = vsel %vm508_vm3, %v735_v14, %v751_v16  ;;  %v8354_v3 = vld [vmem:[#allocation2 + $0x28] sm:$0xff] }
  0x9d   : > { %7114 = vmatprep.subr.bf16.mxu1 %v12243_v0  ;;  %7143 = vmatprep.subr.bf16.mxu0 %v7142_v38  ;;  %v642_v0 = vld [vmem:[#allocation4 + $0xa0] sm:$0xff]  ;;  %v888_v2 = vsel %vm589_vm2, %v12391_v49, %v840_v51  ;;  %v717_v48 = vld [vmem:[#allocation2 + $0x198] sm:$0xff]  ;;  %v8352_v54 = vld [vmem:[#allocation2 + $0x1b0] sm:$0xff]  ;;  %v7150_v12 = vpack.c.bf16 %v661_v28, %v660_v58 }
  0x9e   : > { %1012 = vmatmul.mubr.f32.gmra.mrb[2].mxu0 %v782_v8  ;;  %v8356_v49 = vld [vmem:[#allocation2 + $0x30] sm:$0xff]  ;;  %v678_v11 = vld [vmem:[#allocation2 + $0x60] sm:$0xff]  ;;  %v542_v8 = vrot.slane %v8354_v3, 1  ;;  %v872_v14 = vsel %vm589_vm2, %v840_v51, %v856_v6  ;;  %v857_v45 = vrot.slane %v717_v48, 1  ;;  %v663_v15 = vld [vmem:[#allocation4 + $0x148] sm:$0xff]  ;;  %v842_v28 = vrot.slane %v8352_v54, 1 }
  0x9f   : > { %6507 = vmatmul.mubr.f32.gmra.mrb[16].mxu1 %v870_v39  ;;  %v643_v39 = vld [vmem:[#allocation4 + $0xa8] sm:$0xff]  ;;  %1016 = vmatprep.mubr.f32.mxu0 %v8061_v7  ;;  %v662_v59 = vld [vmem:[#allocation4 + $0x140] sm:$0xff]  ;;  %v645_v58 = vld [vmem:[#allocation4 + $0xb8] sm:$0xff]  ;;  %v736_v51 = vrot.slane %v678_v11, 7  ;;  %v12393_v36 = vrot.slane %v8356_v49, 1 }
  0xa0   : > { %7116 = vmatpush1.bf16.msra.mxu1 %v7115_v41  ;;  %6509 = vmatprep.mubr.f32.mxu1 %v887_v50  ;;  %v767_v50 = vrot.slane %v8065_v9, 7  ;;  %v7121_v21 = vpack.c.bf16 %v643_v39, %v642_v0  ;;  %v644_v41 = vld [vmem:[#allocation4 + $0xb0] sm:$0xff]  ;;  %v721_v6 = vld [vmem:[#allocation2 + $0x1b8] sm:$0xff]  ;;  %v8376_v39 = vld [vmem:[#allocation2 + $0x1c8] sm:$0xff] }
  0xa1   : > { %7117 = vmatprep.subr.bf16.mxu1 %v12390_v34  ;;  %7145 = vmatpush3.bf16.msra.mxu0 %v7142_v38  ;;  %v8378_v48 = vld [vmem:[#allocation2 + $0x1d0] sm:$0xff]  ;;  %v8384_v57 = vsel %vm589_vm2, %v542_v8, %v12393_v36  ;;  %v858_v11 = vrot.slane %v721_v6, 1  ;;  %v665_v30 = vld [vmem:[#allocation4 + $0x158] sm:$0xff]  ;;  %v827_v36 = vrot.slane %v8376_v39, 1  ;;  %v667_v10 = vld [vmem:[#allocation4 + $0x168] sm:$0xff] }
  0xa2   : > { %7147 = vmatprep.subr.bf16.mxu0 %v7146_v20  ;;  %1017 = vmatmul.mubr.f32.gmra.mrb[4].mxu0 %v8349_v46  ;;  %v8373_v0 = vsel %vm508_vm3, %v751_v16, %v767_v50  ;;  %v873_v16 = vsel %vm589_vm2, %v841_v47, %v857_v45  ;;  %v7124_v50 = vpack.c.bf16 %v645_v58, %v644_v41  ;;  %v664_v13 = vld [vmem:[#allocation4 + $0x150] sm:$0xff]  ;;  %v725_v8 = vld [vmem:[#allocation2 + $0x1d8] sm:$0xff]  ;;  %v768_v41 = vrot.slane %v8084_v24, 7 }
  0xa3   : > { %6510 = vmatmul.mubr.f32.gmra.mrb[18].mxu1 %v871_v56  ;;  %v12392_v56 = vrot.slane %v8331_v22, 1  ;;  %1021 = vmatprep.mubr.f32.mxu0 %v8065_v9  ;;  %v7158_v58 = vpack.c.bf16 %v665_v30, %v664_v13  ;;  %v859_v55 = vrot.slane %v725_v8, 1  ;;  %v649_v35 = vld [vmem:[#allocation4 + $0xd8] sm:$0xff]  ;;  %v652_v33 = vld [vmem:[#allocation4 + $0xf0] sm:$0xff] }
  0xa4   : > { %7119 = vmatpush1.bf16.msra.mxu1 %v7118_v53  ;;  %6512 = vmatprep.mubr.f32.mxu1 %v888_v2  ;;  %v826_v53 = vrot.slane %v8344_v1, 1  ;;  %v752_v2 = vrot.slane %v8082_v23, 7 }
  0xa5   : > { %7120 = vmatprep.subr.bf16.mxu1 %v12390_v34  ;;  %v889_v38 = vsel %vm589_vm2, %v12392_v56, %v841_v47  ;;  %7149 = vmatpush3.bf16.msra.mxu0 %v7146_v20  ;;  %v7154_v56 = vpack.c.bf16 %v663_v15, %v662_v59  ;;  %v646_v15 = vld [vmem:[#allocation4 + $0xc0] sm:$0xff]  ;;  %v647_v20 = vld [vmem:[#allocation4 + $0xc8] sm:$0xff] }
  0xa6   : > { %7151 = vmatprep.subr.bf16.mxu0 %v7150_v12  ;;  %1022 = vmatmul.mubr.f32.gmra.mrb[6].mxu0 %v8373_v0  ;;  %v890_v59 = vsel %vm589_vm2, %v826_v53, %v842_v28  ;;  %v8397_v45 = vsel %vm508_vm3, %v736_v51, %v752_v2  ;;  %v8400_v47 = vld [vmem:[#allocation2 + $0x1e8] sm:$0xff]  ;;  %v874_v53 = vsel %vm589_vm2, %v842_v28, %v858_v11  ;;  %v666_v51 = vld [vmem:[#allocation4 + $0x160] sm:$0xff] }
  0xa7   : > { %6513 = vmatmul.mubr.f32.gmra.mrb[20].mxu1 %v872_v14  ;;  %1026 = vmatprep.mubr.f32.mxu0 %v8082_v23  ;;  %v8402_v14 = vld [vmem:[#allocation2 + $0x1f0] sm:$0xff]  ;;  %v7127_v6 = vpack.c.bf16 %v647_v20, %v646_v15  ;;  %v828_v13 = vrot.slane %v8400_v47, 1  ;;  %v8415_v28 = vsel %vm508_vm3, %v752_v2, %v768_v41  ;;  %v8418_v15 = vld [vmem:[#allocation2 + $0x208] sm:$0xff]  ;;  %v669_v41 = vld [vmem:[#allocation4 + $0x178] sm:$0xff] }
  0xa8   : > { %7122 = vmatpush1.bf16.msra.mxu1 %v7121_v21  ;;  %6515 = vmatprep.mubr.f32.mxu1 %v889_v38  ;;  %v843_v21 = vrot.slane %v8378_v48, 1  ;;  %v682_v38 = vld [vmem:[#allocation2 + $0x80] sm:$0xff]  ;;  %v844_v30 = vrot.slane %v8402_v14, 1  ;;  %v8420_v20 = vld [vmem:[#allocation2 + $0x210] sm:$0xff] }
  0xa9   : > { %7123 = vmatprep.subr.bf16.mxu1 %v12390_v34  ;;  %7153 = vmatpush3.bf16.msra.mxu0 %v7150_v12  ;;  %v737_v11 = vrot.slane %v682_v38, 7  ;;  %v668_v2 = vld [vmem:[#allocation4 + $0x170] sm:$0xff] }
  0xaa   : > { %7155 = vmatprep.subr.bf16.mxu0 %v7154_v56  ;;  %1027 = vmatmul.mubr.f32.gmra.mrb[8].mxu0 %v8397_v45  ;;  %v891_v12 = vsel %vm589_vm2, %v827_v36, %v843_v21  ;;  %v7162_v36 = vpack.c.bf16 %v667_v10, %v666_v51  ;;  %v875_v8 = vsel %vm589_vm2, %v843_v21, %v859_v55  ;;  %v829_v10 = vrot.slane %v8418_v15, 1  ;;  %v733_v51 = vld [vmem:[#allocation2 + $0x218] sm:$0xff]  ;;  %v686_v21 = vld [vmem:[#allocation2 + $0xa0] sm:$0xff] }
  0xab   : > { %6516 = vmatmul.mubr.f32.gmra.mrb[22].mxu1 %v873_v16  ;;  %v648_v16 = vld [vmem:[#allocation4 + $0xd0] sm:$0xff]  ;;  %1031 = vmatprep.mubr.f32.mxu0 %v8084_v24  ;;  %v892_v38 = vsel %vm589_vm2, %v828_v13, %v844_v30  ;;  %v769_v55 = vrot.slane %v8112_v40, 7 }
  0xac   : > { %7125 = vmatpush1.bf16.msra.mxu1 %v7124_v50  ;;  %6518 = vmatprep.mubr.f32.mxu1 %v890_v59  ;;  %v729_v50 = vld [vmem:[#allocation2 + $0x1f8] sm:$0xff]  ;;  %v753_v59 = vrot.slane %v8108_v37, 7  ;;  %v7130_v52 = vpack.c.bf16 %v649_v35, %v648_v16 }
  0xad   : > { %7126 = vmatprep.subr.bf16.mxu1 %v12390_v34  ;;  %7157 = vmatpush3.bf16.msra.mxu0 %v7154_v56  ;;  %v860_v18 = vrot.slane %v729_v50, 1  ;;  %v650_v56 = vld [vmem:[#allocation4 + $0xe0] sm:$0xff]  ;;  %v861_v50 = vrot.slane %v733_v51, 1 }
  0xae   : > { %7159 = vmatprep.subr.bf16.mxu0 %v7158_v58  ;;  %1032 = vmatmul.mubr.f32.gmra.mrb[10].mxu0 %v8415_v28  ;;  %v8433_v35 = vsel %vm508_vm3, %v737_v11, %v753_v59 }
  0xaf   : > { %6519 = vmatmul.mubr.f32.gmra.mrb[24].mxu1 %v874_v53  ;;  %v651_v53 = vld [vmem:[#allocation4 + $0xe8] sm:$0xff]  ;;  %1036 = vmatprep.mubr.f32.mxu0 %v8108_v37  ;;  %v876_v16 = vsel %vm589_vm2, %v844_v30, %v860_v18  ;;  %v754_v18 = vrot.slane %v8144_v61, 7 }
  0xb0   : > { %7128 = vmatpush1.bf16.msra.mxu1 %v7127_v6  ;;  %6521 = vmatprep.mubr.f32.mxu1 %v891_v12  ;;  %v845_v6 = vrot.slane %v8420_v20, 1  ;;  %v7166_v12 = vpack.c.bf16 %v669_v41, %v668_v2  ;;  %v7133_v13 = vpack.c.bf16 %v651_v53, %v650_v56  ;;  %v8450_v41 = vld [vmem:[#allocation2] sm:$0xff]  ;;  %v2068_v56 = vld [vmem:[#allocation4 + $0x308] sm:$0xff]  ;;  %v770_v53 = vrot.slane %v8146_v62, 7 }
  0xb1   : > { %7129 = vmatprep.subr.bf16.mxu1 %v12390_v34  ;;  %7161 = vmatpush3.bf16.msra.mxu0 %v7158_v58  ;;  %v653_v58 = vld [vmem:[#allocation4 + $0xf8] sm:$0xff] }
  0xb2   : > { %7163 = vmatprep.subr.bf16.mxu0 %v7162_v36  ;;  %1037 = vmatmul.mubr.f32.gmra.mrb[12].mxu0 %v8433_v35  ;;  %v893_v11 = vsel %vm589_vm2, %v829_v10, %v845_v6  ;;  %v877_v30 = vsel %vm589_vm2, %v845_v6, %v861_v50  ;;  %v7136_v2 = vpack.c.bf16 %v653_v58, %v652_v33  ;;  %v690_v33 = vld [vmem:[#allocation2 + $0xc0] sm:$0xff]  ;;  %v2100_v6 = vld [vmem:[#allocation4 + $0x408] sm:$0xff]  ;;  %v755_v50 = vrot.slane %v8178_v17, 7 }
  0xb3   : > { %6522 = vmatmul.mubr.f32.gmra.mrb[26].mxu1 %v875_v8  ;;  %1041 = vmatprep.mubr.f32.mxu0 %v8112_v40  ;;  %v738_v8 = vrot.slane %v686_v21, 7  ;;  %v2099_v10 = vld [vmem:[#allocation4 + $0x400] sm:$0xff]  ;;  %v2069_v21 = vld [vmem:[#allocation4 + $0x310] sm:$0xff] }
  0xb4   : > { %7131 = vmatpush1.bf16.msra.mxu1 %v7130_v52  ;;  %6524 = vmatprep.mubr.f32.mxu1 %v892_v38  ;;  %v8445_v52 = vsel %vm508_vm3, %v753_v59, %v769_v55  ;;  %v474_v38 = vrot.slane %v8450_v41, 7  ;;  %v2067_v59 = vld [vmem:[#allocation4 + $0x300] sm:$0xff]  ;;  %v8462_v55 = vpack.c.bf16 %v2100_v6, %v2099_v10  ;;  %v2073_v6 = vld [vmem:[#allocation4 + $0x330] sm:$0xff] }
  0xb5   : > { %7132 = vmatprep.subr.bf16.mxu1 %v12390_v34  ;;  %7165 = vmatpush3.bf16.msra.mxu0 %v7162_v36  ;;  %v8458_v36 = vsel %vm508_vm3, %v738_v8, %v754_v18  ;;  %v7171_v51 = vpack.c.bf16 %v2068_v56, %v2067_v59  ;;  %v2071_v8 = vld [vmem:[#allocation4 + $0x320] sm:$0xff]  ;;  %v12394_v56 = vrot.slane %v8271_v31, 7 }
  0xb6   : > { %7167 = vmatprep.subr.bf16.mxu0 %v7166_v12  ;;  %1042 = vmatmul.mubr.f32.gmra.mrb[14].mxu0 %v8445_v52  ;;  %v694_v59 = vld [vmem:[#allocation2 + $0xe0] sm:$0xff] }
  0xb7   : > { %6525 = vmatmul.mubr.f32.gmra.mrb[28].mxu1 %v876_v16  ;;  %1046 = vmatprep.mubr.f32.mxu0 %v8144_v61  ;;  %v2070_v16 = vld [vmem:[#allocation4 + $0x318] sm:$0xff]  ;;  %v740_v31 = vrot.slane %v694_v59, 7 }
  0xb8   : > { %7134 = vmatpush1.bf16.msra.mxu1 %v7133_v13  ;;  %6527 = vmatprep.mubr.f32.mxu1 %v893_v11  ;;  %v739_v13 = vrot.slane %v690_v33, 7  ;;  %v475_v11 = vrot.slane %v8354_v3, 7  ;;  %v7174_v58 = vpack.c.bf16 %v2070_v16, %v2069_v21  ;;  %v491_v33 = vrot.slane %v8356_v49, 7  ;;  %v2078_v59 = vld [vmem:[#allocation4 + $0x358] sm:$0xff] }
  0xb9   : > { %7135 = vmatprep.subr.bf16.mxu1 %v12390_v34  ;;  %7169 = vmatpush3.bf16.msra.mxu0 %v7166_v12  ;;  %v8469_v12 = vsel %vm508_vm3, %v754_v18, %v770_v53 }
  0xba   : > { %1047 = vmatmul.mubr.f32.gmra.mrb[16].mxu0 %v8458_v36  ;;  %7219 = vmatprep.subr.bf16.mxu0 %v8462_v55  ;;  %v8480_v18 = vsel %vm508_vm3, %v739_v13, %v755_v50  ;;  %v526_v53 = vsel %vm508_vm3, %v12394_v56, %v475_v11  ;;  %v510_v21 = vsel %vm508_vm3, %v475_v11, %v491_v33  ;;  %v2075_v13 = vld [vmem:[#allocation4 + $0x340] sm:$0xff]  ;;  %v757_v33 = vrot.slane %v8241_v4, 7 }
  0xbb   : > { %6528 = vmatmul.mubr.f32.gmra.mrb[30].mxu1 %v877_v30  ;;  %1051 = vmatprep.mubr.f32.mxu0 %v8146_v62  ;;  %v2072_v30 = vld [vmem:[#allocation4 + $0x328] sm:$0xff] }
  0xbc   : > { %7137 = vmatpush1.bf16.msra.mxu1 %v7136_v2  ;;  %1456 = vmatprep.mubr.f32.mxu1 %v8450_v41  ;;  %v771_v2 = vrot.slane %v8180_v19, 7  ;;  %v7177_v10 = vpack.c.bf16 %v2072_v30, %v2071_v8  ;;  %v772_v8 = vrot.slane %v8210_v44, 7  ;;  %v698_v30 = vld [vmem:[#allocation2 + $0x100] sm:$0xff] }
  0xbd   : > { %7170 = vmatprep.subr.bf16.mxu1 %v12390_v34 }
  0xbe   : > { %1052 = vmatmul.mubr.f32.gmra.mrb[18].mxu0 %v8469_v12 }
  0xbf   : > { %1457 = vmatmul.mubr.f32.vlgmr.msra.gmra.mrb[32].mxu1 %v474_v38  ;;  %1056 = vmatprep.mubr.f32.mxu0 %v8178_v17 }
  0xc0   : > { %7172 = vmatpush1.bf16.msra.mxu1 %v7171_v51  ;;  %1461 = vmatprep.mubr.f32.mxu1 %v8450_v41  ;;  %v2074_v51 = vld [vmem:[#allocation4 + $0x338] sm:$0xff] }
  0xc1   : > { %7173 = vmatprep.subr.bf16.mxu1 %v12390_v34  ;;  %v7180_v16 = vpack.c.bf16 %v2074_v51, %v2073_v6  ;;  %v2080_v6 = vld [vmem:[#allocation4 + $0x368] sm:$0xff] }
  0xc2   : > { %1057 = vmatmul.mubr.f32.gmra.mrb[20].mxu0 %v8480_v18 }
  0xc3   : > { %1462 = vmatmul.mubr.f32.gmra.mrb[34].mxu1 %v474_v38  ;;  %1061 = vmatprep.mubr.f32.mxu0 %v8180_v19  ;;  %v756_v38 = vrot.slane %v8208_v42, 7 }
  0xc4   : > { %1466 = vmatprep.mubr.f32.mxu1 %v8354_v3  ;;  %7175 = vmatpush1.bf16.msra.mxu1 %v7174_v58  ;;  %v8494_v3 = vsel %vm508_vm3, %v755_v50, %v771_v2  ;;  %v2076_v58 = vld [vmem:[#allocation4 + $0x348] sm:$0xff]  ;;  %v2077_v2 = vld [vmem:[#allocation4 + $0x350] sm:$0xff] }
  0xc5   : > { %7176 = vmatprep.subr.bf16.mxu1 %v12390_v34  ;;  %v8505_v50 = vsel %vm508_vm3, %v740_v31, %v756_v38  ;;  %v7183_v11 = vpack.c.bf16 %v2076_v58, %v2075_v13  ;;  %v8514_v56 = vsel %vm508_vm3, %v756_v38, %v772_v8  ;;  %v773_v31 = vrot.slane %v8243_v5, 7  ;;  %v2081_v38 = vld [vmem:[#allocation4 + $0x370] sm:$0xff]  ;;  %v2083_v58 = vld [vmem:[#allocation4 + $0x380] sm:$0xff]  ;;  %v2084_v8 = vld [vmem:[#allocation4 + $0x388] sm:$0xff] }
  0xc6   : > { %1062 = vmatmul.mubr.f32.gmra.mrb[22].mxu0 %v8494_v3 }
  0xc7   : > { %1467 = vmatmul.mubr.f32.gmra.mrb[36].mxu1 %v526_v53  ;;  %1066 = vmatprep.mubr.f32.mxu0 %v8208_v42  ;;  %v741_v53 = vrot.slane %v698_v30, 7 }
  0xc8   : > { %1471 = vmatprep.mubr.f32.mxu1 %v8356_v49  ;;  %7178 = vmatpush1.bf16.msra.mxu1 %v7177_v10  ;;  %v2079_v10 = vld [vmem:[#allocation4 + $0x360] sm:$0xff] }
  0xc9   : > { %7179 = vmatprep.subr.bf16.mxu1 %v12390_v34  ;;  %v8524_v51 = vsel %vm508_vm3, %v741_v53, %v757_v33 }
  0xca   : > { %1067 = vmatmul.mubr.f32.gmra.mrb[24].mxu0 %v8505_v50 }
  0xcb   : > { %1472 = vmatmul.mubr.f32.gmra.mrb[38].mxu1 %v510_v21  ;;  %1071 = vmatprep.mubr.f32.mxu0 %v8210_v44  ;;  %v2082_v21 = vld [vmem:[#allocation4 + $0x378] sm:$0xff] }
  0xcc   : > { %1476 = vmatprep.mubr.f32.mxu1 %v8061_v7  ;;  %7181 = vmatpush1.bf16.msra.mxu1 %v7180_v16  ;;  %v7186_v7 = vpack.c.bf16 %v2078_v59, %v2077_v2  ;;  %v8534_v16 = vsel %vm508_vm3, %v757_v33, %v773_v31  ;;  %v2085_v2 = vld [vmem:[#allocation4 + $0x390] sm:$0xff]  ;;  %v2086_v59 = vld [vmem:[#allocation4 + $0x398] sm:$0xff]  ;;  %v775_v31 = vrot.slane %v8291_v63, 7 }
  0xcd   : > { %7182 = vmatprep.subr.bf16.mxu1 %v12390_v34 }
  0xce   : > { %1072 = vmatmul.mubr.f32.gmra.mrb[26].mxu0 %v8514_v56 }
  0xcf   : > { %1477 = vmatmul.mubr.f32.gmra.mrb[40].mxu1 %v8349_v46  ;;  %1076 = vmatprep.mubr.f32.mxu0 %v8241_v4  ;;  %v702_v46 = vld [vmem:[#allocation2 + $0x120] sm:$0xff] }
  0xd0   : > { %1481 = vmatprep.mubr.f32.mxu1 %v8065_v9  ;;  %7184 = vmatpush1.bf16.msra.mxu1 %v7183_v11  ;;  %v7189_v9 = vpack.c.bf16 %v2080_v6, %v2079_v10  ;;  %v742_v13 = vrot.slane %v702_v46, 7  ;;  %v774_v11 = vrot.slane %v8268_v27, 7  ;;  %v2088_v10 = vld [vmem:[#allocation4 + $0x3a8] sm:$0xff]  ;;  %v2089_v46 = vld [vmem:[#allocation4 + $0x3b0] sm:$0xff] }
  0xd1   : > { %7185 = vmatprep.subr.bf16.mxu1 %v12390_v34 }
  0xd2   : > { %1077 = vmatmul.mubr.f32.gmra.mrb[28].mxu0 %v8524_v51 }
  0xd3   : > { %1482 = vmatmul.mubr.f32.gmra.mrb[42].mxu1 %v8373_v0  ;;  %1081 = vmatprep.mubr.f32.mxu0 %v8243_v5  ;;  %v758_v0 = vrot.slane %v8266_v26, 7 }
  0xd4   : > { %1486 = vmatprep.mubr.f32.mxu1 %v8082_v23  ;;  %7187 = vmatpush1.bf16.msra.mxu1 %v7186_v7  ;;  %v7192_v23 = vpack.c.bf16 %v2082_v21, %v2081_v38  ;;  %v2087_v7 = vld [vmem:[#allocation4 + $0x3a0] sm:$0xff] }
  0xd5   : > { %7188 = vmatprep.subr.bf16.mxu1 %v12390_v34  ;;  %v8544_v30 = vsel %vm508_vm3, %v742_v13, %v758_v0  ;;  %v8554_v53 = vsel %vm508_vm3, %v758_v0, %v774_v11  ;;  %v2091_v13 = vld [vmem:[#allocation4 + $0x3c0] sm:$0xff]  ;;  %v2092_v0 = vld [vmem:[#allocation4 + $0x3c8] sm:$0xff] }
  0xd6   : > { %1082 = vmatmul.mubr.f32.gmra.mrb[30].mxu0 %v8534_v16 }
  0xd7   : > { %1487 = vmatmul.mubr.f32.gmra.mrb[44].mxu1 %v8397_v45  ;;  %1086 = vmatprep.mubr.f32.mxu0 %v8266_v26  ;;  %v706_v45 = vld [vmem:[#allocation2 + $0x140] sm:$0xff] }
  0xd8   : > { %1491 = vmatprep.mubr.f32.mxu1 %v8084_v24  ;;  %7190 = vmatpush1.bf16.msra.mxu1 %v7189_v9  ;;  %v7195_v24 = vpack.c.bf16 %v2084_v8, %v2083_v58  ;;  %v743_v33 = vrot.slane %v706_v45, 7  ;;  %v2090_v9 = vld [vmem:[#allocation4 + $0x3b8] sm:$0xff]  ;;  %v2093_v58 = vld [vmem:[#allocation4 + $0x3d0] sm:$0xff] }
  0xd9   : > { %7191 = vmatprep.subr.bf16.mxu1 %v12390_v34  ;;  %v2094_v8 = vld [vmem:[#allocation4 + $0x3d8] sm:$0xff] }
  0xda   : > { %1087 = vmatmul.mubr.f32.gmra.mrb[32].mxu0 %v8544_v30 }
  0xdb   : > { %1492 = vmatmul.mubr.f32.gmra.mrb[46].mxu1 %v8415_v28  ;;  %1091 = vmatprep.mubr.f32.mxu0 %v8268_v27  ;;  %v8557_v28 = vrot.slane %v8289_v60, 7 }
  0xdc   : > { %1496 = vmatprep.mubr.f32.mxu1 %v8108_v37  ;;  %7193 = vmatpush1.bf16.msra.mxu1 %v7192_v23  ;;  %v7198_v37 = vpack.c.bf16 %v2086_v59, %v2085_v2  ;;  %v776_v23 = vrot.slane %v8314_v32, 7  ;;  %v2096_v2 = vld [vmem:[#allocation4 + $0x3e8] sm:$0xff]  ;;  %v777_v59 = vrot.slane %v8333_v25, 7 }
  0xdd   : > { %7194 = vmatprep.subr.bf16.mxu1 %v12390_v34  ;;  %v8567_v6 = vsel %vm508_vm3, %v743_v33, %v8557_v28  ;;  %v791_v38 = vsel %vm508_vm3, %v8557_v28, %v775_v31  ;;  %v2097_v33 = vld [vmem:[#allocation4 + $0x3f0] sm:$0xff]  ;;  %v778_v31 = vrot.slane %v8352_v54, 7 }
  0xde   : > { %1092 = vmatmul.mubr.f32.gmra.mrb[34].mxu0 %v8554_v53 }
  0xdf   : > { %1497 = vmatmul.mubr.f32.gmra.mrb[48].mxu1 %v8433_v35  ;;  %1096 = vmatprep.mubr.f32.mxu0 %v8289_v60  ;;  %v7201_v35 = vpack.c.bf16 %v2088_v10, %v2087_v7  ;;  %v762_v10 = vrot.slane %v8344_v1, 7 }
  0xe0   : > { %1501 = vmatprep.mubr.f32.mxu1 %v8112_v40  ;;  %7196 = vmatpush1.bf16.msra.mxu1 %v7195_v24  ;;  %v710_v40 = vld [vmem:[#allocation2 + $0x160] sm:$0xff] }
  0xe1   : > { %7197 = vmatprep.subr.bf16.mxu1 %v12390_v34  ;;  %v744_v21 = vrot.slane %v710_v40, 7  ;;  %v2095_v24 = vld [vmem:[#allocation4 + $0x3e0] sm:$0xff] }
  0xe2   : > { %1097 = vmatmul.mubr.f32.gmra.mrb[36].mxu0 %v8567_v6  ;;  %v8634_v40 = vld [vmem:[#allocation2 + $0x1c0] sm:$0xff] }
  0xe3   : > { %1502 = vmatmul.mubr.f32.gmra.mrb[50].mxu1 %v8445_v52  ;;  %1101 = vmatprep.mubr.f32.mxu0 %v8291_v63  ;;  %v8579_v52 = vrot.slane %v8312_v29, 7 }
  0xe4   : > { %1506 = vmatprep.mubr.f32.mxu1 %v8144_v61  ;;  %7199 = vmatpush1.bf16.msra.mxu1 %v7198_v37  ;;  %v7204_v61 = vpack.c.bf16 %v2090_v9, %v2089_v46  ;;  %v2098_v37 = vld [vmem:[#allocation4 + $0x3f8] sm:$0xff]  ;;  %v765_v46 = vrot.slane %v8418_v15, 7  ;;  %v8683_v9 = vld [vmem:[#allocation2 + $0x170] sm:$0xff] }
  0xe5   : > { %7200 = vmatprep.subr.bf16.mxu1 %v12390_v34  ;;  %v8588_v63 = vsel %vm508_vm3, %v744_v21, %v8579_v52  ;;  %v792_v11 = vsel %vm508_vm3, %v8579_v52, %v776_v23  ;;  %v12262_v21 = vrot.slane %v8683_v9, 7  ;;  %v8704_v23 = vld [vmem:[#allocation2 + $0x58] sm:$0xff] }
  0xe6   : > { %1102 = vmatmul.mubr.f32.gmra.mrb[38].mxu0 %v791_v38  ;;  %v781_v38 = vrot.slane %v8420_v20, 7 }
  0xe7   : > { %1507 = vmatmul.mubr.f32.gmra.mrb[52].mxu1 %v8458_v36  ;;  %1106 = vmatprep.mubr.f32.mxu0 %v8312_v29  ;;  %v714_v36 = vld [vmem:[#allocation2 + $0x180] sm:$0xff] }
  0xe8   : > { %1511 = vmatprep.mubr.f32.mxu1 %v8146_v62  ;;  %7202 = vmatpush1.bf16.msra.mxu1 %v7201_v35  ;;  %v7207_v62 = vpack.c.bf16 %v2092_v0, %v2091_v13  ;;  %v745_v45 = vrot.slane %v714_v36, 7  ;;  %v730_v35 = vld [vmem:[#allocation2 + $0x200] sm:$0xff]  ;;  %v2102_v13 = vld [vmem:[#allocation4 + $0x418] sm:$0xff]  ;;  %v8702_v0 = vld [vmem:[#allocation2 + $0x190] sm:$0xff] }
  0xe9   : > { %7203 = vmatprep.subr.bf16.mxu1 %v12390_v34  ;;  %v12261_v36 = vrot.slane %v8702_v0, 7 }
  0xea   : > { %1107 = vmatmul.mubr.f32.gmra.mrb[40].mxu0 %v8588_v63 }
  0xeb   : > { %1512 = vmatmul.mubr.f32.gmra.mrb[54].mxu1 %v8469_v12  ;;  %1111 = vmatprep.mubr.f32.mxu0 %v8314_v32  ;;  %v8600_v12 = vrot.slane %v8331_v22, 7 }
  0xec   : > { %1516 = vmatprep.mubr.f32.mxu1 %v8178_v17  ;;  %7205 = vmatpush1.bf16.msra.mxu1 %v7204_v61  ;;  %v7210_v17 = vpack.c.bf16 %v2094_v8, %v2093_v58  ;;  %v2101_v61 = vld [vmem:[#allocation4 + $0x410] sm:$0xff]  ;;  %v2104_v58 = vld [vmem:[#allocation4 + $0x428] sm:$0xff] }
  0xed   : > { %7206 = vmatprep.subr.bf16.mxu1 %v12390_v34  ;;  %v8609_v32 = vsel %vm508_vm3, %v745_v45, %v8600_v12  ;;  %v793_v7 = vsel %vm508_vm3, %v8600_v12, %v777_v59  ;;  %v8708_v8 = vld [vmem:[#allocation2 + $0x1a8] sm:$0xff]  ;;  %v575_v45 = vrot.slane %v8704_v23, 1  ;;  %v2106_v59 = vld [vmem:[#allocation4 + $0x438] sm:$0xff] }
  0xee   : > { %1112 = vmatmul.mubr.f32.gmra.mrb[42].mxu0 %v792_v11  ;;  %v1864_v23 = vld [vmem:[#allocation2 + $0xe8] sm:$0xff] }
  0xef   : > { %1517 = vmatmul.mubr.f32.gmra.mrb[56].mxu1 %v8480_v18  ;;  %1116 = vmatprep.mubr.f32.mxu0 %v8331_v22  ;;  %v8613_v18 = vld [vmem:[#allocation2 + $0x1a0] sm:$0xff] }
  0xf0   : > { %1521 = vmatprep.mubr.f32.mxu1 %v8180_v19  ;;  %7208 = vmatpush1.bf16.msra.mxu1 %v7207_v62  ;;  %v7213_v19 = vpack.c.bf16 %v2096_v2, %v2095_v24  ;;  %v2103_v62 = vld [vmem:[#allocation4 + $0x420] sm:$0xff]  ;;  %v2105_v2 = vld [vmem:[#allocation4 + $0x430] sm:$0xff] }
  0xf1   : > { %7209 = vmatprep.subr.bf16.mxu1 %v12390_v34  ;;  %v7226_v24 = vpack.c.bf16 %v2104_v58, %v2103_v62 }
  0xf2   : > { %1117 = vmatmul.mubr.f32.gmra.mrb[44].mxu0 %v8609_v32 }
  0xf3   : > { %1522 = vmatmul.mubr.f32.gmra.mrb[58].mxu1 %v8494_v3  ;;  %1121 = vmatprep.mubr.f32.mxu0 %v8333_v25  ;;  %v746_v3 = vrot.slane %v8613_v18, 7 }
  0xf4   : > { %1526 = vmatprep.mubr.f32.mxu1 %v8208_v42  ;;  %7211 = vmatpush1.bf16.msra.mxu1 %v7210_v17  ;;  %v7216_v42 = vpack.c.bf16 %v2098_v37, %v2097_v33  ;;  %v8718_v17 = vld [vmem:[#allocation2 + $0x78] sm:$0xff] }
  0xf5   : > { %7212 = vmatprep.subr.bf16.mxu1 %v12390_v34  ;;  %v810_v25 = vsel %vm508_vm3, %v746_v3, %v762_v10  ;;  %v576_v37 = vrot.slane %v8718_v17, 1  ;;  %v1865_v17 = vld [vmem:[#allocation2 + $0xf0] sm:$0xff] }
  0xf6   : > { %1122 = vmatmul.mubr.f32.gmra.mrb[46].mxu0 %v793_v7  ;;  %v7230_v7 = vpack.c.bf16 %v2106_v59, %v2105_v2  ;;  %v8806_v2 = vld [vmem:[#allocation2 + $0x1f0] sm:$0xff] }
  0xf7   : > { %1527 = vmatmul.mubr.f32.gmra.mrb[60].mxu1 %v8505_v50  ;;  %1126 = vmatprep.mubr.f32.mxu0 %v8344_v1  ;;  %v747_v1 = vrot.slane %v8634_v40, 7  ;;  %v763_v50 = vrot.slane %v8376_v39, 7  ;;  %v12405_v59 = vld [vmem:[#allocation23_spill] sm:$0xff] }
  0xf8   : > { %1531 = vmatprep.mubr.f32.mxu1 %v8210_v44  ;;  %7214 = vmatpush1.bf16.msra.mxu1 %v7213_v19  ;;  %v794_v44 = vsel %vm508_vm3, %v762_v10, %v778_v31  ;;  %v12397_v19 = vld [vmem:[#allocation14_spill] sm:$0xff] }
  0xf9   : > { %7215 = vmatprep.subr.bf16.mxu1 %v12390_v34  ;;  %v592_v33 = vsel %vm589_vm2, %v12397_v19, %v575_v45  ;;  %v2108_v31 = vld [vmem:[#allocation4 + $0x448] sm:$0xff] }
  0xfa   : > { %1127 = vmatmul.mubr.f32.gmra.mrb[48].mxu0 %v810_v25  ;;  %v2107_v25 = vld [vmem:[#allocation4 + $0x440] sm:$0xff] }
  0xfb   : > { %1532 = vmatmul.mubr.f32.gmra.mrb[62].mxu1 %v8514_v56  ;;  %1131 = vmatprep.mubr.f32.mxu0 %v8352_v54  ;;  %v779_v54 = vrot.slane %v8378_v48, 7  ;;  %v8651_v56 = vld [vmem:[#allocation2 + $0x1e0] sm:$0xff] }
  0xfc   : > { %1536 = vmatprep.mubr.f32.mxu1 %v8241_v4  ;;  %7217 = vmatpush1.bf16.msra.mxu1 %v7216_v42  ;;  %v811_v4 = vsel %vm508_vm3, %v747_v1, %v763_v50 }
  0xfe   : > { %1132 = vmatmul.mubr.f32.gmra.mrb[50].mxu0 %v794_v44  ;;  %v8747_v44 = vld [vmem:[#allocation2 + $0x1c8] sm:$0xff] }
  0xff   : > { %1537 = vmatmul.mubr.f32.gmra.mrb[64].mxu1 %v8524_v51  ;;  %1136 = vmatprep.mubr.f32.mxu0 %v8376_v39  ;;  %v748_v39 = vrot.slane %v8651_v56, 7  ;;  %v764_v51 = vrot.slane %v8400_v47, 7  ;;  %v8834_v56 = vld [vmem:[#allocation2 + $0x138] sm:$0xff] }
 0x100   : > { %1541 = vmatprep.mubr.f32.mxu1 %v8243_v5  ;;  %v795_v5 = vsel %vm508_vm3, %v763_v50, %v779_v54  ;;  %v12398_v50 = vld [vmem:[#allocation17_spill] sm:$0xff] }
 0x102   : > { %1137 = vmatmul.mubr.f32.gmra.mrb[52].mxu0 %v811_v4  ;;  %v12399_v4 = vld [vmem:[#allocation16_spill] sm:$0xff] }
 0x103   : > { %1542 = vmatmul.mubr.f32.gmra.mrb[66].mxu1 %v8534_v16  ;;  %1141 = vmatprep.mubr.f32.mxu0 %v8378_v48  ;;  %v8661_v16 = vld [vmem:[#allocation2 + $0x150] sm:$0xff]  ;;  %v780_v48 = vrot.slane %v8402_v14, 7  ;;  %v593_v54 = vsel %vm589_vm2, %v12399_v4, %v576_v37  ;;  %v12407_v4 = vld [vmem:[#allocation25_spill] sm:$0xff] }
 0x104   : > { %1546 = vmatprep.mubr.f32.mxu1 %v8266_v26  ;;  %v812_v26 = vsel %vm508_vm3, %v748_v39, %v764_v51 }
 0x106   : > { %1142 = vmatmul.mubr.f32.gmra.mrb[54].mxu0 %v795_v5  ;;  %v7234_v5 = vpack.c.bf16 %v2108_v31, %v2107_v25  ;;  %v505_v25 = vrot.slane %v8806_v2, 7  ;;  %v8825_v31 = vld [vmem:[#allocation2 + $0x48] sm:$0xff] }
 0x107   : > { %1547 = vmatmul.mubr.f32.gmra.mrb[68].mxu1 %v8544_v30  ;;  %1146 = vmatprep.mubr.f32.mxu0 %v8400_v47  ;;  %v12263_v30 = vrot.slane %v8661_v16, 7  ;;  %v749_v47 = vrot.slane %v730_v35, 7  ;;  %v2110_v35 = vld [vmem:[#allocation4 + $0x458] sm:$0xff] }
 0x108   : > { %1551 = vmatprep.mubr.f32.mxu1 %v8268_v27  ;;  %v796_v27 = vsel %vm508_vm3, %v764_v51, %v780_v48  ;;  %v2109_v48 = vld [vmem:[#allocation4 + $0x450] sm:$0xff] }
 0x10a   : > { %1147 = vmatmul.mubr.f32.gmra.mrb[56].mxu0 %v812_v26  ;;  %v8765_v26 = vrot.slane %v8747_v44, 7 }
 0x10b   : > { %1552 = vmatmul.mubr.f32.gmra.mrb[70].mxu1 %v8554_v53  ;;  %1151 = vmatprep.mubr.f32.mxu0 %v8402_v14  ;;  %v519_v53 = vsel %vm508_vm3, %v8557_v28, %v12263_v30  ;;  %v813_v14 = vsel %vm508_vm3, %v749_v47, %v765_v46  ;;  %v797_v28 = vsel %vm508_vm3, %v765_v46, %v781_v38  ;;  %v12400_v47 = vld [vmem:[#allocation19_spill] sm:$0xff]  ;;  %v12401_v46 = vld [vmem:[#allocation18_spill] sm:$0xff]  ;;  %v8777_v38 = vld [vmem:[#allocation2 + $0xd8] sm:$0xff] }
 0x10c   : > { %1556 = vmatprep.mubr.f32.mxu1 %v8289_v60  ;;  %v12267_v40 = vrot.slane %v8777_v38, 1 }
 0x10e   : > { %1152 = vmatmul.mubr.f32.gmra.mrb[58].mxu0 %v796_v27  ;;  %v8767_v27 = vld [vmem:[#allocation2 + $0x1d0] sm:$0xff] }
 0x10f   : > { %1557 = vmatmul.mubr.f32.gmra.mrb[72].mxu1 %v8567_v6  ;;  %1156 = vmatprep.mubr.f32.mxu0 %v8418_v15  ;;  %v541_v6 = vrot.slane %v8450_v41, 1  ;;  %v401_v15 = vld [vmem:[#allocation2 + $0x38] sm:$0xff]  ;;  %v520_v41 = vsel %vm508_vm3, %v8579_v52, %v12262_v21  ;;  %v12395_v52 = vrot.slane %v8356_v49, 1  ;;  %v8727_v49 = vrot.slane %v8708_v8, 7 }
 0x110   : > { %1561 = vmatprep.mubr.f32.mxu1 %v8661_v16 }
 0x111   : > { %v538_v10 = vsel %vm508_vm3, %v746_v3, %v8727_v49  ;;  %v8756_v3 = vld [vmem:[#allocation2 + $0xb8] sm:$0xff] }
 0x112   : > { %1157 = vmatmul.mubr.f32.gmra.mrb[60].mxu0 %v813_v14  ;;  %v12268_v14 = vrot.slane %v8756_v3, 1 }
 0x113   : > { %1562 = vmatmul.mubr.f32.gmra.mrb[74].mxu1 %v519_v53  ;;  %1161 = vmatprep.mubr.f32.mxu0 %v8420_v20  ;;  %v574_v20 = vrot.slane %v401_v15, 1  ;;  %v504_v15 = vrot.slane %v8767_v27, 7 }
 0x114   : > { %1566 = vmatprep.mubr.f32.mxu1 %v8312_v29 }
 0x115   : > { %v591_v11 = vsel %vm589_vm2, %v12395_v52, %v574_v20  ;;  %v12402_v20 = vld [vmem:[#allocation21_spill] sm:$0xff]  ;;  %v8801_v52 = vsel %vm508_vm3, %v8765_v26, %v504_v15  ;;  %v12264_v15 = vrot.slane %v8834_v56, 1 }
 0x116   : > { %1162 = vmatmul.mubr.f32.gmra.mrb[62].mxu0 %v797_v28  ;;  %v539_v28 = vsel %vm508_vm3, %v747_v1, %v8765_v26  ;;  %v8795_v1 = vld [vmem:[#allocation2 + $0xf8] sm:$0xff] }
 0x117   : > { %1567 = vmatmul.mubr.f32.gmra.mrb[76].mxu1 %v8588_v63  ;;  %6562 = vmatprep.mubr.f32.mxu0 %v541_v6  ;;  %v7222_v63 = vpack.c.bf16 %v2102_v13, %v2101_v61  ;;  %v2112_v61 = vld [vmem:[#allocation4 + $0x468] sm:$0xff] }
 0x118   : > { %1571 = vmatprep.mubr.f32.mxu1 %v8683_v9  ;;  %v8786_v13 = vld [vmem:[#allocation2 + $0x1e8] sm:$0xff] }
 0x11a   : > { %6563 = vmatmul.mubr.f32.vlgmr.msra.gmra.mrb[64].mxu0 %v541_v6  ;;  %v7238_v6 = vpack.c.bf16 %v2110_v35, %v2109_v48  ;;  %v1923_v35 = vrot.slane %v8825_v31, 7 }
 0x11b   : > { %1572 = vmatmul.mubr.f32.gmra.mrb[78].mxu1 %v520_v41  ;;  %6565 = vmatprep.mubr.f32.mxu0 %v8384_v57  ;;  %v521_v57 = vsel %vm508_vm3, %v8600_v12, %v12261_v36  ;;  %v8738_v12 = vld [vmem:[#allocation2 + $0x98] sm:$0xff]  ;;  %v2111_v41 = vld [vmem:[#allocation4 + $0x460] sm:$0xff] }
 0x11c   : > { %1576 = vmatprep.mubr.f32.mxu1 %v8331_v22  ;;  %7221 = vmatpush3.bf16.msra.mxu0 %v8462_v55  ;;  %v8729_v55 = vld [vmem:[#allocation2 + $0x1b0] sm:$0xff]  ;;  %v12269_v18 = vrot.slane %v8738_v12, 1  ;;  %v7242_v58 = vpack.c.bf16 %v2112_v61, %v2111_v41  ;;  %v8853_v41 = vrot.slane %v8661_v16, 1  ;;  %v437_v61 = vld [vmem:[#allocation2 + $0x158] sm:$0xff] }
 0x11d   : > { %7223 = vmatprep.subr.bf16.mxu0 %v7222_v63  ;;  %v503_v42 = vrot.slane %v8729_v55, 7  ;;  %v457_v36 = vld [vmem:[#allocation2 + $0x1f8] sm:$0xff] }
 0x11e   : > { %6566 = vmatmul.mubr.f32.gmra.mrb[66].mxu0 %v591_v11  ;;  %v594_v53 = vsel %vm589_vm2, %v12401_v46, %v12269_v18  ;;  %v8804_v11 = vrot.slane %v8786_v13, 7  ;;  %v8843_v46 = vld [vmem:[#allocation2 + $0x50] sm:$0xff] }
 0x11f   : > { %1577 = vmatmul.mubr.f32.gmra.mrb[80].mxu1 %v8609_v32  ;;  %v12396_v32 = vld [vmem:[#allocation15_spill] sm:$0xff]  ;;  %v8762_v51 = vsel %vm508_vm3, %v8727_v49, %v503_v42 }
 0x120   : > { %1581 = vmatprep.mubr.f32.mxu1 %v8702_v0  ;;  %6568 = vmatprep.mubr.f32.mxu0 %v12396_v32  ;;  %12404 = vst [vmem:[#allocation15_spill] sm:$0xff] %v8806_v2  ;;  %v12406_v32 = vld [vmem:[#allocation22_spill] sm:$0xff]  ;;  %v540_v42 = vsel %vm508_vm3, %v748_v39, %v8804_v11  ;;  %v8840_v39 = vsel %vm508_vm3, %v8804_v11, %v505_v25  ;;  %v441_v25 = vld [vmem:[#allocation2 + $0x178] sm:$0xff] }
 0x121   : > { %7225 = vmatpush3.bf16.msra.mxu0 %v7222_v63  ;;  %v12403_v63 = vld [vmem:[#allocation20_spill] sm:$0xff]  ;;  %v596_v19 = vsel %vm589_vm2, %v12406_v32, %v12267_v40  ;;  %12409 = vst [vmem:[#allocation14_spill] sm:$0xff] %v8840_v39  ;;  %v583_v32 = vrot.slane %v437_v61, 1 }
 0x122   : > { %7227 = vmatprep.subr.bf16.mxu0 %v7226_v24  ;;  %6569 = vmatmul.mubr.f32.gmra.mrb[68].mxu0 %v592_v33  ;;  %v595_v62 = vsel %vm589_vm2, %v12403_v63, %v12268_v14  ;;  %v12266_v33 = vrot.slane %v8795_v1, 1  ;;  %v1939_v63 = vrot.slane %v8843_v46, 7 }
 0x123   : > { %1582 = vmatmul.mubr.f32.gmra.mrb[82].mxu1 %v521_v57  ;;  %6571 = vmatprep.mubr.f32.mxu0 %v12398_v50  ;;  %v2114_v57 = vld [vmem:[#allocation4 + $0x478] sm:$0xff]  ;;  %v1843_v50 = vld [vmem:[#allocation2 + $0x40] sm:$0xff] }
 0x124   : > { %1586 = vmatprep.mubr.f32.mxu1 %v8708_v8 }
 0x125   : > { %7229 = vmatpush3.bf16.msra.mxu0 %v7226_v24  ;;  %v2113_v24 = vld [vmem:[#allocation4 + $0x470] sm:$0xff] }
 0x126   : > { %7231 = vmatprep.subr.bf16.mxu0 %v7230_v7  ;;  %6572 = vmatmul.mubr.f32.gmra.mrb[70].mxu0 %v593_v54  ;;  %v12408_v54 = vld [vmem:[#allocation24_spill] sm:$0xff] }
 0x127   : > { %1587 = vmatmul.mubr.f32.gmra.mrb[84].mxu1 %v538_v10  ;;  %6574 = vmatprep.mubr.f32.mxu0 %v12400_v47  ;;  %v7246_v10 = vpack.c.bf16 %v2114_v57, %v2113_v24  ;;  %v1907_v47 = vrot.slane %v1843_v50, 7  ;;  %v12412_v24 = vld [vmem:[#allocation29_spill] sm:$0xff]  ;;  %v12413_v57 = vld [vmem:[#allocation28_spill] sm:$0xff]  ;;  %v1955_v50 = vsel %vm508_vm3, %v1923_v35, %v1939_v63  ;;  %v8901_v63 = vld [vmem:[#allocation2 + $0x88] sm:$0xff] }
 0x128   : > { %1591 = vmatprep.mubr.f32.mxu1 %v8729_v55 }
 0x129   : > { %7233 = vmatpush3.bf16.msra.mxu0 %v7230_v7  ;;  %v8816_v7 = vld [vmem:[#allocation2 + $0x118] sm:$0xff] }
 0x12a   : > { %7235 = vmatprep.subr.bf16.mxu0 %v7234_v5  ;;  %6575 = vmatmul.mubr.f32.gmra.mrb[72].mxu0 %v594_v53  ;;  %v12265_v48 = vrot.slane %v8816_v7, 1  ;;  %v12410_v53 = vld [vmem:[#allocation27_spill] sm:$0xff] }
 0x12b   : > { %1592 = vmatmul.mubr.f32.gmra.mrb[86].mxu1 %v8762_v51  ;;  %6577 = vmatprep.mubr.f32.mxu0 %v12402_v20  ;;  %v1971_v20 = vsel %vm508_vm3, %v1907_v47, %v1923_v35  ;;  %v584_v47 = vrot.slane %v441_v25, 1  ;;  %v12415_v35 = vrot.slane %v8312_v29, 1 }
 0x12c   : > { %1596 = vmatprep.mubr.f32.mxu1 %v8747_v44 }
 0x12d   : > { %7237 = vmatpush3.bf16.msra.mxu0 %v7234_v5  ;;  %v597_v5 = vsel %vm589_vm2, %v12408_v54, %v12266_v33 }
 0x12e   : > { %7239 = vmatprep.subr.bf16.mxu0 %v7238_v6  ;;  %6578 = vmatmul.mubr.f32.gmra.mrb[74].mxu0 %v595_v62  ;;  %v8861_v62 = vld [vmem:[#allocation2 + $0x68] sm:$0xff] }
 0x12f   : > { %1597 = vmatmul.mubr.f32.gmra.mrb[88].mxu1 %v539_v28  ;;  %6580 = vmatprep.mubr.f32.mxu0 %v12405_v59  ;;  %v599_v59 = vsel %vm589_vm2, %v12413_v57, %v12264_v15  ;;  %v554_v57 = vrot.slane %v8708_v8, 1  ;;  %v1987_v15 = vrot.slane %v8825_v31, 1 }
 0x130   : > { %1601 = vmatprep.mubr.f32.mxu1 %v8767_v27 }
 0x131   : > { %7241 = vmatpush3.bf16.msra.mxu0 %v7238_v6  ;;  %v12411_v6 = vld [vmem:[#allocation26_spill] sm:$0xff] }
 0x132   : > { %7243 = vmatprep.subr.bf16.mxu0 %v7242_v58  ;;  %6581 = vmatmul.mubr.f32.gmra.mrb[76].mxu0 %v596_v19  ;;  %v598_v28 = vsel %vm589_vm2, %v12411_v6, %v12265_v48  ;;  %v8870_v19 = vrot.slane %v8683_v9, 1 }
 0x133   : > { %1602 = vmatmul.mubr.f32.gmra.mrb[90].mxu1 %v8801_v52  ;;  %6583 = vmatprep.mubr.f32.mxu0 %v12407_v4  ;;  %v1924_v4 = vrot.slane %v8861_v62, 7 }
 0x134   : > { %1606 = vmatprep.mubr.f32.mxu1 %v8786_v13  ;;  %v617_v6 = vsel %vm589_vm2, %v12415_v35, %v8870_v19  ;;  %v8906_v29 = vsel %vm589_vm2, %v8870_v19, %v584_v47  ;;  %v8920_v47 = vld [vmem:[#allocation2 + $0x90] sm:$0xff] }
 0x135   : > { %7245 = vmatpush3.bf16.msra.mxu0 %v7242_v58  ;;  %v1847_v58 = vld [vmem:[#allocation2 + $0x60] sm:$0xff] }
 0x136   : > { %7247 = vmatprep.subr.bf16.mxu0 %v7246_v10  ;;  %6584 = vmatmul.mubr.f32.gmra.mrb[78].mxu0 %v597_v5  ;;  %v1908_v54 = vrot.slane %v1847_v58, 7  ;;  %v8881_v5 = vld [vmem:[#allocation2 + $0x70] sm:$0xff]  ;;  %v1851_v58 = vld [vmem:[#allocation2 + $0x80] sm:$0xff] }
 0x137   : > { %1607 = vmatmul.mubr.f32.gmra.mrb[92].mxu1 %v540_v42  ;;  %6586 = vmatprep.mubr.f32.mxu0 %v12410_v53  ;;  %v8889_v53 = vrot.slane %v8702_v0, 1 }
 0x138   : > { %1611 = vmatprep.mubr.f32.mxu1 %v8806_v2  ;;  %v1972_v61 = vsel %vm508_vm3, %v1908_v54, %v1924_v4  ;;  %v1909_v54 = vrot.slane %v1851_v58, 7  ;;  %v1941_v58 = vrot.slane %v8920_v47, 7 }
 0x139   : > { %7249 = vmatpush3.bf16.msra.mxu0 %v7246_v10  ;;  %v12414_v10 = vrot.slane %v8289_v60, 1  ;;  %v8886_v60 = vsel %vm589_vm2, %v8853_v41, %v583_v32  ;;  %v12416_v32 = vrot.slane %v8331_v22, 1 }
 0x13a   : > { %7250 = vmatprep.subr.bf16.mxu0 %v12390_v34  ;;  %6587 = vmatmul.mubr.f32.gmra.mrb[80].mxu0 %v598_v28  ;;  %v445_v28 = vld [vmem:[#allocation2 + $0x198] sm:$0xff] }
 0x13b   : > { %1612 = vmatmul.mubr.f32.gmra.mrb[94].mxu1 %v8840_v39  ;;  %6589 = vmatprep.mubr.f32.mxu0 %v12412_v24  ;;  %v616_v42 = vsel %vm589_vm2, %v12414_v10, %v8853_v41  ;;  %v585_v24 = vrot.slane %v445_v28, 1  ;;  %v618_v10 = vsel %vm589_vm2, %v12416_v32, %v8889_v53  ;;  %v571_v28 = vrot.slane %v8767_v27, 1  ;;  %v1855_v32 = vld [vmem:[#allocation2 + $0xa0] sm:$0xff] }
 0x13c   : > { %2179 = vmatprep.mubr.f32.mxu1 %v8825_v31  ;;  %v1859_v31 = vld [vmem:[#allocation2 + $0xc0] sm:$0xff] }
 0x13d   : > { %v8925_v22 = vsel %vm589_vm2, %v8889_v53, %v585_v24  ;;  %v8938_v24 = vld [vmem:[#allocation2 + $0xa8] sm:$0xff]  ;;  %v1911_v18 = vrot.slane %v1859_v31, 7  ;;  %v1863_v31 = vld [vmem:[#allocation2 + $0xe0] sm:$0xff] }
 0x13e   : > { %6590 = vmatmul.mubr.f32.gmra.mrb[82].mxu0 %v599_v59  ;;  %v570_v59 = vrot.slane %v8729_v55, 1  ;;  %v1926_v30 = vrot.slane %v8938_v24, 7 }
 0x13f   : > { %2180 = vmatmul.mubr.f32.vlgmr.msra.gmra.mrb[96].mxu1 %v1971_v20  ;;  %6592 = vmatprep.mubr.f32.mxu0 %v616_v42  ;;  %v1940_v20 = vrot.slane %v8881_v5, 7  ;;  %v449_v42 = vld [vmem:[#allocation2 + $0x1b8] sm:$0xff] }
 0x140   : > { %2184 = vmatprep.mubr.f32.mxu1 %v8843_v46  ;;  %v586_v35 = vrot.slane %v449_v42, 1  ;;  %v556_v42 = vrot.slane %v8786_v13, 1 }
 0x141   : > { %v1956_v25 = vsel %vm508_vm3, %v1924_v4, %v1940_v20  ;;  %v8931_v4 = vsel %vm589_vm2, %v554_v57, %v570_v59 }
 0x142   : > { %6593 = vmatmul.mubr.f32.gmra.mrb[84].mxu0 %v8886_v60 }
 0x143   : > { %2185 = vmatmul.mubr.f32.gmra.mrb[98].mxu1 %v1955_v50  ;;  %6595 = vmatprep.mubr.f32.mxu0 %v617_v6  ;;  %v1925_v50 = vrot.slane %v8901_v63, 7  ;;  %v555_v6 = vrot.slane %v8747_v44, 1 }
 0x144   : > { %2189 = vmatprep.mubr.f32.mxu1 %v8861_v62 }
 0x145   : > { %v1973_v20 = vsel %vm508_vm3, %v1909_v54, %v1925_v50  ;;  %v8949_v54 = vsel %vm589_vm2, %v555_v6, %v571_v28  ;;  %v1957_v21 = vsel %vm508_vm3, %v1925_v50, %v1941_v58  ;;  %v2003_v50 = vrot.slane %v8843_v46, 1 }
 0x146   : > { %6596 = vmatmul.mubr.f32.gmra.mrb[86].mxu0 %v8906_v29 }
 0x147   : > { %2190 = vmatmul.mubr.f32.gmra.mrb[100].mxu1 %v1972_v61  ;;  %6598 = vmatprep.mubr.f32.mxu0 %v618_v10  ;;  %v453_v61 = vld [vmem:[#allocation2 + $0x1d8] sm:$0xff]  ;;  %v8943_v10 = vsel %vm589_vm2, %v570_v59, %v586_v35  ;;  %v1910_v59 = vrot.slane %v1855_v32, 7  ;;  %v8956_v35 = vld [vmem:[#allocation2 + $0xb0] sm:$0xff]  ;;  %v2051_v33 = vsel %vm589_vm2, %v1987_v15, %v2003_v50  ;;  %v1989_v15 = vrot.slane %v8901_v63, 1 }
 0x148   : > { %2194 = vmatprep.mubr.f32.mxu1 %v8881_v5  ;;  %v587_v57 = vrot.slane %v453_v61, 1 }
 0x149   : > { %v1974_v48 = vsel %vm508_vm3, %v1910_v59, %v1926_v30 }
 0x14a   : > { %6599 = vmatmul.mubr.f32.gmra.mrb[88].mxu0 %v8925_v22  ;;  %v8963_v6 = vsel %vm589_vm2, %v571_v28, %v587_v57  ;;  %v1942_v28 = vrot.slane %v8956_v35, 7  ;;  %v1988_v57 = vrot.slane %v8861_v62, 1 }
 0x14b   : > { %2195 = vmatmul.mubr.f32.gmra.mrb[102].mxu1 %v1956_v25  ;;  %6601 = vmatprep.mubr.f32.mxu0 %v8931_v4  ;;  %v572_v25 = vrot.slane %v8806_v2, 1  ;;  %v1876_v2 = vld [vmem:[#allocation2 + $0x148] sm:$0xff] }
 0x14c   : > { %2199 = vmatprep.mubr.f32.mxu1 %v8901_v63  ;;  %v1958_v40 = vsel %vm508_vm3, %v1926_v30, %v1942_v28  ;;  %v1990_v63 = vrot.slane %v8938_v24, 1 }
 0x14d   : > { %v8971_v32 = vsel %vm589_vm2, %v556_v42, %v572_v25  ;;  %v2004_v42 = vrot.slane %v8881_v5, 1  ;;  %v2005_v5 = vrot.slane %v8920_v47, 1 }
 0x14e   : > { %6602 = vmatmul.mubr.f32.gmra.mrb[90].mxu0 %v8943_v10 }
 0x14f   : > { %2200 = vmatmul.mubr.f32.gmra.mrb[104].mxu1 %v1973_v20  ;;  %6604 = vmatprep.mubr.f32.mxu0 %v8949_v54  ;;  %v588_v20 = vrot.slane %v457_v36, 1  ;;  %v8978_v36 = vld [vmem:[#allocation2 + $0xc8] sm:$0xff]  ;;  %v2052_v30 = vsel %vm589_vm2, %v1988_v57, %v2004_v42 }
 0x150   : > { %2204 = vmatprep.mubr.f32.mxu1 %v8920_v47  ;;  %v1927_v14 = vrot.slane %v8978_v36, 7  ;;  %v2006_v47 = vrot.slane %v8956_v35, 1 }
 0x152   : > { %v8958_v61 = vpop.f32.mrb[0].mxu1  ;;  %6605 = vmatmul.mubr.f32.gmra.mrb[92].mxu0 %v8963_v6 }
 0x153   : > { %v8967_v58 = vpop.f32.mrb[1].mxu1  ;;  %2205 = vmatmul.mubr.f32.gmra.mrb[106].mxu1 %v1957_v21  ;;  %6607 = vmatprep.mubr.f32.mxu0 %v8971_v32  ;;  %v8985_v21 = vsel %vm589_vm2, %v572_v25, %v588_v20  ;;  %v1861_v25 = vld [vmem:[#allocation2 + $0xd0] sm:$0xff] }
 0x154   : > { %2209 = vmatprep.mubr.f32.mxu1 %v8938_v24  ;;  %v1943_v28 = vrot.slane %v1861_v25, 7 }
 0x156   : > { %v8980_v46 = vpop.f32.mrb[2].mxu1  ;;  %6608 = vmatmul.mubr.f32.gmra.mrb[94].mxu0 %v8985_v21  ;;  %v1959_v57 = vsel %vm508_vm3, %v1927_v14, %v1943_v28  ;;  %v1944_v28 = vrot.slane %v1865_v17, 7 }
 0x157   : > { %v8989_v59 = vpop.f32.mrb[3].mxu1  ;;  %2210 = vmatmul.mubr.f32.gmra.mrb[108].mxu1 %v1974_v48  ;;  %6642 = vmatprep.mubr.f32.mxu0 %v2051_v33  ;;  %v2035_v48 = vsel %vm589_vm2, %v2003_v50, %v575_v45  ;;  %v1975_v33 = vsel %vm508_vm3, %v1911_v18, %v1927_v14  ;;  %v2053_v18 = vsel %vm589_vm2, %v1989_v15, %v2005_v5 }
 0x158   : > { %2214 = vmatprep.mubr.f32.mxu1 %v8956_v35  ;;  %v1991_v35 = vrot.slane %v8978_v36, 1  ;;  %v2054_v14 = vsel %vm589_vm2, %v1990_v63, %v2006_v47  ;;  %v2008_v63 = vrot.slane %v1865_v17, 1 }
 0x15a   : > { %v8998_v62 = vpop.f32.mrb[4].mxu1  ;;  %6643 = vmatmul.mubr.f32.vlgmr.msra.gmra.mrb[96].mxu0 %v2035_v48  ;;  %v1928_v48 = vrot.slane %v1864_v23, 7 }
 0x15b   : > { %v9006_v20 = vpop.f32.mrb[5].mxu1  ;;  %2215 = vmatmul.mubr.f32.gmra.mrb[110].mxu1 %v1958_v40  ;;  %6645 = vmatprep.mubr.f32.mxu0 %v2052_v30  ;;  %v2036_v40 = vsel %vm589_vm2, %v2004_v42, %v576_v37  ;;  %v1912_v30 = vrot.slane %v1863_v31, 7  ;;  %v12417_v37 = vrot.slane %v8738_v12, 1  ;;  %v2007_v42 = vrot.slane %v1861_v25, 1  ;;  %v1868_v31 = vld [vmem:[#allocation2 + $0x108] sm:$0xff]  ;;  %v1867_v12 = vld [vmem:[#allocation2 + $0x100] sm:$0xff] }
 0x15c   : > { %2219 = vmatprep.mubr.f32.mxu1 %v8978_v36  ;;  %v12418_v36 = vrot.slane %v8756_v3, 1 }
 0x15d   : > { %v2037_v24 = vsel %vm589_vm2, %v2005_v5, %v12417_v37  ;;  %v1992_v5 = vrot.slane %v1864_v23, 1  ;;  %v1929_v37 = vrot.slane %v1868_v31, 7 }
 0x15e   : > { %v9013_v45 = vpop.f32.mrb[6].mxu1  ;;  %6646 = vmatmul.mubr.f32.gmra.mrb[98].mxu0 %v2036_v40 }
 0x15f   : > { %v9021_v50 = vpop.f32.mrb[7].mxu1  ;;  %2220 = vmatmul.mubr.f32.gmra.mrb[112].mxu1 %v1975_v33  ;;  %6648 = vmatprep.mubr.f32.mxu0 %v2053_v18  ;;  %v1976_v33 = vsel %vm508_vm3, %v1912_v30, %v1928_v48  ;;  %v1960_v30 = vsel %vm508_vm3, %v1928_v48, %v1944_v28 }
 0x160   : > { %2224 = vmatprep.mubr.f32.mxu1 %v1861_v25  ;;  %v2038_v25 = vsel %vm589_vm2, %v2006_v47, %v12418_v36  ;;  %v1873_v36 = vld [vmem:[#allocation2 + $0x130] sm:$0xff] }
 0x162   : > { %v9027_v34 = vpop.f32.mrb[8].mxu1  ;;  %6649 = vmatmul.mubr.f32.gmra.mrb[100].mxu0 %v2037_v24  ;;  %v1913_v24 = vrot.slane %v1867_v12, 7 }
 0x163   : > { %v9034_v15 = vpop.f32.mrb[9].mxu1  ;;  %2225 = vmatmul.mubr.f32.gmra.mrb[114].mxu1 %v1959_v57  ;;  %6651 = vmatprep.mubr.f32.mxu0 %v2054_v14  ;;  %v2055_v57 = vsel %vm589_vm2, %v1991_v35, %v2007_v42  ;;  %v1869_v14 = vld [vmem:[#allocation2 + $0x110] sm:$0xff]  ;;  %v1993_v35 = vrot.slane %v1868_v31, 1 }
 0x164   : > { %2229 = vmatprep.mubr.f32.mxu1 %v1864_v23  ;;  %v12419_v23 = vrot.slane %v8777_v38, 1  ;;  %v2009_v48 = vrot.slane %v1869_v14, 1  ;;  %v1977_v28 = vsel %vm508_vm3, %v1913_v24, %v1929_v37  ;;  %v1945_v12 = vrot.slane %v1869_v14, 7  ;;  %v1871_v38 = vld [vmem:[#allocation2 + $0x120] sm:$0xff] }
 0x165   : > { %v2010_v24 = vrot.slane %v1873_v36, 1 }
 0x166   : > { %v9040_v40 = vpop.f32.mrb[10].mxu1  ;;  %6652 = vmatmul.mubr.f32.gmra.mrb[102].mxu0 %v2038_v25  ;;  %v2039_v47 = vsel %vm589_vm2, %v2007_v42, %v12419_v23  ;;  %v1872_v25 = vld [vmem:[#allocation2 + $0x128] sm:$0xff]  ;;  %v12421_v42 = vrot.slane %v8795_v1, 1 }
 0x167   : > { %v9046_v18 = vpop.f32.mrb[11].mxu1  ;;  %2230 = vmatmul.mubr.f32.gmra.mrb[116].mxu1 %v1976_v33  ;;  %6654 = vmatprep.mubr.f32.mxu0 %v2055_v57 }
 0x168   : > { %2234 = vmatprep.mubr.f32.mxu1 %v1865_v17  ;;  %v2056_v17 = vsel %vm589_vm2, %v1992_v5, %v2008_v63  ;;  %v1994_v5 = vrot.slane %v1872_v25, 1 }
 0x16a   : > { %v9052_v3 = vpop.f32.mrb[12].mxu1  ;;  %6655 = vmatmul.mubr.f32.gmra.mrb[104].mxu0 %v2039_v47  ;;  %v1961_v47 = vsel %vm508_vm3, %v1929_v37, %v1945_v12  ;;  %v2058_v37 = vsel %vm589_vm2, %v1994_v5, %v2010_v24  ;;  %v1995_v12 = vrot.slane %v1876_v2, 1  ;;  %v12423_v5 = vrot.slane %v8834_v56, 1  ;;  %v9110_v56 = vld [vmem:[#allocation2 + $0x188] sm:$0xff] }
 0x16b   : > { %v9058_v33 = vpop.f32.mrb[13].mxu1  ;;  %2235 = vmatmul.mubr.f32.gmra.mrb[118].mxu1 %v1960_v30  ;;  %6657 = vmatprep.mubr.f32.mxu0 %v2056_v17  ;;  %v2040_v30 = vsel %vm589_vm2, %v2008_v63, %v12421_v42  ;;  %v1914_v17 = vrot.slane %v1871_v38, 7 }
 0x16c   : > { %2239 = vmatprep.mubr.f32.mxu1 %v1868_v31  ;;  %v2057_v31 = vsel %vm589_vm2, %v1993_v35, %v2009_v48  ;;  %v1008_v39 = vpop.f32.mrb[0].mxu0  ;;  %v12422_v35 = vrot.slane %v8816_v7, 1 }
 0x16d   : > { %v9077_v1 = vadd.f32 %v8967_v58, %v1008_v39  ;;  %v1010_v63 = vpop.f32.mrb[1].mxu0  ;;  %v1946_v58 = vrot.slane %v1873_v36, 7 }
 0x16e   : > { %v9064_v57 = vpop.f32.mrb[14].mxu1  ;;  %6658 = vmatmul.mubr.f32.gmra.mrb[106].mxu0 %v2040_v30  ;;  %v9091_v30 = vld [vmem:[#allocation2 + $0x168] sm:$0xff] }
 0x16f   : > { %12420 = vst [vmem:[#allocation17_spill] sm:$0xff] %v9064_v57  ;;  %v9070_v23 = vpop.f32.mrb[15].mxu1  ;;  %2240 = vmatmul.mubr.f32.gmra.mrb[120].mxu1 %v1977_v28  ;;  %v1930_v57 = vrot.slane %v1872_v25, 7  ;;  %6660 = vmatprep.mubr.f32.mxu0 %v2057_v31  ;;  %v2041_v28 = vsel %vm589_vm2, %v2009_v48, %v12422_v35  ;;  %v1875_v31 = vld [vmem:[#allocation2 + $0x140] sm:$0xff] }
 0x170   : > { %2244 = vmatprep.mubr.f32.mxu1 %v1869_v14 }
 0x171   : > { %v1013_v38 = vpop.f32.mrb[2].mxu0  ;;  %v1978_v39 = vsel %vm508_vm3, %v1914_v17, %v1930_v57  ;;  %v2059_v17 = vsel %vm589_vm2, %v1995_v12, %v8853_v41 }
 0x172   : > { %v9079_v42 = vpop.f32.mrb[16].mxu1  ;;  %v9094_v7 = vadd.f32 %v8958_v61, %v1013_v38  ;;  %6661 = vmatmul.mubr.f32.gmra.mrb[108].mxu0 %v2041_v28  ;;  %v1015_v48 = vpop.f32.mrb[3].mxu0  ;;  %v1996_v61 = vrot.slane %v9091_v30, 1  ;;  %v1962_v28 = vsel %vm508_vm3, %v1930_v57, %v1946_v58  ;;  %v1931_v38 = vrot.slane %v1876_v2, 7 }
 0x173   : > { %v9085_v14 = vpop.f32.mrb[17].mxu1  ;;  %2245 = vmatmul.mubr.f32.gmra.mrb[122].mxu1 %v1961_v47  ;;  %6663 = vmatprep.mubr.f32.mxu0 %v2058_v37  ;;  %v1915_v37 = vrot.slane %v1875_v31, 7  ;;  %v1997_v57 = vrot.slane %v9110_v56, 1 }
 0x174   : > { %2249 = vmatprep.mubr.f32.mxu1 %v1872_v25  ;;  %v2042_v25 = vsel %vm589_vm2, %v2010_v24, %v12423_v5  ;;  %v1879_v5 = vld [vmem:[#allocation2 + $0x160] sm:$0xff] }
 0x175   : > { %v1018_v35 = vpop.f32.mrb[4].mxu0 }
 0x176   : > { %v9096_v63 = vpop.f32.mrb[18].mxu1  ;;  %v9113_v24 = vadd.f32 %v8989_v59, %v1018_v35  ;;  %6664 = vmatmul.mubr.f32.gmra.mrb[110].mxu0 %v2042_v25  ;;  %v1979_v59 = vsel %vm508_vm3, %v1915_v37, %v1931_v38  ;;  %v1932_v35 = vrot.slane %v9091_v30, 7 }
 0x177   : > { %v9102_v47 = vpop.f32.mrb[19].mxu1  ;;  %2250 = vmatmul.mubr.f32.gmra.mrb[124].mxu1 %v1978_v39  ;;  %v1020_v39 = vpop.f32.mrb[5].mxu0  ;;  %6666 = vmatprep.mubr.f32.mxu0 %v2059_v17 }
 0x178   : > { %2254 = vmatprep.mubr.f32.mxu1 %v1873_v36  ;;  %v2060_v36 = vsel %vm589_vm2, %v1996_v61, %v8870_v19  ;;  %v1916_v61 = vrot.slane %v1879_v5, 7  ;;  %v1933_v5 = vrot.slane %v9110_v56, 7 }
 0x179   : > { %v1023_v12 = vpop.f32.mrb[6].mxu0 }
 0x17a   : > { %v9115_v48 = vpop.f32.mrb[20].mxu1  ;;  %v9126_v58 = vadd.f32 %v8980_v46, %v1023_v12  ;;  %6667 = vmatmul.mubr.f32.gmra.mrb[112].mxu0 %v8886_v60  ;;  %v1025_v31 = vpop.f32.mrb[7].mxu0  ;;  %v12424_v46 = vrot.slane %v8661_v16, 7 }
 0x17b   : > { %v9117_v41 = vpop.f32.mrb[21].mxu1  ;;  %2255 = vmatmul.mubr.f32.gmra.mrb[126].mxu1 %v1962_v28  ;;  %6669 = vmatprep.mubr.f32.mxu0 %v2060_v36 }
 0x17c   : > { %2259 = vmatprep.mubr.f32.mxu1 %v1876_v2  ;;  %v2061_v2 = vsel %vm589_vm2, %v1997_v57, %v8889_v53  ;;  %v1963_v60 = vsel %vm508_vm3, %v1931_v38, %v12424_v46  ;;  %v1883_v57 = vld [vmem:[#allocation2 + $0x180] sm:$0xff] }
 0x17d   : > { %v1028_v19 = vpop.f32.mrb[8].mxu0  ;;  %v1917_v31 = vrot.slane %v1883_v57, 7 }
 0x17e   : > { %v9129_v25 = vpop.f32.mrb[22].mxu1  ;;  %v9143_v28 = vadd.f32 %v9006_v20, %v1028_v19  ;;  %v1030_v37 = vpop.f32.mrb[9].mxu0  ;;  %6670 = vmatmul.mubr.f32.gmra.mrb[114].mxu0 %v8906_v29 }
 0x17f   : > { %v9131_v17 = vpop.f32.mrb[23].mxu1  ;;  %2260 = vmatmul.mubr.f32.gmra.mrb[128].mxu1 %v1979_v59  ;;  %6672 = vmatprep.mubr.f32.mxu0 %v2061_v2  ;;  %v9170_v2 = vld [vmem:[#allocation2 + $0x210] sm:$0xff] }
 0x180   : > { %2264 = vmatprep.mubr.f32.mxu1 %v8661_v16  ;;  %v1980_v16 = vsel %vm508_vm3, %v1916_v61, %v1932_v35  ;;  %v2017_v61 = vrot.slane %v9170_v2, 1 }
 0x181   : > { %v1033_v36 = vpop.f32.mrb[10].mxu0 }
 0x182   : > { %v9146_v39 = vpop.f32.mrb[24].mxu1  ;;  %v9154_v38 = vadd.f32 %v8998_v62, %v1033_v36  ;;  %v1035_v20 = vpop.f32.mrb[11].mxu0  ;;  %6673 = vmatmul.mubr.f32.gmra.mrb[116].mxu0 %v8925_v22  ;;  %v9168_v22 = vld [vmem:[#allocation2 + $0x208] sm:$0xff] }
 0x183   : > { %v9148_v53 = vpop.f32.mrb[25].mxu1  ;;  %2265 = vmatmul.mubr.f32.gmra.mrb[130].mxu1 %v1963_v60  ;;  %6675 = vmatprep.mubr.f32.mxu0 %v8931_v4  ;;  %v2001_v60 = vrot.slane %v9168_v22, 1 }
 0x184   : > { %2269 = vmatprep.mubr.f32.mxu1 %v9091_v30  ;;  %v12425_v30 = vrot.slane %v8683_v9, 7 }
 0x185   : > { %v1038_v59 = vpop.f32.mrb[12].mxu0 }
 0x186   : > { %v9157_v29 = vpop.f32.mrb[26].mxu1  ;;  %v1964_v62 = vsel %vm508_vm3, %v1932_v35, %v12425_v30  ;;  %v9173_v4 = vadd.f32 %v9021_v50, %v1038_v59  ;;  %v1040_v19 = vpop.f32.mrb[13].mxu0  ;;  %6676 = vmatmul.mubr.f32.gmra.mrb[118].mxu0 %v8943_v10  ;;  %v1902_v35 = vld [vmem:[#allocation2 + $0x218] sm:$0xff]  ;;  %v1981_v50 = vsel %vm508_vm3, %v1917_v31, %v1933_v5  ;;  %v9197_v59 = vld [vmem:[#allocation2] sm:$0xff] }
 0x187   : > { %v9160_v12 = vpop.f32.mrb[27].mxu1  ;;  %2270 = vmatmul.mubr.f32.gmra.mrb[132].mxu1 %v1980_v16  ;;  %6678 = vmatprep.mubr.f32.mxu0 %v8949_v54  ;;  %v1887_v16 = vld [vmem:[#allocation2 + $0x1a0] sm:$0xff]  ;;  %v2033_v20 = vrot.slane %v1902_v35, 1 }
 0x188   : > { %2274 = vmatprep.mubr.f32.mxu1 %v8683_v9 }
 0x189   : > { %v1043_v37 = vpop.f32.mrb[14].mxu0  ;;  %v2049_v35 = vsel %vm589_vm2, %v2017_v61, %v2033_v20 }
 0x18a   : > { %v9176_v46 = vpop.f32.mrb[28].mxu1  ;;  %v9187_v10 = vadd.f32 %v9013_v45, %v1043_v37  ;;  %v1045_v36 = vpop.f32.mrb[15].mxu0  ;;  %6679 = vmatmul.mubr.f32.gmra.mrb[120].mxu0 %v8963_v6  ;;  %v2002_v45 = vrot.slane %v9197_v59, 1  ;;  %v12426_v6 = vrot.slane %v8702_v0, 7 }
 0x18b   : > { %v9179_v9 = vpop.f32.mrb[29].mxu1  ;;  %2275 = vmatmul.mubr.f32.gmra.mrb[134].mxu1 %v1964_v62  ;;  %6681 = vmatprep.mubr.f32.mxu0 %v8971_v32  ;;  %v1918_v32 = vrot.slane %v1887_v16, 7  ;;  %v1891_v36 = vld [vmem:[#allocation2 + $0x1c0] sm:$0xff] }
 0x18c   : > { %2279 = vmatprep.mubr.f32.mxu1 %v9110_v56  ;;  %v2065_v56 = vsel %vm589_vm2, %v2001_v60, %v2017_v61  ;;  %v1965_v62 = vsel %vm508_vm3, %v1933_v5, %v12426_v6 }
 0x18d   : > { %v1048_v30 = vpop.f32.mrb[16].mxu0 }
 0x18e   : > { %v9190_v54 = vpop.f32.mrb[30].mxu1  ;;  %v9206_v31 = vadd.f32 %v9034_v15, %v1048_v30  ;;  %v1050_v19 = vpop.f32.mrb[17].mxu0  ;;  %6682 = vmatmul.mubr.f32.gmra.mrb[122].mxu0 %v8985_v21  ;;  %v1982_v15 = vsel %vm508_vm3, %v1918_v32, %v8727_v49  ;;  %v1895_v32 = vld [vmem:[#allocation2 + $0x1e0] sm:$0xff] }
 0x18f   : > { %v9193_v57 = vpop.f32.mrb[31].mxu1  ;;  %2280 = vmatmul.mubr.f32.gmra.mrb[136].mxu1 %v1981_v50  ;;  %6684 = vmatprep.mubr.f32.mxu0 %v2065_v56 }
 0x190   : > { %2284 = vmatprep.mubr.f32.mxu1 %v8702_v0 }
 0x191   : > { %v1053_v0 = vpop.f32.mrb[18].mxu0 }
 0x192   : > { %v1458_v60 = vpop.f32.mrb[32].mxu1  ;;  %v9219_v5 = vadd.f32 %v9027_v34, %v1053_v0  ;;  %v1055_v21 = vpop.f32.mrb[19].mxu0  ;;  %6685 = vmatmul.mubr.f32.gmra.mrb[124].mxu0 %v2049_v35 }
 0x193   : > { %v1460_v37 = vpop.f32.mrb[33].mxu1  ;;  %2285 = vmatmul.mubr.f32.gmra.mrb[138].mxu1 %v1965_v62  ;;  %v9212_v50 = vadd.f32 %v1458_v60, %v9077_v1  ;;  %6687 = vmatprep.mubr.f32.mxu0 %v2002_v45  ;;  %v1920_v60 = vrot.slane %v1895_v32, 7 }
 0x194   : > { %2289 = vmatprep.mubr.f32.mxu1 %v8708_v8  ;;  %v1919_v8 = vrot.slane %v1891_v36, 7 }
 0x195   : > { %v1058_v20 = vpop.f32.mrb[20].mxu0 }
 0x196   : > { %v1463_v16 = vpop.f32.mrb[34].mxu1  ;;  %v9226_v56 = vadd.f32 %v9046_v18, %v1058_v20  ;;  %v1060_v49 = vpop.f32.mrb[21].mxu0  ;;  %6688 = vmatmul.mubr.f32.gmra.mrb[126].mxu0 %v2002_v45 }
 0x197   : > { %v1465_v61 = vpop.f32.mrb[35].mxu1  ;;  %2290 = vmatmul.mubr.f32.gmra.mrb[140].mxu1 %v1982_v15  ;;  %v9222_v1 = vadd.f32 %v1463_v16, %v9094_v7  ;;  %v1899_v15 = vld [vmem:[#allocation2 + $0x200] sm:$0xff]  ;;  %v12427_v16 = vld [vmem:[#allocation15_spill] sm:$0xff] }
 0x198   : > { %2294 = vmatprep.mubr.f32.mxu1 %v8729_v55  ;;  %v1983_v55 = vsel %vm508_vm3, %v1919_v8, %v8765_v26  ;;  %v1921_v61 = vrot.slane %v1899_v15, 7 }
 0x199   : > { %v1063_v62 = vpop.f32.mrb[22].mxu0 }
 0x19a   : > { %v1468_v34 = vpop.f32.mrb[36].mxu1  ;;  %v9237_v7 = vadd.f32 %v9040_v40, %v1063_v62  ;;  %v1065_v18 = vpop.f32.mrb[23].mxu0  ;;  %v1953_v62 = vrot.slane %v9170_v2, 7 }
 0x19b   : > { %v1470_v30 = vpop.f32.mrb[37].mxu1  ;;  %2295 = vmatmul.mubr.f32.gmra.mrb[142].mxu1 %v8762_v51  ;;  %v9230_v6 = vadd.f32 %v1468_v34, %v9113_v24  ;;  %v12429_v18 = vld [vmem:[#allocation17_spill] sm:$0xff] }
 0x19c   : > { %2299 = vmatprep.mubr.f32.mxu1 %v8747_v44 }
 0x19d   : > { %v1068_v24 = vpop.f32.mrb[24].mxu0 }
 0x19e   : > { %v1473_v45 = vpop.f32.mrb[38].mxu1  ;;  %v1070_v44 = vpop.f32.mrb[25].mxu0  ;;  %v9244_v35 = vadd.f32 %v9058_v33, %v1068_v24 }
 0x19f   : > { %v1475_v19 = vpop.f32.mrb[39].mxu1  ;;  %2300 = vmatmul.mubr.f32.gmra.mrb[144].mxu1 %v1983_v55  ;;  %v9240_v51 = vadd.f32 %v1473_v45, %v9126_v58  ;;  %v1984_v58 = vsel %vm508_vm3, %v1920_v60, %v8804_v11 }
 0x1a0   : > { %2304 = vmatprep.mubr.f32.mxu1 %v8767_v27 }
 0x1a1   : > { %v1073_v0 = vpop.f32.mrb[26].mxu0 }
 0x1a2   : > { %v1478_v26 = vpop.f32.mrb[40].mxu1  ;;  %v1075_v27 = vpop.f32.mrb[27].mxu0  ;;  %v9255_v21 = vadd.f32 %v9052_v3, %v1073_v0  ;;  %v12428_v3 = vld [vmem:[#allocation14_spill] sm:$0xff] }
 0x1a3   : > { %v1480_v37 = vpop.f32.mrb[41].mxu1  ;;  %2305 = vmatmul.mubr.f32.gmra.mrb[146].mxu1 %v8801_v52  ;;  %v9248_v40 = vadd.f32 %v1478_v26, %v9143_v28 }
 0x1a4   : > { %2309 = vmatprep.mubr.f32.mxu1 %v8786_v13  ;;  %v1937_v13 = vrot.slane %v9168_v22, 7 }
 0x1a5   : > { %v1078_v28 = vpop.f32.mrb[28].mxu0 }
 0x1a6   : > { %v1483_v33 = vpop.f32.mrb[42].mxu1  ;;  %v1080_v20 = vpop.f32.mrb[29].mxu0  ;;  %v9263_v11 = vadd.f32 %v9070_v23, %v1078_v28 }
 0x1a7   : > { %v1485_v36 = vpop.f32.mrb[43].mxu1  ;;  %2310 = vmatmul.mubr.f32.gmra.mrb[148].mxu1 %v1984_v58  ;;  %v9258_v52 = vadd.f32 %v1483_v33, %v9154_v38  ;;  %v1985_v38 = vsel %vm508_vm3, %v1921_v61, %v1937_v13 }
 0x1a8   : > { %2314 = vmatprep.mubr.f32.mxu1 %v12427_v16 }
 0x1a9   : > { %v1083_v30 = vpop.f32.mrb[30].mxu0 }
 0x1aa   : > { %v1488_v8 = vpop.f32.mrb[44].mxu1  ;;  %v1085_v55 = vpop.f32.mrb[31].mxu0  ;;  %v1309_v32 = vadd.f32 %v12429_v18, %v1083_v30 }
 0x1ab   : > { %v1490_v49 = vpop.f32.mrb[45].mxu1  ;;  %2315 = vmatmul.mubr.f32.gmra.mrb[150].mxu1 %v12428_v3  ;;  %v9267_v34 = vadd.f32 %v1488_v8, %v9173_v4  ;;  %v1922_v4 = vrot.slane %v9197_v59, 7 }
 0x1ac   : > { %2319 = vmatprep.mubr.f32.mxu1 %v9168_v22  ;;  %v1969_v22 = vsel %vm508_vm3, %v1937_v13, %v1953_v62 }
 0x1ad   : > { %v1088_v24 = vpop.f32.mrb[32].mxu0 }
 0x1ae   : > { %v1493_v23 = vpop.f32.mrb[46].mxu1  ;;  %v1090_v60 = vpop.f32.mrb[33].mxu0  ;;  %v1314_v44 = vadd.f32 %v9085_v14, %v1088_v24 }
 0x1af   : > { %v1495_v45 = vpop.f32.mrb[47].mxu1  ;;  %2320 = vmatmul.mubr.f32.gmra.mrb[152].mxu1 %v1985_v38  ;;  %v9275_v19 = vadd.f32 %v1493_v23, %v9187_v10 }
 0x1b0   : > { %2324 = vmatprep.mubr.f32.mxu1 %v9170_v2 }
 0x1b1   : > { %v1093_v58 = vpop.f32.mrb[34].mxu0 }
 0x1b2   : > { %v1498_v26 = vpop.f32.mrb[48].mxu1  ;;  %v1095_v10 = vpop.f32.mrb[35].mxu0  ;;  %v1319_v2 = vadd.f32 %v9079_v42, %v1093_v58 }
 0x1b3   : > { %v1500_v37 = vpop.f32.mrb[49].mxu1  ;;  %2325 = vmatmul.mubr.f32.gmra.mrb[154].mxu1 %v1969_v22  ;;  %v9283_v0 = vadd.f32 %v1498_v26, %v9206_v31 }
 0x1b4   : > { %2329 = vmatprep.mubr.f32.mxu1 %v9197_v59 }
 0x1b5   : > { %v1098_v36 = vpop.f32.mrb[36].mxu0 }
 0x1b6   : > { %v1503_v27 = vpop.f32.mrb[50].mxu1  ;;  %v1100_v14 = vpop.f32.mrb[37].mxu0  ;;  %v1324_v28 = vadd.f32 %v9102_v47, %v1098_v36 }
 0x1b7   : > { %v1505_v15 = vpop.f32.mrb[51].mxu1  ;;  %2330 = vmatmul.mubr.f32.gmra.mrb[156].mxu1 %v1922_v4  ;;  %v9288_v33 = vadd.f32 %v1503_v27, %v9219_v5 }
 0x1b8   : > { %2334 = vmatprep.mubr.f32.mxu1 %v9197_v59 }
 0x1b9   : > { %v1103_v13 = vpop.f32.mrb[38].mxu0 }
 0x1ba   : > { %v1508_v31 = vpop.f32.mrb[52].mxu1  ;;  %v1105_v42 = vpop.f32.mrb[39].mxu0  ;;  %v1329_v20 = vadd.f32 %v9096_v63, %v1103_v13 }
 0x1bb   : > { %v1510_v16 = vpop.f32.mrb[53].mxu1  ;;  %2335 = vmatmul.mubr.f32.gmra.mrb[158].mxu1 %v1922_v4  ;;  %v9293_v61 = vadd.f32 %v1508_v31, %v9226_v56 }
 0x1bd   : > { %v1108_v3 = vpop.f32.mrb[40].mxu0 }
 0x1be   : > { %v1513_v8 = vpop.f32.mrb[54].mxu1  ;;  %v1334_v59 = vadd.f32 %v9117_v41, %v1108_v3  ;;  %v1110_v30 = vpop.f32.mrb[41].mxu0 }
 0x1bf   : > { %v1515_v49 = vpop.f32.mrb[55].mxu1  ;;  %v9297_v5 = vadd.f32 %v1513_v8, %v9237_v7 }
 0x1c1   : > { %v1113_v56 = vpop.f32.mrb[42].mxu0 }
 0x1c2   : > { %v1518_v47 = vpop.f32.mrb[56].mxu1  ;;  %v1339_v55 = vadd.f32 %v9115_v48, %v1113_v56  ;;  %v1115_v18 = vpop.f32.mrb[43].mxu0 }
 0x1c3   : > { %v9301_v38 = vadd.f32 %v1518_v47, %v9244_v35  ;;  %v1520_v62 = vpop.f32.mrb[57].mxu1 }
 0x1c5   : > { %v1118_v7 = vpop.f32.mrb[44].mxu0 }
 0x1c6   : > { %v1523_v23 = vpop.f32.mrb[58].mxu1  ;;  %v1344_v24 = vadd.f32 %v9131_v17, %v1118_v7  ;;  %v1120_v22 = vpop.f32.mrb[45].mxu0 }
 0x1c7   : > { %v9305_v63 = vadd.f32 %v1523_v23, %v9255_v21  ;;  %v1525_v45 = vpop.f32.mrb[59].mxu1 }
 0x1c9   : > { %v1123_v60 = vpop.f32.mrb[46].mxu0 }
 0x1ca   : > { %v1528_v41 = vpop.f32.mrb[60].mxu1  ;;  %v1349_v26 = vadd.f32 %v9129_v25, %v1123_v60  ;;  %v1125_v37 = vpop.f32.mrb[47].mxu0 }
 0x1cb   : > { %v9309_v4 = vadd.f32 %v1528_v41, %v9263_v11  ;;  %v1530_v35 = vpop.f32.mrb[61].mxu1 }
 0x1cd   : > { %v1128_v21 = vpop.f32.mrb[48].mxu0 }
 0x1ce   : > { %v1533_v48 = vpop.f32.mrb[62].mxu1  ;;  %v1354_v27 = vadd.f32 %v9148_v53, %v1128_v21  ;;  %v1130_v15 = vpop.f32.mrb[49].mxu0 }
 0x1cf   : > { %v9312_v58 = vadd.f32 %v1533_v48, %v1309_v32  ;;  %v1535_v10 = vpop.f32.mrb[63].mxu1 }
 0x1d1   : > { %v1133_v31 = vpop.f32.mrb[50].mxu0 }
 0x1d2   : > { %v1538_v36 = vpop.f32.mrb[64].mxu1  ;;  %v1359_v11 = vadd.f32 %v9146_v39, %v1133_v31  ;;  %v1135_v16 = vpop.f32.mrb[51].mxu0 }
 0x1d3   : > { %v9315_v17 = vadd.f32 %v1538_v36, %v1314_v44  ;;  %v1540_v14 = vpop.f32.mrb[65].mxu1 }
 0x1d5   : > { %v1138_v8 = vpop.f32.mrb[52].mxu0 }
 0x1d6   : > { %v1543_v13 = vpop.f32.mrb[66].mxu1  ;;  %v1364_v32 = vadd.f32 %v9160_v12, %v1138_v8  ;;  %v1140_v49 = vpop.f32.mrb[53].mxu0 }
 0x1d7   : > { %v9318_v42 = vadd.f32 %v1543_v13, %v1319_v2  ;;  %v1545_v25 = vpop.f32.mrb[67].mxu1 }
 0x1d9   : > { %v1143_v47 = vpop.f32.mrb[54].mxu0 }
 0x1da   : > { %v1548_v3 = vpop.f32.mrb[68].mxu1  ;;  %v1369_v44 = vadd.f32 %v9157_v29, %v1143_v47  ;;  %v1145_v62 = vpop.f32.mrb[55].mxu0 }
 0x1db   : > { %v9321_v30 = vadd.f32 %v1548_v3, %v1324_v28  ;;  %v1550_v53 = vpop.f32.mrb[69].mxu1 }
 0x1dd   : > { %v1148_v23 = vpop.f32.mrb[56].mxu0 }
 0x1de   : > { %v1553_v56 = vpop.f32.mrb[70].mxu1  ;;  %v1374_v2 = vadd.f32 %v9179_v9, %v1148_v23  ;;  %v1150_v45 = vpop.f32.mrb[57].mxu0 }
 0x1df   : > { %v9324_v18 = vadd.f32 %v1553_v56, %v1329_v20  ;;  %v1555_v39 = vpop.f32.mrb[71].mxu1 }
 0x1e1   : > { %v1153_v41 = vpop.f32.mrb[58].mxu0 }
 0x1e2   : > { %v1558_v7 = vpop.f32.mrb[72].mxu1  ;;  %v1379_v28 = vadd.f32 %v9176_v46, %v1153_v41  ;;  %v1155_v35 = vpop.f32.mrb[59].mxu0 }
 0x1e3   : > { %v9327_v22 = vadd.f32 %v1558_v7, %v1334_v59  ;;  %v1560_v12 = vpop.f32.mrb[73].mxu1 }
 0x1e5   : > { %v1158_v48 = vpop.f32.mrb[60].mxu0 }
 0x1e6   : > { %v1563_v60 = vpop.f32.mrb[74].mxu1  ;;  %v1384_v20 = vadd.f32 %v9193_v57, %v1158_v48  ;;  %v1160_v10 = vpop.f32.mrb[61].mxu0 }
 0x1e7   : > { %v9330_v37 = vadd.f32 %v1563_v60, %v1339_v55  ;;  %v1565_v29 = vpop.f32.mrb[75].mxu1 }
 0x1e9   : > { %v1163_v36 = vpop.f32.mrb[62].mxu0 }
 0x1ea   : > { %v1568_v21 = vpop.f32.mrb[76].mxu1  ;;  %v1389_v59 = vadd.f32 %v9190_v54, %v1163_v36  ;;  %v1165_v14 = vpop.f32.mrb[63].mxu0 }
 0x1eb   : > { %v9333_v15 = vadd.f32 %v1568_v21, %v1344_v24  ;;  %v1570_v9 = vpop.f32.mrb[77].mxu1 }
 0x1ed   : > { %v6564_v13 = vpop.f32.mrb[64].mxu0 }
 0x1ee   : > { %v1573_v31 = vpop.f32.mrb[78].mxu1  ;;  %v9339_v55 = vadd.f32 %v6564_v13, %v9222_v1  ;;  %v1683_v25 = vpop.f32.mrb[65].mxu0 }
 0x1ef   : > { %v9336_v16 = vadd.f32 %v1573_v31, %v1349_v26  ;;  %v1575_v46 = vpop.f32.mrb[79].mxu1  ;;  %v9342_v57 = vadd.f32 %v1683_v25, %v9212_v50 }
 0x1f1   : > { %v6567_v3 = vpop.f32.mrb[66].mxu0 }
 0x1f2   : > { %v1578_v8 = vpop.f32.mrb[80].mxu1  ;;  %v9347_v54 = vadd.f32 %v6567_v3, %v9240_v51  ;;  %v1693_v53 = vpop.f32.mrb[67].mxu0 }
 0x1f3   : > { %v9344_v24 = vadd.f32 %v1578_v8, %v1354_v27  ;;  %v1580_v49 = vpop.f32.mrb[81].mxu1  ;;  %v9350_v47 = vadd.f32 %v1693_v53, %v9230_v6 }
 0x1f5   : > { %v6570_v56 = vpop.f32.mrb[68].mxu0 }
 0x1f6   : > { %v1583_v26 = vpop.f32.mrb[82].mxu1  ;;  %v9355_v39 = vadd.f32 %v6570_v56, %v9258_v52  ;;  %v1703_v50 = vpop.f32.mrb[69].mxu0 }
 0x1f7   : > { %v9352_v62 = vadd.f32 %v1583_v26, %v1359_v11  ;;  %v1585_v1 = vpop.f32.mrb[83].mxu1  ;;  %v9358_v23 = vadd.f32 %v1703_v50, %v9248_v40 }
 0x1f9   : > { %v6573_v7 = vpop.f32.mrb[70].mxu0 }
 0x1fa   : > { %v1588_v27 = vpop.f32.mrb[84].mxu1  ;;  %v9363_v12 = vadd.f32 %v6573_v7, %v9275_v19  ;;  %v1713_v6 = vpop.f32.mrb[71].mxu0 }
 0x1fb   : > { %v9360_v45 = vadd.f32 %v1588_v27, %v1364_v32  ;;  %v1590_v51 = vpop.f32.mrb[85].mxu1  ;;  %v9366_v41 = vadd.f32 %v1713_v6, %v9267_v34 }
 0x1fd   : > { %v6576_v60 = vpop.f32.mrb[72].mxu0 }
 0x1fe   : > { %v1593_v11 = vpop.f32.mrb[86].mxu1  ;;  %v9369_v29 = vadd.f32 %v6576_v60, %v9288_v33  ;;  %v1723_v40 = vpop.f32.mrb[73].mxu0 }
 0x1ff   : > { %v1594_v35 = vadd.f32 %v1593_v11, %v1369_v44  ;;  %v1595_v52 = vpop.f32.mrb[87].mxu1  ;;  %v9372_v32 = vadd.f32 %v1723_v40, %v9283_v0 }
 0x201   : > { %v6579_v19 = vpop.f32.mrb[74].mxu0 }
 0x202   : > { %v1598_v48 = vpop.f32.mrb[88].mxu1  ;;  %v9375_v9 = vadd.f32 %v6579_v19, %v9297_v5  ;;  %v1733_v36 = vpop.f32.mrb[75].mxu0 }
 0x203   : > { %v1599_v10 = vadd.f32 %v1598_v48, %v1374_v2  ;;  %v1600_v21 = vpop.f32.mrb[89].mxu1  ;;  %v9378_v44 = vadd.f32 %v1733_v36, %v9293_v61 }
 0x205   : > { %v6582_v33 = vpop.f32.mrb[76].mxu0 }
 0x206   : > { %v1603_v34 = vpop.f32.mrb[90].mxu1  ;;  %v9381_v46 = vadd.f32 %v6582_v33, %v9305_v63  ;;  %v1743_v13 = vpop.f32.mrb[77].mxu0 }
 0x207   : > { %v1604_v14 = vadd.f32 %v1603_v34, %v1379_v28  ;;  %v1605_v31 = vpop.f32.mrb[91].mxu1  ;;  %v9384_v2 = vadd.f32 %v1743_v13, %v9301_v38 }
 0x209   : > { %v6585_v5 = vpop.f32.mrb[78].mxu0 }
 0x20a   : > { %v1608_v0 = vpop.f32.mrb[92].mxu1  ;;  %v9387_v49 = vadd.f32 %v6585_v5, %v9312_v58  ;;  %v1753_v3 = vpop.f32.mrb[79].mxu0 }
 0x20b   : > { %v1609_v25 = vadd.f32 %v1608_v0, %v1384_v20  ;;  %v1610_v8 = vpop.f32.mrb[93].mxu1  ;;  %v9390_v28 = vadd.f32 %v1753_v3, %v9309_v4 }
 0x20d   : > { %v6588_v63 = vpop.f32.mrb[80].mxu0 }
 0x20e   : > { %v1613_v61 = vpop.f32.mrb[94].mxu1  ;;  %v9393_v1 = vadd.f32 %v6588_v63, %v9318_v42  ;;  %v1763_v56 = vpop.f32.mrb[81].mxu0 }
 0x20f   : > { %v1614_v53 = vadd.f32 %v1613_v61, %v1389_v59  ;;  %v1615_v26 = vpop.f32.mrb[95].mxu1  ;;  %v9396_v38 = vadd.f32 %v1763_v56, %v9315_v17 }
 0x211   : > { %v6591_v27 = vpop.f32.mrb[82].mxu0 }
 0x212   : > { %v2181_v20 = vpop.f32.mrb[96].mxu1  ;;  %v9399_v58 = vadd.f32 %v6591_v27, %v9324_v18  ;;  %v1773_v51 = vpop.f32.mrb[83].mxu0 }
 0x213   : > { %v2183_v50 = vpop.f32.mrb[97].mxu1  ;;  %v9402_v4 = vadd.f32 %v1773_v51, %v9321_v30 }
 0x215   : > { %v6594_v6 = vpop.f32.mrb[84].mxu0 }
 0x216   : > { %v2186_v59 = vpop.f32.mrb[98].mxu1  ;;  %v9405_v42 = vadd.f32 %v6594_v6, %v9330_v37  ;;  %v1783_v11 = vpop.f32.mrb[85].mxu0 }
 0x217   : > { %v2188_v7 = vpop.f32.mrb[99].mxu1  ;;  %v9408_v17 = vadd.f32 %v1783_v11, %v9327_v22 }
 0x219   : > { %v6597_v40 = vpop.f32.mrb[86].mxu0 }
 0x21a   : > { %v2191_v52 = vpop.f32.mrb[100].mxu1  ;;  %v9411_v18 = vadd.f32 %v6597_v40, %v9336_v16  ;;  %v1793_v48 = vpop.f32.mrb[87].mxu0 }
 0x21b   : > { %v2193_v60 = vpop.f32.mrb[101].mxu1  ;;  %v9414_v30 = vadd.f32 %v1793_v48, %v9333_v15 }
 0x21d   : > { %v6600_v36 = vpop.f32.mrb[88].mxu0 }
 0x21e   : > { %v2196_v21 = vpop.f32.mrb[102].mxu1  ;;  %v9417_v37 = vadd.f32 %v6600_v36, %v9352_v62  ;;  %v1803_v34 = vpop.f32.mrb[89].mxu0 }
 0x21f   : > { %v2198_v19 = vpop.f32.mrb[103].mxu1  ;;  %v9420_v22 = vadd.f32 %v1803_v34, %v9344_v24 }
 0x221   : > { %v6603_v13 = vpop.f32.mrb[90].mxu0 }
 0x222   : > { %v2201_v31 = vpop.f32.mrb[104].mxu1  ;;  %v9422_v0 = vadd.f32 %v6603_v13, %v1594_v35  ;;  %v1813_v16 = vpop.f32.mrb[91].mxu0 }
 0x223   : > { %v2203_v33 = vpop.f32.mrb[105].mxu1  ;;  %v9425_v8 = vadd.f32 %v1813_v16, %v9360_v45 }
 0x225   : > { %v6606_v3 = vpop.f32.mrb[92].mxu0 }
 0x226   : > { %v2206_v15 = vpop.f32.mrb[106].mxu1  ;;  %v9427_v61 = vadd.f32 %v6606_v3, %v1604_v14  ;;  %v1823_v62 = vpop.f32.mrb[93].mxu0 }
 0x227   : > { %v2208_v5 = vpop.f32.mrb[107].mxu1  ;;  %v9429_v26 = vadd.f32 %v1823_v62, %v1599_v10 }
 0x229   : > { %v6609_v56 = vpop.f32.mrb[94].mxu0 }
 0x22a   : > { %v2211_v63 = vpop.f32.mrb[108].mxu1  ;;  %v9431_v50 = vadd.f32 %v6609_v56, %v1614_v53  ;;  %v1833_v27 = vpop.f32.mrb[95].mxu0 }
 0x22b   : > { %v2213_v24 = vpop.f32.mrb[109].mxu1  ;;  %v9433_v35 = vadd.f32 %v1833_v27, %v1609_v25 }
 0x22d   : > { %v6644_v45 = vpop.f32.mrb[96].mxu0 }
 0x22e   : > { %v2216_v51 = vpop.f32.mrb[110].mxu1  ;;  %v2412_v6 = vadd.f32 %v6644_v45, %v2186_v59  ;;  %v2406_v11 = vpop.f32.mrb[97].mxu0 }
 0x22f   : > { %v2218_v7 = vpop.f32.mrb[111].mxu1  ;;  %v2407_v40 = vadd.f32 %v2406_v11, %v2181_v20 }
 0x230   : > { %v9436_v14 = vadd.f32 %v2412_v6, %v9339_v55 }
 0x231   : > { %v9439_v48 = vadd.f32 %v2407_v40, %v9342_v57  ;;  %v6647_v19 = vpop.f32.mrb[98].mxu0 }
 0x232   : > { %v2221_v60 = vpop.f32.mrb[112].mxu1  ;;  %v2422_v53 = vadd.f32 %v6647_v19, %v2196_v21  ;;  %v2416_v36 = vpop.f32.mrb[99].mxu0  ;;  %v2635_v55 = vmul.f32 %v9436_v14, %v9436_v14 }
 0x233   : > { %v2223_v10 = vpop.f32.mrb[113].mxu1  ;;  %v2417_v25 = vadd.f32 %v2416_v36, %v2191_v52  ;;  %v2634_v57 = vmul.f32 %v9439_v48, %v9439_v48  ;;  %v2597_v52 = vadd.f32 %v9436_v14, %v9439_v48 }
 0x234   : > { %v9442_v33 = vadd.f32 %v2422_v53, %v9347_v54 }
 0x235   : > { %v9445_v59 = vadd.f32 %v2417_v25, %v9350_v47  ;;  %v6650_v20 = vpop.f32.mrb[100].mxu0  ;;  %v2666_v27 = vadd.f32 %v2635_v55, %v2634_v57 }
 0x236   : > { %v2226_v34 = vpop.f32.mrb[114].mxu1  ;;  %v2432_v16 = vadd.f32 %v6650_v20, %v2206_v15  ;;  %v2426_v5 = vpop.f32.mrb[101].mxu0 }
 0x237   : > { %v2228_v13 = vpop.f32.mrb[115].mxu1  ;;  %v2427_v3 = vadd.f32 %v2426_v5, %v2201_v31  ;;  %v2636_v54 = vmul.f32 %v9445_v59, %v9445_v59  ;;  %v2598_v15 = vadd.f32 %v2597_v52, %v9445_v59 }
 0x238   : > { %v9456_v47 = vadd.f32 %v2432_v16, %v9355_v39 }
 0x239   : > { %v9459_v24 = vadd.f32 %v2427_v3, %v9358_v23  ;;  %v6653_v56 = vpop.f32.mrb[102].mxu0  ;;  %v2667_v11 = vadd.f32 %v2666_v27, %v2636_v54  ;;  %v2637_v23 = vmul.f32 %v9442_v33, %v9442_v33  ;;  %v2599_v53 = vadd.f32 %v2598_v15, %v9442_v33 }
 0x23a   : > { %v2231_v21 = vpop.f32.mrb[116].mxu1  ;;  %v2442_v7 = vadd.f32 %v6653_v56, %v2216_v51  ;;  %v2436_v45 = vpop.f32.mrb[103].mxu0 }
 0x23b   : > { %v2233_v62 = vpop.f32.mrb[117].mxu1  ;;  %v2437_v6 = vadd.f32 %v2436_v45, %v2211_v63  ;;  %v2638_v63 = vmul.f32 %v9459_v24, %v9459_v24  ;;  %v2668_v20 = vadd.f32 %v2667_v11, %v2637_v23  ;;  %v2600_v16 = vadd.f32 %v2599_v53, %v9459_v24 }
 0x23c   : > { %v9463_v40 = vadd.f32 %v2442_v7, %v9363_v12 }
 0x23d   : > { %v9466_v39 = vadd.f32 %v2437_v6, %v9366_v41  ;;  %v6656_v19 = vpop.f32.mrb[104].mxu0  ;;  %v2669_v54 = vadd.f32 %v2668_v20, %v2638_v63  ;;  %v2601_v27 = vadd.f32 %v2600_v16, %v9456_v47 }
 0x23e   : > { %v2236_v31 = vpop.f32.mrb[118].mxu1  ;;  %v2452_v36 = vadd.f32 %v6656_v19, %v2226_v34  ;;  %v2446_v25 = vpop.f32.mrb[105].mxu0 }
 0x23f   : > { %v2238_v10 = vpop.f32.mrb[119].mxu1  ;;  %v2447_v13 = vadd.f32 %v2446_v25, %v2221_v60  ;;  %v2602_v19 = vadd.f32 %v2601_v27, %v9466_v39 }
 0x240   : > { %v9474_v12 = vadd.f32 %v2452_v36, %v9369_v29 }
 0x241   : > { %v9477_v41 = vadd.f32 %v2447_v13, %v9372_v32  ;;  %v6659_v57 = vpop.f32.mrb[106].mxu0  ;;  %v2639_v32 = vmul.f32 %v9456_v47, %v9456_v47 }
 0x242   : > { %v2241_v51 = vpop.f32.mrb[120].mxu1  ;;  %v2462_v5 = vadd.f32 %v6659_v57, %v2236_v31  ;;  %v2456_v3 = vpop.f32.mrb[107].mxu0 }
 0x243   : > { %v2243_v55 = vpop.f32.mrb[121].mxu1  ;;  %v2457_v52 = vadd.f32 %v2456_v3, %v2231_v21  ;;  %v2640_v21 = vmul.f32 %v9466_v39, %v9466_v39  ;;  %v2670_v6 = vadd.f32 %v2669_v54, %v2639_v32 }
 0x244   : > { %v9481_v60 = vadd.f32 %v2462_v5, %v9375_v9  ;;  %v2603_v55 = vadd.f32 %v2602_v19, %v9463_v40  ;;  %v2642_v5 = vmul.f32 %v9477_v41, %v9477_v41 }
 0x245   : > { %v9484_v56 = vadd.f32 %v2457_v52, %v9378_v44  ;;  %v6662_v29 = vpop.f32.mrb[108].mxu0  ;;  %v2671_v25 = vadd.f32 %v2670_v6, %v2640_v21 }
 0x246   : > { %v2246_v34 = vpop.f32.mrb[122].mxu1  ;;  %v2466_v7 = vpop.f32.mrb[109].mxu0 }
 0x247   : > { %v2248_v62 = vpop.f32.mrb[123].mxu1  ;;  %v2472_v15 = vadd.f32 %v6662_v29, %v2246_v34  ;;  %v2467_v31 = vadd.f32 %v2466_v7, %v2241_v51 }
 0x249   : > { %v9492_v9 = vadd.f32 %v2472_v15, %v9381_v46  ;;  %v9495_v44 = vadd.f32 %v2467_v31, %v9384_v2  ;;  %v6665_v10 = vpop.f32.mrb[110].mxu0  ;;  %v2641_v46 = vmul.f32 %v9463_v40, %v9463_v40 }
 0x24a   : > { %v2251_v45 = vpop.f32.mrb[124].mxu1  ;;  %v2476_v23 = vpop.f32.mrb[111].mxu0 }
 0x24b   : > { %v2253_v11 = vpop.f32.mrb[125].mxu1  ;;  %v2477_v36 = vadd.f32 %v2476_v23, %v2251_v45  ;;  %v2672_v3 = vadd.f32 %v2671_v25, %v2641_v46  ;;  %v2643_v45 = vmul.f32 %v9474_v12, %v9474_v12 }
 0x24d   : > { %v9499_v63 = vadd.f32 %v2477_v36, %v9390_v28  ;;  %v6668_v20 = vpop.f32.mrb[112].mxu0  ;;  %v2604_v28 = vadd.f32 %v2603_v55, %v9477_v41  ;;  %v2673_v27 = vadd.f32 %v2672_v3, %v2642_v5 }
 0x24e   : > { %v2256_v53 = vpop.f32.mrb[126].mxu1  ;;  %v2486_v57 = vpop.f32.mrb[113].mxu0 }
 0x24f   : > { %v2482_v13 = vadd.f32 %v6665_v10, %v2256_v53  ;;  %v2258_v51 = vpop.f32.mrb[127].mxu1  ;;  %v2605_v31 = vadd.f32 %v2604_v28, %v9474_v12  ;;  %v2674_v10 = vadd.f32 %v2673_v27, %v2643_v45 }
 0x251   : > { %v9505_v2 = vadd.f32 %v2482_v13, %v9387_v49  ;;  %v6671_v54 = vpop.f32.mrb[114].mxu0  ;;  %v2606_v36 = vadd.f32 %v2605_v31, %v9484_v56 }
 0x252   : > { %v2261_v16 = vpop.f32.mrb[128].mxu1  ;;  %v2496_v29 = vpop.f32.mrb[115].mxu0 }
 0x253   : > { %v2487_v34 = vadd.f32 %v2486_v57, %v2261_v16  ;;  %v2263_v52 = vpop.f32.mrb[129].mxu1  ;;  %v2645_v57 = vmul.f32 %v9481_v60, %v9481_v60  ;;  %v2607_v16 = vadd.f32 %v2606_v36, %v9481_v60 }
 0x255   : > { %v9511_v62 = vadd.f32 %v2487_v34, %v9396_v38  ;;  %v6674_v7 = vpop.f32.mrb[116].mxu0  ;;  %v2644_v38 = vmul.f32 %v9484_v56, %v9484_v56 }
 0x256   : > { %v2266_v32 = vpop.f32.mrb[130].mxu1  ;;  %v2506_v6 = vpop.f32.mrb[117].mxu0 }
 0x257   : > { %v2492_v15 = vadd.f32 %v6668_v20, %v2266_v32  ;;  %v2268_v49 = vpop.f32.mrb[131].mxu1  ;;  %v2675_v20 = vadd.f32 %v2674_v10, %v2644_v38  ;;  %v2647_v38 = vmul.f32 %v9492_v9, %v9492_v9 }
 0x259   : > { %v9517_v21 = vadd.f32 %v2492_v15, %v9393_v1  ;;  %v6677_v53 = vpop.f32.mrb[118].mxu0  ;;  %v2676_v52 = vadd.f32 %v2675_v20, %v2645_v57 }
 0x25a   : > { %v2271_v11 = vpop.f32.mrb[132].mxu1  ;;  %v2516_v13 = vpop.f32.mrb[119].mxu0 }
 0x25b   : > { %v2497_v19 = vadd.f32 %v2496_v29, %v2271_v11  ;;  %v2273_v23 = vpop.f32.mrb[133].mxu1 }
 0x25d   : > { %v9523_v25 = vadd.f32 %v2497_v19, %v9402_v4  ;;  %v6680_v55 = vpop.f32.mrb[120].mxu0  ;;  %v2646_v4 = vmul.f32 %v9495_v44, %v9495_v44 }
 0x25e   : > { %v2276_v51 = vpop.f32.mrb[134].mxu1  ;;  %v2526_v3 = vpop.f32.mrb[121].mxu0 }
 0x25f   : > { %v2502_v46 = vadd.f32 %v6671_v54, %v2276_v51  ;;  %v2278_v1 = vpop.f32.mrb[135].mxu1  ;;  %v2608_v54 = vadd.f32 %v2607_v16, %v9495_v44  ;;  %v2677_v45 = vadd.f32 %v2676_v52, %v2646_v4  ;;  %v2649_v52 = vmul.f32 %v9505_v2, %v9505_v2 }
 0x261   : > { %v9529_v5 = vadd.f32 %v2502_v46, %v9399_v58  ;;  %v6683_v32 = vpop.f32.mrb[122].mxu0  ;;  %v2609_v10 = vadd.f32 %v2608_v54, %v9492_v9  ;;  %v2678_v36 = vadd.f32 %v2677_v45, %v2647_v38  ;;  %v2650_v54 = vmul.f32 %v9511_v62, %v9511_v62 }
 0x262   : > { %v2281_v34 = vpop.f32.mrb[136].mxu1  ;;  %v2536_v15 = vpop.f32.mrb[123].mxu0 }
 0x263   : > { %v2507_v28 = vadd.f32 %v2506_v6, %v2281_v34  ;;  %v2283_v29 = vpop.f32.mrb[137].mxu1  ;;  %v2610_v46 = vadd.f32 %v2609_v10, %v9499_v63 }
 0x265   : > { %v9535_v27 = vadd.f32 %v2507_v28, %v9408_v17  ;;  %v9537_v11 = vpop.f32.mrb[124].mxu0  ;;  %v2648_v17 = vmul.f32 %v9499_v63, %v9499_v63  ;;  %v2611_v28 = vadd.f32 %v2610_v46, %v9505_v2 }
 0x266   : > { %v2286_v49 = vpop.f32.mrb[138].mxu1  ;;  %v2546_v19 = vpop.f32.mrb[125].mxu0 }
 0x267   : > { %v2512_v31 = vadd.f32 %v6674_v7, %v2286_v49  ;;  %v2288_v58 = vpop.f32.mrb[139].mxu1 }
 0x269   : > { %v9543_v6 = vadd.f32 %v2512_v31, %v9405_v42  ;;  %v9547_v7 = vpop.f32.mrb[126].mxu0  ;;  %v2679_v42 = vadd.f32 %v2678_v36, %v2648_v17  ;;  %v2612_v31 = vadd.f32 %v2611_v28, %v9511_v62 }
 0x26a   : > { %v2291_v23 = vpop.f32.mrb[140].mxu1  ;;  %v9553_v57 = vpop.f32.mrb[127].mxu0 }
 0x26b   : > { %v2517_v51 = vadd.f32 %v2516_v13, %v2291_v23  ;;  %v2293_v20 = vpop.f32.mrb[141].mxu1  ;;  %v2652_v23 = vmul.f32 %v9523_v25, %v9523_v25 }
 0x26c   : > { %v2653_v20 = vmul.f32 %v9529_v5, %v9529_v5 }
 0x26d   : > { %v9551_v1 = vadd.f32 %v2517_v51, %v9414_v30  ;;  %v2680_v30 = vadd.f32 %v2679_v42, %v2649_v52 }
 0x26e   : > { %v2296_v16 = vpop.f32.mrb[142].mxu1 }
 0x26f   : > { %v2522_v34 = vadd.f32 %v6677_v53, %v2296_v16  ;;  %v2298_v4 = vpop.f32.mrb[143].mxu1  ;;  %v2651_v53 = vmul.f32 %v9517_v21, %v9517_v21  ;;  %v2681_v10 = vadd.f32 %v2680_v30, %v2650_v54 }
 0x271   : > { %v9559_v13 = vadd.f32 %v2522_v34, %v9411_v18  ;;  %v2613_v18 = vadd.f32 %v2612_v31, %v9517_v21  ;;  %v2682_v51 = vadd.f32 %v2681_v10, %v2651_v53  ;;  %v2654_v34 = vmul.f32 %v9535_v27, %v9535_v27 }
 0x272   : > { %v2301_v29 = vpop.f32.mrb[144].mxu1 }
 0x273   : > { %v2527_v49 = vadd.f32 %v2526_v3, %v2301_v29  ;;  %v2303_v45 = vpop.f32.mrb[145].mxu1  ;;  %v2614_v3 = vadd.f32 %v2613_v18, %v9523_v25  ;;  %v2683_v16 = vadd.f32 %v2682_v51, %v2652_v23  ;;  %v2655_v29 = vmul.f32 %v9543_v6, %v9543_v6 }
 0x274   : > { %v2656_v45 = vmul.f32 %v9551_v1, %v9551_v1  ;;  %v2657_v10 = vmul.f32 %v9559_v13, %v9559_v13 }
 0x275   : > { %v9567_v58 = vadd.f32 %v2527_v49, %v9420_v22  ;;  %v2615_v42 = vadd.f32 %v2614_v3, %v9529_v5 }
 0x276   : > { %v2306_v38 = vpop.f32.mrb[146].mxu1 }
 0x277   : > { %v2532_v17 = vadd.f32 %v6680_v55, %v2306_v38  ;;  %v2308_v36 = vpop.f32.mrb[147].mxu1  ;;  %v2684_v55 = vadd.f32 %v2683_v16, %v2653_v20  ;;  %v2616_v28 = vadd.f32 %v2615_v42, %v9535_v27 }
 0x278   : > { %v2658_v36 = vmul.f32 %v9567_v58, %v9567_v58 }
 0x279   : > { %v9576_v46 = vadd.f32 %v2532_v17, %v9417_v37  ;;  %v2685_v30 = vadd.f32 %v2684_v55, %v2654_v34  ;;  %v2617_v49 = vadd.f32 %v2616_v28, %v9543_v6 }
 0x27a   : > { %v2311_v22 = vpop.f32.mrb[148].mxu1 }
 0x27b   : > { %v2537_v4 = vadd.f32 %v2536_v15, %v2311_v22  ;;  %v2313_v52 = vpop.f32.mrb[149].mxu1  ;;  %v2686_v15 = vadd.f32 %v2685_v30, %v2655_v29  ;;  %v2618_v38 = vadd.f32 %v2617_v49, %v9551_v1  ;;  %v2659_v22 = vmul.f32 %v9576_v46, %v9576_v46 }
 0x27d   : > { %v9585_v54 = vadd.f32 %v2537_v4, %v9425_v8  ;;  %v2687_v23 = vadd.f32 %v2686_v15, %v2656_v45  ;;  %v2619_v17 = vadd.f32 %v2618_v38, %v9559_v13 }
 0x27e   : > { %v2316_v37 = vpop.f32.mrb[150].mxu1 }
 0x27f   : > { %v2542_v31 = vadd.f32 %v6683_v32, %v2316_v37  ;;  %v2318_v53 = vpop.f32.mrb[151].mxu1  ;;  %v2688_v32 = vadd.f32 %v2687_v23, %v2657_v10  ;;  %v2620_v20 = vadd.f32 %v2619_v17, %v9567_v58  ;;  %v2660_v4 = vmul.f32 %v9585_v54, %v9585_v54 }
 0x281   : > { %v9594_v18 = vadd.f32 %v2542_v31, %v9422_v0  ;;  %v2689_v42 = vadd.f32 %v2688_v32, %v2658_v36  ;;  %v2621_v34 = vadd.f32 %v2620_v20, %v9576_v46 }
 0x282   : > { %v2321_v8 = vpop.f32.mrb[152].mxu1 }
 0x283   : > { %v2547_v51 = vadd.f32 %v2546_v19, %v2321_v8  ;;  %v2323_v3 = vpop.f32.mrb[153].mxu1  ;;  %v2690_v55 = vadd.f32 %v2689_v42, %v2659_v22  ;;  %v2622_v28 = vadd.f32 %v2621_v34, %v9585_v54  ;;  %v2661_v29 = vmul.f32 %v9594_v18, %v9594_v18 }
 0x285   : > { %v9603_v16 = vadd.f32 %v2547_v51, %v9429_v26  ;;  %v2691_v30 = vadd.f32 %v2690_v55, %v2660_v4  ;;  %v2623_v49 = vadd.f32 %v2622_v28, %v9594_v18 }
 0x286   : > { %v2326_v0 = vpop.f32.mrb[154].mxu1 }
 0x287   : > { %v2552_v52 = vadd.f32 %v9537_v11, %v2326_v0  ;;  %v2328_v19 = vpop.f32.mrb[155].mxu1  ;;  %v2662_v45 = vmul.f32 %v9603_v16, %v9603_v16  ;;  %v2692_v53 = vadd.f32 %v2691_v30, %v2661_v29  ;;  %v2624_v15 = vadd.f32 %v2623_v49, %v9603_v16 }
 0x289   : > { %v9613_v37 = vadd.f32 %v2552_v52, %v9427_v61  ;;  %v2693_v8 = vadd.f32 %v2692_v53, %v2662_v45  ;;  %v3444_v53 = vld [vmem:[#allocation7 + $0x190] sm:$0xff] }
 0x28a   : > { %v2331_v26 = vpop.f32.mrb[156].mxu1 }
 0x28b   : > { %v2557_v31 = vadd.f32 %v9553_v57, %v2331_v26  ;;  %v2333_v11 = vpop.f32.mrb[157].mxu1  ;;  %v2663_v38 = vmul.f32 %v9613_v37, %v9613_v37  ;;  %v2625_v23 = vadd.f32 %v2624_v15, %v9613_v37 }
 0x28c   : > { %v3443_v11 = vld [vmem:[#allocation7 + $0x188] sm:$0xff] }
 0x28d   : > { %v9623_v10 = vadd.f32 %v2557_v31, %v9433_v35  ;;  %v2694_v51 = vadd.f32 %v2693_v8, %v2663_v38  ;;  %v3442_v31 = vld [vmem:[#allocation7 + $0x180] sm:$0xff]  ;;  %v3445_v38 = vld [vmem:[#allocation7 + $0x198] sm:$0xff]  ;;  %v12430_v8 = vmov 0.0|0.0  }
 0x28e   : > { %v2336_v61 = vpop.f32.mrb[158].mxu1  ;;  %v7251_v15 = vpack.c.bf16 %v3443_v11, %v3442_v31  ;;  %v3458_v31 = vld [vmem:[#allocation7 + $0x200] sm:$0xff]  ;;  %v3459_v11 = vld [vmem:[#allocation7 + $0x208] sm:$0xff] }
 0x28f   : > { %v2664_v17 = vmul.f32 %v9623_v10, %v9623_v10  ;;  %v2562_v36 = vadd.f32 %v9547_v7, %v2336_v61  ;;  %v2338_v57 = vpop.f32.mrb[159].mxu1  ;;  %v2626_v3 = vadd.f32 %v2625_v23, %v9623_v10  ;;  %v7254_v61 = vpack.c.bf16 %v3445_v38, %v3444_v53  ;;  %v3446_v23 = vld [vmem:[#allocation7 + $0x1a0] sm:$0xff]  ;;  %v3461_v38 = vld [vmem:[#allocation7 + $0x218] sm:$0xff] }
 0x290   : > { %7252 = vmatpush1.bf16.msra.mxu0 %v7251_v15  ;;  %v3475_v57 = vld [vmem:[#allocation7 + $0x288] sm:$0xff]  ;;  %v7275_v53 = vpack.c.bf16 %v3459_v11, %v3458_v31  ;;  %v3460_v15 = vld [vmem:[#allocation7 + $0x210] sm:$0xff]  ;;  %v3481_v31 = vld [vmem:[#allocation7 + $0x2b8] sm:$0xff] }
 0x291   : > { %v9631_v32 = vadd.f32 %v2562_v36, %v9431_v50  ;;  %v2695_v20 = vadd.f32 %v2694_v51, %v2664_v17  ;;  %7253 = vmatprep.subr.bf16.mxu0 %v12430_v8  ;;  %v3447_v17 = vld [vmem:[#allocation7 + $0x1a8] sm:$0xff]  ;;  %v3474_v36 = vld [vmem:[#allocation7 + $0x280] sm:$0xff] }
 0x292   : > { %v7257_v51 = vpack.c.bf16 %v3447_v17, %v3446_v23 }
 0x293   : > { %v2627_v35 = vadd.f32 %v2626_v3, %v9631_v32  ;;  %v2665_v22 = vmul.f32 %v9631_v32, %v9631_v32  ;;  %v7298_v3 = vpack.c.bf16 %v3475_v57, %v3474_v36 }
 0x294   : > { %7255 = vmatpush1.bf16.msra.mxu0 %v7254_v61  ;;  %v7278_v61 = vpack.c.bf16 %v3461_v38, %v3460_v15  ;;  %v3467_v15 = vld [vmem:[#allocation7 + $0x248] sm:$0xff]  ;;  %v3482_v38 = vld [vmem:[#allocation7 + $0x2c0] sm:$0xff] }
 0x295   : > { %v2628_v0 = vrot.slane %v2627_v35, 4  ;;  %v2696_v42 = vadd.f32 %v2695_v20, %v2665_v22  ;;  %v3476_v20 = vld [vmem:[#allocation7 + $0x290] sm:$0xff]  ;;  %7256 = vmatprep.subr.bf16.mxu0 %v12430_v8  ;;  %7299 = vmatprep.subr.bf16.mxu1 %v7298_v3 }
 0x296   : > { %v3448_v22 = vld [vmem:[#allocation7 + $0x1b0] sm:$0xff]  ;;  %7301 = vmatpush3.bf16.msra.mxu1 %v7298_v3 }
 0x297   : > { %v2629_v34 = vadd.f32 %v2628_v0, %v2627_v35  ;;  %v2697_v4 = vrot.slane %v2696_v42, 4  ;;  %v3477_v35 = vld [vmem:[#allocation7 + $0x298] sm:$0xff] }
 0x298   : > { %v3449_v0 = vld [vmem:[#allocation7 + $0x1b8] sm:$0xff]  ;;  %7258 = vmatpush1.bf16.msra.mxu0 %v7257_v51 }
 0x299   : > { %v2630_v52 = vrot.slane %v2629_v34, 2  ;;  %v2698_v19 = vadd.f32 %v2697_v4, %v2696_v42  ;;  %v7302_v42 = vpack.c.bf16 %v3477_v35, %v3476_v20  ;;  %7259 = vmatprep.subr.bf16.mxu0 %v12430_v8  ;;  %v3450_v4 = vld [vmem:[#allocation7 + $0x1c0] sm:$0xff] }
 0x29b   : > { %v2631_v7 = vadd.f32 %v2630_v52, %v2629_v34  ;;  %v2699_v55 = vrot.slane %v2698_v19, 2  ;;  %v7260_v34 = vpack.c.bf16 %v3449_v0, %v3448_v22  ;;  %7303 = vmatprep.subr.bf16.mxu1 %v7302_v42  ;;  %v3451_v52 = vld [vmem:[#allocation7 + $0x1c8] sm:$0xff] }
 0x29c   : > { %7305 = vmatpush3.bf16.msra.mxu1 %v7302_v42 }
 0x29d   : > { %v2632_v28 = vrot.slane %v2631_v7, 1  ;;  %v2700_v29 = vadd.f32 %v2699_v55, %v2698_v19  ;;  %7261 = vmatpush1.bf16.msra.mxu0 %v7260_v34  ;;  %v7263_v19 = vpack.c.bf16 %v3451_v52, %v3450_v4  ;;  %v3453_v55 = vld [vmem:[#allocation7 + $0x1d8] sm:$0xff] }
 0x29e   : > { %7262 = vmatprep.subr.bf16.mxu0 %v12430_v8 }
 0x29f   : > { %v2633_v26 = vadd.f32 %v2632_v28, %v2631_v7  ;;  %v2701_v50 = vrot.slane %v2700_v29, 1  ;;  %v3452_v7 = vld [vmem:[#allocation7 + $0x1d0] sm:$0xff] }
 0x2a0   : > { %v7266_v28 = vpack.c.bf16 %v3453_v55, %v3452_v7  ;;  %v3463_v7 = vld [vmem:[#allocation7 + $0x228] sm:$0xff]  ;;  %v3478_v55 = vld [vmem:[#allocation7 + $0x2a0] sm:$0xff] }
 0x2a1   : > { %v2704_v30 = vsel %vm2703_vm4, %v2633_v26, 0.0  ;;  %v2702_v49 = vadd.f32 %v2701_v50, %v2700_v29  ;;  %7264 = vmatpush1.bf16.msra.mxu0 %v7263_v19  ;;  %v3454_v29 = vld [vmem:[#allocation7 + $0x1e0] sm:$0xff]  ;;  %v3455_v26 = vld [vmem:[#allocation7 + $0x1e8] sm:$0xff] }
 0x2a2   : > { %2705 = vadd.xlane.f32.xlu0 %v2704_v30  ;;  %7265 = vmatprep.subr.bf16.mxu0 %v12430_v8  ;;  %v7269_v50 = vpack.c.bf16 %v3455_v26, %v3454_v29  ;;  %v3456_v30 = vld [vmem:[#allocation7 + $0x1f0] sm:$0xff]  ;;  %v3462_v19 = vld [vmem:[#allocation7 + $0x220] sm:$0xff]  ;;  %v3479_v29 = vld [vmem:[#allocation7 + $0x2a8] sm:$0xff] }
 0x2a3   : > { %v2715_v45 = vsel %vm2703_vm4, %v2702_v49, 0.0  ;;  %v3457_v49 = vld [vmem:[#allocation7 + $0x1f8] sm:$0xff]  ;;  %v7306_v26 = vpack.c.bf16 %v3479_v29, %v3478_v55  ;;  %v3488_v55 = vld [vmem:[#allocation7 + $0x2f0] sm:$0xff] }
 0x2a4   : > { %v3489_v29 = vld [vmem:[#allocation7 + $0x2f8] sm:$0xff] }
 0x2a5   : > { %7267 = vmatpush1.bf16.msra.mxu0 %v7266_v28  ;;  %v7281_v28 = vpack.c.bf16 %v3463_v7, %v3462_v19  ;;  %7307 = vmatprep.subr.bf16.mxu1 %v7306_v26  ;;  %v3472_v19 = vld [vmem:[#allocation7 + $0x270] sm:$0xff]  ;;  %v3473_v7 = vld [vmem:[#allocation7 + $0x278] sm:$0xff] }
 0x2a6   : > { %2716 = vadd.xlane.f32.xlu0 %v2715_v45  ;;  %7268 = vmatprep.subr.bf16.mxu0 %v12430_v8  ;;  %v7272_v45 = vpack.c.bf16 %v3457_v49, %v3456_v30  ;;  %v3465_v30 = vld [vmem:[#allocation7 + $0x238] sm:$0xff]  ;;  %v3480_v49 = vld [vmem:[#allocation7 + $0x2b0] sm:$0xff] }
 0x2a7   : > { %7309 = vmatpush3.bf16.msra.mxu1 %v7306_v26  ;;  %v7310_v11 = vpack.c.bf16 %v3481_v31, %v3480_v49  ;;  %v7326_v26 = vpack.c.bf16 %v3489_v29, %v3488_v55 }
 0x2a9   : > { %7270 = vmatpush1.bf16.msra.mxu0 %v7269_v50  ;;  %v3464_v50 = vld [vmem:[#allocation7 + $0x230] sm:$0xff]  ;;  %7311 = vmatprep.subr.bf16.mxu1 %v7310_v11 }
 0x2aa   : > { %7271 = vmatprep.subr.bf16.mxu0 %v12430_v8 }
 0x2ab   : > { %7313 = vmatpush3.bf16.msra.mxu1 %v7310_v11  ;;  %v2806_v11 = vsub.s32 1, %v8017_v43 }
 0x2ad   : > { %7273 = vmatpush1.bf16.msra.mxu0 %v7272_v45  ;;  %v7284_v45 = vpack.c.bf16 %v3465_v30, %v3464_v50  ;;  %v3202_v50 = vld [vmem:[#allocation7 + $0x100] sm:$0xff]  ;;  %v3203_v30 = vld [vmem:[#allocation7 + $0x108] sm:$0xff] }
 0x2ae   : > { %7274 = vmatprep.subr.bf16.mxu0 %v12430_v8  ;;  %v9653_v49 = vpack.c.bf16 %v3203_v30, %v3202_v50 }
 0x2b1   : > { %7276 = vmatpush1.bf16.msra.mxu0 %v7275_v53  ;;  %v3466_v53 = vld [vmem:[#allocation7 + $0x240] sm:$0xff] }
 0x2b2   : > { %7277 = vmatprep.subr.bf16.mxu0 %v12430_v8 }
 0x2b5   : > { %7279 = vmatpush1.bf16.msra.mxu0 %v7278_v61  ;;  %v7287_v61 = vpack.c.bf16 %v3467_v15, %v3466_v53  ;;  %v9659_v53 = vld [vmem:[#allocation3 + $0x20] sm:$0xff] }
 0x2b6   : > { %7280 = vmatprep.subr.bf16.mxu0 %v12430_v8 }
 0x2b9   : > { %7282 = vmatpush1.bf16.msra.mxu0 %v7281_v28  ;;  %v7296_v28 = vpack.c.bf16 %v3473_v7, %v3472_v19 }
 0x2ba   : > { %7283 = vmatprep.subr.bf16.mxu0 %v12430_v8 }
 0x2bd   : > { %7285 = vmatpush1.bf16.msra.mxu0 %v7284_v45 }
 0x2be   : > { %7286 = vmatprep.subr.bf16.mxu0 %v12430_v8 }
 0x2c1   : > { %7288 = vmatpush1.bf16.msra.mxu0 %v7287_v61  ;;  %v253_v61 = vld [vmem:[%s12236_s4] sm:$0xff] }
 0x2c2   : > { %7289 = vmatprep.subr.bf16.mxu0 %v12430_v8 }
 0x32f   : > { %v2706_v23 = vpop.xlane.xlu0 %2705 }
 0x330   : > { %v2707_v17 = vrot.slane %v2706_v23, 4 }
 0x332   : > { %v2708_v36 = vadd.f32 %v2707_v17, %v2706_v23  ;;  %v3483_v23 = vld [vmem:[#allocation7 + $0x2c8] sm:$0xff] }
 0x333   : > { %v2717_v57 = vpop.xlane.xlu0 %2716  ;;  %v7314_v17 = vpack.c.bf16 %v3483_v23, %v3482_v38  ;;  %v9663_v38 = vld [vmem:[#allocation3 + $0x38] sm:$0xff]  ;;  %v2770_v23 = vsub.s32 0, %v8017_v43 }
 0x334   : > { %v2709_v51 = vrot.slane %v2708_v36, 2  ;;  %v2718_v3 = vrot.slane %v2717_v57, 4 }
 0x335   : > { %7315 = vmatprep.subr.bf16.mxu1 %v7314_v17 }
 0x336   : > { %v2719_v20 = vadd.f32 %v2718_v3, %v2717_v57  ;;  %v2710_v35 = vadd.f32 %v2709_v51, %v2708_v36  ;;  %v3468_v36 = vld [vmem:[#allocation7 + $0x250] sm:$0xff]  ;;  %v3469_v57 = vld [vmem:[#allocation7 + $0x258] sm:$0xff]  ;;  %7317 = vmatpush3.bf16.msra.mxu1 %v7314_v17  ;;  %v9669_v17 = vrot.slane %v253_v61, %v2806_v11 }
 0x337   : > { %v3484_v51 = vld [vmem:[#allocation7 + $0x2d0] sm:$0xff]  ;;  %v7290_v3 = vpack.c.bf16 %v3469_v57, %v3468_v36  ;;  %v3282_v36 = vrot.slane %v9659_v53, 7 }
 0x338   : > { %v2720_v22 = vrot.slane %v2719_v20, 2  ;;  %v2711_v0 = vrot.slane %v2710_v35, 1 }
 0x339   : > { %7291 = vmatpush1.bf16.msra.mxu0 %v7290_v3 }
 0x33a   : > { %v2712_v42 = vadd.f32 %v2711_v0, %v2710_v35  ;;  %v2721_v34 = vadd.f32 %v2720_v22, %v2719_v20  ;;  %v3485_v20 = vld [vmem:[#allocation7 + $0x2d8] sm:$0xff]  ;;  %7292 = vmatprep.subr.bf16.mxu0 %v12430_v8  ;;  %v3470_v22 = vld [vmem:[#allocation7 + $0x260] sm:$0xff]  ;;  %v3471_v0 = vld [vmem:[#allocation7 + $0x268] sm:$0xff] }
 0x33b   : > { %v7318_v35 = vpack.c.bf16 %v3485_v20, %v3484_v51  ;;  %v3394_v20 = vrot.slane %v9663_v38, 1 }
 0x33c   : > { %7538 = vpush %v2712_v42  ;;  %v2722_v4 = vrot.slane %v2721_v34, 1  ;;  %v3486_v42 = vld [vmem:[#allocation7 + $0x2e0] sm:$0xff] }
 0x33d   : > { %7319 = vmatprep.subr.bf16.mxu1 %v7318_v35 }
 0x33e   : > { %v2723_v52 = vadd.f32 %v2722_v4, %v2721_v34  ;;  %7321 = vmatpush3.bf16.msra.mxu1 %v7318_v35  ;;  %v7293_v34 = vpack.c.bf16 %v3471_v0, %v3470_v22  ;;  %v3487_v4 = vld [vmem:[#allocation7 + $0x2e8] sm:$0xff] }
 0x340   : > { %7540 = vpush %v2723_v52  ;;  %v7322_v52 = vpack.c.bf16 %v3487_v4, %v3486_v42  ;;  %7294 = vmatpush1.bf16.msra.mxu0 %v7293_v34 }
 0x341   : > { %7295 = vmatprep.subr.bf16.mxu0 %v12430_v8 }
 0x342   : > { %7323 = vmatprep.subr.bf16.mxu1 %v7322_v52 }
 0x343   : > { %7325 = vmatpush3.bf16.msra.mxu1 %v7322_v52 }
 0x344   : > { %7297 = vmatpush1.bf16.msra.mxu0 %v7296_v28  ;;  %7327 = vmatprep.subr.bf16.mxu1 %v7326_v26 }
 0x345   : > { %7379 = vmatprep.subr.bf16.mxu0 %v9653_v49 }
 0x347   : > { %7329 = vmatpush3.bf16.msra.mxu1 %v7326_v26 }
 0x348   : > { %7330 = vmatprep.subr.bf16.mxu1 %v12430_v8 }
 0x36d   : > { %s7539_s9 = spop %7538 }
 0x36e   : > { %s2714_s11 = smul.f32 0.00048828125, %s7539_s9 }
 0x370   : > { %s2726_s12 = smul.f32 %s2714_s11, %s2714_s11  ;;  %v9661_v15 = vstv %s2714_s11 }
 0x371   : > { %s7541_s13 = spop %7540  ;;  %v2730_v57 = vsub.f32 %v9439_v48, %v9661_v15  ;;  %v2731_v51 = vsub.f32 %v9436_v14, %v9661_v15  ;;  %v2732_v3 = vsub.f32 %v9445_v59, %v9661_v15  ;;  %v2733_v35 = vsub.f32 %v9442_v33, %v9661_v15 }
 0x372   : > { %s2725_s14 = smul.f32 0.00048828125, %s7541_s13  ;;  %v2734_v22 = vsub.f32 %v9459_v24, %v9661_v15  ;;  %v2735_v0 = vsub.f32 %v9456_v47, %v9661_v15  ;;  %v2736_v48 = vsub.f32 %v9466_v39, %v9661_v15  ;;  %v2737_v14 = vsub.f32 %v9463_v40, %v9661_v15 }
 0x373   : > { %v2738_v59 = vsub.f32 %v9477_v41, %v9661_v15  ;;  %v2739_v42 = vsub.f32 %v9474_v12, %v9661_v15  ;;  %v2740_v33 = vsub.f32 %v9484_v56, %v9661_v15  ;;  %v2741_v24 = vsub.f32 %v9481_v60, %v9661_v15 }
 0x374   : > { %s2727_s15 = ssub.f32 %s2725_s14, %s2726_s12  ;;  %v2742_v47 = vsub.f32 %v9495_v44, %v9661_v15  ;;  %v2743_v39 = vsub.f32 %v9492_v9, %v9661_v15  ;;  %v2744_v40 = vsub.f32 %v9499_v63, %v9661_v15  ;;  %v2745_v41 = vsub.f32 %v9505_v2, %v9661_v15 }
 0x375   : > { %v2746_v12 = vsub.f32 %v9511_v62, %v9661_v15  ;;  %v2747_v56 = vsub.f32 %v9517_v21, %v9661_v15  ;;  %v2748_v44 = vsub.f32 %v9523_v25, %v9661_v15  ;;  %v2749_v9 = vsub.f32 %v9529_v5, %v9661_v15 }
 0x376   : > { %s2728_s17 = smax.f32 %s7768_s16, %s2727_s15  ;;  %v2750_v63 = vsub.f32 %v9535_v27, %v9661_v15  ;;  %v2751_v2 = vsub.f32 %v9543_v6, %v9661_v15  ;;  %v2752_v62 = vsub.f32 %v9551_v1, %v9661_v15  ;;  %v2753_v21 = vsub.f32 %v9559_v13, %v9661_v15 }
 0x377   : > { %s2762_s7 = sadd.f32 1e-05, %s2728_s17  ;;  %v2754_v4 = vsub.f32 %v9567_v58, %v9661_v15  ;;  %v2755_v25 = vsub.f32 %v9576_v46, %v9661_v15  ;;  %v2756_v5 = vsub.f32 %v9585_v54, %v9661_v15  ;;  %v2757_v27 = vsub.f32 %v9594_v18, %v9661_v15 }
 0x378   : > { %v2758_v6 = vsub.f32 %v9603_v16, %v9661_v15  ;;  %v2759_v1 = vsub.f32 %v9613_v37, %v9661_v15  ;;  %v2760_v13 = vsub.f32 %v9623_v10, %v9661_v15  ;;  %v2761_v58 = vsub.f32 %v9631_v32, %v9661_v15 }
 0x379   : > { %v2763_v45 = vstv %s2762_s7 }
 0x37a   : > { %7623 = vrsqrt.f32 %v2763_v45 }
 0x384   : > { %v7624_v31 = vpop.eup %7623 }
 0x385   : > { %7542 = vpush %v7624_v31 }
 0x3b6   : > { %s7543_s30 = spop %7542 }
 0x3b7   : > { %v2766_v60 = vstv %s7543_s30 }
 0x3b8   : > { %v2767_v34 = vmul.f32 %v2766_v60, %v253_v61 }
 0x3ba   : > { %v2771_v52 = vrot.slane %v2767_v34, %v2770_v23 }
 0x3bc   : > { %v2772_v46 = vmul.f32 %v2771_v52, %v2730_v57  ;;  %v2773_v19 = vmul.f32 %v2771_v52, %v2731_v51  ;;  %v2774_v7 = vmul.f32 %v2771_v52, %v2732_v3  ;;  %v2775_v54 = vmul.f32 %v2771_v52, %v2733_v35 }
 0x3bd   : > { %v2776_v55 = vmul.f32 %v2771_v52, %v2734_v22  ;;  %v2777_v28 = vmul.f32 %v2771_v52, %v2735_v0  ;;  %v2778_v18 = vmul.f32 %v2771_v52, %v2736_v48  ;;  %v2779_v29 = vmul.f32 %v2771_v52, %v2737_v14 }
 0x3be   : > { %v2780_v26 = vmul.f32 %v2771_v52, %v2738_v59  ;;  %v2781_v50 = vmul.f32 %v2771_v52, %v2739_v42  ;;  %v2782_v16 = vmul.f32 %v2771_v52, %v2740_v33  ;;  %v2783_v30 = vmul.f32 %v2771_v52, %v2741_v24 }
 0x3bf   : > { %v2784_v45 = vmul.f32 %v2771_v52, %v2742_v47  ;;  %v2785_v37 = vmul.f32 %v2771_v52, %v2743_v39  ;;  %v2786_v31 = vmul.f32 %v2771_v52, %v2744_v40  ;;  %v2787_v11 = vmul.f32 %v2771_v52, %v2745_v41 }
 0x3c0   : > { %v2788_v10 = vmul.f32 %v2771_v52, %v2746_v12  ;;  %v2789_v61 = vmul.f32 %v2771_v52, %v2747_v56  ;;  %v2790_v23 = vmul.f32 %v2771_v52, %v2748_v44  ;;  %v2791_v32 = vmul.f32 %v2771_v52, %v2749_v9 }
 0x3c1   : > { %v2792_v15 = vmul.f32 %v2771_v52, %v2750_v63  ;;  %v2793_v57 = vmul.f32 %v2771_v52, %v2751_v2  ;;  %v2794_v51 = vmul.f32 %v2771_v52, %v2752_v62  ;;  %v2795_v3 = vmul.f32 %v2771_v52, %v2753_v21 }
 0x3c2   : > { %v2796_v35 = vmul.f32 %v2771_v52, %v2754_v4  ;;  %v2797_v22 = vmul.f32 %v2771_v52, %v2755_v25  ;;  %v2798_v0 = vmul.f32 %v2771_v52, %v2756_v5  ;;  %v2799_v48 = vmul.f32 %v2771_v52, %v2757_v27 }
 0x3c3   : > { %v2800_v14 = vmul.f32 %v2771_v52, %v2758_v6  ;;  %v2801_v59 = vmul.f32 %v2771_v52, %v2759_v1  ;;  %v2802_v42 = vmul.f32 %v2771_v52, %v2760_v13  ;;  %v2803_v33 = vmul.f32 %v2771_v52, %v2761_v58 }
 0x3c4   : > { %v2808_v24 = vadd.f32 %v9669_v17, %v2772_v46  ;;  %v2809_v47 = vadd.f32 %v9669_v17, %v2773_v19  ;;  %v2810_v39 = vadd.f32 %v9669_v17, %v2774_v7  ;;  %v2811_v40 = vadd.f32 %v9669_v17, %v2775_v54 }
 0x3c5   : > { %v2812_v41 = vadd.f32 %v9669_v17, %v2776_v55  ;;  %v2813_v12 = vadd.f32 %v9669_v17, %v2777_v28  ;;  %v2814_v56 = vadd.f32 %v9669_v17, %v2778_v18  ;;  %v2815_v60 = vadd.f32 %v9669_v17, %v2779_v29 }
 0x3c6   : > { %v2816_v44 = vadd.f32 %v9669_v17, %v2780_v26  ;;  %v2817_v9 = vadd.f32 %v9669_v17, %v2781_v50  ;;  %v2818_v63 = vadd.f32 %v9669_v17, %v2782_v16  ;;  %v2819_v34 = vadd.f32 %v9669_v17, %v2783_v30 }
 0x3c7   : > { %v2820_v2 = vadd.f32 %v9669_v17, %v2784_v45  ;;  %v2821_v62 = vadd.f32 %v9669_v17, %v2785_v37  ;;  %v2822_v21 = vadd.f32 %v9669_v17, %v2786_v31  ;;  %v2823_v4 = vadd.f32 %v9669_v17, %v2787_v11 }
 0x3c8   : > { %v2824_v25 = vadd.f32 %v9669_v17, %v2788_v10  ;;  %v2825_v5 = vadd.f32 %v9669_v17, %v2789_v61  ;;  %v2826_v27 = vadd.f32 %v9669_v17, %v2790_v23  ;;  %v2827_v52 = vadd.f32 %v9669_v17, %v2791_v32 }
 0x3c9   : > { %v2828_v6 = vadd.f32 %v9669_v17, %v2792_v15  ;;  %v2829_v1 = vadd.f32 %v9669_v17, %v2793_v57  ;;  %v2830_v13 = vadd.f32 %v9669_v17, %v2794_v51  ;;  %v2831_v58 = vadd.f32 %v9669_v17, %v2795_v3 }
 0x3ca   : > { %v2832_v46 = vadd.f32 %v9669_v17, %v2796_v35  ;;  %v2833_v19 = vadd.f32 %v9669_v17, %v2797_v22  ;;  %v2834_v7 = vadd.f32 %v9669_v17, %v2798_v0  ;;  %v2835_v54 = vadd.f32 %v9669_v17, %v2799_v48 }
 0x3cb   : > { %v2836_v55 = vadd.f32 %v9669_v17, %v2800_v14  ;;  %v2837_v28 = vadd.f32 %v9669_v17, %v2801_v59  ;;  %v2838_v18 = vadd.f32 %v9669_v17, %v2802_v42  ;;  %v2839_v29 = vadd.f32 %v9669_v17, %v2803_v33  ;;  %v3170_v33 = vld [vmem:[#allocation7] sm:$0xff] }
 0x3cc   : > { %v9769_v26 = vmax.f32 %v2808_v24, 0.0  ;;  %v9771_v50 = vmax.f32 %v2809_v47, 0.0  ;;  %v9773_v16 = vmax.f32 %v2810_v39, 0.0  ;;  %v9775_v30 = vmax.f32 %v2811_v40, 0.0  ;;  %v3171_v24 = vld [vmem:[#allocation7 + $0x8] sm:$0xff] }
 0x3cd   : > { %v9777_v45 = vmax.f32 %v2812_v41, 0.0  ;;  %v9779_v37 = vmax.f32 %v2813_v12, 0.0  ;;  %v9781_v31 = vmax.f32 %v2814_v56, 0.0  ;;  %v9783_v11 = vmax.f32 %v2815_v60, 0.0  ;;  %v3204_v12 = vld [vmem:[#allocation7 + $0x110] sm:$0xff]  ;;  %v3205_v56 = vld [vmem:[#allocation7 + $0x118] sm:$0xff] }
 0x3ce   : > { %v9785_v10 = vmax.f32 %v2816_v44, 0.0  ;;  %v9787_v61 = vmax.f32 %v2817_v9, 0.0  ;;  %v9789_v17 = vmax.f32 %v2818_v63, 0.0  ;;  %v9791_v23 = vmax.f32 %v2819_v34, 0.0  ;;  %2916 = vst [vmem:[#allocation3 + $0x48] sm:$0xff] %v9773_v16  ;;  %2917 = vst [vmem:[#allocation3 + $0x50] sm:$0xff] %v9775_v30  ;;  %3554 = vmatprep.mubr.f32.mxu0 %v9769_v26 }
 0x3cf   : > { %v9796_v32 = vmax.f32 %v2820_v2, 0.0  ;;  %v9798_v15 = vmax.f32 %v2821_v62, 0.0  ;;  %v9800_v57 = vmax.f32 %v2822_v21, 0.0  ;;  %v9802_v51 = vmax.f32 %v2823_v4, 0.0  ;;  %2918 = vst [vmem:[#allocation3 + $0x68] sm:$0xff] %v9777_v45  ;;  %2919 = vst [vmem:[#allocation3 + $0x70] sm:$0xff] %v9779_v37 }
 0x3d0   : > { %2920 = vst [vmem:[#allocation3 + $0x88] sm:$0xff] %v9781_v31  ;;  %2921 = vst [vmem:[#allocation3 + $0x90] sm:$0xff] %v9783_v11  ;;  %v9808_v3 = vmax.f32 %v2824_v25, 0.0  ;;  %v9810_v35 = vmax.f32 %v2825_v5, 0.0  ;;  %v9812_v22 = vmax.f32 %v2826_v27, 0.0  ;;  %v9814_v0 = vmax.f32 %v2827_v52, 0.0 }
 0x3d1   : > { %2922 = vst [vmem:[#allocation3 + $0xa8] sm:$0xff] %v9785_v10  ;;  %2923 = vst [vmem:[#allocation3 + $0xb0] sm:$0xff] %v9787_v61  ;;  %v9820_v48 = vmax.f32 %v2828_v6, 0.0  ;;  %v9822_v14 = vmax.f32 %v2829_v1, 0.0  ;;  %v9824_v59 = vmax.f32 %v2830_v13, 0.0  ;;  %v9826_v42 = vmax.f32 %v2831_v58, 0.0 }
 0x3d2   : > { %2924 = vst [vmem:[#allocation3 + $0xc8] sm:$0xff] %v9789_v17  ;;  %2925 = vst [vmem:[#allocation3 + $0xd0] sm:$0xff] %v9791_v23  ;;  %v9832_v47 = vmax.f32 %v2832_v46, 0.0  ;;  %v9834_v39 = vmax.f32 %v2833_v19, 0.0  ;;  %v9836_v40 = vmax.f32 %v2834_v7, 0.0  ;;  %v9838_v41 = vmax.f32 %v2835_v54, 0.0 }
 0x3d3   : > { %2926 = vst [vmem:[#allocation3 + $0xe8] sm:$0xff] %v9796_v32  ;;  %2927 = vst [vmem:[#allocation3 + $0xf0] sm:$0xff] %v9798_v15  ;;  %v9844_v60 = vmax.f32 %v2836_v55, 0.0  ;;  %v9846_v44 = vmax.f32 %v2837_v28, 0.0  ;;  %v9848_v9 = vmax.f32 %v2838_v18, 0.0  ;;  %v9850_v63 = vmax.f32 %v2839_v29, 0.0 }
 0x3d4   : > { %2928 = vst [vmem:[#allocation3 + $0x108] sm:$0xff] %v9800_v57  ;;  %2929 = vst [vmem:[#allocation3 + $0x110] sm:$0xff] %v9802_v51  ;;  %v3298_v34 = vrot.slane %v9769_v26, 7  ;;  %v3362_v2 = vrot.slane %v9769_v26, 1  ;;  %v9863_v62 = vrot.slane %v9771_v50, 1  ;;  %v3363_v21 = vrot.slane %v9773_v16, 1 }
 0x3d5   : > { %2930 = vst [vmem:[#allocation3 + $0x128] sm:$0xff] %v9808_v3  ;;  %2931 = vst [vmem:[#allocation3 + $0x130] sm:$0xff] %v9810_v35  ;;  %v3225_v4 = vld [vmem:[#allocation3 + $0x58] sm:$0xff]  ;;  %v9871_v25 = vrot.slane %v9775_v30, 1  ;;  %v7331_v5 = vpack.c.bf16 %v3171_v24, %v3170_v33  ;;  %v7382_v27 = vpack.c.bf16 %v3205_v56, %v3204_v12  ;;  %v3314_v13 = vrot.slane %v9771_v50, 7  ;;  %v3172_v58 = vld [vmem:[#allocation7 + $0x10] sm:$0xff] }
 0x3d6   : > { %2932 = vst [vmem:[#allocation3 + $0x148] sm:$0xff] %v9812_v22  ;;  %2933 = vst [vmem:[#allocation3 + $0x150] sm:$0xff] %v9814_v0  ;;  %v9877_v52 = vsel %vm508_vm3, %v3282_v36, %v3298_v34  ;;  %v9882_v6 = vsel %vm589_vm2, %v3362_v2, %v9863_v62  ;;  %v3410_v1 = vsel %vm589_vm2, %v9863_v62, %v3394_v20  ;;  %v3222_v46 = vld [vmem:[#allocation3 + $0x40] sm:$0xff]  ;;  %v3395_v53 = vrot.slane %v3225_v4, 1  ;;  %v3173_v36 = vld [vmem:[#allocation7 + $0x18] sm:$0xff] }
 0x3d7   : > { %2934 = vst [vmem:[#allocation3 + $0x168] sm:$0xff] %v9820_v48  ;;  %2935 = vst [vmem:[#allocation3 + $0x170] sm:$0xff] %v9822_v14  ;;  %3555 = vmatmul.mubr.f32.vlgmr.msra.gmra.mrb[128].mxu0 %v9877_v52  ;;  %6722 = vmatprep.mubr.f32.mxu1 %v9882_v6  ;;  %v3206_v19 = vld [vmem:[#allocation7 + $0x120] sm:$0xff]  ;;  %v3207_v7 = vld [vmem:[#allocation7 + $0x128] sm:$0xff]  ;;  %v9896_v38 = vsel %vm589_vm2, %v3363_v21, %v9871_v25  ;;  %v12273_v20 = vrot.slane %v9777_v45, 1  ;;  %v3380_v54 = vrot.slane %v9779_v37, 1 }
 0x3d8   : > { %2936 = vst [vmem:[#allocation3 + $0x188] sm:$0xff] %v9824_v59  ;;  %2937 = vst [vmem:[#allocation3 + $0x190] sm:$0xff] %v9826_v42  ;;  %3559 = vmatprep.mubr.f32.mxu0 %v9771_v50  ;;  %6723 = vmatmul.mubr.f32.vlgmr.msra.gmra.mrb[160].mxu1 %v3410_v1  ;;  %v3229_v55 = vld [vmem:[#allocation3 + $0x78] sm:$0xff]  ;;  %v3283_v28 = vrot.slane %v3222_v46, 7  ;;  %v9904_v18 = vsel %vm508_vm3, %v3298_v34, %v3314_v13  ;;  %v7334_v29 = vpack.c.bf16 %v3173_v36, %v3172_v58  ;;  %v3174_v24 = vld [vmem:[#allocation7 + $0x20] sm:$0xff] }
 0x3d9   : > { %2938 = vst [vmem:[#allocation3 + $0x1a8] sm:$0xff] %v9832_v47  ;;  %2939 = vst [vmem:[#allocation3 + $0x1b0] sm:$0xff] %v9834_v39  ;;  %7381 = vmatpush3.bf16.msra.mxu0 %v9653_v49  ;;  %6725 = vmatprep.mubr.f32.mxu1 %v9896_v38  ;;  %v3299_v33 = vrot.slane %v9773_v16, 7  ;;  %v7386_v12 = vpack.c.bf16 %v3207_v7, %v3206_v19  ;;  %v3411_v49 = vsel %vm589_vm2, %v9871_v25, %v3395_v53  ;;  %v3175_v2 = vld [vmem:[#allocation7 + $0x28] sm:$0xff]  ;;  %v3208_v21 = vld [vmem:[#allocation7 + $0x130] sm:$0xff] }
 0x3da   : > { %2940 = vst [vmem:[#allocation3 + $0x1c8] sm:$0xff] %v9836_v40  ;;  %2941 = vst [vmem:[#allocation3 + $0x1d0] sm:$0xff] %v9838_v41  ;;  %7332 = vmatpush1.bf16.msra.mxu1 %v7331_v5  ;;  %7383 = vmatprep.subr.bf16.mxu0 %v7382_v27  ;;  %v3396_v56 = vrot.slane %v3229_v55, 1  ;;  %v3209_v4 = vld [vmem:[#allocation7 + $0x138] sm:$0xff]  ;;  %v3428_v34 = vsel %vm589_vm2, %v12273_v20, %v3380_v54  ;;  %v3365_v5 = vrot.slane %v9781_v31, 1  ;;  %v3381_v1 = vrot.slane %v9783_v11, 1 }
 0x3db   : > { %2942 = vst [vmem:[#allocation3 + $0x1e8] sm:$0xff] %v9844_v60  ;;  %2943 = vst [vmem:[#allocation3 + $0x1f0] sm:$0xff] %v9846_v44  ;;  %3560 = vmatmul.mubr.f32.gmra.mrb[130].mxu0 %v9904_v18  ;;  %7333 = vmatprep.subr.bf16.mxu1 %v12430_v8  ;;  %v3233_v13 = vld [vmem:[#allocation3 + $0x98] sm:$0xff]  ;;  %v9921_v58 = vsel %vm508_vm3, %v3283_v28, %v3299_v33  ;;  %v7337_v46 = vpack.c.bf16 %v3175_v2, %v3174_v24  ;;  %v3315_v53 = vrot.slane %v9775_v30, 7  ;;  %v3176_v36 = vld [vmem:[#allocation7 + $0x30] sm:$0xff] }
 0x3dc   : > { %2944 = vst [vmem:[#allocation3 + $0x208] sm:$0xff] %v9848_v9  ;;  %2945 = vst [vmem:[#allocation3 + $0x210] sm:$0xff] %v9850_v63  ;;  %3564 = vmatprep.mubr.f32.mxu0 %v9773_v16  ;;  %6726 = vmatmul.mubr.f32.gmra.mrb[162].mxu1 %v3411_v49  ;;  %v3226_v19 = vld [vmem:[#allocation3 + $0x60] sm:$0xff]  ;;  %v7390_v7 = vpack.c.bf16 %v3209_v4, %v3208_v21  ;;  %v3412_v55 = vsel %vm589_vm2, %v3380_v54, %v3396_v56  ;;  %v3366_v24 = vrot.slane %v9785_v10, 1  ;;  %v3237_v21 = vld [vmem:[#allocation3 + $0xb8] sm:$0xff] }
 0x3dd   : > { %12431 = vst [vmem:[#allocation16_spill] sm:$0xff] %v9871_v25  ;;  %12432 = vst [vmem:[#allocation19_spill] sm:$0xff] %v9896_v38  ;;  %6728 = vmatprep.mubr.f32.mxu1 %v3428_v34  ;;  %7385 = vmatpush3.bf16.msra.mxu0 %v7382_v27  ;;  %v3397_v27 = vrot.slane %v3233_v13, 1  ;;  %v3210_v49 = vld [vmem:[#allocation7 + $0x140] sm:$0xff]  ;;  %v3211_v34 = vld [vmem:[#allocation7 + $0x148] sm:$0xff]  ;;  %v3429_v28 = vsel %vm589_vm2, %v3365_v5, %v3381_v1  ;;  %v3382_v2 = vrot.slane %v9787_v61, 1 }
 0x3de   : > { %7335 = vmatpush1.bf16.msra.mxu1 %v7334_v29  ;;  %7387 = vmatprep.subr.bf16.mxu0 %v7386_v12  ;;  %v3177_v29 = vld [vmem:[#allocation7 + $0x38] sm:$0xff]  ;;  %v3284_v4 = vrot.slane %v3226_v19, 7  ;;  %v9935_v54 = vsel %vm508_vm3, %v3299_v33, %v3315_v53  ;;  %v9938_v13 = vrot.slane %v9777_v45, 7  ;;  %v3398_v19 = vrot.slane %v3237_v21, 1  ;;  %v3182_v20 = vld [vmem:[#allocation7 + $0x60] sm:$0xff]  ;;  %v3215_v38 = vld [vmem:[#allocation7 + $0x168] sm:$0xff] }
 0x3df   : > { %3565 = vmatmul.mubr.f32.gmra.mrb[132].mxu0 %v9921_v58  ;;  %7336 = vmatprep.subr.bf16.mxu1 %v12430_v8  ;;  %v7340_v56 = vpack.c.bf16 %v3177_v29, %v3176_v36  ;;  %v3413_v5 = vsel %vm589_vm2, %v3381_v1, %v3397_v27  ;;  %v3430_v33 = vsel %vm589_vm2, %v3366_v24, %v3382_v2  ;;  %v3367_v53 = vrot.slane %v9789_v17, 1  ;;  %v3241_v29 = vld [vmem:[#allocation3 + $0xd8] sm:$0xff] }
 0x3e0   : > { %3569 = vmatprep.mubr.f32.mxu0 %v9775_v30  ;;  %6729 = vmatmul.mubr.f32.gmra.mrb[164].mxu1 %v3412_v55  ;;  %v7394_v55 = vpack.c.bf16 %v3211_v34, %v3210_v49  ;;  %v3383_v36 = vrot.slane %v9791_v23, 1  ;;  %v9952_v1 = vsel %vm508_vm3, %v3284_v4, %v9938_v13  ;;  %v3316_v49 = vrot.slane %v9779_v37, 7  ;;  %v3180_v34 = vld [vmem:[#allocation7 + $0x50] sm:$0xff]  ;;  %v3181_v21 = vld [vmem:[#allocation7 + $0x58] sm:$0xff] }
 0x3e1   : > { %6731 = vmatprep.mubr.f32.mxu1 %v3429_v28  ;;  %7389 = vmatpush3.bf16.msra.mxu0 %v7386_v12  ;;  %v3178_v12 = vld [vmem:[#allocation7 + $0x40] sm:$0xff]  ;;  %v3414_v24 = vsel %vm589_vm2, %v3382_v2, %v3398_v19  ;;  %v3183_v2 = vld [vmem:[#allocation7 + $0x68] sm:$0xff] }
 0x3e2   : > { %7338 = vmatpush1.bf16.msra.mxu1 %v7337_v46  ;;  %7391 = vmatprep.subr.bf16.mxu0 %v7390_v7  ;;  %v3179_v46 = vld [vmem:[#allocation7 + $0x48] sm:$0xff]  ;;  %v9955_v28 = vld [vmem:[#allocation3 + $0x80] sm:$0xff]  ;;  %v3431_v4 = vsel %vm589_vm2, %v3367_v53, %v3383_v36 }
 0x3e3   : > { %3570 = vmatmul.mubr.f32.gmra.mrb[134].mxu0 %v9935_v54  ;;  %7339 = vmatprep.subr.bf16.mxu1 %v12430_v8  ;;  %v7343_v27 = vpack.c.bf16 %v3179_v46, %v3178_v12  ;;  %v3368_v12 = vrot.slane %v9796_v32, 1  ;;  %v3384_v46 = vrot.slane %v9798_v15, 1  ;;  %v3214_v19 = vld [vmem:[#allocation7 + $0x160] sm:$0xff] }
 0x3e4   : > { %3574 = vmatprep.mubr.f32.mxu0 %v9777_v45  ;;  %6732 = vmatmul.mubr.f32.gmra.mrb[166].mxu1 %v3413_v5  ;;  %v3213_v5 = vld [vmem:[#allocation7 + $0x158] sm:$0xff] }
 0x3e5   : > { %6734 = vmatprep.mubr.f32.mxu1 %v3430_v33  ;;  %7393 = vmatpush3.bf16.msra.mxu0 %v7390_v7  ;;  %v3399_v7 = vrot.slane %v3241_v29, 1  ;;  %v3245_v33 = vld [vmem:[#allocation3 + $0xf8] sm:$0xff]  ;;  %v3332_v29 = vsel %vm508_vm3, %v9938_v13, %v3316_v49  ;;  %v3432_v49 = vsel %vm589_vm2, %v3368_v12, %v3384_v46  ;;  %v7402_v12 = vpack.c.bf16 %v3215_v38, %v3214_v19 }
 0x3e6   : > { %7341 = vmatpush1.bf16.msra.mxu1 %v7340_v56  ;;  %7395 = vmatprep.subr.bf16.mxu0 %v7394_v55  ;;  %v3212_v56 = vld [vmem:[#allocation7 + $0x150] sm:$0xff]  ;;  %v3386_v38 = vrot.slane %v9810_v35, 1  ;;  %v3253_v19 = vld [vmem:[#allocation3 + $0x138] sm:$0xff] }
 0x3e7   : > { %3575 = vmatmul.mubr.f32.gmra.mrb[136].mxu0 %v9952_v1  ;;  %7342 = vmatprep.subr.bf16.mxu1 %v12430_v8  ;;  %v7398_v53 = vpack.c.bf16 %v3213_v5, %v3212_v56  ;;  %v3415_v25 = vsel %vm589_vm2, %v3383_v36, %v3399_v7  ;;  %v12433_v36 = vrot.slane %v9800_v57, 7  ;;  %v12434_v56 = vrot.slane %v9955_v28, 7 }
 0x3e8   : > { %3579 = vmatprep.mubr.f32.mxu0 %v9779_v37  ;;  %6735 = vmatmul.mubr.f32.gmra.mrb[168].mxu1 %v3414_v24  ;;  %v7346_v37 = vpack.c.bf16 %v3181_v21, %v3180_v34  ;;  %v3301_v24 = vrot.slane %v9781_v31, 7  ;;  %v3385_v34 = vrot.slane %v9802_v51, 1  ;;  %v3249_v21 = vld [vmem:[#allocation3 + $0x118] sm:$0xff]  ;;  %v3317_v5 = vrot.slane %v9783_v11, 7 }
 0x3e9   : > { %6737 = vmatprep.mubr.f32.mxu1 %v3431_v4  ;;  %7397 = vmatpush3.bf16.msra.mxu0 %v7394_v55  ;;  %v3400_v4 = vrot.slane %v3245_v33, 1  ;;  %v3369_v55 = vrot.slane %v9800_v57, 1 }
 0x3ea   : > { %7344 = vmatpush1.bf16.msra.mxu1 %v7343_v27  ;;  %v3321_v27 = vrot.slane %v9802_v51, 7  ;;  %7399 = vmatprep.subr.bf16.mxu0 %v7398_v53 }
 0x3eb   : > { %3580 = vmatmul.mubr.f32.gmra.mrb[138].mxu0 %v3332_v29  ;;  %7345 = vmatprep.subr.bf16.mxu1 %v12430_v8  ;;  %v3416_v33 = vsel %vm589_vm2, %v3384_v46, %v3400_v4  ;;  %v3401_v29 = vrot.slane %v3249_v21, 1  ;;  %v3333_v46 = vsel %vm508_vm3, %v3301_v24, %v3317_v5  ;;  %v3371_v5 = vrot.slane %v9812_v22, 1 }
 0x3ec   : > { %3584 = vmatprep.mubr.f32.mxu0 %v9781_v31  ;;  %6738 = vmatmul.mubr.f32.gmra.mrb[170].mxu1 %v3415_v25  ;;  %v9985_v7 = vsel %vm508_vm3, %v12433_v36, %v3321_v27  ;;  %v3349_v31 = vsel %vm508_vm3, %v12434_v56, %v3301_v24  ;;  %v7349_v25 = vpack.c.bf16 %v3183_v2, %v3182_v20  ;;  %v3184_v27 = vld [vmem:[#allocation7 + $0x70] sm:$0xff]  ;;  %v3370_v2 = vrot.slane %v9808_v3, 1  ;;  %v3186_v36 = vld [vmem:[#allocation7 + $0x80] sm:$0xff] }
 0x3ed   : > { %6740 = vmatprep.mubr.f32.mxu1 %v3432_v49  ;;  %v3185_v49 = vld [vmem:[#allocation7 + $0x78] sm:$0xff]  ;;  %v3433_v20 = vsel %vm589_vm2, %v3369_v55, %v3385_v34  ;;  %7401 = vmatpush3.bf16.msra.mxu0 %v7398_v53  ;;  %v3417_v55 = vsel %vm589_vm2, %v3385_v34, %v3401_v29  ;;  %v3402_v56 = vrot.slane %v3253_v19, 1  ;;  %v3216_v53 = vld [vmem:[#allocation7 + $0x170] sm:$0xff] }
 0x3ee   : > { %7347 = vmatpush1.bf16.msra.mxu1 %v7346_v37  ;;  %v9995_v37 = vld [vmem:[#allocation3 + $0xa0] sm:$0xff]  ;;  %v7352_v4 = vpack.c.bf16 %v3185_v49, %v3184_v27  ;;  %7403 = vmatprep.subr.bf16.mxu0 %v7402_v12  ;;  %v3434_v24 = vsel %vm589_vm2, %v3370_v2, %v3386_v38  ;;  %v3257_v27 = vld [vmem:[#allocation3 + $0x158] sm:$0xff]  ;;  %v3188_v19 = vld [vmem:[#allocation7 + $0x90] sm:$0xff] }
 0x3ef   : > { %3585 = vmatmul.mubr.f32.gmra.mrb[140].mxu0 %v3349_v31  ;;  %7348 = vmatprep.subr.bf16.mxu1 %v12430_v8  ;;  %v3286_v21 = vrot.slane %v9995_v37, 7  ;;  %v3187_v31 = vld [vmem:[#allocation7 + $0x88] sm:$0xff]  ;;  %v3403_v2 = vrot.slane %v3257_v27, 1 }
 0x3f0   : > { %3589 = vmatprep.mubr.f32.mxu0 %v9783_v11  ;;  %6741 = vmatmul.mubr.f32.gmra.mrb[172].mxu1 %v3416_v33  ;;  %v3302_v11 = vrot.slane %v9785_v10, 7  ;;  %v3387_v33 = vrot.slane %v9814_v0, 1  ;;  %v7355_v29 = vpack.c.bf16 %v3187_v31, %v3186_v36  ;;  %v3372_v36 = vrot.slane %v9820_v48, 1  ;;  %v3261_v31 = vld [vmem:[#allocation3 + $0x178] sm:$0xff]  ;;  %v3191_v27 = vld [vmem:[#allocation7 + $0xa8] sm:$0xff] }
 0x3f1   : > { %6743 = vmatprep.mubr.f32.mxu1 %v3433_v20  ;;  %7405 = vmatpush3.bf16.msra.mxu0 %v7402_v12  ;;  %v3418_v20 = vsel %vm589_vm2, %v3386_v38, %v3402_v56  ;;  %v10022_v12 = vld [vmem:[#allocation3 + $0xc0] sm:$0xff] }
 0x3f2   : > { %7350 = vmatpush1.bf16.msra.mxu1 %v7349_v25  ;;  %v3217_v25 = vld [vmem:[#allocation7 + $0x178] sm:$0xff]  ;;  %v3350_v34 = vsel %vm508_vm3, %v3286_v21, %v3302_v11 }
 0x3f3   : > { %3590 = vmatmul.mubr.f32.gmra.mrb[142].mxu0 %v3333_v46  ;;  %7351 = vmatprep.subr.bf16.mxu1 %v12430_v8  ;;  %v7406_v49 = vpack.c.bf16 %v3217_v25, %v3216_v53  ;;  %v3189_v46 = vld [vmem:[#allocation7 + $0x98] sm:$0xff]  ;;  %v3287_v53 = vrot.slane %v10022_v12, 7  ;;  %v3419_v25 = vsel %vm589_vm2, %v3387_v33, %v3403_v2 }
 0x3f4   : > { %3594 = vmatprep.mubr.f32.mxu0 %v9785_v10  ;;  %6744 = vmatmul.mubr.f32.gmra.mrb[174].mxu1 %v3417_v55  ;;  %v3318_v10 = vrot.slane %v9787_v61, 7  ;;  %v3388_v55 = vrot.slane %v9822_v14, 1  ;;  %v7358_v56 = vpack.c.bf16 %v3189_v46, %v3188_v19  ;;  %v3192_v19 = vld [vmem:[#allocation7 + $0xb0] sm:$0xff]  ;;  %v3193_v46 = vld [vmem:[#allocation7 + $0xb8] sm:$0xff] }
 0x3f5   : > { %6746 = vmatprep.mubr.f32.mxu1 %v3434_v24  ;;  %7407 = vmatprep.subr.bf16.mxu0 %v7406_v49  ;;  %v3404_v24 = vrot.slane %v3261_v31, 1  ;;  %v3374_v31 = vrot.slane %v9832_v47, 1 }
 0x3f6   : > { %7353 = vmatpush1.bf16.msra.mxu1 %v7352_v4  ;;  %v3435_v4 = vsel %vm589_vm2, %v3371_v5, %v3387_v33  ;;  %v3334_v38 = vsel %vm508_vm3, %v3302_v11, %v3318_v10  ;;  %7409 = vmatpush3.bf16.msra.mxu0 %v7406_v49  ;;  %v3190_v5 = vld [vmem:[#allocation7 + $0xa0] sm:$0xff]  ;;  %v3436_v11 = vsel %vm589_vm2, %v3372_v36, %v3388_v55  ;;  %v3265_v10 = vld [vmem:[#allocation3 + $0x198] sm:$0xff] }
 0x3f7   : > { %3595 = vmatmul.mubr.f32.gmra.mrb[144].mxu0 %v3350_v34  ;;  %7354 = vmatprep.subr.bf16.mxu1 %v12430_v8  ;;  %v3373_v34 = vrot.slane %v9824_v59, 1  ;;  %v7361_v49 = vpack.c.bf16 %v3191_v27, %v3190_v5  ;;  %v3405_v2 = vrot.slane %v3265_v10, 1  ;;  %v3304_v5 = vrot.slane %v9796_v32, 7 }
 0x3f8   : > { %3599 = vmatprep.mubr.f32.mxu0 %v9787_v61  ;;  %6747 = vmatmul.mubr.f32.gmra.mrb[176].mxu1 %v3418_v20  ;;  %v3303_v61 = vrot.slane %v9789_v17, 7  ;;  %v3420_v20 = vsel %vm589_vm2, %v3388_v55, %v3404_v24  ;;  %v3375_v10 = vrot.slane %v9836_v40, 1 }
 0x3f9   : > { %6749 = vmatprep.mubr.f32.mxu1 %v3435_v4  ;;  %7410 = vmatprep.subr.bf16.mxu0 %v12430_v8  ;;  %v10050_v4 = vld [vmem:[#allocation3 + $0xe0] sm:$0xff] }
 0x3fa   : > { %7356 = vmatpush1.bf16.msra.mxu1 %v7355_v29  ;;  %v3389_v29 = vrot.slane %v9826_v42, 1  ;;  %v3351_v33 = vsel %vm508_vm3, %v3287_v53, %v3303_v61  ;;  %v3288_v24 = vrot.slane %v10050_v4, 7 }
 0x3fb   : > { %3600 = vmatmul.mubr.f32.gmra.mrb[146].mxu0 %v3334_v38  ;;  %7357 = vmatprep.subr.bf16.mxu1 %v12430_v8  ;;  %v3390_v38 = vrot.slane %v9834_v39, 1 }
 0x3fc   : > { %3604 = vmatprep.mubr.f32.mxu0 %v9789_v17  ;;  %6750 = vmatmul.mubr.f32.gmra.mrb[178].mxu1 %v3419_v25  ;;  %v3319_v17 = vrot.slane %v9791_v23, 7  ;;  %v3437_v36 = vsel %vm589_vm2, %v3373_v34, %v3389_v29  ;;  %v7364_v25 = vpack.c.bf16 %v3193_v46, %v3192_v19  ;;  %v3195_v34 = vld [vmem:[#allocation7 + $0xc8] sm:$0xff]  ;;  %v3196_v19 = vld [vmem:[#allocation7 + $0xd0] sm:$0xff]  ;;  %v3197_v46 = vld [vmem:[#allocation7 + $0xd8] sm:$0xff] }
 0x3fd   : > { %6752 = vmatprep.mubr.f32.mxu1 %v3436_v11  ;;  %v3194_v11 = vld [vmem:[#allocation7 + $0xc0] sm:$0xff] }
 0x3fe   : > { %7359 = vmatpush1.bf16.msra.mxu1 %v7358_v56  ;;  %v3269_v56 = vld [vmem:[#allocation3 + $0x1b8] sm:$0xff]  ;;  %v3335_v55 = vsel %vm508_vm3, %v3303_v61, %v3319_v17  ;;  %v3438_v61 = vsel %vm589_vm2, %v3374_v31, %v3390_v38  ;;  %v7367_v17 = vpack.c.bf16 %v3195_v34, %v3194_v11  ;;  %v3198_v34 = vld [vmem:[#allocation7 + $0xe0] sm:$0xff] }
 0x3ff   : > { %3605 = vmatmul.mubr.f32.gmra.mrb[148].mxu0 %v3351_v33  ;;  %7360 = vmatprep.subr.bf16.mxu1 %v12430_v8  ;;  %v3406_v27 = vrot.slane %v3269_v56, 1  ;;  %v3391_v33 = vrot.slane %v9838_v41, 1  ;;  %v3376_v56 = vrot.slane %v9844_v60, 1 }
 0x400   : > { %3609 = vmatprep.mubr.f32.mxu0 %v9791_v23  ;;  %6753 = vmatmul.mubr.f32.gmra.mrb[180].mxu1 %v3420_v20  ;;  %v3421_v23 = vsel %vm589_vm2, %v3389_v29, %v3405_v2  ;;  %v3352_v29 = vsel %vm508_vm3, %v3288_v24, %v3304_v5  ;;  %v3320_v20 = vrot.slane %v9798_v15, 7 }
 0x401   : > { %6755 = vmatprep.mubr.f32.mxu1 %v3437_v36  ;;  %v10077_v36 = vld [vmem:[#allocation3 + $0x100] sm:$0xff]  ;;  %v3439_v31 = vsel %vm589_vm2, %v3375_v10, %v3391_v33 }
 0x402   : > { %7362 = vmatpush1.bf16.msra.mxu1 %v7361_v49  ;;  %v3273_v49 = vld [vmem:[#allocation3 + $0x1d8] sm:$0xff] }
 0x403   : > { %3610 = vmatmul.mubr.f32.gmra.mrb[150].mxu0 %v3335_v55  ;;  %7363 = vmatprep.subr.bf16.mxu1 %v12430_v8  ;;  %v3407_v2 = vrot.slane %v3273_v49, 1  ;;  %v3392_v55 = vrot.slane %v9846_v44, 1  ;;  %v3393_v49 = vrot.slane %v9850_v63, 1 }
 0x404   : > { %3614 = vmatprep.mubr.f32.mxu0 %v9796_v32  ;;  %6756 = vmatmul.mubr.f32.gmra.mrb[182].mxu1 %v3421_v23  ;;  %v3422_v32 = vsel %vm589_vm2, %v3390_v38, %v3406_v27  ;;  %v3336_v38 = vsel %vm508_vm3, %v3304_v5, %v3320_v20  ;;  %v7370_v23 = vpack.c.bf16 %v3197_v46, %v3196_v19  ;;  %v3289_v27 = vrot.slane %v10077_v36, 7  ;;  %v3200_v19 = vld [vmem:[#allocation7 + $0xf0] sm:$0xff]  ;;  %v3201_v46 = vld [vmem:[#allocation7 + $0xf8] sm:$0xff] }
 0x405   : > { %6758 = vmatprep.mubr.f32.mxu1 %v3438_v61  ;;  %v3199_v61 = vld [vmem:[#allocation7 + $0xe8] sm:$0xff]  ;;  %v3440_v10 = vsel %vm589_vm2, %v3376_v56, %v3392_v55  ;;  %v3377_v5 = vrot.slane %v9848_v9, 1  ;;  %v4647_v56 = vld [vmem:[#allocation7 + $0x400] sm:$0xff] }
 0x406   : > { %7365 = vmatpush1.bf16.msra.mxu1 %v7364_v25  ;;  %v3277_v25 = vld [vmem:[#allocation3 + $0x1f8] sm:$0xff]  ;;  %v7373_v20 = vpack.c.bf16 %v3199_v61, %v3198_v34  ;;  %v4649_v61 = vld [vmem:[#allocation7 + $0x410] sm:$0xff] }
 0x407   : > { %3615 = vmatmul.mubr.f32.gmra.mrb[152].mxu0 %v3352_v29  ;;  %7366 = vmatprep.subr.bf16.mxu1 %v12430_v8  ;;  %v3408_v11 = vrot.slane %v3277_v25, 1  ;;  %v3281_v29 = vld [vmem:[#allocation3 + $0x218] sm:$0xff]  ;;  %v4648_v25 = vld [vmem:[#allocation7 + $0x408] sm:$0xff] }
 0x408   : > { %3619 = vmatprep.mubr.f32.mxu0 %v9798_v15  ;;  %6759 = vmatmul.mubr.f32.gmra.mrb[184].mxu1 %v3422_v32  ;;  %v3423_v15 = vsel %vm589_vm2, %v3391_v33, %v3407_v2  ;;  %v12435_v33 = vrot.slane %v9800_v57, 7  ;;  %v3409_v2 = vrot.slane %v3281_v29, 1  ;;  %v10118_v34 = vpack.c.bf16 %v4648_v25, %v4647_v56 }
 0x409   : > { %6761 = vmatprep.mubr.f32.mxu1 %v3439_v31  ;;  %v3424_v32 = vsel %vm589_vm2, %v3392_v55, %v3408_v11  ;;  %v10104_v31 = vld [vmem:[#allocation3 + $0x120] sm:$0xff]  ;;  %v3323_v25 = vrot.slane %v9814_v0, 7 }
 0x40a   : > { %7368 = vmatpush1.bf16.msra.mxu1 %v7367_v17  ;;  %v3353_v17 = vsel %vm508_vm3, %v3289_v27, %v12435_v33  ;;  %v3290_v55 = vrot.slane %v10104_v31, 7  ;;  %v4652_v33 = vld [vmem:[#allocation7 + $0x428] sm:$0xff] }
 0x40b   : > { %3620 = vmatmul.mubr.f32.gmra.mrb[154].mxu0 %v3336_v38  ;;  %7369 = vmatprep.subr.bf16.mxu1 %v12430_v8  ;;  %v7376_v38 = vpack.c.bf16 %v3201_v46, %v3200_v19  ;;  %v10141_v19 = vld [vmem:[#allocation3 + $0x90] sm:$0xff] }
 0x40c   : > { %3624 = vmatprep.mubr.f32.mxu0 %v9800_v57  ;;  %6762 = vmatmul.mubr.f32.gmra.mrb[186].mxu1 %v3423_v15  ;;  %v3441_v57 = vsel %vm589_vm2, %v3377_v5, %v3393_v49  ;;  %v10111_v15 = vld [vmem:[#allocation2] sm:$0xff]  ;;  %v3322_v5 = vrot.slane %v9810_v35, 7  ;;  %v4653_v46 = vld [vmem:[#allocation7 + $0x430] sm:$0xff] }
 0x40d   : > { %6764 = vmatprep.mubr.f32.mxu1 %v3440_v10  ;;  %v3026_v11 = vrot.slane %v10111_v15, 7  ;;  %v4650_v10 = vld [vmem:[#allocation7 + $0x418] sm:$0xff] }
 0x40e   : > { %7371 = vmatpush1.bf16.msra.mxu1 %v7370_v23  ;;  %v3306_v23 = vrot.slane %v9808_v3, 7  ;;  %v10130_v29 = vpack.c.bf16 %v4650_v10, %v4649_v61 }
 0x40f   : > { %3625 = vmatmul.mubr.f32.gmra.mrb[156].mxu0 %v3353_v17  ;;  %7372 = vmatprep.subr.bf16.mxu1 %v12430_v8 }
 0x410   : > { %3629 = vmatprep.mubr.f32.mxu0 %v9802_v51  ;;  %6765 = vmatmul.mubr.f32.gmra.mrb[188].mxu1 %v3424_v32  ;;  %v3425_v51 = vsel %vm589_vm2, %v3393_v49, %v3409_v2  ;;  %v10127_v49 = vld [vmem:[#allocation3 + $0x140] sm:$0xff]  ;;  %v3338_v17 = vsel %vm508_vm3, %v3306_v23, %v3322_v5  ;;  %v3307_v32 = vrot.slane %v9812_v22, 7  ;;  %v10139_v2 = vld [vmem:[#allocation3 + $0x88] sm:$0xff] }
 0x411   : > { %6767 = vmatprep.mubr.f32.mxu1 %v3441_v57  ;;  %v4654_v57 = vld [vmem:[#allocation7 + $0x438] sm:$0xff] }
 0x412   : > { %7374 = vmatpush1.bf16.msra.mxu1 %v7373_v20  ;;  %v3291_v20 = vrot.slane %v10127_v49, 7  ;;  %v3339_v61 = vsel %vm508_vm3, %v3307_v32, %v3323_v25 }
 0x413   : > { %3630 = vmatmul.mubr.f32.gmra.mrb[158].mxu0 %v9985_v7  ;;  %7375 = vmatprep.subr.bf16.mxu1 %v12430_v8  ;;  %v3354_v7 = vsel %vm508_vm3, %v3290_v55, %v3306_v23  ;;  %v10155_v23 = vrot.slane %v10141_v19, 1 }
 0x414   : > { %3634 = vmatprep.mubr.f32.mxu0 %v9808_v3  ;;  %6768 = vmatmul.mubr.f32.gmra.mrb[190].mxu1 %v3425_v51  ;;  %v4651_v3 = vld [vmem:[#allocation7 + $0x420] sm:$0xff]  ;;  %v3355_v56 = vsel %vm508_vm3, %v3291_v20, %v3307_v32  ;;  %v4656_v51 = vld [vmem:[#allocation7 + $0x448] sm:$0xff] }
 0x415   : > { %4004 = vmatprep.mubr.f32.mxu1 %v10111_v15  ;;  %12436 = vst [vmem:[#allocation18_spill] sm:$0xff] %v10155_v23 }
 0x416   : > { %7377 = vmatpush1.bf16.msra.mxu1 %v7376_v38  ;;  %v3094_v38 = vrot.slane %v10139_v2, 1 }
 0x417   : > { %3635 = vmatmul.mubr.f32.gmra.mrb[160].mxu0 %v3354_v7  ;;  %7522 = vmatprep.subr.bf16.mxu1 %v10118_v34  ;;  %v3308_v7 = vrot.slane %v9820_v48, 7 }
 0x418   : > { %3639 = vmatprep.mubr.f32.mxu0 %v9810_v35  ;;  %v10144_v35 = vpack.c.bf16 %v4652_v33, %v4651_v3  ;;  %v10174_v5 = vsel %vm589_vm2, %v3094_v38, %v10155_v23  ;;  %v3324_v33 = vrot.slane %v9822_v14, 7  ;;  %v3325_v38 = vrot.slane %v9826_v42, 7 }
 0x419   : > { %4005 = vmatmul.mubr.f32.vlgmr.msra.gmra.mrb[192].mxu1 %v3026_v11  ;;  %12437 = vst [vmem:[#allocation21_spill] sm:$0xff] %v10174_v5 }
 0x41a   : > { %4009 = vmatprep.mubr.f32.mxu1 %v10111_v15  ;;  %7530 = vmatpush3.bf16.msra.mxu1 %v10118_v34  ;;  %v3340_v32 = vsel %vm508_vm3, %v3308_v7, %v3324_v33  ;;  %v3046_v33 = vrot.slane %v10141_v19, 7 }
 0x41b   : > { %3640 = vmatmul.mubr.f32.gmra.mrb[162].mxu0 %v3338_v17  ;;  %7523 = vmatprep.subr.bf16.mxu1 %v10130_v29  ;;  %v10188_v17 = vld [vmem:[#allocation3 + $0x180] sm:$0xff] }
 0x41c   : > { %3644 = vmatprep.mubr.f32.mxu0 %v9812_v22  ;;  %v10158_v22 = vld [vmem:[#allocation3 + $0x160] sm:$0xff] }
 0x41d   : > { %4010 = vmatmul.mubr.f32.gmra.mrb[194].mxu1 %v3026_v11  ;;  %v4655_v11 = vld [vmem:[#allocation7 + $0x440] sm:$0xff]  ;;  %v3292_v10 = vrot.slane %v10158_v22, 7 }
 0x41e   : > { %4014 = vmatprep.mubr.f32.mxu1 %v9769_v26  ;;  %7531 = vmatpush3.bf16.msra.mxu1 %v10130_v29  ;;  %v10161_v26 = vpack.c.bf16 %v4654_v57, %v4653_v46  ;;  %v12281_v46 = vrot.slane %v10188_v17, 7  ;;  %v3309_v57 = vrot.slane %v9824_v59, 7 }
 0x41f   : > { %3645 = vmatmul.mubr.f32.gmra.mrb[164].mxu0 %v3355_v56  ;;  %7524 = vmatprep.subr.bf16.mxu1 %v10144_v35  ;;  %v3356_v3 = vsel %vm508_vm3, %v3292_v10, %v3308_v7  ;;  %v3310_v7 = vrot.slane %v9832_v47, 7 }
 0x420   : > { %3649 = vmatprep.mubr.f32.mxu0 %v9814_v0  ;;  %v10177_v0 = vpack.c.bf16 %v4656_v51, %v4655_v11  ;;  %v3357_v25 = vsel %vm508_vm3, %v12281_v46, %v3309_v57  ;;  %v10215_v11 = vld [vmem:[#allocation3 + $0x1a0] sm:$0xff]  ;;  %v3341_v51 = vsel %vm508_vm3, %v3309_v57, %v3325_v38 }
 0x421   : > { %4015 = vmatmul.mubr.f32.gmra.mrb[196].mxu1 %v9877_v52  ;;  %v4658_v52 = vld [vmem:[#allocation7 + $0x458] sm:$0xff] }
 0x422   : > { %4019 = vmatprep.mubr.f32.mxu1 %v9771_v50  ;;  %7532 = vmatpush3.bf16.msra.mxu1 %v10144_v35  ;;  %v4657_v50 = vld [vmem:[#allocation7 + $0x450] sm:$0xff] }
 0x423   : > { %3650 = vmatmul.mubr.f32.gmra.mrb[166].mxu0 %v3339_v61  ;;  %7525 = vmatprep.subr.bf16.mxu1 %v10161_v26  ;;  %v12280_v61 = vrot.slane %v10215_v11, 7 }
 0x424   : > { %3654 = vmatprep.mubr.f32.mxu0 %v9820_v48  ;;  %v10191_v48 = vpack.c.bf16 %v4658_v52, %v4657_v50  ;;  %v3326_v52 = vrot.slane %v9834_v39, 7 }
 0x425   : > { %4020 = vmatmul.mubr.f32.gmra.mrb[198].mxu1 %v9904_v18  ;;  %v4659_v18 = vld [vmem:[#allocation7 + $0x460] sm:$0xff]  ;;  %v3358_v50 = vsel %vm508_vm3, %v12280_v61, %v3310_v7 }
 0x426   : > { %4024 = vmatprep.mubr.f32.mxu1 %v9773_v16  ;;  %7533 = vmatpush3.bf16.msra.mxu1 %v10161_v26  ;;  %v4660_v16 = vld [vmem:[#allocation7 + $0x468] sm:$0xff] }
 0x427   : > { %3655 = vmatmul.mubr.f32.gmra.mrb[168].mxu0 %v3356_v3  ;;  %7526 = vmatprep.subr.bf16.mxu1 %v10177_v0  ;;  %v10202_v56 = vpack.c.bf16 %v4660_v16, %v4659_v18  ;;  %v10255_v18 = vld [vmem:[#allocation3 + $0xa8] sm:$0xff]  ;;  %v3342_v16 = vsel %vm508_vm3, %v3310_v7, %v3326_v52  ;;  %v3312_v52 = vrot.slane %v9844_v60, 7 }
 0x428   : > { %3659 = vmatprep.mubr.f32.mxu0 %v9822_v14  ;;  %v4661_v14 = vld [vmem:[#allocation7 + $0x470] sm:$0xff]  ;;  %v3031_v57 = vrot.slane %v10255_v18, 7  ;;  %v10286_v7 = vld [vmem:[#allocation3 + $0xc8] sm:$0xff] }
 0x429   : > { %4025 = vmatmul.mubr.f32.gmra.mrb[200].mxu1 %v9921_v58  ;;  %v4662_v58 = vld [vmem:[#allocation7 + $0x478] sm:$0xff]  ;;  %v10297_v37 = vrot.slane %v10286_v7, 7 }
 0x42a   : > { %4029 = vmatprep.mubr.f32.mxu1 %v9775_v30  ;;  %7534 = vmatpush3.bf16.msra.mxu1 %v10177_v0  ;;  %v10206_v30 = vld [vmem:[#allocation3 + $0x70] sm:$0xff]  ;;  %v3079_v38 = vsel %vm508_vm3, %v3286_v21, %v3031_v57 }
 0x42b   : > { %3660 = vmatmul.mubr.f32.gmra.mrb[170].mxu0 %v3340_v32  ;;  %7527 = vmatprep.subr.bf16.mxu1 %v10191_v48  ;;  %v10299_v21 = vld [vmem:[#allocation3 + $0xd0] sm:$0xff] }
 0x42c   : > { %3664 = vmatprep.mubr.f32.mxu0 %v9824_v59  ;;  %v10218_v59 = vpack.c.bf16 %v4662_v58, %v4661_v14  ;;  %v10270_v14 = vld [vmem:[#allocation3 + $0xb0] sm:$0xff] }
 0x42d   : > { %4030 = vmatmul.mubr.f32.gmra.mrb[202].mxu1 %v9935_v54  ;;  %v12276_v54 = vrot.slane %v10206_v30, 7 }
 0x42e   : > { %4034 = vmatprep.mubr.f32.mxu1 %v9777_v45  ;;  %7535 = vmatpush3.bf16.msra.mxu1 %v10191_v48 }
 0x42f   : > { %3665 = vmatmul.mubr.f32.gmra.mrb[172].mxu0 %v3357_v25  ;;  %7528 = vmatprep.subr.bf16.mxu1 %v10202_v56  ;;  %v10278_v25 = vld [vmem:[#allocation3 + $0x1e0] sm:$0xff] }
 0x430   : > { %3669 = vmatprep.mubr.f32.mxu0 %v9826_v42  ;;  %v3061_v42 = vsel %vm508_vm3, %v9938_v13, %v12276_v54  ;;  %v12438_v13 = vrot.slane %v9955_v28, 7 }
 0x431   : > { %4035 = vmatmul.mubr.f32.gmra.mrb[204].mxu1 %v9952_v1  ;;  %v10237_v1 = vrot.slane %v10139_v2, 7 }
 0x432   : > { %4039 = vmatprep.mubr.f32.mxu1 %v10206_v30  ;;  %7536 = vmatpush3.bf16.msra.mxu1 %v10202_v56 }
 0x433   : > { %3670 = vmatmul.mubr.f32.gmra.mrb[174].mxu0 %v3341_v51  ;;  %7529 = vmatprep.subr.bf16.mxu1 %v10218_v59  ;;  %v3078_v3 = vsel %vm508_vm3, %v12438_v13, %v10237_v1  ;;  %v10266_v28 = vsel %vm508_vm3, %v10237_v1, %v3046_v33  ;;  %v3047_v51 = vrot.slane %v10270_v14, 7  ;;  %v3080_v33 = vsel %vm508_vm3, %v3287_v53, %v10297_v37 }
 0x434   : > { %3674 = vmatprep.mubr.f32.mxu0 %v9832_v47  ;;  %v10246_v47 = vld [vmem:[#allocation3 + $0x1c0] sm:$0xff]  ;;  %v3090_v53 = vrot.slane %v10111_v15, 1 }
 0x435   : > { %4040 = vmatmul.mubr.f32.gmra.mrb[206].mxu1 %v3061_v42  ;;  %v12279_v32 = vrot.slane %v10246_v47, 7 }
 0x436   : > { %4044 = vmatprep.mubr.f32.mxu1 %v10139_v2  ;;  %7537 = vmatpush3.bf16.msra.mxu1 %v10218_v59 }
 0x437   : > { %3675 = vmatmul.mubr.f32.gmra.mrb[176].mxu0 %v3358_v50  ;;  %v12278_v50 = vrot.slane %v10278_v25, 7 }
 0x438   : > { %3679 = vmatprep.mubr.f32.mxu0 %v9834_v39  ;;  %v3311_v39 = vrot.slane %v9836_v40, 7 }
 0x439   : > { %4045 = vmatmul.mubr.f32.gmra.mrb[208].mxu1 %v3078_v3  ;;  %v3360_v13 = vsel %vm508_vm3, %v12278_v50, %v3312_v52  ;;  %v3328_v3 = vrot.slane %v9846_v44, 7  ;;  %v10448_v50 = vld [vmem:[#allocation3 + $0x168] sm:$0xff] }
 0x43a   : > { %4049 = vmatprep.mubr.f32.mxu1 %v10141_v19  ;;  %v3359_v58 = vsel %vm508_vm3, %v12279_v32, %v3311_v39  ;;  %12450 = vst [vmem:[#allocation28_spill] sm:$0xff] %v10448_v50  ;;  %v4628_v32 = vld [vmem:[#allocation7 + $0x368] sm:$0xff] }
 0x43b   : > { %3680 = vmatmul.mubr.f32.gmra.mrb[178].mxu0 %v3342_v16  ;;  %v3048_v16 = vrot.slane %v10299_v21, 7 }
 0x43c   : > { %3684 = vmatprep.mubr.f32.mxu0 %v9836_v40  ;;  %v3327_v40 = vrot.slane %v9838_v41, 7 }
 0x43d   : > { %4050 = vmatmul.mubr.f32.gmra.mrb[210].mxu1 %v10266_v28 }
 0x43e   : > { %4054 = vmatprep.mubr.f32.mxu1 %v10255_v18  ;;  %v3343_v42 = vsel %vm508_vm3, %v3311_v39, %v3327_v40  ;;  %v10314_v39 = vld [vmem:[#allocation3 + $0xe8] sm:$0xff]  ;;  %v3313_v40 = vrot.slane %v9848_v9, 7 }
 0x43f   : > { %3685 = vmatmul.mubr.f32.gmra.mrb[180].mxu0 %v3359_v58  ;;  %v10327_v12 = vrot.slane %v10314_v39, 7 }
 0x440   : > { %3689 = vmatprep.mubr.f32.mxu0 %v9838_v41  ;;  %v3063_v41 = vsel %vm508_vm3, %v3031_v57, %v3047_v51  ;;  %v3344_v57 = vsel %vm508_vm3, %v3312_v52, %v3328_v3  ;;  %v10344_v52 = vld [vmem:[#allocation3 + $0x108] sm:$0xff] }
 0x441   : > { %4055 = vmatmul.mubr.f32.gmra.mrb[212].mxu1 %v3079_v38  ;;  %v10331_v38 = vld [vmem:[#allocation3 + $0xf0] sm:$0xff]  ;;  %v3081_v15 = vsel %vm508_vm3, %v3288_v24, %v10327_v12  ;;  %v10355_v24 = vrot.slane %v10344_v52, 7 }
 0x442   : > { %4059 = vmatprep.mubr.f32.mxu1 %v10270_v14 }
 0x443   : > { %3690 = vmatmul.mubr.f32.gmra.mrb[182].mxu0 %v3343_v42  ;;  %v3049_v42 = vrot.slane %v10331_v38, 7 }
 0x444   : > { %3694 = vmatprep.mubr.f32.mxu0 %v9844_v60  ;;  %v3278_v60 = vld [vmem:[#allocation3 + $0x200] sm:$0xff] }
 0x445   : > { %4060 = vmatmul.mubr.f32.gmra.mrb[214].mxu1 %v3063_v41  ;;  %v3297_v58 = vrot.slane %v3278_v60, 7  ;;  %v4615_v41 = vld [vmem:[#allocation7 + $0x300] sm:$0xff]  ;;  %v10352_v4 = vsel %vm508_vm3, %v10327_v12, %v3049_v42  ;;  %v10371_v42 = vld [vmem:[#allocation3 + $0x128] sm:$0xff] }
 0x446   : > { %4064 = vmatprep.mubr.f32.mxu1 %v10286_v7 }
 0x447   : > { %3695 = vmatmul.mubr.f32.gmra.mrb[184].mxu0 %v3360_v13  ;;  %v3361_v51 = vsel %vm508_vm3, %v3297_v58, %v3313_v40  ;;  %v4616_v13 = vld [vmem:[#allocation7 + $0x308] sm:$0xff] }
 0x448   : > { %3699 = vmatprep.mubr.f32.mxu0 %v9846_v44  ;;  %v10324_v44 = vsel %vm508_vm3, %v10297_v37, %v3048_v16  ;;  %v7411_v60 = vpack.c.bf16 %v4616_v13, %v4615_v41  ;;  %v4617_v16 = vld [vmem:[#allocation7 + $0x310] sm:$0xff]  ;;  %v4620_v41 = vld [vmem:[#allocation7 + $0x328] sm:$0xff]  ;;  %v2961_v13 = vld [vmem:[#allocation3 + $0x78] sm:$0xff] }
 0x449   : > { %4065 = vmatmul.mubr.f32.gmra.mrb[216].mxu1 %v3080_v33  ;;  %v10358_v33 = vld [vmem:[#allocation3 + $0x110] sm:$0xff] }
 0x44a   : > { %4069 = vmatprep.mubr.f32.mxu1 %v10299_v21  ;;  %v3114_v61 = vrot.slane %v10358_v33, 1 }
 0x44b   : > { %3700 = vmatmul.mubr.f32.gmra.mrb[186].mxu0 %v3344_v57  ;;  %v4618_v57 = vld [vmem:[#allocation7 + $0x318] sm:$0xff] }
 0x44c   : > { %3704 = vmatprep.mubr.f32.mxu0 %v9848_v9  ;;  %v3329_v9 = vrot.slane %v9850_v63, 7 }
 0x44d   : > { %4070 = vmatmul.mubr.f32.gmra.mrb[218].mxu1 %v10324_v44 }
 0x44e   : > { %4074 = vmatprep.mubr.f32.mxu1 %v10314_v39  ;;  %v3345_v3 = vsel %vm508_vm3, %v3313_v40, %v3329_v9  ;;  %v10361_v40 = vld [vmem:[#allocation3 + $0x58] sm:$0xff]  ;;  %v3050_v9 = vrot.slane %v10358_v33, 7 }
 0x44f   : > { %3705 = vmatmul.mubr.f32.gmra.mrb[188].mxu0 %v3361_v51  ;;  %12439 = vst [vmem:[#allocation20_spill] sm:$0xff] %v10361_v40  ;;  %v3082_v51 = vsel %vm508_vm3, %v3289_v27, %v10355_v24  ;;  %v12277_v27 = vrot.slane %v10361_v40, 1 }
 0x450   : > { %3709 = vmatprep.mubr.f32.mxu0 %v9850_v63  ;;  %v2953_v63 = vld [vmem:[#allocation3 + $0x38] sm:$0xff] }
 0x451   : > { %4075 = vmatmul.mubr.f32.gmra.mrb[220].mxu1 %v3081_v15  ;;  %v3123_v58 = vrot.slane %v2953_v63, 1  ;;  %v7414_v15 = vpack.c.bf16 %v4618_v57, %v4617_v16  ;;  %v12441_v63 = vld [vmem:[#allocation19_spill] sm:$0xff] }
 0x452   : > { %4079 = vmatprep.mubr.f32.mxu1 %v10331_v38  ;;  %v4621_v57 = vld [vmem:[#allocation7 + $0x330] sm:$0xff] }
 0x453   : > { %3710 = vmatmul.mubr.f32.gmra.mrb[190].mxu0 %v3345_v3  ;;  %v3139_v36 = vsel %vm589_vm2, %v9863_v62, %v3123_v58  ;;  %v10384_v3 = vsel %vm508_vm3, %v10355_v24, %v3050_v9  ;;  %v10392_v62 = vld [vmem:[#allocation3 + $0x130] sm:$0xff]  ;;  %v4622_v58 = vld [vmem:[#allocation7 + $0x338] sm:$0xff] }
 0x454   : > { %6802 = vmatprep.mubr.f32.mxu0 %v3090_v53  ;;  %12443 = vst [vmem:[#allocation25_spill] sm:$0xff] %v10392_v62  ;;  %v3051_v54 = vrot.slane %v10392_v62, 7 }
 0x455   : > { %4080 = vmatmul.mubr.f32.gmra.mrb[222].mxu1 %v10352_v4 }
 0x456   : > { %4084 = vmatprep.mubr.f32.mxu1 %v10344_v52 }
 0x457   : > { %6803 = vmatmul.mubr.f32.vlgmr.msra.gmra.mrb[192].mxu0 %v3090_v53  ;;  %v4619_v53 = vld [vmem:[#allocation7 + $0x320] sm:$0xff] }
 0x458   : > { %6805 = vmatprep.mubr.f32.mxu0 %v9882_v6  ;;  %7412 = vmatpush1.bf16.msra.mxu0 %v7411_v60  ;;  %v10379_v6 = vrot.slane %v10206_v30, 1  ;;  %v10388_v60 = vrot.slane %v10371_v42, 7  ;;  %v7417_v16 = vpack.c.bf16 %v4620_v41, %v4619_v53  ;;  %v12445_v53 = vrot.slane %v9777_v45, 1  ;;  %v4623_v45 = vld [vmem:[#allocation7 + $0x340] sm:$0xff] }
 0x459   : > { %4085 = vmatmul.mubr.f32.gmra.mrb[224].mxu1 %v3082_v51  ;;  %7413 = vmatprep.subr.bf16.mxu0 %v12430_v8  ;;  %v12444_v51 = vld [vmem:[#allocation16_spill] sm:$0xff] }
 0x45a   : > { %4089 = vmatprep.mubr.f32.mxu1 %v10358_v33  ;;  %12440 = vst [vmem:[#allocation23_spill] sm:$0xff] %v10379_v6  ;;  %12442 = vst [vmem:[#allocation22_spill] sm:$0xff] %v10388_v60  ;;  %v3140_v9 = vsel %vm589_vm2, %v12444_v51, %v12277_v27  ;;  %v3157_v41 = vsel %vm589_vm2, %v12445_v53, %v10379_v6  ;;  %v7420_v51 = vpack.c.bf16 %v4622_v58, %v4621_v57  ;;  %v2969_v57 = vld [vmem:[#allocation3 + $0xb8] sm:$0xff] }
 0x45b   : > { %6806 = vmatmul.mubr.f32.gmra.mrb[194].mxu0 %v3139_v36  ;;  %v2965_v36 = vld [vmem:[#allocation3 + $0x98] sm:$0xff]  ;;  %v10423_v58 = vsel %vm508_vm3, %v10388_v60, %v3051_v54 }
 0x45c   : > { %6808 = vmatprep.mubr.f32.mxu0 %v12441_v63  ;;  %7415 = vmatpush1.bf16.msra.mxu0 %v7414_v15  ;;  %v3125_v15 = vrot.slane %v2961_v13, 1  ;;  %v3083_v63 = vsel %vm508_vm3, %v3290_v55, %v10388_v60  ;;  %v10412_v13 = vld [vmem:[#allocation3 + $0x148] sm:$0xff]  ;;  %v3126_v53 = vrot.slane %v2965_v36, 1  ;;  %v3095_v55 = vrot.slane %v10255_v18, 1  ;;  %12447 = vst [vmem:[#allocation27_spill] sm:$0xff] %v10423_v58  ;;  %v10431_v18 = vld [vmem:[#allocation3 + $0x150] sm:$0xff] }
 0x45d   : > { %4090 = vmatmul.mubr.f32.gmra.mrb[226].mxu1 %v10384_v3  ;;  %7416 = vmatprep.subr.bf16.mxu0 %v12430_v8  ;;  %12446 = vst [vmem:[#allocation24_spill] sm:$0xff] %v10412_v13  ;;  %12449 = vst [vmem:[#allocation29_spill] sm:$0xff] %v10431_v18  ;;  %v3127_v36 = vrot.slane %v2969_v57, 1 }
 0x45e   : > { %4094 = vmatprep.mubr.f32.mxu1 %v10371_v42  ;;  %v3141_v31 = vsel %vm589_vm2, %v10379_v6, %v3125_v15  ;;  %v4626_v15 = vld [vmem:[#allocation7 + $0x358] sm:$0xff]  ;;  %v3142_v54 = vsel %vm589_vm2, %v10155_v23, %v3126_v53  ;;  %v3052_v53 = vrot.slane %v10431_v18, 7  ;;  %v4632_v23 = vld [vmem:[#allocation7 + $0x388] sm:$0xff] }
 0x45f   : > { %6809 = vmatmul.mubr.f32.gmra.mrb[196].mxu0 %v3140_v9  ;;  %v4624_v9 = vld [vmem:[#allocation7 + $0x348] sm:$0xff]  ;;  %v4634_v6 = vld [vmem:[#allocation7 + $0x398] sm:$0xff] }
 0x460   : > { %6811 = vmatprep.mubr.f32.mxu0 %v3157_v41  ;;  %7418 = vmatpush1.bf16.msra.mxu0 %v7417_v16  ;;  %v3111_v16 = vrot.slane %v10270_v14, 1  ;;  %v10427_v41 = vrot.slane %v10412_v13, 7  ;;  %v4625_v14 = vld [vmem:[#allocation7 + $0x350] sm:$0xff] }
 0x461   : > { %4095 = vmatmul.mubr.f32.gmra.mrb[228].mxu1 %v3083_v63  ;;  %7419 = vmatprep.subr.bf16.mxu0 %v12430_v8  ;;  %v7423_v63 = vpack.c.bf16 %v4624_v9, %v4623_v45  ;;  %v2973_v9 = vld [vmem:[#allocation3 + $0xd8] sm:$0xff]  ;;  %v7426_v57 = vpack.c.bf16 %v4626_v15, %v4625_v14 }
 0x462   : > { %4099 = vmatprep.mubr.f32.mxu1 %v10392_v62  ;;  %12448 = vst [vmem:[#allocation26_spill] sm:$0xff] %v10427_v41  ;;  %v3159_v45 = vsel %vm589_vm2, %v3095_v55, %v3111_v16  ;;  %v3084_v27 = vsel %vm508_vm3, %v3291_v20, %v10427_v41  ;;  %v3143_v49 = vsel %vm589_vm2, %v3111_v16, %v3127_v36  ;;  %v3128_v55 = vrot.slane %v2973_v9, 1  ;;  %v2977_v14 = vld [vmem:[#allocation3 + $0xf8] sm:$0xff] }
 0x463   : > { %6812 = vmatmul.mubr.f32.gmra.mrb[198].mxu0 %v3141_v31  ;;  %v3112_v31 = vrot.slane %v10299_v21, 1  ;;  %v3097_v20 = vrot.slane %v10314_v39, 1  ;;  %v10462_v15 = vsel %vm508_vm3, %v10427_v41, %v3052_v53  ;;  %v10466_v16 = vrot.slane %v10448_v50, 7  ;;  %v4630_v9 = vld [vmem:[#allocation7 + $0x378] sm:$0xff] }
 0x464   : > { %6814 = vmatprep.mubr.f32.mxu0 %v10174_v5  ;;  %7421 = vmatpush1.bf16.msra.mxu0 %v7420_v51  ;;  %v3096_v51 = vrot.slane %v10286_v7, 1  ;;  %12451 = vst [vmem:[#allocation15_spill] sm:$0xff] %v10462_v15  ;;  %v3099_v5 = vrot.slane %v10371_v42, 1  ;;  %v3101_v41 = vrot.slane %v10448_v50, 1 }
 0x465   : > { %4100 = vmatmul.mubr.f32.gmra.mrb[230].mxu1 %v10423_v58  ;;  %7422 = vmatprep.subr.bf16.mxu0 %v12430_v8  ;;  %12452 = vst [vmem:[#allocation14_spill] sm:$0xff] %v10466_v16  ;;  %v10475_v53 = vsel %vm589_vm2, %v3112_v31, %v3128_v55  ;;  %v3085_v46 = vsel %vm508_vm3, %v3292_v10, %v10466_v16 }
 0x466   : > { %4104 = vmatprep.mubr.f32.mxu1 %v10412_v13 }
 0x467   : > { %6815 = vmatmul.mubr.f32.gmra.mrb[200].mxu0 %v3142_v54  ;;  %v4627_v54 = vld [vmem:[#allocation7 + $0x360] sm:$0xff] }
 0x468   : > { %6817 = vmatprep.mubr.f32.mxu0 %v3159_v45  ;;  %7424 = vmatpush1.bf16.msra.mxu0 %v7423_v63  ;;  %v3113_v63 = vrot.slane %v10331_v38, 1  ;;  %v7429_v36 = vpack.c.bf16 %v4628_v32, %v4627_v54  ;;  %v10470_v45 = vld [vmem:[#allocation3 + $0x170] sm:$0xff]  ;;  %v2981_v54 = vld [vmem:[#allocation3 + $0x118] sm:$0xff] }
 0x469   : > { %4105 = vmatmul.mubr.f32.gmra.mrb[232].mxu1 %v3084_v27  ;;  %7425 = vmatprep.subr.bf16.mxu0 %v12430_v8  ;;  %v10457_v27 = vsel %vm589_vm2, %v3096_v51, %v3112_v31  ;;  %12453 = vst [vmem:[#allocation17_spill] sm:$0xff] %v10470_v45  ;;  %v4629_v51 = vld [vmem:[#allocation7 + $0x370] sm:$0xff]  ;;  %v3053_v31 = vrot.slane %v10470_v45, 7  ;;  %v3130_v10 = vrot.slane %v2981_v54, 1 }
 0x46a   : > { %4109 = vmatprep.mubr.f32.mxu1 %v10431_v18  ;;  %v10482_v32 = vsel %vm589_vm2, %v3097_v20, %v3113_v63  ;;  %v7432_v55 = vpack.c.bf16 %v4630_v9, %v4629_v51  ;;  %v4631_v20 = vld [vmem:[#allocation7 + $0x380] sm:$0xff]  ;;  %v2985_v51 = vld [vmem:[#allocation3 + $0x138] sm:$0xff]  ;;  %v10517_v54 = vld [vmem:[#allocation3 + $0x190] sm:$0xff] }
 0x46b   : > { %6818 = vmatmul.mubr.f32.gmra.mrb[202].mxu0 %v3143_v49  ;;  %v3129_v49 = vrot.slane %v2977_v14, 1  ;;  %v10492_v14 = vld [vmem:[#allocation3 + $0x188] sm:$0xff]  ;;  %v10509_v9 = vsel %vm508_vm3, %v10466_v16, %v3053_v31  ;;  %12457 = vst [vmem:[#allocation31_spill] sm:$0xff] %v10517_v54  ;;  %v10522_v31 = vsel %vm589_vm2, %v3114_v61, %v3130_v10  ;;  %v3131_v40 = vrot.slane %v2985_v51, 1 }
 0x46c   : > { %6820 = vmatprep.mubr.f32.mxu0 %v10457_v27  ;;  %7427 = vmatpush1.bf16.msra.mxu0 %v7426_v57  ;;  %v3098_v57 = vrot.slane %v10344_v52, 1  ;;  %12454 = vst [vmem:[#allocation19_spill] sm:$0xff] %v10492_v14  ;;  %12455 = vst [vmem:[#allocation16_spill] sm:$0xff] %v10509_v9  ;;  %v3116_v16 = vrot.slane %v10431_v18, 1  ;;  %v10539_v51 = vld [vmem:[#allocation3 + $0x1a8] sm:$0xff] }
 0x46d   : > { %4110 = vmatmul.mubr.f32.gmra.mrb[234].mxu1 %v10462_v15  ;;  %7428 = vmatprep.subr.bf16.mxu0 %v12430_v8  ;;  %v10497_v22 = vsel %vm589_vm2, %v3113_v63, %v3129_v49  ;;  %v10513_v63 = vrot.slane %v10492_v14, 7  ;;  %v7435_v49 = vpack.c.bf16 %v4632_v23, %v4631_v20  ;;  %v2989_v20 = vld [vmem:[#allocation3 + $0x158] sm:$0xff]  ;;  %12459 = vst [vmem:[#allocation32_spill] sm:$0xff] %v10539_v51  ;;  %v4636_v18 = vld [vmem:[#allocation7 + $0x3a8] sm:$0xff] }
 0x46e   : > { %4114 = vmatprep.mubr.f32.mxu1 %v10448_v50  ;;  %v3118_v50 = vrot.slane %v10517_v54, 1 }
 0x46f   : > { %6821 = vmatmul.mubr.f32.gmra.mrb[204].mxu0 %v10475_v53  ;;  %12456 = vst [vmem:[#allocation30_spill] sm:$0xff] %v10513_v63 }
 0x470   : > { %6823 = vmatprep.mubr.f32.mxu0 %v10482_v32  ;;  %7430 = vmatpush1.bf16.msra.mxu0 %v7429_v36  ;;  %v3115_v36 = vrot.slane %v10392_v62, 1  ;;  %v4644_v62 = vld [vmem:[#allocation7 + $0x3e8] sm:$0xff] }
 0x471   : > { %4115 = vmatmul.mubr.f32.gmra.mrb[236].mxu1 %v3085_v46  ;;  %7431 = vmatprep.subr.bf16.mxu0 %v12430_v8  ;;  %v10504_v46 = vsel %vm589_vm2, %v3098_v57, %v3114_v61  ;;  %v4633_v57 = vld [vmem:[#allocation7 + $0x390] sm:$0xff]  ;;  %v3054_v61 = vrot.slane %v10517_v54, 7 }
 0x472   : > { %4119 = vmatprep.mubr.f32.mxu1 %v10470_v45  ;;  %v10529_v23 = vsel %vm589_vm2, %v3099_v5, %v3115_v36  ;;  %v7438_v10 = vpack.c.bf16 %v4634_v6, %v4633_v57  ;;  %v4635_v5 = vld [vmem:[#allocation7 + $0x3a0] sm:$0xff] }
 0x473   : > { %6824 = vmatmul.mubr.f32.gmra.mrb[206].mxu0 %v10497_v22  ;;  %v10556_v57 = vsel %vm508_vm3, %v10513_v63, %v3054_v61 }
 0x474   : > { %6826 = vmatprep.mubr.f32.mxu0 %v10504_v46  ;;  %7433 = vmatpush1.bf16.msra.mxu0 %v7432_v55  ;;  %v3100_v55 = vrot.slane %v10412_v13, 1  ;;  %12460 = vst [vmem:[#allocation33_spill] sm:$0xff] %v10556_v57 }
 0x475   : > { %4120 = vmatmul.mubr.f32.gmra.mrb[238].mxu1 %v10509_v9  ;;  %7434 = vmatprep.subr.bf16.mxu0 %v12430_v8  ;;  %v12458_v9 = vrot.slane %v10188_v17, 7  ;;  %v10544_v17 = vsel %vm589_vm2, %v3115_v36, %v3131_v40  ;;  %v10560_v40 = vrot.slane %v10539_v51, 7  ;;  %v7441_v36 = vpack.c.bf16 %v4636_v18, %v4635_v5  ;;  %v2997_v5 = vld [vmem:[#allocation3 + $0x198] sm:$0xff] }
 0x476   : > { %4124 = vmatprep.mubr.f32.mxu1 %v10492_v14  ;;  %v10551_v6 = vsel %vm589_vm2, %v3100_v55, %v3116_v16  ;;  %v4637_v55 = vld [vmem:[#allocation7 + $0x3b0] sm:$0xff] }
 0x477   : > { %6827 = vmatmul.mubr.f32.gmra.mrb[208].mxu0 %v10522_v31  ;;  %v3086_v15 = vsel %vm508_vm3, %v12458_v9, %v10513_v63  ;;  %v3132_v9 = vrot.slane %v2989_v20, 1  ;;  %12461 = vst [vmem:[#allocation34_spill] sm:$0xff] %v10560_v40  ;;  %v10564_v20 = vld [vmem:[#allocation3 + $0x1b0] sm:$0xff] }
 0x478   : > { %6829 = vmatprep.mubr.f32.mxu0 %v10529_v23  ;;  %7436 = vmatpush1.bf16.msra.mxu0 %v7435_v49  ;;  %v3117_v49 = vrot.slane %v10470_v45, 1  ;;  %12462 = vst [vmem:[#allocation35_spill] sm:$0xff] %v10564_v20  ;;  %v4638_v45 = vld [vmem:[#allocation7 + $0x3b8] sm:$0xff] }
 0x479   : > { %4125 = vmatmul.mubr.f32.gmra.mrb[240].mxu1 %v3086_v15  ;;  %7437 = vmatprep.subr.bf16.mxu0 %v12430_v8  ;;  %v2993_v15 = vld [vmem:[#allocation3 + $0x178] sm:$0xff]  ;;  %v10569_v61 = vsel %vm589_vm2, %v3116_v16, %v3132_v9  ;;  %v3055_v16 = vrot.slane %v10564_v20, 7  ;;  %v7444_v9 = vpack.c.bf16 %v4638_v45, %v4637_v55 }
 0x47a   : > { %4129 = vmatprep.mubr.f32.mxu1 %v10517_v54  ;;  %v3133_v63 = vrot.slane %v2993_v15, 1  ;;  %v10576_v18 = vsel %vm589_vm2, %v3101_v41, %v3117_v49  ;;  %v10586_v15 = vld [vmem:[#allocation3 + $0x1c8] sm:$0xff]  ;;  %v4639_v41 = vld [vmem:[#allocation7 + $0x3c0] sm:$0xff]  ;;  %v3001_v45 = vld [vmem:[#allocation3 + $0x1b8] sm:$0xff] }
 0x47b   : > { %6830 = vmatmul.mubr.f32.gmra.mrb[210].mxu0 %v10544_v17  ;;  %12464 = vst [vmem:[#allocation36_spill] sm:$0xff] %v10586_v15  ;;  %v4640_v54 = vld [vmem:[#allocation7 + $0x3c8] sm:$0xff]  ;;  %v10603_v55 = vsel %vm508_vm3, %v10560_v40, %v3055_v16 }
 0x47c   : > { %6832 = vmatprep.mubr.f32.mxu0 %v10551_v6  ;;  %7439 = vmatpush1.bf16.msra.mxu0 %v7438_v10  ;;  %v3102_v10 = vrot.slane %v10492_v14, 1  ;;  %v3103_v14 = vrot.slane %v10539_v51, 1  ;;  %12465 = vst [vmem:[#allocation37_spill] sm:$0xff] %v10603_v55 }
 0x47d   : > { %4130 = vmatmul.mubr.f32.gmra.mrb[242].mxu1 %v10556_v57  ;;  %7440 = vmatprep.subr.bf16.mxu0 %v12430_v8  ;;  %v12463_v57 = vrot.slane %v10215_v11, 7  ;;  %v10591_v11 = vsel %vm589_vm2, %v3117_v49, %v3133_v63  ;;  %v10607_v63 = vrot.slane %v10586_v15, 7  ;;  %v7447_v49 = vpack.c.bf16 %v4640_v54, %v4639_v41 }
 0x47e   : > { %4134 = vmatprep.mubr.f32.mxu1 %v10539_v51  ;;  %v12467_v51 = vrot.slane %v10246_v47, 7 }
 0x47f   : > { %6833 = vmatmul.mubr.f32.gmra.mrb[212].mxu0 %v10569_v61  ;;  %v3087_v13 = vsel %vm508_vm3, %v12463_v57, %v10560_v40  ;;  %v3134_v57 = vrot.slane %v2997_v5, 1  ;;  %v10609_v5 = vld [vmem:[#allocation3 + $0x1d0] sm:$0xff]  ;;  %v3135_v40 = vrot.slane %v3001_v45, 1  ;;  %v10632_v45 = vld [vmem:[#allocation3 + $0x1e8] sm:$0xff] }
 0x480   : > { %6835 = vmatprep.mubr.f32.mxu0 %v10576_v18  ;;  %7442 = vmatpush1.bf16.msra.mxu0 %v7441_v36  ;;  %v3119_v36 = vrot.slane %v10564_v20, 1  ;;  %12466 = vst [vmem:[#allocation38_spill] sm:$0xff] %v10609_v5  ;;  %v3120_v41 = vrot.slane %v10609_v5, 1  ;;  %v3088_v58 = vsel %vm508_vm3, %v12467_v51, %v10607_v63  ;;  %12468 = vst [vmem:[#allocation39_spill] sm:$0xff] %v10632_v45 }
 0x481   : > { %4135 = vmatmul.mubr.f32.gmra.mrb[244].mxu1 %v3087_v13  ;;  %7443 = vmatprep.subr.bf16.mxu0 %v12430_v8  ;;  %v10598_v13 = vsel %vm589_vm2, %v3102_v10, %v3118_v50  ;;  %v4641_v10 = vld [vmem:[#allocation7 + $0x3d0] sm:$0xff]  ;;  %v10616_v16 = vsel %vm589_vm2, %v3118_v50, %v3134_v57  ;;  %v3056_v50 = vrot.slane %v10609_v5, 7 }
 0x482   : > { %4139 = vmatprep.mubr.f32.mxu1 %v10564_v20  ;;  %v4642_v20 = vld [vmem:[#allocation7 + $0x3d8] sm:$0xff]  ;;  %v10622_v54 = vsel %vm589_vm2, %v3103_v14, %v3119_v36  ;;  %v4643_v14 = vld [vmem:[#allocation7 + $0x3e0] sm:$0xff]  ;;  %v10640_v47 = vsel %vm589_vm2, %v3119_v36, %v3135_v40  ;;  %v10656_v40 = vrot.slane %v10632_v45, 7 }
 0x483   : > { %6836 = vmatmul.mubr.f32.gmra.mrb[214].mxu0 %v10591_v11  ;;  %v7450_v57 = vpack.c.bf16 %v4642_v20, %v4641_v10  ;;  %v3009_v10 = vld [vmem:[#allocation3 + $0x1f8] sm:$0xff]  ;;  %v7453_v36 = vpack.c.bf16 %v4644_v62, %v4643_v14  ;;  %v10670_v62 = vld [vmem:[#allocation3 + $0x48] sm:$0xff]  ;;  %v4391_v14 = vld [vmem:[#allocation3 + $0x40] sm:$0xff] }
 0x484   : > { %6838 = vmatprep.mubr.f32.mxu0 %v10598_v13  ;;  %7445 = vmatpush1.bf16.msra.mxu0 %v7444_v9  ;;  %v3104_v9 = vrot.slane %v10586_v15, 1 }
 0x485   : > { %4140 = vmatmul.mubr.f32.gmra.mrb[246].mxu1 %v10603_v55  ;;  %7446 = vmatprep.subr.bf16.mxu0 %v12430_v8  ;;  %v3005_v55 = vld [vmem:[#allocation3 + $0x1d8] sm:$0xff] }
 0x486   : > { %4144 = vmatprep.mubr.f32.mxu1 %v10586_v15  ;;  %v10634_v15 = vld [vmem:[#allocation3 + $0x1f0] sm:$0xff]  ;;  %v3136_v51 = vrot.slane %v3005_v55, 1  ;;  %v10645_v20 = vsel %vm589_vm2, %v3104_v9, %v3120_v41  ;;  %v4646_v9 = vld [vmem:[#allocation7 + $0x3f8] sm:$0xff] }
 0x487   : > { %6839 = vmatmul.mubr.f32.gmra.mrb[216].mxu0 %v10616_v16  ;;  %v4645_v55 = vld [vmem:[#allocation7 + $0x3f0] sm:$0xff] }
 0x488   : > { %6841 = vmatprep.mubr.f32.mxu0 %v10622_v54  ;;  %7448 = vmatpush1.bf16.msra.mxu0 %v7447_v49  ;;  %v3105_v49 = vrot.slane %v10632_v45, 1  ;;  %v10663_v60 = vsel %vm589_vm2, %v3120_v41, %v3136_v51  ;;  %v3057_v41 = vrot.slane %v10634_v15, 7  ;;  %v7456_v51 = vpack.c.bf16 %v4646_v9, %v4645_v55  ;;  %v4395_v55 = vld [vmem:[#allocation3 + $0x60] sm:$0xff] }
 0x489   : > { %4145 = vmatmul.mubr.f32.gmra.mrb[248].mxu1 %v3088_v58  ;;  %7449 = vmatprep.subr.bf16.mxu0 %v12430_v8  ;;  %v3121_v58 = vrot.slane %v10634_v15, 1 }
 0x48a   : > { %4149 = vmatprep.mubr.f32.mxu1 %v10609_v5  ;;  %v10652_v5 = vsel %vm508_vm3, %v10607_v63, %v3056_v50  ;;  %v3137_v50 = vrot.slane %v3009_v10, 1  ;;  %v4455_v10 = vrot.slane %v4391_v14, 7 }
 0x48b   : > { %6842 = vmatmul.mubr.f32.gmra.mrb[218].mxu0 %v10640_v47  ;;  %12469 = vst [vmem:[#allocation40_spill] sm:$0xff] %v10652_v5 }
 0x48c   : > { %6844 = vmatprep.mubr.f32.mxu0 %v10645_v20  ;;  %7451 = vmatpush1.bf16.msra.mxu0 %v7450_v57  ;;  %v10668_v57 = vsel %vm589_vm2, %v3105_v49, %v3121_v58  ;;  %v10683_v49 = vsel %vm589_vm2, %v3121_v58, %v3137_v50  ;;  %v10701_v58 = vld [vmem:[#allocation3 + $0x68] sm:$0xff]  ;;  %v4456_v50 = vrot.slane %v4395_v55, 7 }
 0x48d   : > { %4150 = vmatmul.mubr.f32.gmra.mrb[250].mxu1 %v10652_v5  ;;  %7452 = vmatprep.subr.bf16.mxu0 %v12430_v8  ;;  %v12470_v5 = vrot.slane %v10278_v25, 7  ;;  %v4471_v25 = vrot.slane %v10670_v62, 7  ;;  %v4472_v9 = vrot.slane %v10701_v58, 7 }
 0x48e   : > { %4154 = vmatprep.mubr.f32.mxu1 %v10632_v45 }
 0x48f   : > { %6845 = vmatmul.mubr.f32.gmra.mrb[220].mxu0 %v10663_v60  ;;  %v3089_v45 = vsel %vm508_vm3, %v12470_v5, %v10656_v40  ;;  %v10687_v5 = vld [vmem:[#allocation3 + $0x50] sm:$0xff] }
 0x490   : > { %6847 = vmatprep.mubr.f32.mxu0 %v10668_v57  ;;  %7454 = vmatpush1.bf16.msra.mxu0 %v7453_v36  ;;  %v10692_v36 = vsel %vm508_vm3, %v10656_v40, %v3057_v41 }
 0x491   : > { %4155 = vmatmul.mubr.f32.gmra.mrb[252].mxu1 %v3089_v45  ;;  %7455 = vmatprep.subr.bf16.mxu0 %v12430_v8  ;;  %v4519_v8 = vsel %vm508_vm3, %v4455_v10, %v4471_v25  ;;  %v4487_v45 = vrot.slane %v10687_v5, 7 }
 0x492   : > { %4159 = vmatprep.mubr.f32.mxu1 %v10634_v15 }
 0x493   : > { %6848 = vmatmul.mubr.f32.gmra.mrb[222].mxu0 %v10683_v49 }
 0x494   : > { %7457 = vmatpush1.bf16.msra.mxu0 %v7456_v51  ;;  %4727 = vmatprep.mubr.f32.mxu0 %v10670_v62 }
 0x495   : > { %4160 = vmatmul.mubr.f32.gmra.mrb[254].mxu1 %v10692_v36  ;;  %7459 = vmatprep.subr.bf16.mxu0 %v10118_v34 }
 0x496   : > { %6894 = vmatprep.mubr.f32.mxu1 %v10457_v27  ;;  %v4503_v27 = vsel %vm508_vm3, %v4471_v25, %v4487_v45 }
 0x497   : > { %4728 = vmatmul.mubr.f32.vlgmr.msra.gmra.mrb[224].mxu0 %v4519_v8 }
 0x498   : > { %4732 = vmatprep.mubr.f32.mxu0 %v10687_v5  ;;  %7461 = vmatpush3.bf16.msra.mxu0 %v10118_v34  ;;  %v4520_v34 = vsel %vm508_vm3, %v4456_v50, %v4472_v9 }
 0x499   : > { %6895 = vmatmul.mubr.f32.vlgmr.msra.gmra.mrb[0].mxu1 %v10475_v53  ;;  %7463 = vmatprep.subr.bf16.mxu0 %v10130_v29  ;;  %v4399_v53 = vld [vmem:[#allocation3 + $0x80] sm:$0xff] }
 0x49a   : > { %6897 = vmatprep.mubr.f32.mxu1 %v10482_v32 }
 0x49b   : > { %4733 = vmatmul.mubr.f32.gmra.mrb[226].mxu0 %v4503_v27 }
 0x49c   : > { %4737 = vmatprep.mubr.f32.mxu0 %v10701_v58  ;;  %7465 = vmatpush3.bf16.msra.mxu0 %v10130_v29  ;;  %v12471_v29 = vrot.slane %v10206_v30, 7 }
 0x49d   : > { %6898 = vmatmul.mubr.f32.gmra.mrb[2].mxu1 %v10497_v22  ;;  %7467 = vmatprep.subr.bf16.mxu0 %v10144_v35  ;;  %v4457_v22 = vrot.slane %v4399_v53, 7  ;;  %v4411_v53 = vld [vmem:[#allocation3 + $0xe0] sm:$0xff] }
 0x49e   : > { %6900 = vmatprep.mubr.f32.mxu1 %v10504_v46  ;;  %v4504_v32 = vsel %vm508_vm3, %v4472_v9, %v12471_v29  ;;  %v4403_v46 = vld [vmem:[#allocation3 + $0xa0] sm:$0xff] }
 0x49f   : > { %4738 = vmatmul.mubr.f32.gmra.mrb[228].mxu0 %v4520_v34 }
 0x4a0   : > { %4742 = vmatprep.mubr.f32.mxu0 %v10206_v30  ;;  %7469 = vmatpush3.bf16.msra.mxu0 %v10144_v35  ;;  %v4521_v35 = vsel %vm508_vm3, %v4457_v22, %v10237_v1  ;;  %v10735_v30 = vld [vmem:[#allocation3 + $0xa8] sm:$0xff] }
 0x4a1   : > { %6901 = vmatmul.mubr.f32.gmra.mrb[4].mxu1 %v10522_v31  ;;  %7471 = vmatprep.subr.bf16.mxu0 %v10161_v26  ;;  %v4458_v31 = vrot.slane %v4403_v46, 7 }
 0x4a2   : > { %6903 = vmatprep.mubr.f32.mxu1 %v10529_v23 }
 0x4a3   : > { %4743 = vmatmul.mubr.f32.gmra.mrb[230].mxu0 %v4504_v32  ;;  %v4450_v32 = vld [vmem:[#allocation3 + $0x218] sm:$0xff] }
 0x4a4   : > { %4747 = vmatprep.mubr.f32.mxu0 %v10139_v2  ;;  %7473 = vmatpush3.bf16.msra.mxu0 %v10161_v26  ;;  %v4474_v26 = vrot.slane %v10735_v30, 7 }
 0x4a5   : > { %6904 = vmatmul.mubr.f32.gmra.mrb[6].mxu1 %v10544_v17  ;;  %7475 = vmatprep.subr.bf16.mxu0 %v10177_v0  ;;  %v10744_v17 = vld [vmem:[#allocation3 + $0xb0] sm:$0xff] }
 0x4a6   : > { %6906 = vmatprep.mubr.f32.mxu1 %v10551_v6 }
 0x4a7   : > { %4748 = vmatmul.mubr.f32.gmra.mrb[232].mxu0 %v4521_v35  ;;  %v4460_v35 = vrot.slane %v4411_v53, 7 }
 0x4a8   : > { %4752 = vmatprep.mubr.f32.mxu0 %v10141_v19  ;;  %7477 = vmatpush3.bf16.msra.mxu0 %v10177_v0 }
 0x4a9   : > { %6907 = vmatmul.mubr.f32.gmra.mrb[8].mxu1 %v10569_v61  ;;  %7479 = vmatprep.subr.bf16.mxu0 %v10191_v48  ;;  %v4522_v61 = vsel %vm508_vm3, %v4458_v31, %v4474_v26  ;;  %v5421_v31 = vld [vmem:[%s12235_s3 + $0x10] sm:$0xff] }
 0x4aa   : > { %6909 = vmatprep.mubr.f32.mxu1 %v10576_v18  ;;  %v3556_v2 = vpop.f32.mrb[128].mxu0 }
 0x4ab   : > { %v3558_v23 = vpop.f32.mrb[129].mxu0  ;;  %v6724_v1 = vpop.f32.mrb[160].mxu1  ;;  %4753 = vmatmul.mubr.f32.gmra.mrb[234].mxu0 %v10266_v28  ;;  %v4490_v28 = vrot.slane %v10744_v17, 7 }
 0x4ac   : > { %v3781_v6 = vpop.f32.mrb[161].mxu1  ;;  %4757 = vmatprep.mubr.f32.mxu0 %v10735_v30  ;;  %7481 = vmatpush3.bf16.msra.mxu0 %v10191_v48  ;;  %v4407_v48 = vld [vmem:[#allocation3 + $0xc0] sm:$0xff] }
 0x4ad   : > { %v10748_v19 = vadd.f32 %v3781_v6, %v3556_v2  ;;  %6910 = vmatmul.mubr.f32.gmra.mrb[10].mxu1 %v10591_v11  ;;  %7483 = vmatprep.subr.bf16.mxu0 %v10202_v56  ;;  %v4459_v25 = vrot.slane %v4407_v48, 7  ;;  %v5424_v48 = vld [vmem:[%s12235_s3 + $0x28] sm:$0xff] }
 0x4ae   : > { %6912 = vmatprep.mubr.f32.mxu1 %v10598_v13  ;;  %v3561_v0 = vpop.f32.mrb[130].mxu0  ;;  %v4506_v13 = vsel %vm508_vm3, %v4474_v26, %v4490_v28 }
 0x4af   : > { %v10756_v18 = vadd.f32 %v6724_v1, %v3561_v0  ;;  %v3563_v14 = vpop.f32.mrb[131].mxu0  ;;  %v6727_v41 = vpop.f32.mrb[162].mxu1  ;;  %4758 = vmatmul.mubr.f32.gmra.mrb[236].mxu0 %v4522_v61  ;;  %v4523_v27 = vsel %vm508_vm3, %v4459_v25, %v10297_v37  ;;  %v4581_v1 = vrot.slane %v4450_v32, 1  ;;  %v4524_v61 = vsel %vm508_vm3, %v4460_v35, %v10327_v12 }
 0x4b0   : > { %v3791_v51 = vpop.f32.mrb[163].mxu1  ;;  %4762 = vmatprep.mubr.f32.mxu0 %v10744_v17  ;;  %7485 = vmatpush3.bf16.msra.mxu0 %v10202_v56  ;;  %v5419_v56 = vld [vmem:[%s12235_s3] sm:$0xff] }
 0x4b1   : > { %6913 = vmatmul.mubr.f32.gmra.mrb[12].mxu1 %v10616_v16  ;;  %7487 = vmatprep.subr.bf16.mxu0 %v10218_v59  ;;  %v5420_v16 = vld [vmem:[%s12235_s3 + $0x8] sm:$0xff] }
 0x4b2   : > { %6915 = vmatprep.mubr.f32.mxu1 %v10622_v54  ;;  %v3566_v11 = vpop.f32.mrb[132].mxu0 }
 0x4b3   : > { %v10765_v10 = vadd.f32 %v3791_v51, %v3566_v11  ;;  %v3568_v8 = vpop.f32.mrb[133].mxu0  ;;  %v6730_v45 = vpop.f32.mrb[164].mxu1  ;;  %4763 = vmatmul.mubr.f32.gmra.mrb[238].mxu0 %v4506_v13 }
 0x4b4   : > { %v3801_v55 = vpop.f32.mrb[165].mxu1  ;;  %4767 = vmatprep.mubr.f32.mxu0 %v10286_v7  ;;  %7489 = vmatpush3.bf16.msra.mxu0 %v10218_v59  ;;  %v10780_v7 = vld [vmem:[#allocation3 + $0x208] sm:$0xff]  ;;  %v10782_v59 = vld [vmem:[#allocation3 + $0x210] sm:$0xff] }
 0x4b5   : > { %6916 = vmatmul.mubr.f32.gmra.mrb[14].mxu1 %v10640_v47  ;;  %v7490_v47 = vpack.c.bf16 %v5420_v16, %v5419_v56  ;;  %v4549_v37 = vrot.slane %v10780_v7, 1  ;;  %v5426_v56 = vld [vmem:[%s12235_s3 + $0x38] sm:$0xff] }
 0x4b6   : > { %6918 = vmatprep.mubr.f32.mxu1 %v10645_v20  ;;  %v3571_v54 = vpop.f32.mrb[134].mxu0  ;;  %v4565_v20 = vrot.slane %v10782_v59, 1 }
 0x4b7   : > { %v10784_v9 = vadd.f32 %v6727_v41, %v3571_v54  ;;  %v3573_v50 = vpop.f32.mrb[135].mxu0  ;;  %v10786_v34 = vpop.f32.mrb[166].mxu1  ;;  %4768 = vmatmul.mubr.f32.gmra.mrb[240].mxu0 %v4523_v27  ;;  %7491 = vmatprep.subr.bf16.mxu1 %v7490_v47 }
 0x4b8   : > { %v3811_v29 = vpop.f32.mrb[167].mxu1  ;;  %4772 = vmatprep.mubr.f32.mxu0 %v10299_v21  ;;  %7493 = vmatpush3.bf16.msra.mxu1 %v7490_v47  ;;  %v10798_v21 = vld [vmem:[#allocation2] sm:$0xff]  ;;  %v4597_v12 = vsel %vm589_vm2, %v4565_v20, %v4581_v1  ;;  %v12472_v1 = vld [vmem:[#allocation22_spill] sm:$0xff] }
 0x4b9   : > { %6919 = vmatmul.mubr.f32.gmra.mrb[16].mxu1 %v10663_v60  ;;  %v4550_v60 = vrot.slane %v10798_v21, 1 }
 0x4ba   : > { %6921 = vmatprep.mubr.f32.mxu1 %v10668_v57  ;;  %v3576_v22 = vpop.f32.mrb[136].mxu0  ;;  %v5422_v57 = vld [vmem:[%s12235_s3 + $0x18] sm:$0xff] }
 0x4bb   : > { %v10793_v46 = vadd.f32 %v3801_v55, %v3576_v22  ;;  %v3578_v2 = vpop.f32.mrb[137].mxu0  ;;  %v10795_v26 = vpop.f32.mrb[168].mxu1  ;;  %4773 = vmatmul.mubr.f32.gmra.mrb[242].mxu0 %v10324_v44  ;;  %v7494_v6 = vpack.c.bf16 %v5422_v57, %v5421_v31  ;;  %v4613_v44 = vsel %vm589_vm2, %v4549_v37, %v4565_v20  ;;  %v5428_v37 = vld [vmem:[%s12235_s3 + $0x48] sm:$0xff] }
 0x4bc   : > { %v3821_v23 = vpop.f32.mrb[169].mxu1  ;;  %4777 = vmatprep.mubr.f32.mxu0 %v10314_v39  ;;  %v4415_v39 = vld [vmem:[#allocation3 + $0x100] sm:$0xff] }
 0x4bd   : > { %6922 = vmatmul.mubr.f32.gmra.mrb[18].mxu1 %v10683_v49  ;;  %7495 = vmatprep.subr.bf16.mxu1 %v7494_v6  ;;  %v5423_v49 = vld [vmem:[%s12235_s3 + $0x20] sm:$0xff]  ;;  %v4461_v25 = vrot.slane %v4415_v39, 7 }
 0x4be   : > { %6924 = vmatprep.mubr.f32.mxu1 %v4613_v44  ;;  %v3581_v0 = vpop.f32.mrb[138].mxu0  ;;  %7497 = vmatpush3.bf16.msra.mxu1 %v7494_v6  ;;  %v7498_v11 = vpack.c.bf16 %v5424_v48, %v5423_v49  ;;  %v12473_v49 = vld [vmem:[#allocation25_spill] sm:$0xff] }
 0x4bf   : > { %v10814_v28 = vadd.f32 %v6730_v45, %v3581_v0  ;;  %v3583_v14 = vpop.f32.mrb[139].mxu0  ;;  %v10816_v41 = vpop.f32.mrb[170].mxu1  ;;  %4778 = vmatmul.mubr.f32.gmra.mrb[244].mxu0 %v4524_v61  ;;  %v4423_v61 = vld [vmem:[#allocation3 + $0x140] sm:$0xff] }
 0x4c0   : > { %v10824_v51 = vpop.f32.mrb[171].mxu1  ;;  %4782 = vmatprep.mubr.f32.mxu0 %v10331_v38  ;;  %7499 = vmatprep.subr.bf16.mxu1 %v7498_v11  ;;  %v5425_v38 = vld [vmem:[%s12235_s3 + $0x30] sm:$0xff]  ;;  %v5432_v14 = vld [vmem:[%s12235_s3 + $0x68] sm:$0xff] }
 0x4c1   : > { %6925 = vmatmul.mubr.f32.gmra.mrb[20].mxu1 %v4597_v12  ;;  %v7502_v54 = vpack.c.bf16 %v5426_v56, %v5425_v38  ;;  %v4463_v12 = vrot.slane %v4423_v61, 7  ;;  %v5433_v38 = vld [vmem:[%s12235_s3 + $0x70] sm:$0xff]  ;;  %v5434_v56 = vld [vmem:[%s12235_s3 + $0x78] sm:$0xff] }
 0x4c2   : > { %v3586_v13 = vpop.f32.mrb[140].mxu0  ;;  %6927 = vmatprep.mubr.f32.mxu1 %v4550_v60  ;;  %7501 = vmatpush3.bf16.msra.mxu1 %v7498_v11  ;;  %v12478_v61 = vld [vmem:[#allocation15_spill] sm:$0xff] }
 0x4c3   : > { %v10829_v8 = vadd.f32 %v3811_v29, %v3586_v13  ;;  %v3588_v45 = vpop.f32.mrb[141].mxu0  ;;  %v10831_v55 = vpop.f32.mrb[172].mxu1  ;;  %4783 = vmatmul.mubr.f32.gmra.mrb[246].mxu0 %v10352_v4  ;;  %v4525_v4 = vsel %vm508_vm3, %v4461_v25, %v10355_v24  ;;  %7503 = vmatprep.subr.bf16.mxu1 %v7502_v54  ;;  %v4419_v29 = vld [vmem:[#allocation3 + $0x120] sm:$0xff] }
 0x4c4   : > { %v10840_v16 = vpop.f32.mrb[173].mxu1  ;;  %4787 = vmatprep.mubr.f32.mxu0 %v10344_v52  ;;  %v5427_v52 = vld [vmem:[%s12235_s3 + $0x40] sm:$0xff]  ;;  %v4462_v32 = vrot.slane %v4419_v29, 7  ;;  %v12474_v45 = vld [vmem:[#allocation27_spill] sm:$0xff]  ;;  %v12476_v29 = vld [vmem:[#allocation26_spill] sm:$0xff] }
 0x4c5   : > { %6928 = vmatmul.mubr.f32.gmra.mrb[22].mxu1 %v4550_v60  ;;  %v7506_v24 = vpack.c.bf16 %v5428_v37, %v5427_v52  ;;  %v5429_v60 = vld [vmem:[%s12235_s3 + $0x50] sm:$0xff]  ;;  %v4527_v52 = vsel %vm508_vm3, %v4463_v12, %v12476_v29  ;;  %v12480_v12 = vld [vmem:[#allocation14_spill] sm:$0xff] }
 0x4c6   : > { %v3591_v27 = vpop.f32.mrb[142].mxu0  ;;  %7505 = vmatpush3.bf16.msra.mxu1 %v7502_v54  ;;  %v4526_v6 = vsel %vm508_vm3, %v4462_v32, %v12472_v1  ;;  %v4427_v32 = vld [vmem:[#allocation3 + $0x160] sm:$0xff] }
 0x4c7   : > { %v10847_v47 = vadd.f32 %v10786_v34, %v3591_v27  ;;  %v3593_v50 = vpop.f32.mrb[143].mxu0  ;;  %v10849_v53 = vpop.f32.mrb[174].mxu1  ;;  %4788 = vmatmul.mubr.f32.gmra.mrb[248].mxu0 %v4525_v4  ;;  %7507 = vmatprep.subr.bf16.mxu1 %v7506_v24  ;;  %v12475_v27 = vld [vmem:[#allocation24_spill] sm:$0xff]  ;;  %v5387_v4 = vld [vmem:[#allocation2 + $0x28] sm:$0xff]  ;;  %v4464_v1 = vrot.slane %v4427_v32, 7 }
 0x4c8   : > { %v10857_v20 = vpop.f32.mrb[175].mxu1  ;;  %4792 = vmatprep.mubr.f32.mxu0 %v10358_v33  ;;  %v5430_v33 = vld [vmem:[%s12235_s3 + $0x58] sm:$0xff]  ;;  %6962 = vmatprep.mubr.f32.mxu1 %v5387_v4  ;;  %v12481_v4 = vld [vmem:[#allocation17_spill] sm:$0xff] }
 0x4c9   : > { %v7510_v57 = vpack.c.bf16 %v5430_v33, %v5429_v60  ;;  %v12477_v33 = vld [vmem:[#allocation29_spill] sm:$0xff] }
 0x4ca   : > { %v3596_v34 = vpop.f32.mrb[144].mxu0  ;;  %7509 = vmatpush3.bf16.msra.mxu1 %v7506_v24 }
 0x4cb   : > { %v10860_v22 = vadd.f32 %v3821_v23, %v3596_v34  ;;  %v3598_v35 = vpop.f32.mrb[145].mxu0  ;;  %v10862_v2 = vpop.f32.mrb[176].mxu1  ;;  %4793 = vmatmul.mubr.f32.gmra.mrb[250].mxu0 %v10384_v3  ;;  %7511 = vmatprep.subr.bf16.mxu1 %v7510_v57 }
 0x4cc   : > { %v10871_v31 = vpop.f32.mrb[177].mxu1  ;;  %4797 = vmatprep.mubr.f32.mxu0 %v10371_v42  ;;  %v5431_v42 = vld [vmem:[%s12235_s3 + $0x60] sm:$0xff]  ;;  %v5388_v35 = vld [vmem:[#allocation2 + $0x30] sm:$0xff] }
 0x4ce   : > { %v3601_v23 = vpop.f32.mrb[146].mxu0  ;;  %7513 = vmatpush3.bf16.msra.mxu1 %v7510_v57  ;;  %v5389_v57 = vld [vmem:[#allocation2 + $0x48] sm:$0xff] }
 0x4cf   : > { %v10878_v3 = vadd.f32 %v10795_v26, %v3601_v23  ;;  %v3603_v44 = vpop.f32.mrb[147].mxu0  ;;  %v10880_v0 = vpop.f32.mrb[178].mxu1  ;;  %4798 = vmatmul.mubr.f32.gmra.mrb[252].mxu0 %v4526_v6  ;;  %v7514_v26 = vpack.c.bf16 %v5432_v14, %v5431_v42  ;;  %v5390_v42 = vld [vmem:[#allocation2 + $0x50] sm:$0xff] }
 0x4d0   : > { %v10888_v39 = vpop.f32.mrb[179].mxu1  ;;  %4802 = vmatprep.mubr.f32.mxu0 %v12473_v49  ;;  %v12479_v49 = vld [vmem:[#allocation28_spill] sm:$0xff] }
 0x4d1   : > { %7515 = vmatprep.subr.bf16.mxu1 %v7514_v26 }
 0x4d2   : > { %v3606_v48 = vpop.f32.mrb[148].mxu0  ;;  %7517 = vmatpush3.bf16.msra.mxu1 %v7514_v26  ;;  %v5391_v26 = vld [vmem:[#allocation2 + $0x68] sm:$0xff] }
 0x4d3   : > { %v10892_v11 = vadd.f32 %v10824_v51, %v3606_v48  ;;  %v3608_v13 = vpop.f32.mrb[149].mxu0  ;;  %v10894_v25 = vpop.f32.mrb[180].mxu1  ;;  %4803 = vmatmul.mubr.f32.gmra.mrb[254].mxu0 %v12474_v45  ;;  %v7518_v51 = vpack.c.bf16 %v5434_v56, %v5433_v38  ;;  %v4431_v56 = vld [vmem:[#allocation3 + $0x180] sm:$0xff] }
 0x4d4   : > { %v10903_v54 = vpop.f32.mrb[181].mxu1  ;;  %4807 = vmatprep.mubr.f32.mxu0 %v12475_v27  ;;  %v4528_v13 = vsel %vm508_vm3, %v4464_v1, %v12480_v12  ;;  %v5392_v27 = vld [vmem:[#allocation2 + $0x70] sm:$0xff]  ;;  %v5395_v1 = vld [vmem:[#allocation2 + $0xa8] sm:$0xff] }
 0x4d5   : > { %7519 = vmatprep.subr.bf16.mxu1 %v7518_v51  ;;  %v5396_v12 = vld [vmem:[#allocation2 + $0xb0] sm:$0xff] }
 0x4d6   : > { %v3611_v50 = vpop.f32.mrb[150].mxu0  ;;  %7521 = vmatpush3.bf16.msra.mxu1 %v7518_v51 }
 0x4d7   : > { %v10910_v37 = vadd.f32 %v10816_v41, %v3611_v50  ;;  %v3613_v24 = vpop.f32.mrb[151].mxu0  ;;  %v10912_v34 = vpop.f32.mrb[182].mxu1  ;;  %4808 = vmatmul.mubr.f32.gmra.mrb[0].mxu0 %v4527_v52  ;;  %v5393_v50 = vld [vmem:[#allocation2 + $0x88] sm:$0xff]  ;;  %v4465_v52 = vrot.slane %v4431_v56, 7 }
 0x4d8   : > { %v10914_v60 = vpop.f32.mrb[183].mxu1  ;;  %4812 = vmatprep.mubr.f32.mxu0 %v12477_v33  ;;  %v5394_v33 = vld [vmem:[#allocation2 + $0x90] sm:$0xff] }
 0x4d9   : > { %6963 = vmatmul.mubr.f32.vlgmr.msra.gmra.mrb[24].mxu1 %v5388_v35  ;;  %v12482_v35 = vld [vmem:[#allocation16_spill] sm:$0xff] }
 0x4da   : > { %v3616_v23 = vpop.f32.mrb[152].mxu0  ;;  %6965 = vmatprep.mubr.f32.mxu1 %v5389_v57 }
 0x4db   : > { %v10918_v6 = vadd.f32 %v10840_v16, %v3616_v23  ;;  %v3618_v41 = vpop.f32.mrb[153].mxu0  ;;  %v10920_v44 = vpop.f32.mrb[184].mxu1  ;;  %4813 = vmatmul.mubr.f32.gmra.mrb[2].mxu0 %v12478_v61  ;;  %v12483_v23 = vld [vmem:[#allocation19_spill] sm:$0xff]  ;;  %v12484_v61 = vld [vmem:[#allocation30_spill] sm:$0xff] }
 0x4dc   : > { %v10923_v14 = vpop.f32.mrb[185].mxu1  ;;  %4817 = vmatprep.mubr.f32.mxu0 %v12479_v49 }
 0x4dd   : > { %6966 = vmatmul.mubr.f32.gmra.mrb[26].mxu1 %v5390_v42  ;;  %v4529_v42 = vsel %vm508_vm3, %v4465_v52, %v12484_v61  ;;  %v5398_v52 = vld [vmem:[#allocation2 + $0xd0] sm:$0xff]  ;;  %v12488_v61 = vld [vmem:[#allocation34_spill] sm:$0xff] }
 0x4de   : > { %v3621_v48 = vpop.f32.mrb[154].mxu0  ;;  %6968 = vmatprep.mubr.f32.mxu1 %v5391_v26 }
 0x4df   : > { %v10930_v16 = vadd.f32 %v10831_v55, %v3621_v48  ;;  %v3623_v45 = vpop.f32.mrb[155].mxu0  ;;  %v10932_v38 = vpop.f32.mrb[186].mxu1  ;;  %4818 = vmatmul.mubr.f32.gmra.mrb[4].mxu0 %v4528_v13  ;;  %v4435_v48 = vld [vmem:[#allocation3 + $0x1a0] sm:$0xff] }
 0x4e0   : > { %v10934_v51 = vpop.f32.mrb[187].mxu1  ;;  %4822 = vmatprep.mubr.f32.mxu0 %v12481_v4  ;;  %v12485_v45 = vld [vmem:[#allocation31_spill] sm:$0xff] }
 0x4e1   : > { %6969 = vmatmul.mubr.f32.gmra.mrb[28].mxu1 %v5392_v27  ;;  %v4466_v27 = vrot.slane %v4435_v48, 7  ;;  %v4439_v48 = vld [vmem:[#allocation3 + $0x1c0] sm:$0xff] }
 0x4e2   : > { %v3626_v29 = vpop.f32.mrb[156].mxu0  ;;  %6971 = vmatprep.mubr.f32.mxu1 %v5393_v50 }
 0x4e3   : > { %v10938_v24 = vadd.f32 %v10857_v20, %v3626_v29  ;;  %v3628_v55 = vpop.f32.mrb[157].mxu0  ;;  %v10940_v32 = vpop.f32.mrb[188].mxu1  ;;  %4823 = vmatmul.mubr.f32.gmra.mrb[6].mxu0 %v12482_v35  ;;  %v5397_v29 = vld [vmem:[#allocation2 + $0xc8] sm:$0xff]  ;;  %v12487_v35 = vld [vmem:[#allocation32_spill] sm:$0xff] }
 0x4e4   : > { %v10943_v57 = vpop.f32.mrb[189].mxu1  ;;  %4827 = vmatprep.mubr.f32.mxu0 %v12483_v23 }
 0x4e5   : > { %6972 = vmatmul.mubr.f32.gmra.mrb[30].mxu1 %v5394_v33 }
 0x4e6   : > { %v3631_v41 = vpop.f32.mrb[158].mxu0  ;;  %6974 = vmatprep.mubr.f32.mxu1 %v5395_v1  ;;  %v5399_v1 = vld [vmem:[#allocation2 + $0xe8] sm:$0xff] }
 0x4e7   : > { %v10950_v20 = vadd.f32 %v10849_v53, %v3631_v41  ;;  %v3633_v49 = vpop.f32.mrb[159].mxu0  ;;  %v10952_v26 = vpop.f32.mrb[190].mxu1  ;;  %4828 = vmatmul.mubr.f32.gmra.mrb[8].mxu0 %v4529_v42  ;;  %v12486_v53 = vld [vmem:[#allocation33_spill] sm:$0xff] }
 0x4e8   : > { %v10954_v13 = vpop.f32.mrb[191].mxu1  ;;  %4832 = vmatprep.mubr.f32.mxu0 %v12485_v45 }
 0x4e9   : > { %6975 = vmatmul.mubr.f32.gmra.mrb[32].mxu1 %v5396_v12  ;;  %v5400_v12 = vld [vmem:[#allocation2 + $0xf0] sm:$0xff] }
 0x4ea   : > { %v3636_v56 = vpop.f32.mrb[160].mxu0  ;;  %6977 = vmatprep.mubr.f32.mxu1 %v5397_v29 }
 0x4eb   : > { %v10958_v4 = vadd.f32 %v10871_v31, %v3636_v56  ;;  %v3638_v50 = vpop.f32.mrb[161].mxu0  ;;  %4833 = vmatmul.mubr.f32.gmra.mrb[10].mxu0 %v12486_v53  ;;  %v4530_v31 = vsel %vm508_vm3, %v4466_v27, %v12488_v61  ;;  %v12489_v56 = vld [vmem:[#allocation35_spill] sm:$0xff]  ;;  %v5401_v53 = vld [vmem:[#allocation2 + $0x108] sm:$0xff] }
 0x4ec   : > { %v4006_v55 = vpop.f32.mrb[192].mxu1  ;;  %4837 = vmatprep.mubr.f32.mxu0 %v12487_v35  ;;  %v5402_v35 = vld [vmem:[#allocation2 + $0x110] sm:$0xff]  ;;  %v5403_v61 = vld [vmem:[#allocation2 + $0x128] sm:$0xff] }
 0x4ed   : > { %v10963_v33 = vadd.f32 %v4006_v55, %v10748_v19  ;;  %v4008_v23 = vpop.f32.mrb[193].mxu1  ;;  %6978 = vmatmul.mubr.f32.gmra.mrb[34].mxu1 %v5398_v52  ;;  %v4467_v55 = vrot.slane %v4439_v48, 7  ;;  %v12490_v52 = vld [vmem:[#allocation37_spill] sm:$0xff] }
 0x4ee   : > { %v3641_v41 = vpop.f32.mrb[162].mxu0  ;;  %6980 = vmatprep.mubr.f32.mxu1 %v5399_v1  ;;  %v12491_v1 = vld [vmem:[#allocation36_spill] sm:$0xff] }
 0x4ef   : > { %v10969_v42 = vadd.f32 %v10862_v2, %v3641_v41  ;;  %v3643_v49 = vpop.f32.mrb[163].mxu0  ;;  %4838 = vmatmul.mubr.f32.gmra.mrb[12].mxu0 %v4530_v31 }
 0x4f0   : > { %v4011_v45 = vpop.f32.mrb[194].mxu1  ;;  %4842 = vmatprep.mubr.f32.mxu0 %v12489_v56  ;;  %v4531_v49 = vsel %vm508_vm3, %v4467_v55, %v10607_v63  ;;  %v12493_v55 = vld [vmem:[#allocation40_spill] sm:$0xff] }
 0x4f1   : > { %v10973_v19 = vadd.f32 %v4011_v45, %v10756_v18  ;;  %v4013_v50 = vpop.f32.mrb[195].mxu1  ;;  %6981 = vmatmul.mubr.f32.gmra.mrb[36].mxu1 %v5400_v12  ;;  %v4443_v12 = vld [vmem:[#allocation3 + $0x1e0] sm:$0xff]  ;;  %v5404_v45 = vld [vmem:[#allocation2 + $0x130] sm:$0xff] }
 0x4f2   : > { %v3646_v29 = vpop.f32.mrb[164].mxu0  ;;  %6983 = vmatprep.mubr.f32.mxu1 %v5401_v53  ;;  %v12492_v50 = vld [vmem:[#allocation38_spill] sm:$0xff] }
 0x4f3   : > { %v10976_v27 = vadd.f32 %v10888_v39, %v3646_v29  ;;  %v3648_v2 = vpop.f32.mrb[165].mxu0  ;;  %4843 = vmatmul.mubr.f32.gmra.mrb[14].mxu0 %v12490_v52  ;;  %v5405_v29 = vld [vmem:[#allocation2 + $0x148] sm:$0xff]  ;;  %v4468_v52 = vrot.slane %v4443_v12, 7  ;;  %v4447_v12 = vld [vmem:[#allocation3 + $0x200] sm:$0xff] }
 0x4f4   : > { %v4016_v23 = vpop.f32.mrb[196].mxu1  ;;  %4847 = vmatprep.mubr.f32.mxu0 %v12491_v1  ;;  %v12494_v1 = vld [vmem:[#allocation39_spill] sm:$0xff] }
 0x4f5   : > { %v10981_v41 = vadd.f32 %v4016_v23, %v10765_v10  ;;  %v4018_v18 = vpop.f32.mrb[197].mxu1  ;;  %6984 = vmatmul.mubr.f32.gmra.mrb[38].mxu1 %v5402_v35  ;;  %v5406_v35 = vld [vmem:[#allocation2 + $0x150] sm:$0xff] }
 0x4f6   : > { %v3651_v31 = vpop.f32.mrb[166].mxu0  ;;  %6986 = vmatprep.mubr.f32.mxu1 %v5403_v61  ;;  %v5407_v61 = vld [vmem:[#allocation2 + $0x168] sm:$0xff] }
 0x4f7   : > { %v10987_v39 = vadd.f32 %v10880_v0, %v3651_v31  ;;  %v3653_v48 = vpop.f32.mrb[167].mxu0  ;;  %4848 = vmatmul.mubr.f32.gmra.mrb[16].mxu0 %v4531_v49  ;;  %v4532_v49 = vsel %vm508_vm3, %v4468_v52, %v10656_v40  ;;  %v4485_v40 = vrot.slane %v10780_v7, 7 }
 0x4f8   : > { %v4021_v56 = vpop.f32.mrb[198].mxu1  ;;  %4852 = vmatprep.mubr.f32.mxu0 %v12492_v50 }
 0x4f9   : > { %v10991_v10 = vadd.f32 %v4021_v56, %v10784_v9  ;;  %v4023_v53 = vpop.f32.mrb[199].mxu1  ;;  %6987 = vmatmul.mubr.f32.gmra.mrb[40].mxu1 %v5404_v45  ;;  %v5408_v45 = vld [vmem:[#allocation2 + $0x170] sm:$0xff] }
 0x4fa   : > { %v3656_v2 = vpop.f32.mrb[168].mxu0  ;;  %6989 = vmatprep.mubr.f32.mxu1 %v5405_v29  ;;  %v5409_v53 = vld [vmem:[#allocation2 + $0x188] sm:$0xff] }
 0x4fb   : > { %v10994_v63 = vadd.f32 %v10903_v54, %v3656_v2  ;;  %v3658_v0 = vpop.f32.mrb[169].mxu0  ;;  %4853 = vmatmul.mubr.f32.gmra.mrb[18].mxu0 %v12493_v55  ;;  %v4469_v2 = vrot.slane %v4447_v12, 7 }
 0x4fc   : > { %v4026_v23 = vpop.f32.mrb[200].mxu1  ;;  %4857 = vmatprep.mubr.f32.mxu0 %v12494_v1  ;;  %v5410_v0 = vld [vmem:[#allocation2 + $0x190] sm:$0xff] }
 0x4fd   : > { %v10999_v18 = vadd.f32 %v4026_v23, %v10793_v46  ;;  %v4028_v9 = vpop.f32.mrb[201].mxu1  ;;  %6990 = vmatmul.mubr.f32.gmra.mrb[42].mxu1 %v5406_v35  ;;  %v5411_v35 = vld [vmem:[#allocation2 + $0x1a8] sm:$0xff]  ;;  %v4533_v1 = vsel %vm508_vm3, %v4469_v2, %v4485_v40  ;;  %v4551_v2 = vrot.slane %v10687_v5, 1 }
 0x4fe   : > { %v3661_v31 = vpop.f32.mrb[170].mxu0  ;;  %6992 = vmatprep.mubr.f32.mxu1 %v5407_v61  ;;  %v5412_v61 = vld [vmem:[#allocation2 + $0x1b0] sm:$0xff] }
 0x4ff   : > { %v11005_v54 = vadd.f32 %v10894_v25, %v3661_v31  ;;  %v3663_v48 = vpop.f32.mrb[171].mxu0  ;;  %4858 = vmatmul.mubr.f32.gmra.mrb[20].mxu0 %v4532_v49 }
 0x500   : > { %v4031_v56 = vpop.f32.mrb[202].mxu1  ;;  %4862 = vmatprep.mubr.f32.mxu0 %v10634_v15  ;;  %v5413_v48 = vld [vmem:[#allocation2 + $0x1c8] sm:$0xff] }
 0x501   : > { %v11009_v46 = vadd.f32 %v4031_v56, %v10814_v28  ;;  %v4033_v50 = vpop.f32.mrb[203].mxu1  ;;  %6993 = vmatmul.mubr.f32.gmra.mrb[44].mxu1 %v5408_v45 }
 0x502   : > { %v3666_v29 = vpop.f32.mrb[172].mxu0  ;;  %6995 = vmatprep.mubr.f32.mxu1 %v5409_v53 }
 0x503   : > { %v11013_v25 = vadd.f32 %v10914_v60, %v3666_v29  ;;  %v3668_v52 = vpop.f32.mrb[173].mxu0  ;;  %4863 = vmatmul.mubr.f32.gmra.mrb[22].mxu0 %v10692_v36  ;;  %v4501_v60 = vrot.slane %v10782_v59, 7  ;;  %v4535_v29 = vrot.slane %v10670_v62, 1  ;;  %v4536_v62 = vrot.slane %v10701_v58, 1  ;;  %v12495_v58 = vld [vmem:[#allocation20_spill] sm:$0xff] }
 0x504   : > { %v4036_v55 = vpop.f32.mrb[204].mxu1  ;;  %4867 = vmatprep.mubr.f32.mxu0 %v10780_v7  ;;  %v5414_v52 = vld [vmem:[#allocation2 + $0x1d0] sm:$0xff] }
 0x505   : > { %v11018_v15 = vadd.f32 %v4036_v55, %v10829_v8  ;;  %v4038_v28 = vpop.f32.mrb[205].mxu1  ;;  %6996 = vmatmul.mubr.f32.gmra.mrb[46].mxu1 %v5410_v0  ;;  %v4470_v8 = vrot.slane %v10798_v21, 7  ;;  %v4517_v45 = vsel %vm508_vm3, %v4485_v40, %v4501_v60  ;;  %v5415_v0 = vld [vmem:[#allocation2 + $0x1e8] sm:$0xff]  ;;  %v5416_v60 = vld [vmem:[#allocation2 + $0x1f0] sm:$0xff] }
 0x506   : > { %v3671_v23 = vpop.f32.mrb[174].mxu0  ;;  %6998 = vmatprep.mubr.f32.mxu1 %v5411_v35 }
 0x507   : > { %v11024_v9 = vadd.f32 %v10912_v34, %v3671_v23  ;;  %v3673_v36 = vpop.f32.mrb[175].mxu0  ;;  %4868 = vmatmul.mubr.f32.gmra.mrb[24].mxu0 %v4533_v1  ;;  %v4599_v23 = vsel %vm589_vm2, %v4535_v29, %v4551_v2  ;;  %v4398_v1 = vld [vmem:[#allocation3 + $0x78] sm:$0xff] }
 0x508   : > { %v4041_v7 = vpop.f32.mrb[206].mxu1  ;;  %4872 = vmatprep.mubr.f32.mxu0 %v10782_v59 }
 0x509   : > { %v11029_v31 = vadd.f32 %v4041_v7, %v10847_v47  ;;  %v4043_v49 = vpop.f32.mrb[207].mxu1  ;;  %6999 = vmatmul.mubr.f32.gmra.mrb[48].mxu1 %v5412_v61  ;;  %v12496_v7 = vrot.slane %v12495_v58, 1 }
 0x50a   : > { %v3676_v12 = vpop.f32.mrb[176].mxu0  ;;  %7001 = vmatprep.mubr.f32.mxu1 %v5413_v48  ;;  %v4568_v49 = vrot.slane %v4398_v1, 1 }
 0x50b   : > { %v11034_v34 = vadd.f32 %v10923_v14, %v3676_v12  ;;  %v3678_v56 = vpop.f32.mrb[177].mxu0  ;;  %4873 = vmatmul.mubr.f32.gmra.mrb[26].mxu0 %v4517_v45  ;;  %v12497_v45 = vld [vmem:[#allocation23_spill] sm:$0xff] }
 0x50c   : > { %v4046_v50 = vpop.f32.mrb[208].mxu1  ;;  %4877 = vmatprep.mubr.f32.mxu0 %v10798_v21  ;;  %v4600_v56 = vsel %vm589_vm2, %v4536_v62, %v12497_v45 }
 0x50d   : > { %v11038_v59 = vadd.f32 %v4046_v50, %v10860_v22  ;;  %v4048_v47 = vpop.f32.mrb[209].mxu1  ;;  %7002 = vmatmul.mubr.f32.gmra.mrb[50].mxu1 %v5414_v52  ;;  %v5418_v50 = vld [vmem:[#allocation2 + $0x210] sm:$0xff]  ;;  %v4538_v52 = vrot.slane %v10735_v30, 1 }
 0x50e   : > { %v3681_v53 = vpop.f32.mrb[178].mxu0  ;;  %7004 = vmatprep.mubr.f32.mxu1 %v5415_v0  ;;  %v4554_v0 = vrot.slane %v10744_v17, 1 }
 0x50f   : > { %v11043_v40 = vadd.f32 %v10920_v44, %v3681_v53  ;;  %v3683_v14 = vpop.f32.mrb[179].mxu0  ;;  %4878 = vmatmul.mubr.f32.gmra.mrb[28].mxu0 %v4470_v8 }
 0x510   : > { %v4051_v55 = vpop.f32.mrb[210].mxu1  ;;  %4882 = vmatprep.mubr.f32.mxu0 %v10798_v21  ;;  %v5417_v21 = vld [vmem:[#allocation2 + $0x208] sm:$0xff] }
 0x511   : > { %v11047_v22 = vadd.f32 %v4051_v55, %v10878_v3  ;;  %v4053_v28 = vpop.f32.mrb[211].mxu1  ;;  %7005 = vmatmul.mubr.f32.gmra.mrb[52].mxu1 %v5416_v60  ;;  %v12499_v60 = vld [vmem:[#allocation18_spill] sm:$0xff] }
 0x512   : > { %v3686_v35 = vpop.f32.mrb[180].mxu0  ;;  %7007 = vmatprep.mubr.f32.mxu1 %v5417_v21 }
 0x513   : > { %v11051_v5 = vadd.f32 %v10934_v51, %v3686_v35  ;;  %v3688_v44 = vpop.f32.mrb[181].mxu0  ;;  %4883 = vmatmul.mubr.f32.gmra.mrb[30].mxu0 %v4470_v8  ;;  %v4583_v51 = vsel %vm589_vm2, %v4551_v2, %v12496_v7  ;;  %v4406_v35 = vld [vmem:[#allocation3 + $0xb8] sm:$0xff] }
 0x514   : > { %v4056_v36 = vpop.f32.mrb[212].mxu1  ;;  %6882 = vmatprep.mubr.f32.mxu0 %v4599_v23  ;;  %v4570_v21 = vrot.slane %v4406_v35, 1 }
 0x515   : > { %v11056_v3 = vadd.f32 %v4056_v36, %v10892_v11  ;;  %v4058_v61 = vpop.f32.mrb[213].mxu1  ;;  %v4402_v11 = vld [vmem:[#allocation3 + $0x98] sm:$0xff]  ;;  %7008 = vmatmul.mubr.f32.gmra.mrb[54].mxu1 %v5418_v50  ;;  %v4602_v36 = vsel %vm589_vm2, %v4538_v52, %v4554_v0 }
 0x516   : > { %v3691_v8 = vpop.f32.mrb[182].mxu0  ;;  %v4569_v14 = vrot.slane %v4402_v11, 1 }
 0x517   : > { %v11063_v48 = vadd.f32 %v10932_v38, %v3691_v8  ;;  %v3693_v12 = vpop.f32.mrb[183].mxu0  ;;  %6883 = vmatmul.mubr.f32.vlgmr.msra.gmra.mrb[32].mxu0 %v4583_v51  ;;  %v4584_v38 = vsel %vm589_vm2, %v12497_v45, %v4568_v49  ;;  %v4586_v51 = vsel %vm589_vm2, %v4554_v0, %v4570_v21 }
 0x518   : > { %v4061_v47 = vpop.f32.mrb[214].mxu1  ;;  %6885 = vmatprep.mubr.f32.mxu0 %v4600_v56  ;;  %v4585_v30 = vsel %vm589_vm2, %v12499_v60, %v4569_v14 }
 0x519   : > { %v11069_v53 = vadd.f32 %v4061_v47, %v10910_v37  ;;  %v4063_v29 = vpop.f32.mrb[215].mxu1  ;;  %v12498_v37 = vld [vmem:[#allocation21_spill] sm:$0xff] }
 0x51a   : > { %v3696_v2 = vpop.f32.mrb[184].mxu0 }
 0x51b   : > { %v11077_v55 = vadd.f32 %v10943_v57, %v3696_v2  ;;  %v3698_v28 = vpop.f32.mrb[185].mxu0  ;;  %6886 = vmatmul.mubr.f32.gmra.mrb[34].mxu0 %v4584_v38 }
 0x51c   : > { %v4066_v62 = vpop.f32.mrb[216].mxu1  ;;  %6888 = vmatprep.mubr.f32.mxu0 %v12498_v37 }
 0x51d   : > { %v11081_v44 = vadd.f32 %v4066_v62, %v10918_v6  ;;  %v4068_v23 = vpop.f32.mrb[217].mxu1 }
 0x51e   : > { %v3701_v1 = vpop.f32.mrb[186].mxu0 }
 0x51f   : > { %v11087_v17 = vadd.f32 %v10940_v32, %v3701_v1  ;;  %v3703_v57 = vpop.f32.mrb[187].mxu0  ;;  %6889 = vmatmul.mubr.f32.gmra.mrb[36].mxu0 %v4585_v30 }
 0x520   : > { %v4071_v61 = vpop.f32.mrb[218].mxu1  ;;  %6891 = vmatprep.mubr.f32.mxu0 %v4602_v36 }
 0x521   : > { %v4072_v6 = vadd.f32 %v4071_v61, %v10930_v16  ;;  %v4073_v58 = vpop.f32.mrb[219].mxu1 }
 0x522   : > { %v3706_v7 = vpop.f32.mrb[188].mxu0 }
 0x523   : > { %v11095_v8 = vadd.f32 %v10954_v13, %v3706_v7  ;;  %v3708_v49 = vpop.f32.mrb[189].mxu0  ;;  %6892 = vmatmul.mubr.f32.gmra.mrb[38].mxu0 %v4586_v51 }
 0x524   : > { %v4076_v32 = vpop.f32.mrb[220].mxu1 }
 0x525   : > { %v4077_v12 = vadd.f32 %v4076_v32, %v10938_v24  ;;  %v4078_v45 = vpop.f32.mrb[221].mxu1 }
 0x526   : > { %v3711_v56 = vpop.f32.mrb[190].mxu0 }
 0x527   : > { %v11099_v11 = vadd.f32 %v10952_v26, %v3711_v56  ;;  %v3713_v50 = vpop.f32.mrb[191].mxu0 }
 0x528   : > { %v4081_v16 = vpop.f32.mrb[222].mxu1 }
 0x529   : > { %v4082_v47 = vadd.f32 %v4081_v16, %v10950_v20  ;;  %v4083_v29 = vpop.f32.mrb[223].mxu1 }
 0x52a   : > { %v6804_v2 = vpop.f32.mrb[192].mxu0 }
 0x52b   : > { %v11103_v38 = vadd.f32 %v6804_v2, %v10973_v19  ;;  %v4231_v13 = vpop.f32.mrb[193].mxu0 }
 0x52c   : > { %v4086_v14 = vpop.f32.mrb[224].mxu1  ;;  %v11106_v52 = vadd.f32 %v4231_v13, %v10963_v33 }
 0x52d   : > { %v4087_v24 = vadd.f32 %v4086_v14, %v10958_v4  ;;  %v4088_v0 = vpop.f32.mrb[225].mxu1 }
 0x52e   : > { %v6807_v28 = vpop.f32.mrb[194].mxu0 }
 0x52f   : > { %v11110_v26 = vadd.f32 %v6807_v28, %v10991_v10  ;;  %v4241_v35 = vpop.f32.mrb[195].mxu0 }
 0x530   : > { %v4091_v62 = vpop.f32.mrb[226].mxu1  ;;  %v11113_v20 = vadd.f32 %v4241_v35, %v10981_v41 }
 0x531   : > { %v4092_v19 = vadd.f32 %v4091_v62, %v10969_v42  ;;  %v4093_v37 = vpop.f32.mrb[227].mxu1 }
 0x532   : > { %v6810_v23 = vpop.f32.mrb[196].mxu0 }
 0x533   : > { %v11117_v1 = vadd.f32 %v6810_v23, %v11009_v46  ;;  %v4251_v33 = vpop.f32.mrb[197].mxu0 }
 0x534   : > { %v4096_v60 = vpop.f32.mrb[228].mxu1  ;;  %v11120_v4 = vadd.f32 %v4251_v33, %v10999_v18 }
 0x535   : > { %12500 = vst [vmem:[#allocation22_spill] sm:$0xff] %v11117_v1  ;;  %v4097_v10 = vadd.f32 %v4096_v60, %v10976_v27  ;;  %v4098_v30 = vpop.f32.mrb[229].mxu1 }
 0x536   : > { %12501 = vst [vmem:[#allocation25_spill] sm:$0xff] %v11120_v4  ;;  %v6813_v21 = vpop.f32.mrb[198].mxu0 }
 0x537   : > { %v11124_v57 = vadd.f32 %v6813_v21, %v11029_v31  ;;  %v4261_v41 = vpop.f32.mrb[199].mxu0 }
 0x538   : > { %v4101_v36 = vpop.f32.mrb[230].mxu1  ;;  %v11127_v42 = vadd.f32 %v4261_v41, %v11018_v15 }
 0x539   : > { %12502 = vst [vmem:[#allocation27_spill] sm:$0xff] %v11124_v57  ;;  %v4102_v46 = vadd.f32 %v4101_v36, %v10987_v39  ;;  %v4103_v61 = vpop.f32.mrb[231].mxu1 }
 0x53a   : > { %12503 = vst [vmem:[#allocation24_spill] sm:$0xff] %v11127_v42  ;;  %v6816_v58 = vpop.f32.mrb[200].mxu0 }
 0x53b   : > { %v11131_v7 = vadd.f32 %v6816_v58, %v11047_v22  ;;  %v4271_v18 = vpop.f32.mrb[201].mxu0 }
 0x53c   : > { %v4106_v51 = vpop.f32.mrb[232].mxu1  ;;  %v11134_v27 = vadd.f32 %v4271_v18, %v11038_v59 }
 0x53d   : > { %v4107_v31 = vadd.f32 %v4106_v51, %v10994_v63  ;;  %v4108_v49 = vpop.f32.mrb[233].mxu1 }
 0x53e   : > { %v6819_v32 = vpop.f32.mrb[202].mxu0 }
 0x53f   : > { %v11138_v45 = vadd.f32 %v6819_v32, %v11069_v53  ;;  %v4281_v15 = vpop.f32.mrb[203].mxu0 }
 0x540   : > { %v4111_v56 = vpop.f32.mrb[234].mxu1  ;;  %v11141_v39 = vadd.f32 %v4281_v15, %v11056_v3 }
 0x541   : > { %v4112_v22 = vadd.f32 %v4111_v56, %v11005_v54  ;;  %v4113_v50 = vpop.f32.mrb[235].mxu1 }
 0x542   : > { %v6822_v16 = vpop.f32.mrb[204].mxu0 }
 0x543   : > { %v11144_v29 = vadd.f32 %v6822_v16, %v4072_v6  ;;  %v4291_v59 = vpop.f32.mrb[205].mxu0 }
 0x544   : > { %v4116_v2 = vpop.f32.mrb[236].mxu1  ;;  %v11147_v63 = vadd.f32 %v4291_v59, %v11081_v44 }
 0x545   : > { %v4117_v13 = vadd.f32 %v4116_v2, %v11013_v25  ;;  %v4118_v53 = vpop.f32.mrb[237].mxu1 }
 0x546   : > { %v6825_v14 = vpop.f32.mrb[206].mxu0 }
 0x547   : > { %v11150_v0 = vadd.f32 %v6825_v14, %v4082_v47  ;;  %v4301_v28 = vpop.f32.mrb[207].mxu0 }
 0x548   : > { %v4121_v3 = vpop.f32.mrb[238].mxu1  ;;  %v11152_v35 = vadd.f32 %v4301_v28, %v4077_v12 }
 0x549   : > { %v4122_v54 = vadd.f32 %v4121_v3, %v11024_v9  ;;  %v4123_v62 = vpop.f32.mrb[239].mxu1 }
 0x54a   : > { %v6828_v6 = vpop.f32.mrb[208].mxu0 }
 0x54b   : > { %v11155_v37 = vadd.f32 %v6828_v6, %v4092_v19  ;;  %v4311_v23 = vpop.f32.mrb[209].mxu0 }
 0x54c   : > { %v4126_v33 = vpop.f32.mrb[240].mxu1  ;;  %v11157_v44 = vadd.f32 %v4311_v23, %v4087_v24 }
 0x54d   : > { %v4127_v25 = vadd.f32 %v4126_v33, %v11034_v34  ;;  %v4128_v60 = vpop.f32.mrb[241].mxu1 }
 0x54e   : > { %v6831_v30 = vpop.f32.mrb[210].mxu0 }
 0x54f   : > { %v11160_v47 = vadd.f32 %v6831_v30, %v4102_v46  ;;  %v4321_v21 = vpop.f32.mrb[211].mxu0 }
 0x550   : > { %v4131_v41 = vpop.f32.mrb[242].mxu1  ;;  %v11162_v12 = vadd.f32 %v4321_v21, %v4097_v10 }
 0x551   : > { %v4132_v9 = vadd.f32 %v4131_v41, %v11043_v40  ;;  %v4133_v36 = vpop.f32.mrb[243].mxu1 }
 0x552   : > { %v6834_v61 = vpop.f32.mrb[212].mxu0 }
 0x553   : > { %v11165_v19 = vadd.f32 %v6834_v61, %v4112_v22  ;;  %v4331_v58 = vpop.f32.mrb[213].mxu0 }
 0x554   : > { %v4136_v18 = vpop.f32.mrb[244].mxu1  ;;  %v11167_v24 = vadd.f32 %v4331_v58, %v4107_v31 }
 0x555   : > { %v4137_v34 = vadd.f32 %v4136_v18, %v11051_v5  ;;  %v4138_v51 = vpop.f32.mrb[245].mxu1 }
 0x556   : > { %v6837_v49 = vpop.f32.mrb[214].mxu0 }
 0x557   : > { %v11170_v46 = vadd.f32 %v6837_v49, %v4122_v54  ;;  %v4341_v32 = vpop.f32.mrb[215].mxu0 }
 0x558   : > { %v4141_v15 = vpop.f32.mrb[246].mxu1  ;;  %v11172_v10 = vadd.f32 %v4341_v32, %v4117_v13 }
 0x559   : > { %v4142_v40 = vadd.f32 %v4141_v15, %v11063_v48  ;;  %v4143_v56 = vpop.f32.mrb[247].mxu1 }
 0x55a   : > { %v6840_v50 = vpop.f32.mrb[216].mxu0 }
 0x55b   : > { %v11175_v22 = vadd.f32 %v6840_v50, %v4132_v9  ;;  %v4351_v16 = vpop.f32.mrb[217].mxu0 }
 0x55c   : > { %v4146_v59 = vpop.f32.mrb[248].mxu1  ;;  %v11177_v31 = vadd.f32 %v4351_v16, %v4127_v25 }
 0x55d   : > { %v4147_v5 = vadd.f32 %v4146_v59, %v11077_v55  ;;  %v4148_v2 = vpop.f32.mrb[249].mxu1 }
 0x55e   : > { %v6843_v53 = vpop.f32.mrb[218].mxu0 }
 0x55f   : > { %v11180_v14 = vadd.f32 %v6843_v53, %v4142_v40  ;;  %v4361_v28 = vpop.f32.mrb[219].mxu0 }
 0x560   : > { %v4151_v3 = vpop.f32.mrb[250].mxu1  ;;  %v11182_v13 = vadd.f32 %v4361_v28, %v4137_v34 }
 0x561   : > { %v4152_v48 = vadd.f32 %v4151_v3, %v11087_v17  ;;  %v4153_v54 = vpop.f32.mrb[251].mxu1 }
 0x562   : > { %v6846_v62 = vpop.f32.mrb[220].mxu0 }
 0x563   : > { %v11185_v6 = vadd.f32 %v6846_v62, %v4152_v48  ;;  %v4371_v23 = vpop.f32.mrb[221].mxu0 }
 0x564   : > { %v4156_v33 = vpop.f32.mrb[252].mxu1  ;;  %v11187_v25 = vadd.f32 %v4371_v23, %v4147_v5 }
 0x565   : > { %v4157_v55 = vadd.f32 %v4156_v33, %v11095_v8  ;;  %v4158_v60 = vpop.f32.mrb[253].mxu1 }
 0x566   : > { %v6849_v30 = vpop.f32.mrb[222].mxu0 }
 0x567   : > { %v4381_v21 = vpop.f32.mrb[223].mxu0 }
 0x568   : > { %v4161_v41 = vpop.f32.mrb[254].mxu1  ;;  %v11190_v9 = vadd.f32 %v4381_v21, %v4157_v55 }
 0x569   : > { %v4162_v36 = vadd.f32 %v4161_v41, %v11099_v11  ;;  %v4163_v61 = vpop.f32.mrb[255].mxu1 }
 0x56a   : > { %v11193_v17 = vpop.f32.mrb[224].mxu0 }
 0x56b   : > { %v11195_v58 = vadd.f32 %v6849_v30, %v4162_v36  ;;  %v4731_v18 = vpop.f32.mrb[225].mxu0 }
 0x56c   : > { %v6896_v34 = vpop.f32.mrb[0].mxu1 }
 0x56d   : > { %v4994_v51 = vpop.f32.mrb[1].mxu1 }
 0x56e   : > { %v11197_v49 = vpop.f32.mrb[226].mxu0 }
 0x56f   : > { %v4736_v32 = vpop.f32.mrb[227].mxu0 }
 0x570   : > { %v6899_v8 = vpop.f32.mrb[2].mxu1 }
 0x571   : > { %v5004_v15 = vpop.f32.mrb[3].mxu1 }
 0x572   : > { %v11199_v40 = vpop.f32.mrb[228].mxu0 }
 0x573   : > { %v4741_v56 = vpop.f32.mrb[229].mxu0 }
 0x574   : > { %v6902_v50 = vpop.f32.mrb[4].mxu1 }
 0x575   : > { %v5014_v16 = vpop.f32.mrb[5].mxu1 }
 0x576   : > { %v11201_v59 = vpop.f32.mrb[230].mxu0 }
 0x577   : > { %v4746_v11 = vpop.f32.mrb[231].mxu0 }
 0x578   : > { %v6905_v5 = vpop.f32.mrb[6].mxu1 }
 0x579   : > { %v5024_v2 = vpop.f32.mrb[7].mxu1 }
 0x57a   : > { %v11203_v53 = vpop.f32.mrb[232].mxu0 }
 0x57b   : > { %12504 = vst [vmem:[#allocation26_spill] sm:$0xff] %v11203_v53  ;;  %v4751_v28 = vpop.f32.mrb[233].mxu0 }
 0x57c   : > { %v6908_v3 = vpop.f32.mrb[8].mxu1 }
 0x57d   : > { %v5034_v48 = vpop.f32.mrb[9].mxu1 }
 0x57e   : > { %v11205_v54 = vpop.f32.mrb[234].mxu0 }
 0x57f   : > { %v4756_v62 = vpop.f32.mrb[235].mxu0 }
 0x580   : > { %v11207_v23 = vpop.f32.mrb[10].mxu1 }
 0x581   : > { %v11209_v33 = vpop.f32.mrb[11].mxu1 }
 0x582   : > { %v11211_v55 = vpop.f32.mrb[236].mxu0 }
 0x583   : > { %12505 = vst [vmem:[#allocation29_spill] sm:$0xff] %v11211_v55  ;;  %v4761_v60 = vpop.f32.mrb[237].mxu0 }
 0x584   : > { %v11213_v30 = vpop.f32.mrb[12].mxu1 }
 0x585   : > { %v11215_v21 = vpop.f32.mrb[13].mxu1 }
 0x586   : > { %v11217_v41 = vpop.f32.mrb[238].mxu0 }
 0x587   : > { %12506 = vst [vmem:[#allocation15_spill] sm:$0xff] %v11217_v41  ;;  %v4766_v36 = vpop.f32.mrb[239].mxu0 }
 0x588   : > { %v11219_v61 = vpop.f32.mrb[14].mxu1 }
 0x589   : > { %v11221_v18 = vpop.f32.mrb[15].mxu1 }
 0x58a   : > { %v4769_v32 = vpop.f32.mrb[240].mxu0 }
 0x58b   : > { %v4995_v56 = vadd.f32 %v4994_v51, %v4769_v32  ;;  %v4771_v11 = vpop.f32.mrb[241].mxu0 }
 0x58c   : > { %v11223_v28 = vpop.f32.mrb[16].mxu1 }
 0x58d   : > { %v11226_v62 = vadd.f32 %v4995_v56, %v11134_v27  ;;  %v11228_v60 = vpop.f32.mrb[17].mxu1 }
 0x58e   : > { %v4774_v43 = vpop.f32.mrb[242].mxu0 }
 0x58f   : > { %12507 = vst [vmem:[#allocation28_spill] sm:$0xff] %v11226_v62  ;;  %v5000_v42 = vadd.f32 %v6896_v34, %v4774_v43  ;;  %v4776_v57 = vpop.f32.mrb[243].mxu0 }
 0x590   : > { %v11230_v55 = vpop.f32.mrb[18].mxu1 }
 0x591   : > { %v11233_v36 = vadd.f32 %v5000_v42, %v11131_v7  ;;  %v11235_v41 = vpop.f32.mrb[19].mxu1 }
 0x592   : > { %v4779_v4 = vpop.f32.mrb[244].mxu0 }
 0x593   : > { %12508 = vst [vmem:[#allocation14_spill] sm:$0xff] %v11233_v36  ;;  %v5005_v51 = vadd.f32 %v5004_v15, %v4779_v4  ;;  %v4781_v32 = vpop.f32.mrb[245].mxu0 }
 0x594   : > { %v11237_v11 = vpop.f32.mrb[20].mxu1 }
 0x595   : > { %v11240_v27 = vadd.f32 %v5005_v51, %v11141_v39  ;;  %v11242_v56 = vpop.f32.mrb[21].mxu1 }
 0x596   : > { %v4784_v62 = vpop.f32.mrb[246].mxu0 }
 0x597   : > { %12509 = vst [vmem:[#allocation17_spill] sm:$0xff] %v11240_v27  ;;  %v5010_v43 = vadd.f32 %v6899_v8, %v4784_v62  ;;  %v4786_v57 = vpop.f32.mrb[247].mxu0 }
 0x598   : > { %v11244_v34 = vpop.f32.mrb[22].mxu1 }
 0x599   : > { %v11247_v42 = vadd.f32 %v5010_v43, %v11138_v45  ;;  %v11249_v7 = vpop.f32.mrb[23].mxu1 }
 0x59a   : > { %v4789_v36 = vpop.f32.mrb[248].mxu0 }
 0x59b   : > { %12510 = vst [vmem:[#allocation16_spill] sm:$0xff] %v11247_v42  ;;  %v5015_v4 = vadd.f32 %v5014_v16, %v4789_v36  ;;  %v4791_v15 = vpop.f32.mrb[249].mxu0 }
 0x59d   : > { %v11252_v32 = vadd.f32 %v5015_v4, %v11147_v63 }
 0x59e   : > { %v4794_v39 = vpop.f32.mrb[250].mxu0 }
 0x59f   : > { %v5020_v51 = vadd.f32 %v6902_v50, %v4794_v39  ;;  %v4796_v27 = vpop.f32.mrb[251].mxu0 }
 0x5a1   : > { %v11255_v1 = vadd.f32 %v5020_v51, %v11144_v29 }
 0x5a2   : > { %v4799_v8 = vpop.f32.mrb[252].mxu0 }
 0x5a3   : > { %v5025_v62 = vadd.f32 %v5024_v2, %v4799_v8  ;;  %v4801_v57 = vpop.f32.mrb[253].mxu0 }
 0x5a5   : > { %v11258_v45 = vadd.f32 %v5025_v62, %v11152_v35 }
 0x5a6   : > { %v4804_v43 = vpop.f32.mrb[254].mxu0 }
 0x5a7   : > { %v5030_v42 = vadd.f32 %v6905_v5, %v4804_v43  ;;  %v4806_v53 = vpop.f32.mrb[255].mxu0 }
 0x5a9   : > { %v11261_v16 = vadd.f32 %v5030_v42, %v11150_v0 }
 0x5aa   : > { %v4809_v63 = vpop.f32.mrb[0].mxu0 }
 0x5ab   : > { %v5035_v36 = vadd.f32 %v5034_v48, %v4809_v63  ;;  %v4811_v4 = vpop.f32.mrb[1].mxu0 }
 0x5ac   : > { %v11266_v29 = vpop.f32.mrb[24].mxu1 }
 0x5ad   : > { %v11264_v50 = vadd.f32 %v5035_v36, %v11157_v44  ;;  %v5698_v2 = vmul.f32 %v11266_v29, %v11266_v29  ;;  %v11270_v35 = vpop.f32.mrb[25].mxu1 }
 0x5ae   : > { %v4814_v27 = vpop.f32.mrb[2].mxu0  ;;  %v5660_v0 = vadd.f32 %v11266_v29, %v11270_v35  ;;  %v5697_v53 = vmul.f32 %v11270_v35, %v11270_v35 }
 0x5af   : > { %v5040_v15 = vadd.f32 %v6908_v3, %v4814_v27  ;;  %v4816_v5 = vpop.f32.mrb[3].mxu0 }
 0x5b0   : > { %v5729_v44 = vadd.f32 %v5698_v2, %v5697_v53  ;;  %v11279_v42 = vpop.f32.mrb[26].mxu1 }
 0x5b1   : > { %v11277_v48 = vadd.f32 %v5040_v15, %v11155_v37  ;;  %v11281_v51 = vpop.f32.mrb[27].mxu1  ;;  %v5700_v43 = vmul.f32 %v11279_v42, %v11279_v42 }
 0x5b2   : > { %v4819_v39 = vpop.f32.mrb[4].mxu0  ;;  %v5661_v3 = vadd.f32 %v5660_v0, %v11281_v51  ;;  %v5699_v57 = vmul.f32 %v11281_v51, %v11281_v51 }
 0x5b3   : > { %v5045_v8 = vadd.f32 %v11209_v33, %v4819_v39  ;;  %v4821_v62 = vpop.f32.mrb[5].mxu0 }
 0x5b4   : > { %v5730_v63 = vadd.f32 %v5729_v44, %v5699_v57  ;;  %v11292_v36 = vpop.f32.mrb[28].mxu1  ;;  %v5662_v4 = vadd.f32 %v11279_v42, %v5661_v3 }
 0x5b5   : > { %v11290_v37 = vadd.f32 %v5045_v8, %v11162_v12  ;;  %v11295_v2 = vpop.f32.mrb[29].mxu1  ;;  %v5702_v12 = vmul.f32 %v11292_v36, %v11292_v36 }
 0x5b6   : > { %v4824_v27 = vpop.f32.mrb[6].mxu0  ;;  %v5663_v5 = vadd.f32 %v5662_v4, %v11295_v2  ;;  %v5701_v0 = vmul.f32 %v11295_v2, %v11295_v2  ;;  %v5731_v53 = vadd.f32 %v5730_v63, %v5700_v43 }
 0x5b7   : > { %v5050_v33 = vadd.f32 %v11207_v23, %v4824_v27  ;;  %v4826_v15 = vpop.f32.mrb[7].mxu0 }
 0x5b8   : > { %v11306_v39 = vpop.f32.mrb[30].mxu1  ;;  %v5664_v8 = vadd.f32 %v11292_v36, %v5663_v5  ;;  %v5732_v3 = vadd.f32 %v5731_v53, %v5701_v0 }
 0x5b9   : > { %v11304_v44 = vadd.f32 %v5050_v33, %v11160_v47  ;;  %v11309_v23 = vpop.f32.mrb[31].mxu1  ;;  %v5704_v47 = vmul.f32 %v11306_v39, %v11306_v39 }
 0x5ba   : > { %v4829_v62 = vpop.f32.mrb[8].mxu0  ;;  %12511 = vst [vmem:[#allocation19_spill] sm:$0xff] %v11309_v23  ;;  %v5665_v27 = vadd.f32 %v5664_v8, %v11309_v23  ;;  %v5703_v15 = vmul.f32 %v11309_v23, %v11309_v23  ;;  %v5733_v43 = vadd.f32 %v5732_v3, %v5702_v12 }
 0x5bb   : > { %v5055_v57 = vadd.f32 %v11215_v21, %v4829_v62  ;;  %v4831_v4 = vpop.f32.mrb[9].mxu0 }
 0x5bc   : > { %v11320_v33 = vpop.f32.mrb[32].mxu1  ;;  %v5666_v5 = vadd.f32 %v11306_v39, %v5665_v27  ;;  %v5734_v53 = vadd.f32 %v5733_v43, %v5703_v15 }
 0x5bd   : > { %v11318_v63 = vadd.f32 %v5055_v57, %v11167_v24  ;;  %v11323_v21 = vpop.f32.mrb[33].mxu1  ;;  %v5706_v24 = vmul.f32 %v11320_v33, %v11320_v33 }
 0x5be   : > { %v4834_v0 = vpop.f32.mrb[10].mxu0  ;;  %12512 = vst [vmem:[#allocation30_spill] sm:$0xff] %v11323_v21  ;;  %v5667_v4 = vadd.f32 %v5666_v5, %v11323_v21  ;;  %v5705_v23 = vmul.f32 %v11323_v21, %v11323_v21  ;;  %v5735_v12 = vadd.f32 %v5734_v53, %v5704_v47 }
 0x5bf   : > { %v5060_v8 = vadd.f32 %v11213_v30, %v4834_v0  ;;  %v4836_v62 = vpop.f32.mrb[11].mxu0 }
 0x5c0   : > { %v11334_v57 = vpop.f32.mrb[34].mxu1  ;;  %v5668_v27 = vadd.f32 %v11320_v33, %v5667_v4  ;;  %v5736_v43 = vadd.f32 %v5735_v12, %v5705_v23 }
 0x5c1   : > { %v11332_v3 = vadd.f32 %v5060_v8, %v11165_v19  ;;  %12513 = vst [vmem:[#allocation31_spill] sm:$0xff] %v11334_v57  ;;  %v11337_v30 = vpop.f32.mrb[35].mxu1  ;;  %v5708_v19 = vmul.f32 %v11334_v57, %v11334_v57 }
 0x5c2   : > { %v4839_v15 = vpop.f32.mrb[12].mxu0  ;;  %12514 = vst [vmem:[#allocation33_spill] sm:$0xff] %v11337_v30  ;;  %v5669_v62 = vadd.f32 %v5668_v27, %v11337_v30  ;;  %v5707_v21 = vmul.f32 %v11337_v30, %v11337_v30  ;;  %v5737_v47 = vadd.f32 %v5736_v43, %v5706_v24 }
 0x5c3   : > { %v5065_v5 = vadd.f32 %v11221_v18, %v4839_v15  ;;  %v4841_v0 = vpop.f32.mrb[13].mxu0 }
 0x5c4   : > { %v11348_v8 = vpop.f32.mrb[36].mxu1  ;;  %v5670_v23 = vadd.f32 %v11334_v57, %v5669_v62  ;;  %v5738_v12 = vadd.f32 %v5737_v47, %v5707_v21 }
 0x5c5   : > { %v11346_v53 = vadd.f32 %v5065_v5, %v11172_v10  ;;  %12515 = vst [vmem:[#allocation32_spill] sm:$0xff] %v11348_v8  ;;  %v11351_v18 = vpop.f32.mrb[37].mxu1  ;;  %v5710_v10 = vmul.f32 %v11348_v8, %v11348_v8 }
 0x5c6   : > { %v4844_v4 = vpop.f32.mrb[14].mxu0  ;;  %12516 = vst [vmem:[#allocation34_spill] sm:$0xff] %v11351_v18  ;;  %v5671_v0 = vadd.f32 %v5670_v23, %v11351_v18  ;;  %v5709_v30 = vmul.f32 %v11351_v18, %v11351_v18  ;;  %v5739_v24 = vadd.f32 %v5738_v12, %v5708_v19 }
 0x5c7   : > { %v5070_v27 = vadd.f32 %v11219_v61, %v4844_v4  ;;  %v4846_v15 = vpop.f32.mrb[15].mxu0 }
 0x5c8   : > { %v11362_v5 = vpop.f32.mrb[38].mxu1  ;;  %v5672_v21 = vadd.f32 %v11348_v8, %v5671_v0  ;;  %v5740_v47 = vadd.f32 %v5739_v24, %v5709_v30 }
 0x5c9   : > { %v11360_v43 = vadd.f32 %v5070_v27, %v11170_v46  ;;  %12517 = vst [vmem:[#allocation35_spill] sm:$0xff] %v11362_v5  ;;  %v11365_v61 = vpop.f32.mrb[39].mxu1  ;;  %v5712_v46 = vmul.f32 %v11362_v5, %v11362_v5 }
 0x5ca   : > { %v4849_v62 = vpop.f32.mrb[16].mxu0  ;;  %12518 = vst [vmem:[#allocation37_spill] sm:$0xff] %v11365_v61  ;;  %v5673_v15 = vadd.f32 %v5672_v21, %v11365_v61  ;;  %v5711_v18 = vmul.f32 %v11365_v61, %v11365_v61  ;;  %v5741_v19 = vadd.f32 %v5740_v47, %v5710_v10 }
 0x5cb   : > { %v5075_v23 = vadd.f32 %v11228_v60, %v4849_v62  ;;  %v4851_v4 = vpop.f32.mrb[17].mxu0 }
 0x5cc   : > { %v11376_v27 = vpop.f32.mrb[40].mxu1  ;;  %v5674_v30 = vadd.f32 %v11362_v5, %v5673_v15  ;;  %v5742_v24 = vadd.f32 %v5741_v19, %v5711_v18 }
 0x5cd   : > { %v11374_v12 = vadd.f32 %v5075_v23, %v11177_v31  ;;  %12519 = vst [vmem:[#allocation36_spill] sm:$0xff] %v11376_v27  ;;  %v11379_v60 = vpop.f32.mrb[41].mxu1  ;;  %v5714_v31 = vmul.f32 %v11376_v27, %v11376_v27 }
 0x5ce   : > { %v4854_v0 = vpop.f32.mrb[18].mxu0  ;;  %12520 = vst [vmem:[#allocation38_spill] sm:$0xff] %v11379_v60  ;;  %v5675_v4 = vadd.f32 %v5674_v30, %v11379_v60  ;;  %v5713_v61 = vmul.f32 %v11379_v60, %v11379_v60  ;;  %v5743_v10 = vadd.f32 %v5742_v24, %v5712_v46 }
 0x5cf   : > { %v5080_v21 = vadd.f32 %v11223_v28, %v4854_v0  ;;  %v4856_v62 = vpop.f32.mrb[19].mxu0 }
 0x5d0   : > { %v11390_v23 = vpop.f32.mrb[42].mxu1  ;;  %v5676_v18 = vadd.f32 %v11376_v27, %v5675_v4  ;;  %v5744_v19 = vadd.f32 %v5743_v10, %v5713_v61 }
 0x5d1   : > { %v11388_v47 = vadd.f32 %v5080_v21, %v11175_v22  ;;  %12521 = vst [vmem:[#allocation40_spill] sm:$0xff] %v11390_v23  ;;  %v11393_v28 = vpop.f32.mrb[43].mxu1  ;;  %v5716_v22 = vmul.f32 %v11390_v23, %v11390_v23 }
 0x5d2   : > { %v4859_v15 = vpop.f32.mrb[20].mxu0  ;;  %12522 = vst [vmem:[#allocation39_spill] sm:$0xff] %v11393_v28  ;;  %v5677_v62 = vadd.f32 %v5676_v18, %v11393_v28  ;;  %v5715_v60 = vmul.f32 %v11393_v28, %v11393_v28  ;;  %v5745_v46 = vadd.f32 %v5744_v19, %v5714_v31 }
 0x5d3   : > { %v5085_v30 = vadd.f32 %v11235_v41, %v4859_v15  ;;  %v4861_v0 = vpop.f32.mrb[21].mxu0 }
 0x5d4   : > { %v11404_v21 = vpop.f32.mrb[44].mxu1  ;;  %v5678_v61 = vadd.f32 %v11390_v23, %v5677_v62  ;;  %v5746_v10 = vadd.f32 %v5745_v46, %v5715_v60 }
 0x5d5   : > { %v11402_v24 = vadd.f32 %v5085_v30, %v11182_v13  ;;  %12523 = vst [vmem:[#allocation20_spill] sm:$0xff] %v11404_v21  ;;  %v11407_v41 = vpop.f32.mrb[45].mxu1  ;;  %v5718_v13 = vmul.f32 %v11404_v21, %v11404_v21 }
 0x5d6   : > { %v4864_v4 = vpop.f32.mrb[22].mxu0  ;;  %12524 = vst [vmem:[#allocation23_spill] sm:$0xff] %v11407_v41  ;;  %v5679_v0 = vadd.f32 %v5678_v61, %v11407_v41  ;;  %v5717_v28 = vmul.f32 %v11407_v41, %v11407_v41  ;;  %v5747_v31 = vadd.f32 %v5746_v10, %v5716_v22 }
 0x5d7   : > { %v5090_v18 = vadd.f32 %v11230_v55, %v4864_v4  ;;  %v4866_v15 = vpop.f32.mrb[23].mxu0 }
 0x5d8   : > { %v11418_v30 = vpop.f32.mrb[46].mxu1  ;;  %v5680_v60 = vadd.f32 %v11404_v21, %v5679_v0  ;;  %v5748_v46 = vadd.f32 %v5747_v31, %v5717_v28 }
 0x5d9   : > { %v11416_v19 = vadd.f32 %v5090_v18, %v11180_v14  ;;  %12525 = vst [vmem:[#allocation21_spill] sm:$0xff] %v11418_v30  ;;  %v11421_v55 = vpop.f32.mrb[47].mxu1  ;;  %v5720_v14 = vmul.f32 %v11418_v30, %v11418_v30 }
 0x5da   : > { %v4869_v62 = vpop.f32.mrb[24].mxu0  ;;  %12526 = vst [vmem:[#allocation18_spill] sm:$0xff] %v11421_v55  ;;  %v5681_v15 = vadd.f32 %v5680_v60, %v11421_v55  ;;  %v5719_v41 = vmul.f32 %v11421_v55, %v11421_v55  ;;  %v5749_v22 = vadd.f32 %v5748_v46, %v5718_v13 }
 0x5db   : > { %v5095_v61 = vadd.f32 %v11242_v56, %v4869_v62  ;;  %v4871_v4 = vpop.f32.mrb[25].mxu0 }
 0x5dc   : > { %v11432_v18 = vpop.f32.mrb[48].mxu1  ;;  %v5682_v28 = vadd.f32 %v11418_v30, %v5681_v15  ;;  %v5750_v31 = vadd.f32 %v5749_v22, %v5719_v41 }
 0x5dd   : > { %v11430_v10 = vadd.f32 %v5095_v61, %v11187_v25  ;;  %12527 = vst [vmem:[#allocation41_spill] sm:$0xff] %v11432_v18  ;;  %v11435_v56 = vpop.f32.mrb[49].mxu1  ;;  %v5722_v25 = vmul.f32 %v11432_v18, %v11432_v18 }
 0x5de   : > { %v4874_v0 = vpop.f32.mrb[26].mxu0  ;;  %12528 = vst [vmem:[#allocation42_spill] sm:$0xff] %v11435_v56  ;;  %v5683_v4 = vadd.f32 %v5682_v28, %v11435_v56  ;;  %v5721_v55 = vmul.f32 %v11435_v56, %v11435_v56  ;;  %v5751_v13 = vadd.f32 %v5750_v31, %v5720_v14 }
 0x5df   : > { %v5100_v60 = vadd.f32 %v11237_v11, %v4874_v0  ;;  %v4876_v62 = vpop.f32.mrb[27].mxu0 }
 0x5e0   : > { %v5684_v61 = vadd.f32 %v11432_v18, %v5683_v4  ;;  %v5752_v15 = vadd.f32 %v5751_v13, %v5721_v55  ;;  %v11448_v0 = vpop.f32.mrb[50].mxu1 }
 0x5e1   : > { %v11444_v46 = vadd.f32 %v5100_v60, %v11185_v6  ;;  %12529 = vst [vmem:[#allocation43_spill] sm:$0xff] %v11448_v0  ;;  %v11450_v28 = vpop.f32.mrb[51].mxu1  ;;  %v5724_v14 = vmul.f32 %v11448_v0, %v11448_v0 }
 0x5e2   : > { %v4879_v41 = vpop.f32.mrb[28].mxu0  ;;  %12530 = vst [vmem:[#allocation44_spill] sm:$0xff] %v11450_v28  ;;  %v5753_v62 = vadd.f32 %v5752_v15, %v5722_v25  ;;  %v5685_v6 = vadd.f32 %v5684_v61, %v11450_v28  ;;  %v5723_v31 = vmul.f32 %v11450_v28, %v11450_v28  ;;  %v12540_v28 = vld [vmem:[#allocation27_spill] sm:$0xff] }
 0x5e3   : > { %v5105_v22 = vadd.f32 %v11249_v7, %v4879_v41  ;;  %v4881_v11 = vpop.f32.mrb[29].mxu0 }
 0x5e4   : > { %v5754_v4 = vadd.f32 %v5753_v62, %v5723_v31  ;;  %v11461_v13 = vpop.f32.mrb[52].mxu1  ;;  %v5686_v25 = vadd.f32 %v11448_v0, %v5685_v6 }
 0x5e5   : > { %v11453_v56 = vadd.f32 %v5105_v22, %v11190_v9  ;;  %12531 = vst [vmem:[#allocation45_spill] sm:$0xff] %v11461_v13  ;;  %v5726_v9 = vmul.f32 %v11461_v13, %v11461_v13  ;;  %v11466_v41 = vpop.f32.mrb[53].mxu1 }
 0x5e6   : > { %v4884_v55 = vpop.f32.mrb[30].mxu0  ;;  %12532 = vst [vmem:[#allocation46_spill] sm:$0xff] %v11466_v41  ;;  %v5687_v61 = vadd.f32 %v5686_v25, %v11466_v41  ;;  %v5725_v22 = vmul.f32 %v11466_v41, %v11466_v41 }
 0x5e7   : > { %v5110_v7 = vadd.f32 %v11244_v34, %v4884_v55  ;;  %v4886_v60 = vpop.f32.mrb[31].mxu0  ;;  %v5755_v34 = vadd.f32 %v5754_v4, %v5724_v14 }
 0x5e8   : > { %v11475_v6 = vpop.f32.mrb[54].mxu1  ;;  %v5688_v60 = vadd.f32 %v11461_v13, %v5687_v61  ;;  %v12537_v13 = vld [vmem:[#allocation25_spill] sm:$0xff] }
 0x5e9   : > { %v11469_v15 = vadd.f32 %v5110_v7, %v11195_v58  ;;  %v5756_v55 = vadd.f32 %v5755_v34, %v5725_v22  ;;  %12533 = vst [vmem:[#allocation47_spill] sm:$0xff] %v11475_v6  ;;  %v5728_v58 = vmul.f32 %v11475_v6, %v11475_v6  ;;  %v11481_v7 = vpop.f32.mrb[55].mxu1 }
 0x5ea   : > { %v6884_v11 = vpop.f32.mrb[32].mxu0  ;;  %12534 = vst [vmem:[#allocation48_spill] sm:$0xff] %v11481_v7  ;;  %v5689_v14 = vadd.f32 %v5688_v60, %v11481_v7 }
 0x5eb   : > { %v4960_v62 = vadd.f32 %v6884_v11, %v11197_v49  ;;  %v4954_v31 = vpop.f32.mrb[33].mxu0  ;;  %v5727_v49 = vmul.f32 %v11481_v7, %v11481_v7  ;;  %v5757_v4 = vadd.f32 %v5756_v55, %v5726_v9 }
 0x5ec   : > { %v4955_v0 = vadd.f32 %v4954_v31, %v11193_v17  ;;  %v5690_v11 = vadd.f32 %v11475_v6, %v5689_v14 }
 0x5ed   : > { %v11484_v25 = vadd.f32 %v4960_v62, %v11103_v38  ;;  %v5758_v31 = vadd.f32 %v5757_v4, %v5727_v49 }
 0x5ee   : > { %v11490_v22 = vadd.f32 %v4955_v0, %v11106_v52  ;;  %v6887_v61 = vpop.f32.mrb[34].mxu0  ;;  %v5691_v52 = vrot.slane %v5690_v11, 4 }
 0x5ef   : > { %v4970_v17 = vadd.f32 %v6887_v61, %v11201_v59  ;;  %v4964_v34 = vpop.f32.mrb[35].mxu0  ;;  %v5183_v38 = vmul.f32 %v11484_v25, %v11484_v25  ;;  %v11502_v0 = vadd.f32 %v5758_v31, %v5728_v58 }
 0x5f0   : > { %v5182_v62 = vmul.f32 %v11490_v22, %v11490_v22  ;;  %v4965_v60 = vadd.f32 %v4964_v34, %v11199_v40  ;;  %v5145_v59 = vadd.f32 %v11484_v25, %v11490_v22  ;;  %v5692_v61 = vadd.f32 %v5691_v52, %v5690_v11  ;;  %v12536_v34 = vld [vmem:[#allocation22_spill] sm:$0xff] }
 0x5f1   : > { %v11500_v9 = vadd.f32 %v4970_v17, %v11110_v26  ;;  %v12535_v17 = vld [vmem:[#allocation26_spill] sm:$0xff] }
 0x5f2   : > { %v11507_v55 = vadd.f32 %v4965_v60, %v11113_v20  ;;  %v6890_v14 = vpop.f32.mrb[36].mxu0  ;;  %v5214_v6 = vadd.f32 %v5183_v38, %v5182_v62  ;;  %v5693_v7 = vrot.slane %v5692_v61, 2  ;;  %v12538_v62 = vld [vmem:[#allocation15_spill] sm:$0xff] }
 0x5f3   : > { %v4980_v49 = vadd.f32 %v6890_v14, %v11205_v54  ;;  %v4974_v4 = vpop.f32.mrb[37].mxu0  ;;  %v5185_v20 = vmul.f32 %v11500_v9, %v11500_v9 }
 0x5f4   : > { %v5146_v40 = vadd.f32 %v5145_v59, %v11507_v55  ;;  %v5184_v26 = vmul.f32 %v11507_v55, %v11507_v55  ;;  %v4975_v58 = vadd.f32 %v4974_v4, %v12535_v17  ;;  %v5694_v14 = vadd.f32 %v5693_v7, %v5692_v61 }
 0x5f5   : > { %v11515_v31 = vadd.f32 %v4980_v49, %v12536_v34  ;;  %v12539_v34 = vld [vmem:[#allocation29_spill] sm:$0xff] }
 0x5f6   : > { %v5215_v60 = vadd.f32 %v5214_v6, %v5184_v26  ;;  %v11520_v54 = vadd.f32 %v4975_v58, %v12537_v13  ;;  %v5147_v11 = vadd.f32 %v5146_v40, %v11500_v9  ;;  %v6893_v38 = vpop.f32.mrb[38].mxu0  ;;  %v5695_v13 = vrot.slane %v5694_v14, 1  ;;  %v12541_v58 = vld [vmem:[#allocation24_spill] sm:$0xff] }
 0x5f7   : > { %v4990_v52 = vadd.f32 %v6893_v38, %v12538_v62  ;;  %v4984_v59 = vpop.f32.mrb[39].mxu0  ;;  %v5187_v40 = vmul.f32 %v11515_v31, %v11515_v31 }
 0x5f8   : > { %v5148_v4 = vadd.f32 %v5147_v11, %v11520_v54  ;;  %v5186_v49 = vmul.f32 %v11520_v54, %v11520_v54  ;;  %v5216_v17 = vadd.f32 %v5215_v60, %v5185_v20  ;;  %v4985_v41 = vadd.f32 %v4984_v59, %v12539_v34 }
 0x5f9   : > { %v11529_v6 = vadd.f32 %v4990_v52, %v12540_v28  ;;  %v5696_v61 = vadd.f32 %v5695_v13, %v5694_v14 }
 0x5fa   : > { %v5217_v26 = vadd.f32 %v5216_v17, %v5186_v49  ;;  %v11534_v38 = vadd.f32 %v4985_v41, %v12541_v58  ;;  %v5149_v7 = vadd.f32 %v5148_v4, %v11515_v31  ;;  %v12542_v41 = vld [vmem:[#allocation28_spill] sm:$0xff]  ;;  %v12543_v17 = vld [vmem:[#allocation14_spill] sm:$0xff] }
 0x5fb   : > { %v5766_v28 = vsel %vm2703_vm4, %v5696_v61, 0.0  ;;  %v5189_v62 = vmul.f32 %v11529_v6, %v11529_v6  ;;  %v5190_v49 = vmul.f32 %v12542_v41, %v12542_v41  ;;  %v5191_v34 = vmul.f32 %v12543_v17, %v12543_v17 }
 0x5fc   : > { %v5150_v11 = vadd.f32 %v5149_v7, %v11534_v38  ;;  %v5188_v20 = vmul.f32 %v11534_v38, %v11534_v38  ;;  %v5218_v60 = vadd.f32 %v5217_v26, %v5187_v40  ;;  %5767 = vadd.xlane.f32.xlu0 %v5766_v28  ;;  %v12544_v26 = vld [vmem:[#allocation17_spill] sm:$0xff] }
 0x5fd   : > { %v5192_v58 = vmul.f32 %v12544_v26, %v12544_v26 }
 0x5fe   : > { %v5151_v52 = vadd.f32 %v5150_v11, %v11529_v6  ;;  %v5219_v59 = vadd.f32 %v5218_v60, %v5188_v20  ;;  %v12545_v11 = vld [vmem:[#allocation16_spill] sm:$0xff] }
 0x5ff   : > { %v5193_v20 = vmul.f32 %v12545_v11, %v12545_v11 }
 0x600   : > { %v5152_v14 = vadd.f32 %v5151_v52, %v12542_v41  ;;  %v5220_v4 = vadd.f32 %v5219_v59, %v5189_v62  ;;  %v5194_v62 = vmul.f32 %v11252_v32, %v11252_v32 }
 0x602   : > { %v5153_v13 = vadd.f32 %v5152_v14, %v12543_v17  ;;  %v5221_v40 = vadd.f32 %v5220_v4, %v5190_v49  ;;  %v5195_v49 = vmul.f32 %v11255_v1, %v11255_v1 }
 0x604   : > { %v5154_v7 = vadd.f32 %v5153_v13, %v12544_v26  ;;  %v5222_v61 = vadd.f32 %v5221_v40, %v5191_v34  ;;  %v5196_v34 = vmul.f32 %v11258_v45, %v11258_v45 }
 0x606   : > { %v5155_v60 = vadd.f32 %v5154_v7, %v12545_v11  ;;  %v5223_v28 = vadd.f32 %v5222_v61, %v5192_v58  ;;  %v5197_v58 = vmul.f32 %v11261_v16, %v11261_v16 }
 0x608   : > { %v5156_v52 = vadd.f32 %v5155_v60, %v11252_v32  ;;  %v5224_v59 = vadd.f32 %v5223_v28, %v5193_v20  ;;  %v5198_v20 = vmul.f32 %v11264_v50, %v11264_v50 }
 0x60a   : > { %v5157_v14 = vadd.f32 %v5156_v52, %v11255_v1  ;;  %v5225_v4 = vadd.f32 %v5224_v59, %v5194_v62  ;;  %v5199_v62 = vmul.f32 %v11277_v48, %v11277_v48 }
 0x60c   : > { %v5158_v13 = vadd.f32 %v5157_v14, %v11258_v45  ;;  %v5226_v40 = vadd.f32 %v5225_v4, %v5195_v49  ;;  %v5200_v49 = vmul.f32 %v11290_v37, %v11290_v37 }
 0x60e   : > { %v5159_v7 = vadd.f32 %v5158_v13, %v11261_v16  ;;  %v5227_v61 = vadd.f32 %v5226_v40, %v5196_v34  ;;  %v5201_v34 = vmul.f32 %v11304_v44, %v11304_v44 }
 0x610   : > { %v5160_v60 = vadd.f32 %v5159_v7, %v11264_v50  ;;  %v5228_v28 = vadd.f32 %v5227_v61, %v5197_v58  ;;  %v5202_v58 = vmul.f32 %v11318_v63, %v11318_v63 }
 0x612   : > { %v5161_v52 = vadd.f32 %v5160_v60, %v11277_v48  ;;  %v5229_v59 = vadd.f32 %v5228_v28, %v5198_v20  ;;  %v5203_v20 = vmul.f32 %v11332_v3, %v11332_v3 }
 0x614   : > { %v5162_v14 = vadd.f32 %v5161_v52, %v11290_v37  ;;  %v5230_v4 = vadd.f32 %v5229_v59, %v5199_v62  ;;  %v5204_v62 = vmul.f32 %v11346_v53, %v11346_v53 }
 0x616   : > { %v5231_v13 = vadd.f32 %v5230_v4, %v5200_v49  ;;  %v5163_v40 = vadd.f32 %v5162_v14, %v11304_v44  ;;  %v5205_v49 = vmul.f32 %v11360_v43, %v11360_v43 }
 0x618   : > { %v5164_v7 = vadd.f32 %v5163_v40, %v11318_v63  ;;  %v5232_v61 = vadd.f32 %v5231_v13, %v5201_v34  ;;  %v5206_v34 = vmul.f32 %v11374_v12, %v11374_v12 }
 0x61a   : > { %v5165_v60 = vadd.f32 %v5164_v7, %v11332_v3  ;;  %v5233_v28 = vadd.f32 %v5232_v61, %v5202_v58  ;;  %v5207_v58 = vmul.f32 %v11388_v47, %v11388_v47 }
 0x61c   : > { %v5166_v52 = vadd.f32 %v5165_v60, %v11346_v53  ;;  %v5234_v59 = vadd.f32 %v5233_v28, %v5203_v20  ;;  %v5208_v20 = vmul.f32 %v11402_v24, %v11402_v24 }
 0x61e   : > { %v5167_v14 = vadd.f32 %v5166_v52, %v11360_v43  ;;  %v5235_v4 = vadd.f32 %v5234_v59, %v5204_v62  ;;  %v5209_v62 = vmul.f32 %v11416_v19, %v11416_v19 }
 0x620   : > { %v5168_v13 = vadd.f32 %v5167_v14, %v11374_v12  ;;  %v5236_v40 = vadd.f32 %v5235_v4, %v5205_v49  ;;  %v5210_v49 = vmul.f32 %v11430_v10, %v11430_v10 }
 0x622   : > { %v5169_v7 = vadd.f32 %v5168_v13, %v11388_v47  ;;  %v5237_v61 = vadd.f32 %v5236_v40, %v5206_v34  ;;  %v5211_v34 = vmul.f32 %v11444_v46, %v11444_v46 }
 0x624   : > { %v5170_v60 = vadd.f32 %v5169_v7, %v11402_v24  ;;  %v5238_v28 = vadd.f32 %v5237_v61, %v5207_v58  ;;  %v5760_v58 = vrot.slane %v11502_v0, 4  ;;  %v5212_v7 = vmul.f32 %v11453_v56, %v11453_v56 }
 0x626   : > { %v5171_v52 = vadd.f32 %v5170_v60, %v11416_v19  ;;  %v5239_v59 = vadd.f32 %v5238_v28, %v5208_v20  ;;  %v5213_v60 = vmul.f32 %v11469_v15, %v11469_v15 }
 0x628   : > { %v5172_v14 = vadd.f32 %v5171_v52, %v11430_v10  ;;  %v5240_v4 = vadd.f32 %v5239_v59, %v5209_v62  ;;  %v5761_v52 = vadd.f32 %v5760_v58, %v11502_v0 }
 0x62a   : > { %v5173_v13 = vadd.f32 %v5172_v14, %v11444_v46  ;;  %v5241_v40 = vadd.f32 %v5240_v4, %v5210_v49  ;;  %v5762_v4 = vrot.slane %v5761_v52, 2 }
 0x62c   : > { %v5174_v61 = vadd.f32 %v5173_v13, %v11453_v56  ;;  %v5242_v20 = vadd.f32 %v5241_v40, %v5211_v34  ;;  %v5763_v5 = vadd.f32 %v5762_v4, %v5761_v52 }
 0x62e   : > { %v5175_v28 = vadd.f32 %v5174_v61, %v11469_v15  ;;  %v5243_v62 = vadd.f32 %v5242_v20, %v5212_v7  ;;  %v5764_v57 = vrot.slane %v5763_v5, 1 }
 0x630   : > { %v5176_v59 = vrot.slane %v5175_v28, 4  ;;  %v5244_v18 = vadd.f32 %v5243_v62, %v5213_v60  ;;  %v5765_v0 = vadd.f32 %v5764_v57, %v5763_v5 }
 0x632   : > { %v5177_v14 = vadd.f32 %v5176_v59, %v5175_v28  ;;  %v5245_v49 = vrot.slane %v5244_v18, 4  ;;  %v5777_v20 = vsel %vm2703_vm4, %v5765_v0, 0.0 }
 0x634   : > { %v5178_v30 = vrot.slane %v5177_v14, 2  ;;  %v5246_v21 = vadd.f32 %v5245_v49, %v5244_v18 }
 0x636   : > { %v5179_v23 = vadd.f32 %v5178_v30, %v5177_v14  ;;  %v5247_v27 = vrot.slane %v5246_v21, 2 }
 0x638   : > { %v5180_v13 = vrot.slane %v5179_v23, 1  ;;  %v5248_v34 = vadd.f32 %v5247_v27, %v5246_v21 }
 0x63a   : > { %v5181_v40 = vadd.f32 %v5180_v13, %v5179_v23  ;;  %v5249_v8 = vrot.slane %v5248_v34, 1 }
 0x63c   : > { %v5251_v61 = vsel %vm2703_vm4, %v5181_v40, 0.0  ;;  %v5250_v7 = vadd.f32 %v5249_v8, %v5248_v34 }
 0x63d   : > { %5252 = vadd.xlane.f32.xlu1 %v5251_v61 }
 0x63e   : > { %v5262_v58 = vsel %vm2703_vm4, %v5250_v7, 0.0 }
 0x641   : > { %5263 = vadd.xlane.f32.xlu1 %v5262_v58 }
 0x645   : > { %5778 = vadd.xlane.f32.xlu1 %v5777_v20 }
 0x689   : > { %v5768_v49 = vpop.xlane.xlu0 %5767 }
 0x68a   : > { %v5769_v13 = vrot.slane %v5768_v49, 4 }
 0x68c   : > { %v5770_v40 = vadd.f32 %v5769_v13, %v5768_v49 }
 0x68e   : > { %v5771_v7 = vrot.slane %v5770_v40, 2 }
 0x690   : > { %v5772_v20 = vadd.f32 %v5771_v7, %v5770_v40 }
 0x6ca   : > { %v5253_v18 = vpop.xlane.xlu1 %5252 }
 0x6cb   : > { %v5254_v30 = vrot.slane %v5253_v18, 4 }
 0x6cd   : > { %v5255_v60 = vadd.f32 %v5254_v30, %v5253_v18  ;;  %v5773_v30 = vrot.slane %v5772_v20, 1 }
 0x6ce   : > { %v5264_v28 = vpop.xlane.xlu1 %5263 }
 0x6cf   : > { %v5256_v62 = vrot.slane %v5255_v60, 2  ;;  %v5265_v27 = vrot.slane %v5264_v28, 4 }
 0x6d1   : > { %v5266_v23 = vadd.f32 %v5265_v27, %v5264_v28  ;;  %v5257_v21 = vadd.f32 %v5256_v62, %v5255_v60  ;;  %v5774_v62 = vadd.f32 %v5773_v30, %v5772_v20 }
 0x6d2   : > { %v5779_v4 = vpop.xlane.xlu1 %5778 }
 0x6d3   : > { %v5267_v52 = vrot.slane %v5266_v23, 2  ;;  %v5258_v59 = vrot.slane %v5257_v21, 1  ;;  %v5780_v34 = vrot.slane %v5779_v4, 4 }
 0x6d5   : > { %v5259_v14 = vadd.f32 %v5258_v59, %v5257_v21  ;;  %v5268_v8 = vadd.f32 %v5267_v52, %v5266_v23  ;;  %v5781_v61 = vadd.f32 %v5780_v34, %v5779_v4  ;;  %v12546_v21 = vld [vmem:[#allocation13_spill] sm:$0xff] }
 0x6d6   : > { %v5317_v52 = vsub.s32 2, %v12546_v21 }
 0x6d7   : > { %7544 = vpush %v5259_v14  ;;  %v5269_v57 = vrot.slane %v5268_v8, 1  ;;  %v5782_v0 = vrot.slane %v5781_v61, 2 }
 0x6d9   : > { %v5270_v5 = vadd.f32 %v5269_v57, %v5268_v8  ;;  %v5783_v18 = vadd.f32 %v5782_v0, %v5781_v61 }
 0x6db   : > { %7546 = vpush %v5270_v5  ;;  %v5784_v60 = vrot.slane %v5783_v18, 1 }
 0x6dd   : > { %v5785_v27 = vadd.f32 %v5784_v60, %v5783_v18 }
 0x708   : > { %s7545_s25 = spop %7544 }
 0x709   : > { %s5261_s26 = smul.f32 0.00048828125, %s7545_s25 }
 0x70b   : > { %s5273_s9 = smul.f32 %s5261_s26, %s5261_s26  ;;  %v11622_v23 = vstv %s5261_s26 }
 0x70c   : > { %s7547_s11 = spop %7546  ;;  %v5277_v59 = vsub.f32 %v11490_v22, %v11622_v23  ;;  %v5278_v14 = vsub.f32 %v11484_v25, %v11622_v23  ;;  %v5279_v8 = vsub.f32 %v11507_v55, %v11622_v23  ;;  %v5280_v57 = vsub.f32 %v11500_v9, %v11622_v23 }
 0x70d   : > { %s5272_s12 = smul.f32 0.00048828125, %s7547_s11  ;;  %v5281_v5 = vsub.f32 %v11520_v54, %v11622_v23  ;;  %v5282_v49 = vsub.f32 %v11515_v31, %v11622_v23  ;;  %v5283_v4 = vsub.f32 %v11534_v38, %v11622_v23  ;;  %v5284_v22 = vsub.f32 %v11529_v6, %v11622_v23 }
 0x70e   : > { %v5285_v25 = vsub.f32 %v12542_v41, %v11622_v23  ;;  %v5286_v55 = vsub.f32 %v12543_v17, %v11622_v23  ;;  %v5287_v9 = vsub.f32 %v12544_v26, %v11622_v23  ;;  %v5288_v54 = vsub.f32 %v12545_v11, %v11622_v23 }
 0x70f   : > { %s5274_s13 = ssub.f32 %s5272_s12, %s5273_s9  ;;  %v5289_v31 = vsub.f32 %v11252_v32, %v11622_v23  ;;  %v5290_v38 = vsub.f32 %v11255_v1, %v11622_v23  ;;  %v5291_v6 = vsub.f32 %v11258_v45, %v11622_v23  ;;  %v5292_v41 = vsub.f32 %v11261_v16, %v11622_v23  ;;  %s245_s12 = sand.u32 1, %s7752_s19  }
 0x710   : > { %v5293_v17 = vsub.f32 %v11264_v50, %v11622_v23  ;;  %v5294_v26 = vsub.f32 %v11277_v48, %v11622_v23  ;;  %v5295_v11 = vsub.f32 %v11290_v37, %v11622_v23  ;;  %v5296_v32 = vsub.f32 %v11304_v44, %v11622_v23  ;;  %s12191_s6 = scalar_lea.sflag [#allocation6], %s245_s12 }
 0x711   : > { %s5275_s14 = smax.f32 %s7768_s16, %s5274_s13  ;;  %v5297_v1 = vsub.f32 %v11318_v63, %v11622_v23  ;;  %v5298_v45 = vsub.f32 %v11332_v3, %v11622_v23  ;;  %v5299_v16 = vsub.f32 %v11346_v53, %v11622_v23  ;;  %v5300_v48 = vsub.f32 %v11360_v43, %v11622_v23  ;;  %v11680_v63 = vld [vmem:[%s12236_s4] sm:$0xff]  ;;  %s6104_s13 = sshll.u32 %s245_s12, 8 }
 0x712   : > { %s5309_s15 = sadd.f32 1e-05, %s5275_s14  ;;  %v5301_v37 = vsub.f32 %v11374_v12, %v11622_v23  ;;  %v5302_v44 = vsub.f32 %v11388_v47, %v11622_v23  ;;  %v5303_v53 = vsub.f32 %v11402_v24, %v11622_v23  ;;  %v5304_v43 = vsub.f32 %v11416_v19, %v11622_v23  ;;  %v12567_v24 = vld [vmem:[#allocation46_spill] sm:$0xff]  ;;  %s12130_s14 = scalar_lea.vmem [#allocation9], %s6104_s13 }
 0x713   : > { %v5305_v12 = vsub.f32 %v11430_v10, %v11622_v23  ;;  %v5306_v47 = vsub.f32 %v11444_v46, %v11622_v23  ;;  %v5307_v13 = vsub.f32 %v11453_v56, %v11622_v23  ;;  %v5308_v34 = vsub.f32 %v11469_v15, %v11622_v23  ;;  %v12564_v46 = vld [vmem:[#allocation41_spill] sm:$0xff]  ;;  %v12565_v10 = vld [vmem:[#allocation44_spill] sm:$0xff] }
 0x714   : > { %v5310_v58 = vstv %s5309_s15  ;;  %s6113_s15 = sshll.u32 %s7823_s22, 12 }
 0x715   : > { %7625 = vrsqrt.f32 %v5310_v58  ;;  %s12169_s23 = scalar_lea.hbm %s12237_s5, %s6113_s15 }
 0x71f   : > { %v7626_v28 = vpop.eup %7625 }
 0x720   : > { %7548 = vpush %v7626_v28 }
 0x721   : > { %7550 = vpush %v5774_v62 }
 0x722   : > { %7552 = vpush %v5785_v27 }
 0x751   : > { %s7549_s17 = spop %7548 }
 0x752   : > { %v5313_v50 = vstv %s7549_s17  ;;  %s7551_s7 = spop %7550  ;;  %s6012_s17 = sshll.u32 %s12130_s14, 4  ;;  %s12179_s17 = int_to_ptr.vmem [resolvable:$true] %s6012_s17 }
 0x753   : > { %v5314_v3 = vmul.f32 %v11680_v63, %v5313_v50  ;;  %s11683_s30 = smul.f32 0.00048828125, %s7551_s7  ;;  %s7553_s8 = spop %7552  ;;  %v12548_v50 = vld [vmem:[#allocation30_spill] sm:$0xff] }
 0x754   : > { %s5787_s25 = smul.f32 0.00048828125, %s7553_s8  ;;  %s7769_s8 = smov [#allocation9]  }
 0x755   : > { %v5318_v40 = vrot.slane %v5314_v3, %v5317_v52  ;;  %v11698_v61 = vstv %s11683_s30  ;;  %s5788_s10 = smul.f32 %s11683_s30, %s11683_s30  ;;  %s7690_s30 = scalar_lea.vmem %s12179_s17, 4096 }
 0x756   : > { %p7691_p10 = scmp.ne.s32.totalorder %s12179_s17, %s7690_s30 }
 0x757   : > { %v11708_v7 = vmul.f32 %v5318_v40, %v5277_v59  ;;  %v11710_v56 = vmul.f32 %v5318_v40, %v5278_v14  ;;  %v11712_v15 = vmul.f32 %v5318_v40, %v5279_v8  ;;  %v11714_v0 = vmul.f32 %v5318_v40, %v5280_v57  ;;  %s5789_s26 = ssub.f32 %s5787_s25, %s5788_s10  ;;  %s7694_s10 = sshll.u32 %s7769_s8, 4  ;;  %s7695_s10 = int_to_ptr.vmem [resolvable:$false] %s7694_s10 }
 0x758   : > { %v11716_v58 = vmul.f32 %v5318_v40, %v5281_v5  ;;  %v11718_v20 = vmul.f32 %v5318_v40, %v5282_v49  ;;  %v11720_v18 = vmul.f32 %v5318_v40, %v5283_v4  ;;  %v11722_v30 = vmul.f32 %v5318_v40, %v5284_v22  ;;  %p7692_p2 = pnand %p7691_p10, %p12644_p1  ;;  %s7696_s25 = scalar_lea.vmem %s7695_s10, 8192 }
 0x759   : > { %v11724_v60 = vmul.f32 %v5318_v40, %v5285_v25  ;;  %v11726_v28 = vmul.f32 %v5318_v40, %v5286_v55  ;;  %v11728_v62 = vmul.f32 %v5318_v40, %v5287_v9  ;;  %v11730_v27 = vmul.f32 %v5318_v40, %v5288_v54  ;;  %s5790_s9 = smax.f32 %s7768_s16, %s5789_s26  ;;  %p7697_p4 = scmp.lt.s32.totalorder %s12179_s17, %s7695_s10 }
 0x75a   : > { %v11732_v23 = vmul.f32 %v5318_v40, %v5289_v31  ;;  %v11734_v52 = vmul.f32 %v5318_v40, %v5290_v38  ;;  %v11736_v59 = vmul.f32 %v5318_v40, %v5291_v6  ;;  %v11738_v14 = vmul.f32 %v5318_v40, %v5292_v41  ;;  %s5824_s16 = sadd.f32 1e-05, %s5790_s9  ;;  %p7693_p3 = pneg %p7692_p2 }
 0x75b   : > { %v11740_v8 = vmul.f32 %v5318_v40, %v5293_v17  ;;  %v11742_v57 = vmul.f32 %v5318_v40, %v5294_v26  ;;  %v11744_v5 = vmul.f32 %v5318_v40, %v5295_v11  ;;  %v11746_v49 = vmul.f32 %v5318_v40, %v5296_v32  ;;  %p7698_p7 = scmp.lt.s32.totalorder %s7696_s25, %s7690_s30 }
 0x75c   : > { %v11748_v4 = vmul.f32 %v5318_v40, %v5297_v1  ;;  %v11750_v22 = vmul.f32 %v5318_v40, %v5298_v45  ;;  %v11752_v25 = vmul.f32 %v5318_v40, %v5299_v16  ;;  %v11754_v55 = vmul.f32 %v5318_v40, %v5300_v48  ;;  %v12547_v1 = vld [vmem:[#allocation19_spill] sm:$0xff]  ;;  %v12568_v48 = vld [vmem:[#allocation45_spill] sm:$0xff] }
 0x75d   : > { %v11756_v9 = vmul.f32 %v5318_v40, %v5301_v37  ;;  %v11758_v54 = vmul.f32 %v5318_v40, %v5302_v44  ;;  %v11760_v31 = vmul.f32 %v5318_v40, %v5303_v53  ;;  %v11762_v38 = vmul.f32 %v5318_v40, %v5304_v43  ;;  %v12549_v44 = vld [vmem:[#allocation33_spill] sm:$0xff]  ;;  %v12550_v53 = vld [vmem:[#allocation31_spill] sm:$0xff]  ;;  %v12569_v37 = vld [vmem:[#allocation48_spill] sm:$0xff]  ;;  %p7699_p8 = por %p7698_p7, %p7697_p4 }
 0x75e   : > { %v11764_v6 = vmul.f32 %v5318_v40, %v5305_v12  ;;  %v11766_v41 = vmul.f32 %v5318_v40, %v5306_v47  ;;  %v11768_v17 = vmul.f32 %v5318_v40, %v5307_v13  ;;  %v11770_v26 = vmul.f32 %v5318_v40, %v5308_v34  ;;  %v12551_v12 = vld [vmem:[#allocation34_spill] sm:$0xff]  ;;  %v12552_v13 = vld [vmem:[#allocation32_spill] sm:$0xff] }
 0x75f   : > { %v5825_v40 = vstv %s5824_s16  ;;  %v5353_v47 = vsub.s32 3, %v12546_v21  ;;  %v5868_v34 = vsub.s32 5, %v12546_v21  ;;  %p7700_p11 = pnand %p7699_p8, %p7693_p3 }
 0x760   : > { %7627 = vrsqrt.f32 %v5825_v40 }
 0x761   : > { %v5354_v19 = vrot.slane %v11680_v63, %v5353_v47  ;;  %v11835_v16 = vrot.slane %v11680_v63, %v5868_v34 }
 0x763   : > { %v11838_v45 = vadd.f32 %v5354_v19, %v11708_v7  ;;  %v11841_v32 = vadd.f32 %v5354_v19, %v11710_v56  ;;  %v11844_v11 = vadd.f32 %v5354_v19, %v11712_v15  ;;  %v11848_v40 = vadd.f32 %v5354_v19, %v11714_v0 }
 0x764   : > { %v11851_v3 = vadd.f32 %v5354_v19, %v11716_v58  ;;  %v11854_v47 = vadd.f32 %v5354_v19, %v11718_v20  ;;  %v11857_v7 = vadd.f32 %v5354_v19, %v11720_v18  ;;  %v11860_v56 = vadd.f32 %v5354_v19, %v11722_v30 }
 0x765   : > { %v11863_v15 = vadd.f32 %v5354_v19, %v11724_v60  ;;  %v11869_v0 = vadd.f32 %v5354_v19, %v11728_v62  ;;  %v11872_v58 = vadd.f32 %v5354_v19, %v11730_v27  ;;  %v11875_v20 = vadd.f32 %v5354_v19, %v11732_v23 }
 0x766   : > { %v11878_v18 = vadd.f32 %v5354_v19, %v11734_v52  ;;  %v11881_v30 = vadd.f32 %v5354_v19, %v11736_v59  ;;  %v11884_v60 = vadd.f32 %v5354_v19, %v11738_v14  ;;  %v11890_v62 = vadd.f32 %v5354_v19, %v11742_v57 }
 0x767   : > { %v11893_v23 = vadd.f32 %v5354_v19, %v11744_v5  ;;  %v11896_v52 = vadd.f32 %v5354_v19, %v11746_v49  ;;  %v11899_v59 = vadd.f32 %v5354_v19, %v11748_v4  ;;  %v11903_v14 = vadd.f32 %v5354_v19, %v11750_v22 }
 0x768   : > { %v11909_v57 = vadd.f32 %v5354_v19, %v11754_v55  ;;  %v11912_v5 = vadd.f32 %v5354_v19, %v11756_v9  ;;  %v11915_v49 = vadd.f32 %v5354_v19, %v11758_v54  ;;  %v11918_v4 = vadd.f32 %v5354_v19, %v11760_v31 }
 0x769   : > { %12571 = vst [vmem:[#allocation26_spill] sm:$0xff] %v11893_v23  ;;  %12572 = vst [vmem:[#allocation22_spill] sm:$0xff] %v11896_v52  ;;  %v11930_v55 = vadd.f32 %v5354_v19, %v11768_v17  ;;  %v11933_v9 = vadd.f32 %v5354_v19, %v11770_v26  ;;  %v12585_v54 = vsub.f32 %v11270_v35, %v11698_v61  ;;  %v12628_v52 = vld [vmem:[#allocation47_spill] sm:$0xff] }
 0x76a   : > { %v7628_v43 = vpop.eup %7627  ;;  %12573 = vst [vmem:[#allocation25_spill] sm:$0xff] %v11899_v59  ;;  %12574 = vst [vmem:[#allocation15_spill] sm:$0xff] %v11903_v14  ;;  %v12590_v35 = vsub.f32 %v11292_v36, %v11698_v61  ;;  %v12595_v36 = vsub.f32 %v12549_v44, %v11698_v61  ;;  %v12619_v14 = vld [vmem:[#allocation42_spill] sm:$0xff]  ;;  %v12623_v59 = vld [vmem:[#allocation43_spill] sm:$0xff] }
 0x76b   : > { %7554 = vpush %v7628_v43  ;;  %v5832_v43 = vsub.s32 4, %v12546_v21  ;;  %v11866_v21 = vadd.f32 %v5354_v19, %v11726_v28  ;;  %v11887_v28 = vadd.f32 %v5354_v19, %v11740_v8  ;;  %v11906_v8 = vadd.f32 %v5354_v19, %v11752_v25  ;;  %12576 = vst [vmem:[#allocation27_spill] sm:$0xff] %v11909_v57  ;;  %v12615_v57 = vld [vmem:[#allocation18_spill] sm:$0xff] }
 0x76c   : > { %12577 = vst [vmem:[#allocation24_spill] sm:$0xff] %v11912_v5  ;;  %12578 = vst [vmem:[#allocation28_spill] sm:$0xff] %v11915_v49  ;;  %v11927_v25 = vadd.f32 %v5354_v19, %v11766_v41  ;;  %v12588_v41 = vsub.f32 %v11279_v42, %v11698_v61  ;;  %v12593_v42 = vsub.f32 %v12548_v50, %v11698_v61  ;;  %v12611_v49 = vld [vmem:[#allocation23_spill] sm:$0xff]  ;;  %v12613_v5 = vld [vmem:[#allocation20_spill] sm:$0xff] }
 0x76d   : > { %12575 = vst [vmem:[#allocation29_spill] sm:$0xff] %v11906_v8  ;;  %12579 = vst [vmem:[#allocation14_spill] sm:$0xff] %v11918_v4  ;;  %v12598_v50 = vsub.f32 %v12552_v13, %v11698_v61  ;;  %v12609_v4 = vld [vmem:[#allocation40_spill] sm:$0xff]  ;;  %v12617_v8 = vld [vmem:[#allocation21_spill] sm:$0xff] }
 0x76e   : > { %12582 = vst [vmem:[#allocation13_spill] sm:$0xff] %v11927_v25  ;;  %12583 = vst [vmem:[#allocation19_spill] sm:$0xff] %v11930_v55  ;;  %v12601_v55 = vld [vmem:[#allocation35_spill] sm:$0xff]  ;;  %v12603_v25 = vld [vmem:[#allocation38_spill] sm:$0xff] }
 0x76f   : > { %12584 = vst [vmem:[#allocation30_spill] sm:$0xff] %v11933_v9  ;;  %v12599_v9 = vld [vmem:[#allocation37_spill] sm:$0xff]  ;;  %v12602_v44 = vsub.f32 %v12601_v55, %v11698_v61  ;;  %v12612_v55 = vsub.f32 %v12611_v49, %v11698_v61  ;;  %v12621_v49 = vsub.f32 %v12564_v46, %v11698_v61  ;;  %v12627_v46 = vsub.f32 %v12569_v37, %v11698_v61 }
 0x79c   : > { %s7555_s11 = spop %7554 }
 0x79d   : > { %v5828_v27 = vstv %s7555_s11 }
 0x79e   : > { %v5829_v34 = vmul.f32 %v11680_v63, %v5828_v27  ;;  %v11921_v63 = vadd.f32 %v5354_v19, %v11762_v38  ;;  %v11924_v27 = vadd.f32 %v5354_v19, %v11764_v6  ;;  %v12586_v38 = vsub.f32 %v11266_v29, %v11698_v61 }
 0x79f   : > { %v12587_v6 = vsub.f32 %v11281_v51, %v11698_v61  ;;  %v12589_v19 = vsub.f32 %v11295_v2, %v11698_v61  ;;  %v12591_v29 = vsub.f32 %v12547_v1, %v11698_v61  ;;  %v12592_v51 = vsub.f32 %v11306_v39, %v11698_v61 }
 0x7a0   : > { %12580 = vst [vmem:[#allocation17_spill] sm:$0xff] %v11921_v63  ;;  %v5833_v22 = vrot.slane %v5829_v34, %v5832_v43  ;;  %12581 = vst [vmem:[#allocation16_spill] sm:$0xff] %v11924_v27  ;;  %v12594_v2 = vsub.f32 %v11320_v33, %v11698_v61  ;;  %v12596_v1 = vsub.f32 %v12550_v53, %v11698_v61  ;;  %v12605_v27 = vld [vmem:[#allocation36_spill] sm:$0xff]  ;;  %v12607_v63 = vld [vmem:[#allocation39_spill] sm:$0xff] }
 0x7a1   : > { %v12597_v39 = vsub.f32 %v12551_v12, %v11698_v61  ;;  %v12600_v33 = vsub.f32 %v12599_v9, %v11698_v61  ;;  %v12604_v53 = vsub.f32 %v12603_v25, %v11698_v61  ;;  %v12606_v12 = vsub.f32 %v12605_v27, %v11698_v61 }
 0x7a2   : > { %v5834_v31 = vmul.f32 %v5833_v22, %v12585_v54  ;;  %v5835_v43 = vmul.f32 %v5833_v22, %v12586_v38  ;;  %v5836_v34 = vmul.f32 %v5833_v22, %v12587_v6  ;;  %v5837_v17 = vmul.f32 %v5833_v22, %v12588_v41 }
 0x7a3   : > { %v5838_v26 = vmul.f32 %v5833_v22, %v12589_v19  ;;  %v5839_v54 = vmul.f32 %v5833_v22, %v12590_v35  ;;  %v5840_v38 = vmul.f32 %v5833_v22, %v12591_v29  ;;  %v5841_v6 = vmul.f32 %v5833_v22, %v12592_v51 }
 0x7a4   : > { %v5842_v41 = vmul.f32 %v5833_v22, %v12593_v42  ;;  %v5843_v19 = vmul.f32 %v5833_v22, %v12594_v2  ;;  %v5844_v35 = vmul.f32 %v5833_v22, %v12595_v36  ;;  %v5845_v29 = vmul.f32 %v5833_v22, %v12596_v1 }
 0x7a5   : > { %v5846_v51 = vmul.f32 %v5833_v22, %v12597_v39  ;;  %v5847_v42 = vmul.f32 %v5833_v22, %v12598_v50  ;;  %v5848_v2 = vmul.f32 %v5833_v22, %v12600_v33  ;;  %v5849_v36 = vmul.f32 %v5833_v22, %v12602_v44 }
 0x7a6   : > { %v5850_v1 = vmul.f32 %v5833_v22, %v12604_v53  ;;  %v5851_v39 = vmul.f32 %v5833_v22, %v12606_v12  ;;  %v12608_v13 = vsub.f32 %v12607_v63, %v11698_v61  ;;  %v12610_v9 = vsub.f32 %v12609_v4, %v11698_v61 }
 0x7a7   : > { %v5854_v44 = vmul.f32 %v5833_v22, %v12612_v55  ;;  %v12614_v25 = vsub.f32 %v12613_v5, %v11698_v61  ;;  %v12616_v27 = vsub.f32 %v12615_v57, %v11698_v61  ;;  %v12618_v63 = vsub.f32 %v12617_v8, %v11698_v61 }
 0x7a8   : > { %v5852_v50 = vmul.f32 %v5833_v22, %v12608_v13  ;;  %v5853_v33 = vmul.f32 %v5833_v22, %v12610_v9  ;;  %v12620_v4 = vsub.f32 %v12619_v14, %v11698_v61  ;;  %v5859_v55 = vmul.f32 %v5833_v22, %v12621_v49 }
 0x7a9   : > { %v5855_v53 = vmul.f32 %v5833_v22, %v12614_v25  ;;  %v5856_v12 = vmul.f32 %v5833_v22, %v12616_v27  ;;  %v5857_v13 = vmul.f32 %v5833_v22, %v12618_v63  ;;  %v12622_v5 = vsub.f32 %v12565_v10, %v11698_v61 }
 0x7aa   : > { %v5858_v9 = vmul.f32 %v5833_v22, %v12620_v4  ;;  %v12624_v57 = vsub.f32 %v12623_v59, %v11698_v61  ;;  %v12625_v8 = vsub.f32 %v12567_v24, %v11698_v61  ;;  %v12626_v14 = vsub.f32 %v12568_v48, %v11698_v61 }
 0x7ab   : > { %v5860_v25 = vmul.f32 %v5833_v22, %v12622_v5  ;;  %v5864_v49 = vmul.f32 %v5833_v22, %v12627_v46  ;;  %v12629_v10 = vsub.f32 %v12628_v52, %v11698_v61  ;;  %v5870_v23 = vadd.f32 %v11835_v16, %v5834_v31 }
 0x7ac   : > { %v5861_v27 = vmul.f32 %v5833_v22, %v12624_v57  ;;  %v5862_v63 = vmul.f32 %v5833_v22, %v12625_v8  ;;  %v5863_v4 = vmul.f32 %v5833_v22, %v12626_v14  ;;  %v5871_v59 = vadd.f32 %v11835_v16, %v5835_v43 }
 0x7ad   : > { %v5865_v5 = vmul.f32 %v5833_v22, %v12629_v10  ;;  %v5872_v57 = vadd.f32 %v11835_v16, %v5836_v34  ;;  %v5873_v24 = vadd.f32 %v11835_v16, %v5837_v17  ;;  %v5874_v8 = vadd.f32 %v11835_v16, %v5838_v26 }
 0x7ae   : > { %v5875_v48 = vadd.f32 %v11835_v16, %v5839_v54  ;;  %v5876_v14 = vadd.f32 %v11835_v16, %v5840_v38  ;;  %v5877_v37 = vadd.f32 %v11835_v16, %v5841_v6  ;;  %v5878_v46 = vadd.f32 %v11835_v16, %v5842_v41 }
 0x7af   : > { %v5879_v61 = vadd.f32 %v11835_v16, %v5843_v19  ;;  %v5880_v52 = vadd.f32 %v11835_v16, %v5844_v35  ;;  %v5881_v22 = vadd.f32 %v11835_v16, %v5845_v29  ;;  %v5882_v31 = vadd.f32 %v11835_v16, %v5846_v51 }
 0x7b0   : > { %v5883_v43 = vadd.f32 %v11835_v16, %v5847_v42  ;;  %v5884_v34 = vadd.f32 %v11835_v16, %v5848_v2  ;;  %v5885_v17 = vadd.f32 %v11835_v16, %v5849_v36  ;;  %v5886_v26 = vadd.f32 %v11835_v16, %v5850_v1 }
 0x7b1   : > { %v5887_v54 = vadd.f32 %v11835_v16, %v5851_v39  ;;  %v5888_v38 = vadd.f32 %v11835_v16, %v5852_v50  ;;  %v5889_v6 = vadd.f32 %v11835_v16, %v5853_v33  ;;  %v5890_v41 = vadd.f32 %v11835_v16, %v5854_v44 }
 0x7b2   : > { %v5891_v19 = vadd.f32 %v11835_v16, %v5855_v53  ;;  %v5892_v35 = vadd.f32 %v11835_v16, %v5856_v12  ;;  %v5893_v29 = vadd.f32 %v11835_v16, %v5857_v13  ;;  %v5894_v51 = vadd.f32 %v11835_v16, %v5858_v9 }
 0x7b3   : > { %v5895_v42 = vadd.f32 %v11835_v16, %v5859_v55  ;;  %v5896_v2 = vadd.f32 %v11835_v16, %v5860_v25  ;;  %v5897_v36 = vadd.f32 %v11835_v16, %v5861_v27  ;;  %v5898_v1 = vadd.f32 %v11835_v16, %v5862_v63 }
 0x7b4   : > { %v5899_v39 = vadd.f32 %v11835_v16, %v5863_v4  ;;  %v5900_v50 = vadd.f32 %v11835_v16, %v5864_v49  ;;  %v5901_v33 = vadd.f32 %v11835_v16, %v5865_v5  ;;  %v5902_v44 = vadd.f32 %v5870_v23, %v11838_v45  ;;  %v12637_v5 = vld [vmem:[#allocation28_spill] sm:$0xff] }
 0x7b5   : > { %v5903_v53 = vadd.f32 %v5871_v59, %v11841_v32  ;;  %v5904_v12 = vadd.f32 %v5872_v57, %v11844_v11  ;;  %v5905_v13 = vadd.f32 %v5873_v24, %v11848_v40  ;;  %v5906_v9 = vadd.f32 %v5874_v8, %v11851_v3  ;;  %v12638_v57 = vld [vmem:[#allocation14_spill] sm:$0xff]  ;;  %v12639_v8 = vld [vmem:[#allocation17_spill] sm:$0xff] }
 0x7b6   : > { %v5907_v55 = vadd.f32 %v5875_v48, %v11854_v47  ;;  %v5908_v25 = vadd.f32 %v5876_v14, %v11857_v7  ;;  %v5909_v27 = vadd.f32 %v5877_v37, %v11860_v56  ;;  %v5910_v16 = vadd.f32 %v5878_v46, %v11863_v15  ;;  %v12630_v15 = vld [vmem:[#allocation26_spill] sm:$0xff]  ;;  %v12640_v14 = vld [vmem:[#allocation16_spill] sm:$0xff]  ;;  %v12641_v46 = vld [vmem:[#allocation13_spill] sm:$0xff] }
 0x7b7   : > { %v5911_v45 = vadd.f32 %v5879_v61, %v11866_v21  ;;  %v5912_v32 = vadd.f32 %v5880_v52, %v11869_v0  ;;  %v5913_v23 = vadd.f32 %v5881_v22, %v11872_v58  ;;  %v5914_v11 = vadd.f32 %v5882_v31, %v11875_v20  ;;  %v12631_v0 = vld [vmem:[#allocation22_spill] sm:$0xff]  ;;  %v12632_v20 = vld [vmem:[#allocation25_spill] sm:$0xff]  ;;  %v12642_v52 = vld [vmem:[#allocation19_spill] sm:$0xff] }
 0x7b8   : > { %v5915_v40 = vadd.f32 %v5883_v43, %v11878_v18  ;;  %v5916_v3 = vadd.f32 %v5884_v34, %v11881_v30  ;;  %v5917_v47 = vadd.f32 %v5885_v17, %v11884_v60  ;;  %v12083_v7 = vadd.f32 %v5886_v26, %v11887_v28  ;;  %v12633_v30 = vld [vmem:[#allocation15_spill] sm:$0xff]  ;;  %v12634_v60 = vld [vmem:[#allocation29_spill] sm:$0xff]  ;;  %v12643_v31 = vld [vmem:[#allocation30_spill] sm:$0xff] }
 0x7b9   : > { %v12086_v56 = vadd.f32 %v5887_v54, %v11890_v62  ;;  %v12089_v21 = vadd.f32 %v5888_v38, %v12630_v15  ;;  %v12092_v58 = vadd.f32 %v5889_v6, %v12631_v0  ;;  %v12095_v18 = vadd.f32 %v5890_v41, %v12632_v20  ;;  %v12635_v28 = vld [vmem:[#allocation27_spill] sm:$0xff]  ;;  %v12636_v62 = vld [vmem:[#allocation24_spill] sm:$0xff] }
 0x7ba   : > { %v12098_v63 = vadd.f32 %v5891_v19, %v12633_v30  ;;  %v12101_v4 = vadd.f32 %v5892_v35, %v12634_v60  ;;  %v12104_v49 = vadd.f32 %v5893_v29, %v12635_v28  ;;  %v12107_v10 = vadd.f32 %v5894_v51, %v12636_v62 }
 0x7bb   : > { %v12110_v59 = vadd.f32 %v5895_v42, %v12637_v5  ;;  %v12113_v24 = vadd.f32 %v5896_v2, %v12638_v57  ;;  %v12116_v48 = vadd.f32 %v5897_v36, %v12639_v8  ;;  %v12119_v37 = vadd.f32 %v5898_v1, %v12640_v14 }
 0x7bc   : > { %v12122_v61 = vadd.f32 %v5899_v39, %v12641_v46  ;;  %v12125_v22 = vadd.f32 %v5900_v50, %v12642_v52  ;;  %v12128_v43 = vadd.f32 %v5901_v33, %v12643_v31  ;;  %v5934_v34 = vmax.f32 %v5902_v44, 0.0 }
 0x7bd   : > { %v5935_v17 = vmax.f32 %v5903_v53, 0.0  ;;  %v5936_v26 = vmax.f32 %v5904_v12, 0.0  ;;  %v5937_v54 = vmax.f32 %v5905_v13, 0.0  ;;  %v5938_v38 = vmax.f32 %v5906_v9, 0.0 }
 0x7be   : > { %v5939_v6 = vmax.f32 %v5907_v55, 0.0  ;;  %v5940_v41 = vmax.f32 %v5908_v25, 0.0  ;;  %v5941_v19 = vmax.f32 %v5909_v27, 0.0  ;;  %v5942_v35 = vmax.f32 %v5910_v16, 0.0  ;;  %5966 = vst [vmem:[%s12130_s14] sm:$0xff] %v5934_v34 }
 0x7bf   : > { %v5943_v29 = vmax.f32 %v5911_v45, 0.0  ;;  %v5944_v51 = vmax.f32 %v5912_v32, 0.0  ;;  %v5945_v42 = vmax.f32 %v5913_v23, 0.0  ;;  %5967 = vst [vmem:[%s12130_s14 + $0x8] sm:$0xff] %v5935_v17  ;;  %5968 = vst [vmem:[%s12130_s14 + $0x10] sm:$0xff] %v5936_v26  ;;  %v5946_v2 = vmax.f32 %v5914_v11, 0.0 }
 0x7c0   : > { %5969 = vst [vmem:[%s12130_s14 + $0x18] sm:$0xff] %v5937_v54  ;;  %v5947_v36 = vmax.f32 %v5915_v40, 0.0  ;;  %v5948_v1 = vmax.f32 %v5916_v3, 0.0  ;;  %v5949_v39 = vmax.f32 %v5917_v47, 0.0  ;;  %5970 = vst [vmem:[%s12130_s14 + $0x20] sm:$0xff] %v5938_v38  ;;  %v5950_v50 = vmax.f32 %v12083_v7, 0.0 }
 0x7c1   : > { %5971 = vst [vmem:[%s12130_s14 + $0x28] sm:$0xff] %v5939_v6  ;;  %5972 = vst [vmem:[%s12130_s14 + $0x30] sm:$0xff] %v5940_v41  ;;  %v5951_v33 = vmax.f32 %v12086_v56, 0.0  ;;  %v5952_v44 = vmax.f32 %v12089_v21, 0.0  ;;  %v5953_v53 = vmax.f32 %v12092_v58, 0.0  ;;  %v5954_v12 = vmax.f32 %v12095_v18, 0.0 }
 0x7c2   : > { %5973 = vst [vmem:[%s12130_s14 + $0x38] sm:$0xff] %v5941_v19  ;;  %5974 = vst [vmem:[%s12130_s14 + $0x40] sm:$0xff] %v5942_v35  ;;  %v5955_v13 = vmax.f32 %v12098_v63, 0.0  ;;  %v5956_v9 = vmax.f32 %v12101_v4, 0.0  ;;  %v5957_v55 = vmax.f32 %v12104_v49, 0.0  ;;  %v5958_v25 = vmax.f32 %v12107_v10, 0.0 }
 0x7c3   : > { %5975 = vst [vmem:[%s12130_s14 + $0x48] sm:$0xff] %v5943_v29  ;;  %5976 = vst [vmem:[%s12130_s14 + $0x50] sm:$0xff] %v5944_v51  ;;  %v5959_v27 = vmax.f32 %v12110_v59, 0.0  ;;  %v5960_v16 = vmax.f32 %v12113_v24, 0.0  ;;  %v5961_v45 = vmax.f32 %v12116_v48, 0.0  ;;  %v5962_v32 = vmax.f32 %v12119_v37, 0.0 }
 0x7c4   : > { %5977 = vst [vmem:[%s12130_s14 + $0x58] sm:$0xff] %v5945_v42  ;;  %5978 = vst [vmem:[%s12130_s14 + $0x60] sm:$0xff] %v5946_v2  ;;  %v5963_v23 = vmax.f32 %v12122_v61, 0.0  ;;  %v5964_v11 = vmax.f32 %v12125_v22, 0.0  ;;  %v5965_v40 = vmax.f32 %v12128_v43, 0.0 }
 0x7c5   : > { %5979 = vst [vmem:[%s12130_s14 + $0x68] sm:$0xff] %v5947_v36  ;;  %5980 = vst [vmem:[%s12130_s14 + $0x70] sm:$0xff] %v5948_v1 }
 0x7c6   : > { %5981 = vst [vmem:[%s12130_s14 + $0x78] sm:$0xff] %v5949_v39  ;;  %5982 = vst [vmem:[%s12130_s14 + $0x80] sm:$0xff] %v5950_v50 }
 0x7c7   : > { %5983 = vst [vmem:[%s12130_s14 + $0x88] sm:$0xff] %v5951_v33  ;;  %5984 = vst [vmem:[%s12130_s14 + $0x90] sm:$0xff] %v5952_v44 }
 0x7c8   : > { %5985 = vst [vmem:[%s12130_s14 + $0x98] sm:$0xff] %v5953_v53  ;;  %5986 = vst [vmem:[%s12130_s14 + $0xa0] sm:$0xff] %v5954_v12 }
 0x7c9   : > { %5987 = vst [vmem:[%s12130_s14 + $0xa8] sm:$0xff] %v5955_v13  ;;  %5988 = vst [vmem:[%s12130_s14 + $0xb0] sm:$0xff] %v5956_v9 }
 0x7ca   : > { %5989 = vst [vmem:[%s12130_s14 + $0xb8] sm:$0xff] %v5957_v55  ;;  %5990 = vst [vmem:[%s12130_s14 + $0xc0] sm:$0xff] %v5958_v25 }
 0x7cb   : > { %5991 = vst [vmem:[%s12130_s14 + $0xc8] sm:$0xff] %v5959_v27  ;;  %5992 = vst [vmem:[%s12130_s14 + $0xd0] sm:$0xff] %v5960_v16 }
 0x7cc   : > { %5993 = vst [vmem:[%s12130_s14 + $0xd8] sm:$0xff] %v5961_v45  ;;  %5994 = vst [vmem:[%s12130_s14 + $0xe0] sm:$0xff] %v5962_v32 }
 0x7cd   : > { %5995 = vst [vmem:[%s12130_s14 + $0xe8] sm:$0xff] %v5963_v23  ;;  %5996 = vst [vmem:[%s12130_s14 + $0xf0] sm:$0xff] %v5964_v11 }
 0x7ce   : > { %5997 = vst [vmem:[%s12130_s14 + $0xf8] sm:$0xff] %v5965_v40 }
 0x7cf   : > { %7703 = shalt.err (!%p7700_p11)
}
 0x7d0   : > { %s7704_s26 = scalar_lea.hbm %s12169_s23, 4096  ;;  %s7708_s11 = scalar_lea.hbm %s12237_s5, 8192 }
 0x7d1   : > { %p7705_p13 = scmp.ne.s32.totalorder %s12169_s23, %s7704_s26  ;;  %p7709_p6 = scmp.lt.u32.totalorder %s12169_s23, %s12237_s5 }
 0x7d2   : > { %p7710_p9 = scmp.lt.u32.totalorder %s7708_s11, %s7704_s26  ;;  %p7712_p10 = scmp.lt.u32.totalorder %s7704_s26, %s12169_s23 }
 0x7d3   : > { %p7706_p5 = pnand %p7705_p13, %p12644_p1 }
 0x7d4   : > { %p7711_p12 = por %p7710_p9, %p7709_p6 }
 0x7d5   : > { %p7707_p0 = pneg %p7706_p5 }
 0x7d6   : > { %p7713_p2 = por %p7712_p10, %p7711_p12 }
 0x7d8   : > { %p7714_p3 = pnand %p7713_p2, %p7707_p0 }
 0x7da   : > { %7717 = shalt.err (!%p7714_p3)
}
 0x7db   : > { %s7770_s14 = smov 128   ;;  %s7771_s15 = smov 8  }
 0x7dc   : > { %7564 = dma.vmem_to_hbm [thread:$0]  (%p12644_p1), %s12179_s17, 4096, %s12169_s23, %s12191_s6, %s7770_s14, %s7770_s14, %s7771_s15  }
 0x7dd PF: > { %p7581_p4 = scmp.ge.s32.totalorder %s7760_s21, 2  ;;  %s6027_s22 = sand.u32 1, %s7748_s18  }
 0x7de   : > { %p12645_p7 = scmp.ne.s32.totalorder %s12365_s29, 0  ;;  %s6028_s7 = scalar_lea.sflag [#allocation6], %s6027_s22 }
 0x7e0   : > { %p7574_p8 = pnand %p7581_p4, %p12645_p7 }
 0x7e2   : > { %7743 = dma.done.wait (!%p7574_p8), %s6028_s7, 4096  }
 0x7e3   : > { %7745 = vsyncadd (!%p7574_p8), %s6028_s7, 4294963200  ;;  %p17_p11 = scmp.ge.s32.totalorder %s7827_s24, 4   ;;  %s12646_s18 = smov %s7752_s19 }
 0x7e4   : > { %s12647_s19 = smov %s7756_s20  ;;  %s12648_s20 = smov %s7838_s27 }
 0x7e5   : > { %s12649_s21 = smov %s7827_s24  ;;  %19 = sbr.rel (!%p17_p11) target bundleno = 5 (0x5), region = 90 }
 0x7ec   :  { %6033 = vsyncpa [#allocation5], 1 }
 0x7ed   :  { %6035 = vsyncpa [#allocation5 + $0x1], 1 }
 0x7ee   :  { %6036 = vsyncpa [#allocation8], 1 }
 0x7ef   :  { %6037 = vsyncpa [#allocation6], 1 }
 0x7f0   :  { %6039 = vsyncpa [#allocation6 + $0x1], 1 }

</bundles_post_ra>
